<compile_context>
chip_gen: v6e
topology: v6e:2x2x1
jax: 0.10.0
libtpu: 0.0.40
codegen_flags: <defaults>
</compile_context>

<pallas_src>
from functools import lru_cache, partial

import jax
import jax.numpy as jnp
from jax.experimental import pallas as pl
from jax.experimental.pallas import tpu as pltpu

EPS = 1e-5  # PyTorch LayerNorm / GroupNorm default eps


# ---------------------------------------------------------------------------
# wrapper-side constant builders
# ---------------------------------------------------------------------------
def _group_mat(c, groups, n_tok):
    """(C, C) matrix: 1/(group_size*N) on same-group entries, 0 elsewhere."""
    g = jnp.arange(c, dtype=jnp.int32) // (c // groups)
    same = (g[:, None] == g[None, :]).astype(jnp.float32)
    return same * (1.0 / float((c // groups) * n_tok))


def _conv_edge_masks(H, W):
    """(9, H*W) validity mask per 3x3 tap in the flattened (y*W + x) token order."""
    n = jnp.arange(H * W, dtype=jnp.int32)
    yy, xx = n // W, n % W
    rows = []
    for dy in range(3):
        for dx in range(3):
            ys, xs = yy + (dy - 1), xx + (dx - 1)
            rows.append(((ys >= 0) & (ys < H) & (xs >= 0) & (xs < W)).astype(jnp.float32))
    return jnp.stack(rows, axis=0)


@lru_cache(maxsize=1)
def _roll_matches_numpy():
    """One-time probe of pltpu.roll's rotation convention (vs jnp.roll)."""
    try:
        def k(x_ref, o_ref):
            o_ref[...] = pltpu.roll(x_ref[...], 1, 1)

        x = jnp.arange(8 * 128, dtype=jnp.float32).reshape(8, 128)
        y = pl.pallas_call(k, out_shape=jax.ShapeDtypeStruct((8, 128), jnp.float32))(x)
        return bool(jnp.array_equal(y, jnp.roll(x, 1, axis=1)))
    except Exception:  # pragma: no cover - assume numpy convention
        return True


# ---------------------------------------------------------------------------
# in-kernel helpers ((C, N) layout: channels on sublanes, tokens on lanes)
# ---------------------------------------------------------------------------
def _group_norm_cn(x_cn, gmat, gamma_col, beta_col):
    """GroupNorm on a (C, N) tile; gmat is the constant group-averaging matrix."""
    f32 = jnp.float32
    s1 = jnp.sum(x_cn, axis=1, keepdims=True)                                # (C, 1)
    mean_c = jnp.dot(gmat, s1, preferred_element_type=f32)                   # group mean per chan
    d = x_cn - mean_c
    var_c = jnp.dot(gmat, jnp.sum(d * d, axis=1, keepdims=True),             # two-pass variance
                    preferred_element_type=f32)
    return d * jax.lax.rsqrt(var_c + EPS) * gamma_col + beta_col


def _layer_norm_cn(x_cn, gamma_col, beta_col):
    """LayerNorm over the channel (sublane) axis of a (C, N) tile."""
    inv_c = 1.0 / x_cn.shape[0]
    mean = jnp.sum(x_cn, axis=0, keepdims=True) * inv_c                      # (1, N)
    d = x_cn - mean
    var = jnp.sum(d * d, axis=0, keepdims=True) * inv_c
    return d * jax.lax.rsqrt(var + EPS) * gamma_col + beta_col


def _conv3x3_cn(a_cn, w_t, bias_col, cmask_ref, *, W, roll_fwd):
    """3x3 SAME conv in (C, N=H*W) layout: lane-roll taps + one im2col matmul.

    a_cn: (Cin, N) f32.  w_t: (Co, 9*Cin) bf16, tap-major rows (dy*3+dx)*Cin + ci.
    cmask_ref: (9, N) f32 edge-validity masks.
    """
    n_tok = a_cn.shape[1]
    taps = []
    for dy in range(3):
        for dx in range(3):
            off = (dy - 1) * W + (dx - 1)
            if off == 0:
                taps.append(a_cn)                                            # centre tap, no mask
                continue
            shift = (-off) % n_tok if roll_fwd else off % n_tok
            t = dy * 3 + dx
            taps.append(pltpu.roll(a_cn, shift, axis=1) * cmask_ref[t:t + 1, :])
    col = jnp.concatenate(taps, axis=0).astype(jnp.bfloat16)                 # (9*Cin, N)
    return jnp.dot(w_t, col, preferred_element_type=jnp.float32) + bias_col  # (Co, N)


# ---------------------------------------------------------------------------
# fused ResnetBlock kernel (one batch element per grid step)
# ---------------------------------------------------------------------------
def resnet_block_kernel(
    # per-batch data
    x_ref, cond_ref, t_ref,
    # constants / block1
    cmask_ref, gmat1_ref, gn1_g_ref, gn1_b_ref, w1_ref, b1_ref,
    # cross-attention
    ln_g_ref, ln_b_ref, nullkv_ref, wq_ref, wk_ref, wv_ref, wout_ref,
    lno_g_ref, lno_b_ref,
    # block2
    gmat2_ref, gn2_g_ref, gn2_b_ref, w2_ref, b2_ref,
    # time MLP (pre-split scale/shift halves, transposed)
    wts_ref, bts_ref, wtb_ref, btb_ref,
    # residual 1x1 conv
    wr_ref, br_ref,
    # output
    o_ref,
    *, W, heads, dim_head, scale, roll_fwd):
    f32, bf16 = jnp.float32, jnp.bfloat16

    x_cn = x_ref[0].astype(f32)                        # (Cin, N) channels-on-sublanes
    n_tok = x_cn.shape[1]
    inner = heads * dim_head

    # ---- time MLP: SiLU -> Linear; results are (Co, 1) columns ---------------
    t_col = jax.nn.silu(t_ref[0].astype(f32))                                   # (T, 1)
    t_scale = jnp.dot(wts_ref[...], t_col, preferred_element_type=f32) + bts_ref[...]
    t_shift = jnp.dot(wtb_ref[...], t_col, preferred_element_type=f32) + btb_ref[...]

    # ---- block1: GroupNorm -> SiLU -> Conv3x3 --------------------------------
    a1 = jax.nn.silu(_group_norm_cn(x_cn, gmat1_ref[...], gn1_g_ref[...], gn1_b_ref[...]))
    h1 = _conv3x3_cn(a1, w1_ref[...], b1_ref[...], cmask_ref, W=W, roll_fwd=roll_fwd)  # (Co, N)

    # ---- CrossAttention (tokens / KV always on the lane axis) ----------------
    xn = _layer_norm_cn(h1, ln_g_ref[...], ln_b_ref[...]).astype(bf16)          # (Co, N)
    ctx = cond_ref[0].astype(bf16)                                              # (Dc, M)
    q = jnp.dot(wq_ref[...], xn, preferred_element_type=f32) * scale            # (inner, N)
    k = jnp.dot(wk_ref[...], ctx, preferred_element_type=f32)                   # (inner, M)
    v = jnp.dot(wv_ref[...], ctx, preferred_element_type=f32)                   # (inner, M)
    q3 = q.reshape(heads, dim_head, n_tok)
    k3 = k.reshape(heads, dim_head, -1).astype(bf16)
    v3 = v.reshape(heads, dim_head, -1).astype(bf16)

    sim = jnp.einsum('hdm,hdn->hmn', k3, q3.astype(bf16),
                     preferred_element_type=f32)                                # (h, M, N)
    nk = nullkv_ref[:, 0:1].reshape(1, dim_head, 1)
    nv = nullkv_ref[:, 1:2].reshape(1, dim_head, 1)
    sim0 = jnp.sum(q3 * nk, axis=1, keepdims=True)                              # (h, 1, N) null logit

    mx = jnp.maximum(jnp.max(sim, axis=1, keepdims=True), sim0)
    p = jnp.exp(sim - mx)
    p0 = jnp.exp(sim0 - mx)
    inv = pl.reciprocal(jnp.sum(p, axis=1, keepdims=True) + p0, approx=True)
    att = jnp.einsum('hdm,hmn->hdn', v3, p.astype(bf16),
                     preferred_element_type=f32)                                # (h, d, N)
    att = (att + p0 * nv) * inv
    attn_out = jnp.dot(wout_ref[...], att.reshape(inner, n_tok).astype(bf16),
                       preferred_element_type=f32)                              # (Co, N)
    attn_out = _layer_norm_cn(attn_out, lno_g_ref[...], lno_b_ref[...])
    h = h1 + attn_out                                                           # residual around attn

    # ---- block2: GroupNorm -> (scale+1, shift) -> SiLU -> Conv3x3 ------------
    a2 = _group_norm_cn(h, gmat2_ref[...], gn2_g_ref[...], gn2_b_ref[...])
    a2 = jax.nn.silu(a2 * (t_scale + 1.0) + t_shift)
    h2 = _conv3x3_cn(a2, w2_ref[...], b2_ref[...], cmask_ref, W=W, roll_fwd=roll_fwd)

    # ---- residual 1x1 conv + final add ---------------------------------------
    res = jnp.dot(wr_ref[...], x_cn.astype(bf16), preferred_element_type=f32) + br_ref[...]
    o_ref[0] = (h2 + res).astype(o_ref.dtype)                                   # lane-dense (Co, N)


# ---------------------------------------------------------------------------
# wrapper
# ---------------------------------------------------------------------------
def resnet_block(x_nchw, cond, time_emb, params, *, groups, heads, dim_head):
    B, Cin, H, W = x_nchw.shape
    Co = params["w1"].shape[-1]
    M, Dc = cond.shape[1], cond.shape[2]
    T = time_emb.shape[-1]
    N = H * W
    inner = heads * dim_head
    scale = dim_head ** (-0.5)
    f32, bf16 = jnp.float32, jnp.bfloat16

    # lane-dense data layout: tokens (H*W) on lanes, channels on sublanes.
    x_cn = x_nchw.reshape(B, Cin, N)                   # pure reshape of NCHW (free)
    cond_t = jnp.transpose(cond, (0, 2, 1))            # (B, Dc, M)  (tiny)
    t_col = time_emb.reshape(B, T, 1)

    def col(p):                                        # (1, C) -> (C, 1) column
        return jnp.reshape(p, (-1, 1)).astype(f32)

    # parameters pre-transposed so every kernel matmul is (out, K) @ (K, N); bf16 for MXU.
    w1_t = params["w1"].reshape(9 * Cin, Co).T.astype(bf16)      # (Co, 9*Cin)
    w2_t = params["w2"].reshape(9 * Co, Co).T.astype(bf16)       # (Co, 9*Co)
    wq_t = params["wq"].T.astype(bf16)                           # (inner, Co)
    wk_t = params["wk"].T.astype(bf16)                           # (inner, Dc)
    wv_t = params["wv"].T.astype(bf16)                           # (inner, Dc)
    wo_t = params["wout"].T.astype(bf16)                         # (Co, inner)
    wr_t = params["w_r"].T.astype(bf16)                          # (Co, Cin)
    wts_t = params["w_ts"].T.astype(f32)                         # (Co, T)
    wtb_t = params["w_tb"].T.astype(f32)
    nullkv_t = params["null_kv"].T.astype(f32)                   # (dim_head, 2)

    gmat1 = _group_mat(Cin, groups, N)
    gmat2 = _group_mat(Co, groups, N)
    cmask = _conv_edge_masks(H, W)                               # (9, N)

    kernel = partial(resnet_block_kernel, W=W, heads=heads, dim_head=dim_head,
                     scale=scale, roll_fwd=_roll_matches_numpy())

    data_args = (x_cn, cond_t, t_col)
    param_args = (
        cmask, gmat1, col(params["gn1_g"]), col(params["gn1_b"]), w1_t, col(params["b1"]),
        col(params["ln_g"]), col(params["ln_b"]), nullkv_t,
        wq_t, wk_t, wv_t, wo_t, col(params["lno_g"]), col(params["lno_b"]),
        gmat2, col(params["gn2_g"]), col(params["gn2_b"]), w2_t, col(params["b2"]),
        wts_t, col(params["b_ts"]), wtb_t, col(params["b_tb"]),
        wr_t, col(params["b_r"]))

    def run(param_mode):
        def prm(arr):  # constant (per-step-invariant) parameter block
            nd = arr.ndim
            kw = {} if param_mode is None else {"pipeline_mode": param_mode}
            return pl.BlockSpec(arr.shape, lambda b, _n=nd: (0,) * _n, **kw)

        in_specs = [
            pl.BlockSpec((1, Cin, N), lambda b: (b, 0, 0)),       # x   (C, N) per batch
            pl.BlockSpec((1, Dc, M), lambda b: (b, 0, 0)),        # cond^T
            pl.BlockSpec((1, T, 1), lambda b: (b, 0, 0)),         # time_emb column
        ] + [prm(a) for a in param_args]

        return pl.pallas_call(
            kernel,
            out_shape=jax.ShapeDtypeStruct((B, Co, N), x_nchw.dtype),
            grid=(B,),
            in_specs=in_specs,
            out_specs=pl.BlockSpec((1, Co, N), lambda b: (b, 0, 0)),   # lane-dense output
            compiler_params=pltpu.CompilerParams(
                dimension_semantics=("parallel",),
                # below v7x's 64 MiB physical VMEM, above the 16 MiB v5e scoped default
                vmem_limit_bytes=48 * 1024 * 1024),
        )(*data_args, *param_args)

    out = None
    buffered = getattr(pl, "Buffered", None)
    if buffered is not None:
        try:
            # single-buffer the constant parameter blocks (they never re-DMA)
            out = jax.block_until_ready(run(buffered(1)))
        except Exception:
            out = None
    if out is None:
        out = run(None)

    return out.reshape(B, Co, H, W)                    # pure reshape back to NCHW


# ---------------------------------------------------------------------------
# pure-JAX reference mirroring the PyTorch forward (f32 everywhere)
# ---------------------------------------------------------------------------
def _layer_norm_ref(x, gamma, beta):
    mean = jnp.mean(x, axis=-1, keepdims=True)
    var = jnp.mean((x - mean) ** 2, axis=-1, keepdims=True)
    return (x - mean) * jax.lax.rsqrt(var + EPS) * gamma + beta


def resnet_block_ref(x, cond, time_emb, params, *, groups, heads, dim_head):
    B, Cin, H, W = x.shape
    Co = params["w1"].shape[-1]
    inner = heads * dim_head
    scale = dim_head ** (-0.5)

    def group_norm(u, gamma, beta):
        b, c, hh, ww = u.shape
        ug = u.reshape(b, groups, c // groups, hh, ww)
        mean = jnp.mean(ug, axis=(2, 3, 4), keepdims=True)
        var = jnp.mean((ug - mean) ** 2, axis=(2, 3, 4), keepdims=True)
        un = ((ug - mean) / jnp.sqrt(var + EPS)).reshape(b, c, hh, ww)
        return un * gamma.reshape(1, c, 1, 1) + beta.reshape(1, c, 1, 1)

    def conv3x3(u, w9, bias):
        whwio = w9.reshape(3, 3, w9.shape[1], w9.shape[2])
        out = jax.lax.conv_general_dilated(
            u, whwio, window_strides=(1, 1), padding="SAME",
            dimension_numbers=("NCHW", "HWIO", "NCHW"))
        return out + bias.reshape(1, -1, 1, 1)

    # time MLP
    t = jax.nn.silu(time_emb)
    t_scale = t @ params["w_ts"] + params["b_ts"]
    t_shift = t @ params["w_tb"] + params["b_tb"]

    # block1
    h = conv3x3(jax.nn.silu(group_norm(x, params["gn1_g"], params["gn1_b"])),
                params["w1"], params["b1"])

    # cross attention over the (h w) sequence, context = cond
    hseq = h.transpose(0, 2, 3, 1).reshape(B, H * W, Co)
    xn = _layer_norm_ref(hseq, params["ln_g"], params["ln_b"])
    q = xn @ params["wq"]
    k = cond @ params["wk"]
    v = cond @ params["wv"]

    def split(tns):
        b, n, _ = tns.shape
        return tns.reshape(b, n, heads, dim_head).transpose(0, 2, 1, 3)

    q, k, v = split(q), split(k), split(v)
    nk = jnp.broadcast_to(params["null_kv"][0].reshape(1, 1, 1, dim_head),
                          (B, heads, 1, dim_head))
    nv = jnp.broadcast_to(params["null_kv"][1].reshape(1, 1, 1, dim_head),
                          (B, heads, 1, dim_head))
    k = jnp.concatenate([nk, k], axis=2)
    v = jnp.concatenate([nv, v], axis=2)
    sim = jnp.einsum("bhid,bhjd->bhij", q * scale, k)
    attn = jax.nn.softmax(sim, axis=-1)
    o = jnp.einsum("bhij,bhjd->bhid", attn, v)
    o = o.transpose(0, 2, 1, 3).reshape(B, H * W, inner) @ params["wout"]
    o = _layer_norm_ref(o, params["lno_g"], params["lno_b"])
    h = h + o.reshape(B, H, W, Co).transpose(0, 3, 1, 2)

    # block2 with the time scale/shift
    hn = group_norm(h, params["gn2_g"], params["gn2_b"])
    hn = hn * (t_scale[:, :, None, None] + 1.0) + t_shift[:, :, None, None]
    h2 = conv3x3(jax.nn.silu(hn), params["w2"], params["b2"])

    res = jnp.einsum("bchw,co->bohw", x, params["w_r"]) + params["b_r"].reshape(1, -1, 1, 1)
    return h2 + res


if __name__ == "__main__":
    B, Cin, Co = 2, 16, 32
    H = W = 16
    groups = 8
    M, Dc = 8, 24            # cond sequence length / cond_dim
    T = 32                   # time_cond_dim
    heads, dim_head = 4, 16
    inner = heads * dim_head

    key = jax.random.PRNGKey(0)
    keys = iter(jax.random.split(key, 32))

    def rnd(shape, s):
        return s * jax.random.normal(next(keys), shape, dtype=jnp.float32)

    x = jax.random.normal(next(keys), (B, Cin, H, W), dtype=jnp.float32)
    cond = jax.random.normal(next(keys), (B, M, Dc), dtype=jnp.float32)
    time_emb = jax.random.normal(next(keys), (B, T), dtype=jnp.float32)

    params = {
        # block1
        "gn1_g": 1.0 + rnd((1, Cin), 0.1), "gn1_b": rnd((1, Cin), 0.1),
        "w1": rnd((9, Cin, Co), 0.1), "b1": rnd((1, Co), 0.1),
        # cross attention (LayerNorm beta is a zero buffer in the module)
        "ln_g": 1.0 + rnd((1, Co), 0.1), "ln_b": jnp.zeros((1, Co), jnp.float32),
        "null_kv": jax.random.normal(next(keys), (2, dim_head), dtype=jnp.float32),
        "wq": rnd((Co, inner), 0.2), "wk": rnd((Dc, inner), 0.2), "wv": rnd((Dc, inner), 0.2),
        "wout": rnd((inner, Co), 0.2),
        "lno_g": jnp.ones((1, Co), jnp.float32), "lno_b": jnp.zeros((1, Co), jnp.float32),
        # block2
        "gn2_g": 1.0 + rnd((1, Co), 0.1), "gn2_b": rnd((1, Co), 0.1),
        "w2": rnd((9, Co, Co), 0.1), "b2": rnd((1, Co), 0.1),
        # time MLP, pre-split into scale / shift halves of the (T, 2*Co) linear
        "w_ts": rnd((T, Co), 0.1), "b_ts": rnd((1, Co), 0.1),
        "w_tb": rnd((T, Co), 0.1), "b_tb": rnd((1, Co), 0.1),
        # residual 1x1 conv (dim != dim_out)
        "w_r": rnd((Cin, Co), 0.1), "b_r": rnd((1, Co), 0.1),
    }

    out = resnet_block(x, cond, time_emb, params,
                       groups=groups, heads=heads, dim_head=dim_head)
    out = jax.block_until_ready(out)

    ref = resnet_block_ref(x, cond, time_emb, params,
                           groups=groups, heads=heads, dim_head=dim_head)
    assert out.shape == (B, Co, H, W)
    max_err = float(jnp.max(jnp.abs(out - ref)))
    # convs / res_conv / attention use bf16 MXU operands + approx reciprocal, so the
    # kernel carries a small systematic delta vs the all-f32 reference.
    assert max_err < 1e-1, f"mismatch vs reference: max abs err {max_err}"
    print("KERNEL_OK")
</pallas_src>

<mosaic_0001>
module attributes {stable_mosaic.version = 11 : i64} {
  func.func @k(%arg0: memref<8x128xf32, #tpu.memory_space<vmem>>, %arg1: memref<8x128xf32, #tpu.memory_space<vmem>>) attributes {dimension_semantics = [], scalar_prefetch = 0 : i64, scratch_operands = 0 : i64, tpu.core_type = #tpu.core_type<tc>} {
    %c0 = arith.constant 0 : index
    %c0_0 = arith.constant 0 : index
    %0 = vector.load %arg0[%c0, %c0_0] : memref<8x128xf32, #tpu.memory_space<vmem>>, vector<8x128xf32>
    %c1_i32 = arith.constant 1 : i32
    %1 = tpu.dynamic_rotate %0 by %c1_i32 dim 1 : vector<8x128xf32>, i32 -> vector<8x128xf32>
    %c0_1 = arith.constant 0 : index
    %c0_2 = arith.constant 0 : index
    %2 = vector.load %arg1[%c0_1, %c0_2] : memref<8x128xf32, #tpu.memory_space<vmem>>, vector<8x128xf32>
    tpu.vector_store %arg1[%c0_1, %c0_2], %1 {strides = array<i32>} : memref<8x128xf32, #tpu.memory_space<vmem>>, vector<8x128xf32>,
    return
  }
}

module attributes {stable_mosaic.version = 11 : i64} {
  func.func @resnet_block_kernel(%arg0: i32, %arg1: memref<1x16x256xf32, #tpu.memory_space<vmem>>, %arg2: memref<1x24x8xf32, #tpu.memory_space<vmem>>, %arg3: memref<1x32x1xf32, #tpu.memory_space<vmem>>, %arg4: memref<9x256xf32, #tpu.memory_space<vmem>>, %arg5: memref<16x16xf32, #tpu.memory_space<vmem>>, %arg6: memref<16x1xf32, #tpu.memory_space<vmem>>, %arg7: memref<16x1xf32, #tpu.memory_space<vmem>>, %arg8: memref<32x144xbf16, #tpu.memory_space<vmem>>, %arg9: memref<32x1xf32, #tpu.memory_space<vmem>>, %arg10: memref<32x1xf32, #tpu.memory_space<vmem>>, %arg11: memref<32x1xf32, #tpu.memory_space<vmem>>, %arg12: memref<16x2xf32, #tpu.memory_space<vmem>>, %arg13: memref<64x32xbf16, #tpu.memory_space<vmem>>, %arg14: memref<64x24xbf16, #tpu.memory_space<vmem>>, %arg15: memref<64x24xbf16, #tpu.memory_space<vmem>>, %arg16: memref<32x64xbf16, #tpu.memory_space<vmem>>, %arg17: memref<32x1xf32, #tpu.memory_space<vmem>>, %arg18: memref<32x1xf32, #tpu.memory_space<vmem>>, %arg19: memref<32x32xf32, #tpu.memory_space<vmem>>, %arg20: memref<32x1xf32, #tpu.memory_space<vmem>>, %arg21: memref<32x1xf32, #tpu.memory_space<vmem>>, %arg22: memref<32x288xbf16, #tpu.memory_space<vmem>>, %arg23: memref<32x1xf32, #tpu.memory_space<vmem>>, %arg24: memref<32x32xf32, #tpu.memory_space<vmem>>, %arg25: memref<32x1xf32, #tpu.memory_space<vmem>>, %arg26: memref<32x32xf32, #tpu.memory_space<vmem>>, %arg27: memref<32x1xf32, #tpu.memory_space<vmem>>, %arg28: memref<32x16xbf16, #tpu.memory_space<vmem>>, %arg29: memref<32x1xf32, #tpu.memory_space<vmem>>, %arg30: memref<1x32x256xf32, #tpu.memory_space<vmem>>) attributes {dimension_semantics = [#tpu.dimension_semantics<parallel>], iteration_bounds = array<i64: 2>, scalar_prefetch = 0 : i64, scratch_operands = 0 : i64, tpu.core_type = #tpu.core_type<tc>, window_params = [{transform_indices = @transform_0, window_bounds = array<i64: 1, 16, 256>}, {transform_indices = @transform_1, window_bounds = array<i64: 1, 24, 8>}, {transform_indices = @transform_2, window_bounds = array<i64: 1, 32, 1>}, {pipeline_mode = #tpu.pipeline_mode<synchronous>, transform_indices = @transform_3, window_bounds = array<i64: 9, 256>}, {pipeline_mode = #tpu.pipeline_mode<synchronous>, transform_indices = @transform_4, window_bounds = array<i64: 16, 16>}, {pipeline_mode = #tpu.pipeline_mode<synchronous>, transform_indices = @transform_5, window_bounds = array<i64: 16, 1>}, {pipeline_mode = #tpu.pipeline_mode<synchronous>, transform_indices = @transform_6, window_bounds = array<i64: 16, 1>}, {pipeline_mode = #tpu.pipeline_mode<synchronous>, transform_indices = @transform_7, window_bounds = array<i64: 32, 144>}, {pipeline_mode = #tpu.pipeline_mode<synchronous>, transform_indices = @transform_8, window_bounds = array<i64: 32, 1>}, {pipeline_mode = #tpu.pipeline_mode<synchronous>, transform_indices = @transform_9, window_bounds = array<i64: 32, 1>}, {pipeline_mode = #tpu.pipeline_mode<synchronous>, transform_indices = @transform_10, window_bounds = array<i64: 32, 1>}, {pipeline_mode = #tpu.pipeline_mode<synchronous>, transform_indices = @transform_11, window_bounds = array<i64: 16, 2>}, {pipeline_mode = #tpu.pipeline_mode<synchronous>, transform_indices = @transform_12, window_bounds = array<i64: 64, 32>}, {pipeline_mode = #tpu.pipeline_mode<synchronous>, transform_indices = @transform_13, window_bounds = array<i64: 64, 24>}, {pipeline_mode = #tpu.pipeline_mode<synchronous>, transform_indices = @transform_14, window_bounds = array<i64: 64, 24>}, {pipeline_mode = #tpu.pipeline_mode<synchronous>, transform_indices = @transform_15, window_bounds = array<i64: 32, 64>}, {pipeline_mode = #tpu.pipeline_mode<synchronous>, transform_indices = @transform_16, window_bounds = array<i64: 32, 1>}, {pipeline_mode = #tpu.pipeline_mode<synchronous>, transform_indices = @transform_17, window_bounds = array<i64: 32, 1>}, {pipeline_mode = #tpu.pipeline_mode<synchronous>, transform_indices = @transform_18, window_bounds = array<i64: 32, 32>}, {pipeline_mode = #tpu.pipeline_mode<synchronous>, transform_indices = @transform_19, window_bounds = array<i64: 32, 1>}, {pipeline_mode = #tpu.pipeline_mode<synchronous>, transform_indices = @transform_20, window_bounds = array<i64: 32, 1>}, {pipeline_mode = #tpu.pipeline_mode<synchronous>, transform_indices = @transform_21, window_bounds = array<i64: 32, 288>}, {pipeline_mode = #tpu.pipeline_mode<synchronous>, transform_indices = @transform_22, window_bounds = array<i64: 32, 1>}, {pipeline_mode = #tpu.pipeline_mode<synchronous>, transform_indices = @transform_23, window_bounds = array<i64: 32, 32>}, {pipeline_mode = #tpu.pipeline_mode<synchronous>, transform_indices = @transform_24, window_bounds = array<i64: 32, 1>}, {pipeline_mode = #tpu.pipeline_mode<synchronous>, transform_indices = @transform_25, window_bounds = array<i64: 32, 32>}, {pipeline_mode = #tpu.pipeline_mode<synchronous>, transform_indices = @transform_26, window_bounds = array<i64: 32, 1>}, {pipeline_mode = #tpu.pipeline_mode<synchronous>, transform_indices = @transform_27, window_bounds = array<i64: 32, 16>}, {pipeline_mode = #tpu.pipeline_mode<synchronous>, transform_indices = @transform_28, window_bounds = array<i64: 32, 1>}, {transform_indices = @transform_29, window_bounds = array<i64: 1, 32, 256>}]} {
    %c0 = arith.constant 0 : index
    %c0_0 = arith.constant 0 : index
    %c0_1 = arith.constant 0 : index
    %0 = vector.load %arg1[%c0, %c0_0, %c0_1] : memref<1x16x256xf32, #tpu.memory_space<vmem>>, vector<1x16x256xf32>
    %1 = vector.shape_cast %0 : vector<1x16x256xf32> to vector<16x256xf32>
    %c0_2 = arith.constant 0 : index
    %c0_3 = arith.constant 0 : index
    %c0_4 = arith.constant 0 : index
    %2 = vector.load %arg3[%c0_2, %c0_3, %c0_4] : memref<1x32x1xf32, #tpu.memory_space<vmem>>, vector<1x32x1xf32>
    %3 = vector.shape_cast %2 : vector<1x32x1xf32> to vector<32x1xf32>
    %4 = arith.negf %3 : vector<32x1xf32>
    %5 = math.exp %4 : vector<32x1xf32>
    %cst = arith.constant 1.000000e+00 : f32
    %6 = vector.broadcast %cst : f32 to vector<32x1xf32>
    %7 = arith.addf %6, %5 : vector<32x1xf32>
    %8 = arith.divf %6, %7 : vector<32x1xf32>
    %9 = arith.mulf %3, %8 : vector<32x1xf32>
    %c0_5 = arith.constant 0 : index
    %c0_6 = arith.constant 0 : index
    %10 = vector.load %arg24[%c0_5, %c0_6] : memref<32x32xf32, #tpu.memory_space<vmem>>, vector<32x32xf32>
    %cst_7 = arith.constant dense<0.000000e+00> : vector<32x1xf32>
    %11 = tpu.matmul %10, %9, %cst_7 {dimension_numbers = #tpu.dot_dimension_numbers<[1], [0], [0], [1], [0, 0, 1, 1], [], []>} : vector<32x32xf32>, vector<32x1xf32>, vector<32x1xf32> -> vector<32x1xf32>
    %c0_8 = arith.constant 0 : index
    %c0_9 = arith.constant 0 : index
    %12 = vector.load %arg25[%c0_8, %c0_9] : memref<32x1xf32, #tpu.memory_space<vmem>>, vector<32x1xf32>
    %13 = arith.addf %11, %12 : vector<32x1xf32>
    %c0_10 = arith.constant 0 : index
    %c0_11 = arith.constant 0 : index
    %14 = vector.load %arg26[%c0_10, %c0_11] : memref<32x32xf32, #tpu.memory_space<vmem>>, vector<32x32xf32>
    %cst_12 = arith.constant dense<0.000000e+00> : vector<32x1xf32>
    %15 = tpu.matmul %14, %9, %cst_12 {dimension_numbers = #tpu.dot_dimension_numbers<[1], [0], [0], [1], [0, 0, 1, 1], [], []>} : vector<32x32xf32>, vector<32x1xf32>, vector<32x1xf32> -> vector<32x1xf32>
    %c0_13 = arith.constant 0 : index
    %c0_14 = arith.constant 0 : index
    %16 = vector.load %arg27[%c0_13, %c0_14] : memref<32x1xf32, #tpu.memory_space<vmem>>, vector<32x1xf32>
    %17 = arith.addf %15, %16 : vector<32x1xf32>
    %c0_15 = arith.constant 0 : index
    %c0_16 = arith.constant 0 : index
    %18 = vector.load %arg5[%c0_15, %c0_16] : memref<16x16xf32, #tpu.memory_space<vmem>>, vector<16x16xf32>
    %c0_17 = arith.constant 0 : index
    %c0_18 = arith.constant 0 : index
    %19 = vector.load %arg6[%c0_17, %c0_18] : memref<16x1xf32, #tpu.memory_space<vmem>>, vector<16x1xf32>
    %c0_19 = arith.constant 0 : index
    %c0_20 = arith.constant 0 : index
    %20 = vector.load %arg7[%c0_19, %c0_20] : memref<16x1xf32, #tpu.memory_space<vmem>>, vector<16x1xf32>
    %cst_21 = arith.constant dense<0.000000e+00> : vector<16xf32>
    %21 = vector.multi_reduction <add>, %1, %cst_21 [1] : vector<16x256xf32> to vector<16xf32>
    %22 = vector.shape_cast %21 : vector<16xf32> to vector<16x1xf32>
    %cst_22 = arith.constant dense<0.000000e+00> : vector<16x1xf32>
    %23 = tpu.matmul %18, %22, %cst_22 {dimension_numbers = #tpu.dot_dimension_numbers<[1], [0], [0], [1], [0, 0, 1, 1], [], []>} : vector<16x16xf32>, vector<16x1xf32>, vector<16x1xf32> -> vector<16x1xf32>
    %24 = vector.broadcast %23 : vector<16x1xf32> to vector<16x256xf32>
    %25 = arith.subf %1, %24 : vector<16x256xf32>
    %26 = arith.mulf %25, %25 : vector<16x256xf32>
    %cst_23 = arith.constant dense<0.000000e+00> : vector<16xf32>
    %27 = vector.multi_reduction <add>, %26, %cst_23 [1] : vector<16x256xf32> to vector<16xf32>
    %28 = vector.shape_cast %27 : vector<16xf32> to vector<16x1xf32>
    %cst_24 = arith.constant dense<0.000000e+00> : vector<16x1xf32>
    %29 = tpu.matmul %18, %28, %cst_24 {dimension_numbers = #tpu.dot_dimension_numbers<[1], [0], [0], [1], [0, 0, 1, 1], [], []>} : vector<16x16xf32>, vector<16x1xf32>, vector<16x1xf32> -> vector<16x1xf32>
    %cst_25 = arith.constant 9.99999974E-6 : f32
    %30 = vector.broadcast %cst_25 : f32 to vector<16x1xf32>
    %31 = arith.addf %29, %30 : vector<16x1xf32>
    %32 = math.rsqrt %31 : vector<16x1xf32>
    %33 = vector.broadcast %32 : vector<16x1xf32> to vector<16x256xf32>
    %34 = arith.mulf %25, %33 : vector<16x256xf32>
    %35 = vector.broadcast %19 : vector<16x1xf32> to vector<16x256xf32>
    %36 = arith.mulf %34, %35 : vector<16x256xf32>
    %37 = vector.broadcast %20 : vector<16x1xf32> to vector<16x256xf32>
    %38 = arith.addf %36, %37 : vector<16x256xf32>
    %39 = arith.negf %38 : vector<16x256xf32>
    %40 = math.exp %39 : vector<16x256xf32>
    %cst_26 = arith.constant 1.000000e+00 : f32
    %41 = vector.broadcast %cst_26 : f32 to vector<16x256xf32>
    %42 = arith.addf %41, %40 : vector<16x256xf32>
    %43 = arith.divf %41, %42 : vector<16x256xf32>
    %44 = arith.mulf %38, %43 : vector<16x256xf32>
    %c0_27 = arith.constant 0 : index
    %c0_28 = arith.constant 0 : index
    %45 = vector.load %arg8[%c0_27, %c0_28] : memref<32x144xbf16, #tpu.memory_space<vmem>>, vector<32x144xbf16>
    %c0_29 = arith.constant 0 : index
    %c0_30 = arith.constant 0 : index
    %46 = vector.load %arg9[%c0_29, %c0_30] : memref<32x1xf32, #tpu.memory_space<vmem>>, vector<32x1xf32>
    %c17_i32 = arith.constant 17 : i32
    %47 = tpu.dynamic_rotate %44 by %c17_i32 dim 1 : vector<16x256xf32>, i32 -> vector<16x256xf32>
    %c0_31 = arith.constant 0 : index
    %c0_32 = arith.constant 0 : index
    %48 = vector.load %arg4[%c0_31, %c0_32] : memref<9x256xf32, #tpu.memory_space<vmem>>, vector<1x256xf32>
    %49 = vector.broadcast %48 : vector<1x256xf32> to vector<16x256xf32>
    %50 = arith.mulf %47, %49 : vector<16x256xf32>
    %c16_i32 = arith.constant 16 : i32
    %51 = tpu.dynamic_rotate %44 by %c16_i32 dim 1 : vector<16x256xf32>, i32 -> vector<16x256xf32>
    %c1 = arith.constant 1 : index
    %c0_33 = arith.constant 0 : index
    %52 = vector.load %arg4[%c1, %c0_33] : memref<9x256xf32, #tpu.memory_space<vmem>>, vector<1x256xf32>
    %53 = vector.broadcast %52 : vector<1x256xf32> to vector<16x256xf32>
    %54 = arith.mulf %51, %53 : vector<16x256xf32>
    %c15_i32 = arith.constant 15 : i32
    %55 = tpu.dynamic_rotate %44 by %c15_i32 dim 1 : vector<16x256xf32>, i32 -> vector<16x256xf32>
    %c2 = arith.constant 2 : index
    %c0_34 = arith.constant 0 : index
    %56 = vector.load %arg4[%c2, %c0_34] : memref<9x256xf32, #tpu.memory_space<vmem>>, vector<1x256xf32>
    %57 = vector.broadcast %56 : vector<1x256xf32> to vector<16x256xf32>
    %58 = arith.mulf %55, %57 : vector<16x256xf32>
    %c1_i32 = arith.constant 1 : i32
    %59 = tpu.dynamic_rotate %44 by %c1_i32 dim 1 : vector<16x256xf32>, i32 -> vector<16x256xf32>
    %c3 = arith.constant 3 : index
    %c0_35 = arith.constant 0 : index
    %60 = vector.load %arg4[%c3, %c0_35] : memref<9x256xf32, #tpu.memory_space<vmem>>, vector<1x256xf32>
    %61 = vector.broadcast %60 : vector<1x256xf32> to vector<16x256xf32>
    %62 = arith.mulf %59, %61 : vector<16x256xf32>
    %c255_i32 = arith.constant 255 : i32
    %63 = tpu.dynamic_rotate %44 by %c255_i32 dim 1 : vector<16x256xf32>, i32 -> vector<16x256xf32>
    %c5 = arith.constant 5 : index
    %c0_36 = arith.constant 0 : index
    %64 = vector.load %arg4[%c5, %c0_36] : memref<9x256xf32, #tpu.memory_space<vmem>>, vector<1x256xf32>
    %65 = vector.broadcast %64 : vector<1x256xf32> to vector<16x256xf32>
    %66 = arith.mulf %63, %65 : vector<16x256xf32>
    %c241_i32 = arith.constant 241 : i32
    %67 = tpu.dynamic_rotate %44 by %c241_i32 dim 1 : vector<16x256xf32>, i32 -> vector<16x256xf32>
    %c6 = arith.constant 6 : index
    %c0_37 = arith.constant 0 : index
    %68 = vector.load %arg4[%c6, %c0_37] : memref<9x256xf32, #tpu.memory_space<vmem>>, vector<1x256xf32>
    %69 = vector.broadcast %68 : vector<1x256xf32> to vector<16x256xf32>
    %70 = arith.mulf %67, %69 : vector<16x256xf32>
    %c240_i32 = arith.constant 240 : i32
    %71 = tpu.dynamic_rotate %44 by %c240_i32 dim 1 : vector<16x256xf32>, i32 -> vector<16x256xf32>
    %c7 = arith.constant 7 : index
    %c0_38 = arith.constant 0 : index
    %72 = vector.load %arg4[%c7, %c0_38] : memref<9x256xf32, #tpu.memory_space<vmem>>, vector<1x256xf32>
    %73 = vector.broadcast %72 : vector<1x256xf32> to vector<16x256xf32>
    %74 = arith.mulf %71, %73 : vector<16x256xf32>
    %c239_i32 = arith.constant 239 : i32
    %75 = tpu.dynamic_rotate %44 by %c239_i32 dim 1 : vector<16x256xf32>, i32 -> vector<16x256xf32>
    %c8 = arith.constant 8 : index
    %c0_39 = arith.constant 0 : index
    %76 = vector.load %arg4[%c8, %c0_39] : memref<9x256xf32, #tpu.memory_space<vmem>>, vector<1x256xf32>
    %77 = vector.broadcast %76 : vector<1x256xf32> to vector<16x256xf32>
    %78 = arith.mulf %75, %77 : vector<16x256xf32>
    %79 = tpu.concatenate %50, %54, %58, %62, %44, %66, %70, %74, %78 in 0 : vector<16x256xf32>, vector<16x256xf32>, vector<16x256xf32>, vector<16x256xf32>, vector<16x256xf32>, vector<16x256xf32>, vector<16x256xf32>, vector<16x256xf32>, vector<16x256xf32> -> vector<144x256xf32>
    %80 = arith.truncf %79 : vector<144x256xf32> to vector<144x256xbf16>
    %cst_40 = arith.constant dense<0.000000e+00> : vector<32x256xf32>
    %81 = tpu.matmul %45, %80, %cst_40 {dimension_numbers = #tpu.dot_dimension_numbers<[1], [0], [0], [1], [0, 0, 1, 1], [], []>} : vector<32x144xbf16>, vector<144x256xbf16>, vector<32x256xf32> -> vector<32x256xf32>
    %82 = vector.broadcast %46 : vector<32x1xf32> to vector<32x256xf32>
    %83 = arith.addf %81, %82 : vector<32x256xf32>
    %c0_41 = arith.constant 0 : index
    %c0_42 = arith.constant 0 : index
    %84 = vector.load %arg10[%c0_41, %c0_42] : memref<32x1xf32, #tpu.memory_space<vmem>>, vector<32x1xf32>
    %c0_43 = arith.constant 0 : index
    %c0_44 = arith.constant 0 : index
    %85 = vector.load %arg11[%c0_43, %c0_44] : memref<32x1xf32, #tpu.memory_space<vmem>>, vector<32x1xf32>
    %cst_45 = arith.constant dense<0.000000e+00> : vector<256xf32>
    %86 = vector.multi_reduction <add>, %83, %cst_45 [0] : vector<32x256xf32> to vector<256xf32>
    %87 = vector.shape_cast %86 : vector<256xf32> to vector<1x256xf32>
    %cst_46 = arith.constant 3.125000e-02 : f32
    %88 = vector.broadcast %cst_46 : f32 to vector<1x256xf32>
    %89 = arith.mulf %87, %88 : vector<1x256xf32>
    %90 = vector.broadcast %89 : vector<1x256xf32> to vector<32x256xf32>
    %91 = arith.subf %83, %90 : vector<32x256xf32>
    %92 = arith.mulf %91, %91 : vector<32x256xf32>
    %cst_47 = arith.constant dense<0.000000e+00> : vector<256xf32>
    %93 = vector.multi_reduction <add>, %92, %cst_47 [0] : vector<32x256xf32> to vector<256xf32>
    %94 = vector.shape_cast %93 : vector<256xf32> to vector<1x256xf32>
    %cst_48 = arith.constant 3.125000e-02 : f32
    %95 = vector.broadcast %cst_48 : f32 to vector<1x256xf32>
    %96 = arith.mulf %94, %95 : vector<1x256xf32>
    %cst_49 = arith.constant 9.99999974E-6 : f32
    %97 = vector.broadcast %cst_49 : f32 to vector<1x256xf32>
    %98 = arith.addf %96, %97 : vector<1x256xf32>
    %99 = math.rsqrt %98 : vector<1x256xf32>
    %100 = vector.broadcast %99 : vector<1x256xf32> to vector<32x256xf32>
    %101 = arith.mulf %91, %100 : vector<32x256xf32>
    %102 = vector.broadcast %84 : vector<32x1xf32> to vector<32x256xf32>
    %103 = arith.mulf %101, %102 : vector<32x256xf32>
    %104 = vector.broadcast %85 : vector<32x1xf32> to vector<32x256xf32>
    %105 = arith.addf %103, %104 : vector<32x256xf32>
    %106 = arith.truncf %105 : vector<32x256xf32> to vector<32x256xbf16>
    %c0_50 = arith.constant 0 : index
    %c0_51 = arith.constant 0 : index
    %c0_52 = arith.constant 0 : index
    %107 = vector.load %arg2[%c0_50, %c0_51, %c0_52] : memref<1x24x8xf32, #tpu.memory_space<vmem>>, vector<1x24x8xf32>
    %108 = vector.shape_cast %107 : vector<1x24x8xf32> to vector<24x8xf32>
    %109 = arith.truncf %108 : vector<24x8xf32> to vector<24x8xbf16>
    %c0_53 = arith.constant 0 : index
    %c0_54 = arith.constant 0 : index
    %110 = vector.load %arg13[%c0_53, %c0_54] : memref<64x32xbf16, #tpu.memory_space<vmem>>, vector<64x32xbf16>
    %cst_55 = arith.constant dense<0.000000e+00> : vector<64x256xf32>
    %111 = tpu.matmul %110, %106, %cst_55 {dimension_numbers = #tpu.dot_dimension_numbers<[1], [0], [0], [1], [0, 0, 1, 1], [], []>} : vector<64x32xbf16>, vector<32x256xbf16>, vector<64x256xf32> -> vector<64x256xf32>
    %cst_56 = arith.constant 2.500000e-01 : f32
    %112 = vector.broadcast %cst_56 : f32 to vector<64x256xf32>
    %113 = arith.mulf %111, %112 : vector<64x256xf32>
    %c0_57 = arith.constant 0 : index
    %c0_58 = arith.constant 0 : index
    %114 = vector.load %arg14[%c0_57, %c0_58] : memref<64x24xbf16, #tpu.memory_space<vmem>>, vector<64x24xbf16>
    %cst_59 = arith.constant dense<0.000000e+00> : vector<64x8xf32>
    %115 = tpu.matmul %114, %109, %cst_59 {dimension_numbers = #tpu.dot_dimension_numbers<[1], [0], [0], [1], [0, 0, 1, 1], [], []>} : vector<64x24xbf16>, vector<24x8xbf16>, vector<64x8xf32> -> vector<64x8xf32>
    %c0_60 = arith.constant 0 : index
    %c0_61 = arith.constant 0 : index
    %116 = vector.load %arg15[%c0_60, %c0_61] : memref<64x24xbf16, #tpu.memory_space<vmem>>, vector<64x24xbf16>
    %cst_62 = arith.constant dense<0.000000e+00> : vector<64x8xf32>
    %117 = tpu.matmul %116, %109, %cst_62 {dimension_numbers = #tpu.dot_dimension_numbers<[1], [0], [0], [1], [0, 0, 1, 1], [], []>} : vector<64x24xbf16>, vector<24x8xbf16>, vector<64x8xf32> -> vector<64x8xf32>
    %118 = vector.shape_cast %113 : vector<64x256xf32> to vector<4x16x256xf32>
    %119 = vector.shape_cast %115 : vector<64x8xf32> to vector<4x16x8xf32>
    %120 = arith.truncf %119 : vector<4x16x8xf32> to vector<4x16x8xbf16>
    %121 = vector.shape_cast %117 : vector<64x8xf32> to vector<4x16x8xf32>
    %122 = arith.truncf %121 : vector<4x16x8xf32> to vector<4x16x8xbf16>
    %123 = arith.truncf %118 : vector<4x16x256xf32> to vector<4x16x256xbf16>
    "tpu.trace_start"() <{level = 10 : i32, message = "hdm,hdn->hmn"}> : () -> ()
    %cst_63 = arith.constant dense<0.000000e+00> : vector<4x8x256xf32>
    %124 = tpu.matmul %120, %123, %cst_63 {dimension_numbers = #tpu.dot_dimension_numbers<[1], [1], [2], [2], [0, 0, 0, 2, 1, 2], [0], [0]>} : vector<4x16x8xbf16>, vector<4x16x256xbf16>, vector<4x8x256xf32> -> vector<4x8x256xf32>
    "tpu.trace_stop"() : () -> ()
    %c0_64 = arith.constant 0 : index
    %c0_65 = arith.constant 0 : index
    %125 = vector.load %arg12[%c0_64, %c0_65] : memref<16x2xf32, #tpu.memory_space<vmem>>, vector<16x1xf32>
    %126 = vector.shape_cast %125 : vector<16x1xf32> to vector<1x16x1xf32>
    %c0_66 = arith.constant 0 : index
    %c1_67 = arith.constant 1 : index
    %127 = vector.load %arg12[%c0_66, %c1_67] : memref<16x2xf32, #tpu.memory_space<vmem>>, vector<16x1xf32>
    %128 = vector.shape_cast %127 : vector<16x1xf32> to vector<1x16x1xf32>
    %129 = vector.broadcast %126 : vector<1x16x1xf32> to vector<4x16x256xf32>
    %130 = arith.mulf %118, %129 : vector<4x16x256xf32>
    %cst_68 = arith.constant dense<0.000000e+00> : vector<4x256xf32>
    %131 = vector.multi_reduction <add>, %130, %cst_68 [1] : vector<4x16x256xf32> to vector<4x256xf32>
    %132 = vector.shape_cast %131 : vector<4x256xf32> to vector<4x1x256xf32>
    %cst_69 = arith.constant dense<0xFF800000> : vector<4x256xf32>
    %133 = vector.multi_reduction <maximumf>, %124, %cst_69 [1] : vector<4x8x256xf32> to vector<4x256xf32>
    %134 = vector.shape_cast %133 : vector<4x256xf32> to vector<4x1x256xf32>
    %135 = arith.maximumf %134, %132 : vector<4x1x256xf32>
    %136 = vector.broadcast %135 : vector<4x1x256xf32> to vector<4x8x256xf32>
    %137 = arith.subf %124, %136 : vector<4x8x256xf32>
    %138 = math.exp %137 : vector<4x8x256xf32>
    %139 = arith.subf %132, %135 : vector<4x1x256xf32>
    %140 = math.exp %139 : vector<4x1x256xf32>
    %cst_70 = arith.constant dense<0.000000e+00> : vector<4x256xf32>
    %141 = vector.multi_reduction <add>, %138, %cst_70 [1] : vector<4x8x256xf32> to vector<4x256xf32>
    %142 = vector.shape_cast %141 : vector<4x256xf32> to vector<4x1x256xf32>
    %143 = arith.addf %142, %140 : vector<4x1x256xf32>
    %144 = tpu.reciprocal %143 {approx = true} : vector<4x1x256xf32> -> vector<4x1x256xf32>
    %145 = arith.truncf %138 : vector<4x8x256xf32> to vector<4x8x256xbf16>
    "tpu.trace_start"() <{level = 10 : i32, message = "hdm,hmn->hdn"}> : () -> ()
    %cst_71 = arith.constant dense<0.000000e+00> : vector<4x16x256xf32>
    %146 = tpu.matmul %122, %145, %cst_71 {dimension_numbers = #tpu.dot_dimension_numbers<[2], [1], [1], [2], [0, 0, 0, 1, 1, 2], [0], [0]>} : vector<4x16x8xbf16>, vector<4x8x256xbf16>, vector<4x16x256xf32> -> vector<4x16x256xf32>
    "tpu.trace_stop"() : () -> ()
    %147 = vector.broadcast %140 : vector<4x1x256xf32> to vector<4x16x256xf32>
    %148 = vector.broadcast %128 : vector<1x16x1xf32> to vector<4x16x256xf32>
    %149 = arith.mulf %147, %148 : vector<4x16x256xf32>
    %150 = arith.addf %146, %149 : vector<4x16x256xf32>
    %151 = vector.broadcast %144 : vector<4x1x256xf32> to vector<4x16x256xf32>
    %152 = arith.mulf %150, %151 : vector<4x16x256xf32>
    %c0_72 = arith.constant 0 : index
    %c0_73 = arith.constant 0 : index
    %153 = vector.load %arg16[%c0_72, %c0_73] : memref<32x64xbf16, #tpu.memory_space<vmem>>, vector<32x64xbf16>
    %154 = vector.shape_cast %152 : vector<4x16x256xf32> to vector<64x256xf32>
    %155 = arith.truncf %154 : vector<64x256xf32> to vector<64x256xbf16>
    %cst_74 = arith.constant dense<0.000000e+00> : vector<32x256xf32>
    %156 = tpu.matmul %153, %155, %cst_74 {dimension_numbers = #tpu.dot_dimension_numbers<[1], [0], [0], [1], [0, 0, 1, 1], [], []>} : vector<32x64xbf16>, vector<64x256xbf16>, vector<32x256xf32> -> vector<32x256xf32>
    %c0_75 = arith.constant 0 : index
    %c0_76 = arith.constant 0 : index
    %157 = vector.load %arg17[%c0_75, %c0_76] : memref<32x1xf32, #tpu.memory_space<vmem>>, vector<32x1xf32>
    %c0_77 = arith.constant 0 : index
    %c0_78 = arith.constant 0 : index
    %158 = vector.load %arg18[%c0_77, %c0_78] : memref<32x1xf32, #tpu.memory_space<vmem>>, vector<32x1xf32>
    %cst_79 = arith.constant dense<0.000000e+00> : vector<256xf32>
    %159 = vector.multi_reduction <add>, %156, %cst_79 [0] : vector<32x256xf32> to vector<256xf32>
    %160 = vector.shape_cast %159 : vector<256xf32> to vector<1x256xf32>
    %cst_80 = arith.constant 3.125000e-02 : f32
    %161 = vector.broadcast %cst_80 : f32 to vector<1x256xf32>
    %162 = arith.mulf %160, %161 : vector<1x256xf32>
    %163 = vector.broadcast %162 : vector<1x256xf32> to vector<32x256xf32>
    %164 = arith.subf %156, %163 : vector<32x256xf32>
    %165 = arith.mulf %164, %164 : vector<32x256xf32>
    %cst_81 = arith.constant dense<0.000000e+00> : vector<256xf32>
    %166 = vector.multi_reduction <add>, %165, %cst_81 [0] : vector<32x256xf32> to vector<256xf32>
    %167 = vector.shape_cast %166 : vector<256xf32> to vector<1x256xf32>
    %cst_82 = arith.constant 3.125000e-02 : f32
    %168 = vector.broadcast %cst_82 : f32 to vector<1x256xf32>
    %169 = arith.mulf %167, %168 : vector<1x256xf32>
    %cst_83 = arith.constant 9.99999974E-6 : f32
    %170 = vector.broadcast %cst_83 : f32 to vector<1x256xf32>
    %171 = arith.addf %169, %170 : vector<1x256xf32>
    %172 = math.rsqrt %171 : vector<1x256xf32>
    %173 = vector.broadcast %172 : vector<1x256xf32> to vector<32x256xf32>
    %174 = arith.mulf %164, %173 : vector<32x256xf32>
    %175 = vector.broadcast %157 : vector<32x1xf32> to vector<32x256xf32>
    %176 = arith.mulf %174, %175 : vector<32x256xf32>
    %177 = vector.broadcast %158 : vector<32x1xf32> to vector<32x256xf32>
    %178 = arith.addf %176, %177 : vector<32x256xf32>
    %179 = arith.addf %83, %178 : vector<32x256xf32>
    %c0_84 = arith.constant 0 : index
    %c0_85 = arith.constant 0 : index
    %180 = vector.load %arg19[%c0_84, %c0_85] : memref<32x32xf32, #tpu.memory_space<vmem>>, vector<32x32xf32>
    %c0_86 = arith.constant 0 : index
    %c0_87 = arith.constant 0 : index
    %181 = vector.load %arg20[%c0_86, %c0_87] : memref<32x1xf32, #tpu.memory_space<vmem>>, vector<32x1xf32>
    %c0_88 = arith.constant 0 : index
    %c0_89 = arith.constant 0 : index
    %182 = vector.load %arg21[%c0_88, %c0_89] : memref<32x1xf32, #tpu.memory_space<vmem>>, vector<32x1xf32>
    %cst_90 = arith.constant dense<0.000000e+00> : vector<32xf32>
    %183 = vector.multi_reduction <add>, %179, %cst_90 [1] : vector<32x256xf32> to vector<32xf32>
    %184 = vector.shape_cast %183 : vector<32xf32> to vector<32x1xf32>
    %cst_91 = arith.constant dense<0.000000e+00> : vector<32x1xf32>
    %185 = tpu.matmul %180, %184, %cst_91 {dimension_numbers = #tpu.dot_dimension_numbers<[1], [0], [0], [1], [0, 0, 1, 1], [], []>} : vector<32x32xf32>, vector<32x1xf32>, vector<32x1xf32> -> vector<32x1xf32>
    %186 = vector.broadcast %185 : vector<32x1xf32> to vector<32x256xf32>
    %187 = arith.subf %179, %186 : vector<32x256xf32>
    %188 = arith.mulf %187, %187 : vector<32x256xf32>
    %cst_92 = arith.constant dense<0.000000e+00> : vector<32xf32>
    %189 = vector.multi_reduction <add>, %188, %cst_92 [1] : vector<32x256xf32> to vector<32xf32>
    %190 = vector.shape_cast %189 : vector<32xf32> to vector<32x1xf32>
    %cst_93 = arith.constant dense<0.000000e+00> : vector<32x1xf32>
    %191 = tpu.matmul %180, %190, %cst_93 {dimension_numbers = #tpu.dot_dimension_numbers<[1], [0], [0], [1], [0, 0, 1, 1], [], []>} : vector<32x32xf32>, vector<32x1xf32>, vector<32x1xf32> -> vector<32x1xf32>
    %cst_94 = arith.constant 9.99999974E-6 : f32
    %192 = vector.broadcast %cst_94 : f32 to vector<32x1xf32>
    %193 = arith.addf %191, %192 : vector<32x1xf32>
    %194 = math.rsqrt %193 : vector<32x1xf32>
    %195 = vector.broadcast %194 : vector<32x1xf32> to vector<32x256xf32>
    %196 = arith.mulf %187, %195 : vector<32x256xf32>
    %197 = vector.broadcast %181 : vector<32x1xf32> to vector<32x256xf32>
    %198 = arith.mulf %196, %197 : vector<32x256xf32>
    %199 = vector.broadcast %182 : vector<32x1xf32> to vector<32x256xf32>
    %200 = arith.addf %198, %199 : vector<32x256xf32>
    %cst_95 = arith.constant 1.000000e+00 : f32
    %201 = vector.broadcast %cst_95 : f32 to vector<32x1xf32>
    %202 = arith.addf %13, %201 : vector<32x1xf32>
    %203 = vector.broadcast %202 : vector<32x1xf32> to vector<32x256xf32>
    %204 = arith.mulf %200, %203 : vector<32x256xf32>
    %205 = vector.broadcast %17 : vector<32x1xf32> to vector<32x256xf32>
    %206 = arith.addf %204, %205 : vector<32x256xf32>
    %207 = arith.negf %206 : vector<32x256xf32>
    %208 = math.exp %207 : vector<32x256xf32>
    %cst_96 = arith.constant 1.000000e+00 : f32
    %209 = vector.broadcast %cst_96 : f32 to vector<32x256xf32>
    %210 = arith.addf %209, %208 : vector<32x256xf32>
    %211 = arith.divf %209, %210 : vector<32x256xf32>
    %212 = arith.mulf %206, %211 : vector<32x256xf32>
    %c0_97 = arith.constant 0 : index
    %c0_98 = arith.constant 0 : index
    %213 = vector.load %arg22[%c0_97, %c0_98] : memref<32x288xbf16, #tpu.memory_space<vmem>>, vector<32x288xbf16>
    %c0_99 = arith.constant 0 : index
    %c0_100 = arith.constant 0 : index
    %214 = vector.load %arg23[%c0_99, %c0_100] : memref<32x1xf32, #tpu.memory_space<vmem>>, vector<32x1xf32>
    %c17_i32_101 = arith.constant 17 : i32
    %215 = tpu.dynamic_rotate %212 by %c17_i32_101 dim 1 : vector<32x256xf32>, i32 -> vector<32x256xf32>
    %c0_102 = arith.constant 0 : index
    %c0_103 = arith.constant 0 : index
    %216 = vector.load %arg4[%c0_102, %c0_103] : memref<9x256xf32, #tpu.memory_space<vmem>>, vector<1x256xf32>
    %217 = vector.broadcast %216 : vector<1x256xf32> to vector<32x256xf32>
    %218 = arith.mulf %215, %217 : vector<32x256xf32>
    %c16_i32_104 = arith.constant 16 : i32
    %219 = tpu.dynamic_rotate %212 by %c16_i32_104 dim 1 : vector<32x256xf32>, i32 -> vector<32x256xf32>
    %c1_105 = arith.constant 1 : index
    %c0_106 = arith.constant 0 : index
    %220 = vector.load %arg4[%c1_105, %c0_106] : memref<9x256xf32, #tpu.memory_space<vmem>>, vector<1x256xf32>
    %221 = vector.broadcast %220 : vector<1x256xf32> to vector<32x256xf32>
    %222 = arith.mulf %219, %221 : vector<32x256xf32>
    %c15_i32_107 = arith.constant 15 : i32
    %223 = tpu.dynamic_rotate %212 by %c15_i32_107 dim 1 : vector<32x256xf32>, i32 -> vector<32x256xf32>
    %c2_108 = arith.constant 2 : index
    %c0_109 = arith.constant 0 : index
    %224 = vector.load %arg4[%c2_108, %c0_109] : memref<9x256xf32, #tpu.memory_space<vmem>>, vector<1x256xf32>
    %225 = vector.broadcast %224 : vector<1x256xf32> to vector<32x256xf32>
    %226 = arith.mulf %223, %225 : vector<32x256xf32>
    %c1_i32_110 = arith.constant 1 : i32
    %227 = tpu.dynamic_rotate %212 by %c1_i32_110 dim 1 : vector<32x256xf32>, i32 -> vector<32x256xf32>
    %c3_111 = arith.constant 3 : index
    %c0_112 = arith.constant 0 : index
    %228 = vector.load %arg4[%c3_111, %c0_112] : memref<9x256xf32, #tpu.memory_space<vmem>>, vector<1x256xf32>
    %229 = vector.broadcast %228 : vector<1x256xf32> to vector<32x256xf32>
    %230 = arith.mulf %227, %229 : vector<32x256xf32>
    %c255_i32_113 = arith.constant 255 : i32
    %231 = tpu.dynamic_rotate %212 by %c255_i32_113 dim 1 : vector<32x256xf32>, i32 -> vector<32x256xf32>
    %c5_114 = arith.constant 5 : index
    %c0_115 = arith.constant 0 : index
    %232 = vector.load %arg4[%c5_114, %c0_115] : memref<9x256xf32, #tpu.memory_space<vmem>>, vector<1x256xf32>
    %233 = vector.broadcast %232 : vector<1x256xf32> to vector<32x256xf32>
    %234 = arith.mulf %231, %233 : vector<32x256xf32>
    %c241_i32_116 = arith.constant 241 : i32
    %235 = tpu.dynamic_rotate %212 by %c241_i32_116 dim 1 : vector<32x256xf32>, i32 -> vector<32x256xf32>
    %c6_117 = arith.constant 6 : index
    %c0_118 = arith.constant 0 : index
    %236 = vector.load %arg4[%c6_117, %c0_118] : memref<9x256xf32, #tpu.memory_space<vmem>>, vector<1x256xf32>
    %237 = vector.broadcast %236 : vector<1x256xf32> to vector<32x256xf32>
    %238 = arith.mulf %235, %237 : vector<32x256xf32>
    %c240_i32_119 = arith.constant 240 : i32
    %239 = tpu.dynamic_rotate %212 by %c240_i32_119 dim 1 : vector<32x256xf32>, i32 -> vector<32x256xf32>
    %c7_120 = arith.constant 7 : index
    %c0_121 = arith.constant 0 : index
    %240 = vector.load %arg4[%c7_120, %c0_121] : memref<9x256xf32, #tpu.memory_space<vmem>>, vector<1x256xf32>
    %241 = vector.broadcast %240 : vector<1x256xf32> to vector<32x256xf32>
    %242 = arith.mulf %239, %241 : vector<32x256xf32>
    %c239_i32_122 = arith.constant 239 : i32
    %243 = tpu.dynamic_rotate %212 by %c239_i32_122 dim 1 : vector<32x256xf32>, i32 -> vector<32x256xf32>
    %c8_123 = arith.constant 8 : index
    %c0_124 = arith.constant 0 : index
    %244 = vector.load %arg4[%c8_123, %c0_124] : memref<9x256xf32, #tpu.memory_space<vmem>>, vector<1x256xf32>
    %245 = vector.broadcast %244 : vector<1x256xf32> to vector<32x256xf32>
    %246 = arith.mulf %243, %245 : vector<32x256xf32>
    %247 = tpu.concatenate %218, %222, %226, %230, %212, %234, %238, %242, %246 in 0 : vector<32x256xf32>, vector<32x256xf32>, vector<32x256xf32>, vector<32x256xf32>, vector<32x256xf32>, vector<32x256xf32>, vector<32x256xf32>, vector<32x256xf32>, vector<32x256xf32> -> vector<288x256xf32>
    %248 = arith.truncf %247 : vector<288x256xf32> to vector<288x256xbf16>
    %cst_125 = arith.constant dense<0.000000e+00> : vector<32x256xf32>
    %249 = tpu.matmul %213, %248, %cst_125 {dimension_numbers = #tpu.dot_dimension_numbers<[1], [0], [0], [1], [0, 0, 1, 1], [], []>} : vector<32x288xbf16>, vector<288x256xbf16>, vector<32x256xf32> -> vector<32x256xf32>
    %250 = vector.broadcast %214 : vector<32x1xf32> to vector<32x256xf32>
    %251 = arith.addf %249, %250 : vector<32x256xf32>
    %c0_126 = arith.constant 0 : index
    %c0_127 = arith.constant 0 : index
    %252 = vector.load %arg28[%c0_126, %c0_127] : memref<32x16xbf16, #tpu.memory_space<vmem>>, vector<32x16xbf16>
    %253 = arith.truncf %1 : vector<16x256xf32> to vector<16x256xbf16>
    %cst_128 = arith.constant dense<0.000000e+00> : vector<32x256xf32>
    %254 = tpu.matmul %252, %253, %cst_128 {dimension_numbers = #tpu.dot_dimension_numbers<[1], [0], [0], [1], [0, 0, 1, 1], [], []>} : vector<32x16xbf16>, vector<16x256xbf16>, vector<32x256xf32> -> vector<32x256xf32>
    %c0_129 = arith.constant 0 : index
    %c0_130 = arith.constant 0 : index
    %255 = vector.load %arg29[%c0_129, %c0_130] : memref<32x1xf32, #tpu.memory_space<vmem>>, vector<32x1xf32>
    %256 = vector.broadcast %255 : vector<32x1xf32> to vector<32x256xf32>
    %257 = arith.addf %254, %256 : vector<32x256xf32>
    %258 = arith.addf %251, %257 : vector<32x256xf32>
    %c0_131 = arith.constant 0 : index
    %c0_132 = arith.constant 0 : index
    %c0_133 = arith.constant 0 : index
    %259 = vector.load %arg30[%c0_131, %c0_132, %c0_133] : memref<1x32x256xf32, #tpu.memory_space<vmem>>, vector<1x32x256xf32>
    %260 = vector.shape_cast %259 : vector<1x32x256xf32> to vector<32x256xf32>
    %261 = vector.shape_cast %258 : vector<32x256xf32> to vector<1x32x256xf32>
    tpu.vector_store %arg30[%c0_131, %c0_132, %c0_133], %261 {strides = array<i32>} : memref<1x32x256xf32, #tpu.memory_space<vmem>>, vector<1x32x256xf32>,
    return
  }
  func.func @transform_0(%arg0: i32) -> (i32, i32, i32) {
    %c0_i32 = arith.constant 0 : i32
    %c0_i32_0 = arith.constant 0 : i32
    %c0_i32_1 = arith.constant 0 : i32
    return %arg0, %c0_i32, %c0_i32_0 : i32, i32, i32
  }
  func.func @transform_1(%arg0: i32) -> (i32, i32, i32) {
    %c0_i32 = arith.constant 0 : i32
    %c0_i32_0 = arith.constant 0 : i32
    %c0_i32_1 = arith.constant 0 : i32
    return %arg0, %c0_i32, %c0_i32_0 : i32, i32, i32
  }
  func.func @transform_2(%arg0: i32) -> (i32, i32, i32) {
    %c0_i32 = arith.constant 0 : i32
    %c0_i32_0 = arith.constant 0 : i32
    %c0_i32_1 = arith.constant 0 : i32
    return %arg0, %c0_i32, %c0_i32_0 : i32, i32, i32
  }
  func.func @transform_3(%arg0: i32) -> (i32, i32) {
    %c0_i32 = arith.constant 0 : i32
    %c0_i32_0 = arith.constant 0 : i32
    %c0_i32_1 = arith.constant 0 : i32
    return %c0_i32, %c0_i32_0 : i32, i32
  }
  func.func @transform_4(%arg0: i32) -> (i32, i32) {
    %c0_i32 = arith.constant 0 : i32
    %c0_i32_0 = arith.constant 0 : i32
    %c0_i32_1 = arith.constant 0 : i32
    return %c0_i32, %c0_i32_0 : i32, i32
  }
  func.func @transform_5(%arg0: i32) -> (i32, i32) {
    %c0_i32 = arith.constant 0 : i32
    %c0_i32_0 = arith.constant 0 : i32
    %c0_i32_1 = arith.constant 0 : i32
    return %c0_i32, %c0_i32_0 : i32, i32
  }
  func.func @transform_6(%arg0: i32) -> (i32, i32) {
    %c0_i32 = arith.constant 0 : i32
    %c0_i32_0 = arith.constant 0 : i32
    %c0_i32_1 = arith.constant 0 : i32
    return %c0_i32, %c0_i32_0 : i32, i32
  }
  func.func @transform_7(%arg0: i32) -> (i32, i32) {
    %c0_i32 = arith.constant 0 : i32
    %c0_i32_0 = arith.constant 0 : i32
    %c0_i32_1 = arith.constant 0 : i32
    return %c0_i32, %c0_i32_0 : i32, i32
  }
  func.func @transform_8(%arg0: i32) -> (i32, i32) {
    %c0_i32 = arith.constant 0 : i32
    %c0_i32_0 = arith.constant 0 : i32
    %c0_i32_1 = arith.constant 0 : i32
    return %c0_i32, %c0_i32_0 : i32, i32
  }
  func.func @transform_9(%arg0: i32) -> (i32, i32) {
    %c0_i32 = arith.constant 0 : i32
    %c0_i32_0 = arith.constant 0 : i32
    %c0_i32_1 = arith.constant 0 : i32
    return %c0_i32, %c0_i32_0 : i32, i32
  }
  func.func @transform_10(%arg0: i32) -> (i32, i32) {
    %c0_i32 = arith.constant 0 : i32
    %c0_i32_0 = arith.constant 0 : i32
    %c0_i32_1 = arith.constant 0 : i32
    return %c0_i32, %c0_i32_0 : i32, i32
  }
  func.func @transform_11(%arg0: i32) -> (i32, i32) {
    %c0_i32 = arith.constant 0 : i32
    %c0_i32_0 = arith.constant 0 : i32
    %c0_i32_1 = arith.constant 0 : i32
    return %c0_i32, %c0_i32_0 : i32, i32
  }
  func.func @transform_12(%arg0: i32) -> (i32, i32) {
    %c0_i32 = arith.constant 0 : i32
    %c0_i32_0 = arith.constant 0 : i32
    %c0_i32_1 = arith.constant 0 : i32
    return %c0_i32, %c0_i32_0 : i32, i32
  }
  func.func @transform_13(%arg0: i32) -> (i32, i32) {
    %c0_i32 = arith.constant 0 : i32
    %c0_i32_0 = arith.constant 0 : i32
    %c0_i32_1 = arith.constant 0 : i32
    return %c0_i32, %c0_i32_0 : i32, i32
  }
  func.func @transform_14(%arg0: i32) -> (i32, i32) {
    %c0_i32 = arith.constant 0 : i32
    %c0_i32_0 = arith.constant 0 : i32
    %c0_i32_1 = arith.constant 0 : i32
    return %c0_i32, %c0_i32_0 : i32, i32
  }
  func.func @transform_15(%arg0: i32) -> (i32, i32) {
    %c0_i32 = arith.constant 0 : i32
    %c0_i32_0 = arith.constant 0 : i32
    %c0_i32_1 = arith.constant 0 : i32
    return %c0_i32, %c0_i32_0 : i32, i32
  }
  func.func @transform_16(%arg0: i32) -> (i32, i32) {
    %c0_i32 = arith.constant 0 : i32
    %c0_i32_0 = arith.constant 0 : i32
    %c0_i32_1 = arith.constant 0 : i32
    return %c0_i32, %c0_i32_0 : i32, i32
  }
  func.func @transform_17(%arg0: i32) -> (i32, i32) {
    %c0_i32 = arith.constant 0 : i32
    %c0_i32_0 = arith.constant 0 : i32
    %c0_i32_1 = arith.constant 0 : i32
    return %c0_i32, %c0_i32_0 : i32, i32
  }
  func.func @transform_18(%arg0: i32) -> (i32, i32) {
    %c0_i32 = arith.constant 0 : i32
    %c0_i32_0 = arith.constant 0 : i32
    %c0_i32_1 = arith.constant 0 : i32
    return %c0_i32, %c0_i32_0 : i32, i32
  }
  func.func @transform_19(%arg0: i32) -> (i32, i32) {
    %c0_i32 = arith.constant 0 : i32
    %c0_i32_0 = arith.constant 0 : i32
    %c0_i32_1 = arith.constant 0 : i32
    return %c0_i32, %c0_i32_0 : i32, i32
  }
  func.func @transform_20(%arg0: i32) -> (i32, i32) {
    %c0_i32 = arith.constant 0 : i32
    %c0_i32_0 = arith.constant 0 : i32
    %c0_i32_1 = arith.constant 0 : i32
    return %c0_i32, %c0_i32_0 : i32, i32
  }
  func.func @transform_21(%arg0: i32) -> (i32, i32) {
    %c0_i32 = arith.constant 0 : i32
    %c0_i32_0 = arith.constant 0 : i32
    %c0_i32_1 = arith.constant 0 : i32
    return %c0_i32, %c0_i32_0 : i32, i32
  }
  func.func @transform_22(%arg0: i32) -> (i32, i32) {
    %c0_i32 = arith.constant 0 : i32
    %c0_i32_0 = arith.constant 0 : i32
    %c0_i32_1 = arith.constant 0 : i32
    return %c0_i32, %c0_i32_0 : i32, i32
  }
  func.func @transform_23(%arg0: i32) -> (i32, i32) {
    %c0_i32 = arith.constant 0 : i32
    %c0_i32_0 = arith.constant 0 : i32
    %c0_i32_1 = arith.constant 0 : i32
    return %c0_i32, %c0_i32_0 : i32, i32
  }
  func.func @transform_24(%arg0: i32) -> (i32, i32) {
    %c0_i32 = arith.constant 0 : i32
    %c0_i32_0 = arith.constant 0 : i32
    %c0_i32_1 = arith.constant 0 : i32
    return %c0_i32, %c0_i32_0 : i32, i32
  }
  func.func @transform_25(%arg0: i32) -> (i32, i32) {
    %c0_i32 = arith.constant 0 : i32
    %c0_i32_0 = arith.constant 0 : i32
    %c0_i32_1 = arith.constant 0 : i32
    return %c0_i32, %c0_i32_0 : i32, i32
  }
  func.func @transform_26(%arg0: i32) -> (i32, i32) {
    %c0_i32 = arith.constant 0 : i32
    %c0_i32_0 = arith.constant 0 : i32
    %c0_i32_1 = arith.constant 0 : i32
    return %c0_i32, %c0_i32_0 : i32, i32
  }
  func.func @transform_27(%arg0: i32) -> (i32, i32) {
    %c0_i32 = arith.constant 0 : i32
    %c0_i32_0 = arith.constant 0 : i32
    %c0_i32_1 = arith.constant 0 : i32
    return %c0_i32, %c0_i32_0 : i32, i32
  }
  func.func @transform_28(%arg0: i32) -> (i32, i32) {
    %c0_i32 = arith.constant 0 : i32
    %c0_i32_0 = arith.constant 0 : i32
    %c0_i32_1 = arith.constant 0 : i32
    return %c0_i32, %c0_i32_0 : i32, i32
  }
  func.func @transform_29(%arg0: i32) -> (i32, i32, i32) {
    %c0_i32 = arith.constant 0 : i32
    %c0_i32_0 = arith.constant 0 : i32
    %c0_i32_1 = arith.constant 0 : i32
    return %arg0, %c0_i32, %c0_i32_0 : i32, i32, i32
  }
}

module attributes {stable_mosaic.version = 11 : i64} {
  func.func @resnet_block_kernel(%arg0: i32, %arg1: memref<1x16x256xf32, #tpu.memory_space<vmem>>, %arg2: memref<1x24x8xf32, #tpu.memory_space<vmem>>, %arg3: memref<1x32x1xf32, #tpu.memory_space<vmem>>, %arg4: memref<9x256xf32, #tpu.memory_space<vmem>>, %arg5: memref<16x16xf32, #tpu.memory_space<vmem>>, %arg6: memref<16x1xf32, #tpu.memory_space<vmem>>, %arg7: memref<16x1xf32, #tpu.memory_space<vmem>>, %arg8: memref<32x144xbf16, #tpu.memory_space<vmem>>, %arg9: memref<32x1xf32, #tpu.memory_space<vmem>>, %arg10: memref<32x1xf32, #tpu.memory_space<vmem>>, %arg11: memref<32x1xf32, #tpu.memory_space<vmem>>, %arg12: memref<16x2xf32, #tpu.memory_space<vmem>>, %arg13: memref<64x32xbf16, #tpu.memory_space<vmem>>, %arg14: memref<64x24xbf16, #tpu.memory_space<vmem>>, %arg15: memref<64x24xbf16, #tpu.memory_space<vmem>>, %arg16: memref<32x64xbf16, #tpu.memory_space<vmem>>, %arg17: memref<32x1xf32, #tpu.memory_space<vmem>>, %arg18: memref<32x1xf32, #tpu.memory_space<vmem>>, %arg19: memref<32x32xf32, #tpu.memory_space<vmem>>, %arg20: memref<32x1xf32, #tpu.memory_space<vmem>>, %arg21: memref<32x1xf32, #tpu.memory_space<vmem>>, %arg22: memref<32x288xbf16, #tpu.memory_space<vmem>>, %arg23: memref<32x1xf32, #tpu.memory_space<vmem>>, %arg24: memref<32x32xf32, #tpu.memory_space<vmem>>, %arg25: memref<32x1xf32, #tpu.memory_space<vmem>>, %arg26: memref<32x32xf32, #tpu.memory_space<vmem>>, %arg27: memref<32x1xf32, #tpu.memory_space<vmem>>, %arg28: memref<32x16xbf16, #tpu.memory_space<vmem>>, %arg29: memref<32x1xf32, #tpu.memory_space<vmem>>, %arg30: memref<1x32x256xf32, #tpu.memory_space<vmem>>) attributes {dimension_semantics = [#tpu.dimension_semantics<parallel>], iteration_bounds = array<i64: 2>, scalar_prefetch = 0 : i64, scratch_operands = 0 : i64, tpu.core_type = #tpu.core_type<tc>, window_params = [{transform_indices = @transform_0, window_bounds = array<i64: 1, 16, 256>}, {transform_indices = @transform_1, window_bounds = array<i64: 1, 24, 8>}, {transform_indices = @transform_2, window_bounds = array<i64: 1, 32, 1>}, {pipeline_mode = #tpu.pipeline_mode<synchronous>, transform_indices = @transform_3, window_bounds = array<i64: 9, 256>}, {pipeline_mode = #tpu.pipeline_mode<synchronous>, transform_indices = @transform_4, window_bounds = array<i64: 16, 16>}, {pipeline_mode = #tpu.pipeline_mode<synchronous>, transform_indices = @transform_5, window_bounds = array<i64: 16, 1>}, {pipeline_mode = #tpu.pipeline_mode<synchronous>, transform_indices = @transform_6, window_bounds = array<i64: 16, 1>}, {pipeline_mode = #tpu.pipeline_mode<synchronous>, transform_indices = @transform_7, window_bounds = array<i64: 32, 144>}, {pipeline_mode = #tpu.pipeline_mode<synchronous>, transform_indices = @transform_8, window_bounds = array<i64: 32, 1>}, {pipeline_mode = #tpu.pipeline_mode<synchronous>, transform_indices = @transform_9, window_bounds = array<i64: 32, 1>}, {pipeline_mode = #tpu.pipeline_mode<synchronous>, transform_indices = @transform_10, window_bounds = array<i64: 32, 1>}, {pipeline_mode = #tpu.pipeline_mode<synchronous>, transform_indices = @transform_11, window_bounds = array<i64: 16, 2>}, {pipeline_mode = #tpu.pipeline_mode<synchronous>, transform_indices = @transform_12, window_bounds = array<i64: 64, 32>}, {pipeline_mode = #tpu.pipeline_mode<synchronous>, transform_indices = @transform_13, window_bounds = array<i64: 64, 24>}, {pipeline_mode = #tpu.pipeline_mode<synchronous>, transform_indices = @transform_14, window_bounds = array<i64: 64, 24>}, {pipeline_mode = #tpu.pipeline_mode<synchronous>, transform_indices = @transform_15, window_bounds = array<i64: 32, 64>}, {pipeline_mode = #tpu.pipeline_mode<synchronous>, transform_indices = @transform_16, window_bounds = array<i64: 32, 1>}, {pipeline_mode = #tpu.pipeline_mode<synchronous>, transform_indices = @transform_17, window_bounds = array<i64: 32, 1>}, {pipeline_mode = #tpu.pipeline_mode<synchronous>, transform_indices = @transform_18, window_bounds = array<i64: 32, 32>}, {pipeline_mode = #tpu.pipeline_mode<synchronous>, transform_indices = @transform_19, window_bounds = array<i64: 32, 1>}, {pipeline_mode = #tpu.pipeline_mode<synchronous>, transform_indices = @transform_20, window_bounds = array<i64: 32, 1>}, {pipeline_mode = #tpu.pipeline_mode<synchronous>, transform_indices = @transform_21, window_bounds = array<i64: 32, 288>}, {pipeline_mode = #tpu.pipeline_mode<synchronous>, transform_indices = @transform_22, window_bounds = array<i64: 32, 1>}, {pipeline_mode = #tpu.pipeline_mode<synchronous>, transform_indices = @transform_23, window_bounds = array<i64: 32, 32>}, {pipeline_mode = #tpu.pipeline_mode<synchronous>, transform_indices = @transform_24, window_bounds = array<i64: 32, 1>}, {pipeline_mode = #tpu.pipeline_mode<synchronous>, transform_indices = @transform_25, window_bounds = array<i64: 32, 32>}, {pipeline_mode = #tpu.pipeline_mode<synchronous>, transform_indices = @transform_26, window_bounds = array<i64: 32, 1>}, {pipeline_mode = #tpu.pipeline_mode<synchronous>, transform_indices = @transform_27, window_bounds = array<i64: 32, 16>}, {pipeline_mode = #tpu.pipeline_mode<synchronous>, transform_indices = @transform_28, window_bounds = array<i64: 32, 1>}, {transform_indices = @transform_29, window_bounds = array<i64: 1, 32, 256>}]} {
    %c0 = arith.constant 0 : index
    %c0_0 = arith.constant 0 : index
    %c0_1 = arith.constant 0 : index
    %0 = vector.load %arg1[%c0, %c0_0, %c0_1] : memref<1x16x256xf32, #tpu.memory_space<vmem>>, vector<1x16x256xf32>
    %1 = vector.shape_cast %0 : vector<1x16x256xf32> to vector<16x256xf32>
    %c0_2 = arith.constant 0 : index
    %c0_3 = arith.constant 0 : index
    %c0_4 = arith.constant 0 : index
    %2 = vector.load %arg3[%c0_2, %c0_3, %c0_4] : memref<1x32x1xf32, #tpu.memory_space<vmem>>, vector<1x32x1xf32>
    %3 = vector.shape_cast %2 : vector<1x32x1xf32> to vector<32x1xf32>
    %4 = arith.negf %3 : vector<32x1xf32>
    %5 = math.exp %4 : vector<32x1xf32>
    %cst = arith.constant 1.000000e+00 : f32
    %6 = vector.broadcast %cst : f32 to vector<32x1xf32>
    %7 = arith.addf %6, %5 : vector<32x1xf32>
    %8 = arith.divf %6, %7 : vector<32x1xf32>
    %9 = arith.mulf %3, %8 : vector<32x1xf32>
    %c0_5 = arith.constant 0 : index
    %c0_6 = arith.constant 0 : index
    %10 = vector.load %arg24[%c0_5, %c0_6] : memref<32x32xf32, #tpu.memory_space<vmem>>, vector<32x32xf32>
    %cst_7 = arith.constant dense<0.000000e+00> : vector<32x1xf32>
    %11 = tpu.matmul %10, %9, %cst_7 {dimension_numbers = #tpu.dot_dimension_numbers<[1], [0], [0], [1], [0, 0, 1, 1], [], []>} : vector<32x32xf32>, vector<32x1xf32>, vector<32x1xf32> -> vector<32x1xf32>
    %c0_8 = arith.constant 0 : index
    %c0_9 = arith.constant 0 : index
    %12 = vector.load %arg25[%c0_8, %c0_9] : memref<32x1xf32, #tpu.memory_space<vmem>>, vector<32x1xf32>
    %13 = arith.addf %11, %12 : vector<32x1xf32>
    %c0_10 = arith.constant 0 : index
    %c0_11 = arith.constant 0 : index
    %14 = vector.load %arg26[%c0_10, %c0_11] : memref<32x32xf32, #tpu.memory_space<vmem>>, vector<32x32xf32>
    %cst_12 = arith.constant dense<0.000000e+00> : vector<32x1xf32>
    %15 = tpu.matmul %14, %9, %cst_12 {dimension_numbers = #tpu.dot_dimension_numbers<[1], [0], [0], [1], [0, 0, 1, 1], [], []>} : vector<32x32xf32>, vector<32x1xf32>, vector<32x1xf32> -> vector<32x1xf32>
    %c0_13 = arith.constant 0 : index
    %c0_14 = arith.constant 0 : index
    %16 = vector.load %arg27[%c0_13, %c0_14] : memref<32x1xf32, #tpu.memory_space<vmem>>, vector<32x1xf32>
    %17 = arith.addf %15, %16 : vector<32x1xf32>
    %c0_15 = arith.constant 0 : index
    %c0_16 = arith.constant 0 : index
    %18 = vector.load %arg5[%c0_15, %c0_16] : memref<16x16xf32, #tpu.memory_space<vmem>>, vector<16x16xf32>
    %c0_17 = arith.constant 0 : index
    %c0_18 = arith.constant 0 : index
    %19 = vector.load %arg6[%c0_17, %c0_18] : memref<16x1xf32, #tpu.memory_space<vmem>>, vector<16x1xf32>
    %c0_19 = arith.constant 0 : index
    %c0_20 = arith.constant 0 : index
    %20 = vector.load %arg7[%c0_19, %c0_20] : memref<16x1xf32, #tpu.memory_space<vmem>>, vector<16x1xf32>
    %cst_21 = arith.constant dense<0.000000e+00> : vector<16xf32>
    %21 = vector.multi_reduction <add>, %1, %cst_21 [1] : vector<16x256xf32> to vector<16xf32>
    %22 = vector.shape_cast %21 : vector<16xf32> to vector<16x1xf32>
    %cst_22 = arith.constant dense<0.000000e+00> : vector<16x1xf32>
    %23 = tpu.matmul %18, %22, %cst_22 {dimension_numbers = #tpu.dot_dimension_numbers<[1], [0], [0], [1], [0, 0, 1, 1], [], []>} : vector<16x16xf32>, vector<16x1xf32>, vector<16x1xf32> -> vector<16x1xf32>
    %24 = vector.broadcast %23 : vector<16x1xf32> to vector<16x256xf32>
    %25 = arith.subf %1, %24 : vector<16x256xf32>
    %26 = arith.mulf %25, %25 : vector<16x256xf32>
    %cst_23 = arith.constant dense<0.000000e+00> : vector<16xf32>
    %27 = vector.multi_reduction <add>, %26, %cst_23 [1] : vector<16x256xf32> to vector<16xf32>
    %28 = vector.shape_cast %27 : vector<16xf32> to vector<16x1xf32>
    %cst_24 = arith.constant dense<0.000000e+00> : vector<16x1xf32>
    %29 = tpu.matmul %18, %28, %cst_24 {dimension_numbers = #tpu.dot_dimension_numbers<[1], [0], [0], [1], [0, 0, 1, 1], [], []>} : vector<16x16xf32>, vector<16x1xf32>, vector<16x1xf32> -> vector<16x1xf32>
    %cst_25 = arith.constant 9.99999974E-6 : f32
    %30 = vector.broadcast %cst_25 : f32 to vector<16x1xf32>
    %31 = arith.addf %29, %30 : vector<16x1xf32>
    %32 = math.rsqrt %31 : vector<16x1xf32>
    %33 = vector.broadcast %32 : vector<16x1xf32> to vector<16x256xf32>
    %34 = arith.mulf %25, %33 : vector<16x256xf32>
    %35 = vector.broadcast %19 : vector<16x1xf32> to vector<16x256xf32>
    %36 = arith.mulf %34, %35 : vector<16x256xf32>
    %37 = vector.broadcast %20 : vector<16x1xf32> to vector<16x256xf32>
    %38 = arith.addf %36, %37 : vector<16x256xf32>
    %39 = arith.negf %38 : vector<16x256xf32>
    %40 = math.exp %39 : vector<16x256xf32>
    %cst_26 = arith.constant 1.000000e+00 : f32
    %41 = vector.broadcast %cst_26 : f32 to vector<16x256xf32>
    %42 = arith.addf %41, %40 : vector<16x256xf32>
    %43 = arith.divf %41, %42 : vector<16x256xf32>
    %44 = arith.mulf %38, %43 : vector<16x256xf32>
    %c0_27 = arith.constant 0 : index
    %c0_28 = arith.constant 0 : index
    %45 = vector.load %arg8[%c0_27, %c0_28] : memref<32x144xbf16, #tpu.memory_space<vmem>>, vector<32x144xbf16>
    %c0_29 = arith.constant 0 : index
    %c0_30 = arith.constant 0 : index
    %46 = vector.load %arg9[%c0_29, %c0_30] : memref<32x1xf32, #tpu.memory_space<vmem>>, vector<32x1xf32>
    %c17_i32 = arith.constant 17 : i32
    %47 = tpu.dynamic_rotate %44 by %c17_i32 dim 1 : vector<16x256xf32>, i32 -> vector<16x256xf32>
    %c0_31 = arith.constant 0 : index
    %c0_32 = arith.constant 0 : index
    %48 = vector.load %arg4[%c0_31, %c0_32] : memref<9x256xf32, #tpu.memory_space<vmem>>, vector<1x256xf32>
    %49 = vector.broadcast %48 : vector<1x256xf32> to vector<16x256xf32>
    %50 = arith.mulf %47, %49 : vector<16x256xf32>
    %c16_i32 = arith.constant 16 : i32
    %51 = tpu.dynamic_rotate %44 by %c16_i32 dim 1 : vector<16x256xf32>, i32 -> vector<16x256xf32>
    %c1 = arith.constant 1 : index
    %c0_33 = arith.constant 0 : index
    %52 = vector.load %arg4[%c1, %c0_33] : memref<9x256xf32, #tpu.memory_space<vmem>>, vector<1x256xf32>
    %53 = vector.broadcast %52 : vector<1x256xf32> to vector<16x256xf32>
    %54 = arith.mulf %51, %53 : vector<16x256xf32>
    %c15_i32 = arith.constant 15 : i32
    %55 = tpu.dynamic_rotate %44 by %c15_i32 dim 1 : vector<16x256xf32>, i32 -> vector<16x256xf32>
    %c2 = arith.constant 2 : index
    %c0_34 = arith.constant 0 : index
    %56 = vector.load %arg4[%c2, %c0_34] : memref<9x256xf32, #tpu.memory_space<vmem>>, vector<1x256xf32>
    %57 = vector.broadcast %56 : vector<1x256xf32> to vector<16x256xf32>
    %58 = arith.mulf %55, %57 : vector<16x256xf32>
    %c1_i32 = arith.constant 1 : i32
    %59 = tpu.dynamic_rotate %44 by %c1_i32 dim 1 : vector<16x256xf32>, i32 -> vector<16x256xf32>
    %c3 = arith.constant 3 : index
    %c0_35 = arith.constant 0 : index
    %60 = vector.load %arg4[%c3, %c0_35] : memref<9x256xf32, #tpu.memory_space<vmem>>, vector<1x256xf32>
    %61 = vector.broadcast %60 : vector<1x256xf32> to vector<16x256xf32>
    %62 = arith.mulf %59, %61 : vector<16x256xf32>
    %c255_i32 = arith.constant 255 : i32
    %63 = tpu.dynamic_rotate %44 by %c255_i32 dim 1 : vector<16x256xf32>, i32 -> vector<16x256xf32>
    %c5 = arith.constant 5 : index
    %c0_36 = arith.constant 0 : index
    %64 = vector.load %arg4[%c5, %c0_36] : memref<9x256xf32, #tpu.memory_space<vmem>>, vector<1x256xf32>
    %65 = vector.broadcast %64 : vector<1x256xf32> to vector<16x256xf32>
    %66 = arith.mulf %63, %65 : vector<16x256xf32>
    %c241_i32 = arith.constant 241 : i32
    %67 = tpu.dynamic_rotate %44 by %c241_i32 dim 1 : vector<16x256xf32>, i32 -> vector<16x256xf32>
    %c6 = arith.constant 6 : index
    %c0_37 = arith.constant 0 : index
    %68 = vector.load %arg4[%c6, %c0_37] : memref<9x256xf32, #tpu.memory_space<vmem>>, vector<1x256xf32>
    %69 = vector.broadcast %68 : vector<1x256xf32> to vector<16x256xf32>
    %70 = arith.mulf %67, %69 : vector<16x256xf32>
    %c240_i32 = arith.constant 240 : i32
    %71 = tpu.dynamic_rotate %44 by %c240_i32 dim 1 : vector<16x256xf32>, i32 -> vector<16x256xf32>
    %c7 = arith.constant 7 : index
    %c0_38 = arith.constant 0 : index
    %72 = vector.load %arg4[%c7, %c0_38] : memref<9x256xf32, #tpu.memory_space<vmem>>, vector<1x256xf32>
    %73 = vector.broadcast %72 : vector<1x256xf32> to vector<16x256xf32>
    %74 = arith.mulf %71, %73 : vector<16x256xf32>
    %c239_i32 = arith.constant 239 : i32
    %75 = tpu.dynamic_rotate %44 by %c239_i32 dim 1 : vector<16x256xf32>, i32 -> vector<16x256xf32>
    %c8 = arith.constant 8 : index
    %c0_39 = arith.constant 0 : index
    %76 = vector.load %arg4[%c8, %c0_39] : memref<9x256xf32, #tpu.memory_space<vmem>>, vector<1x256xf32>
    %77 = vector.broadcast %76 : vector<1x256xf32> to vector<16x256xf32>
    %78 = arith.mulf %75, %77 : vector<16x256xf32>
    %79 = tpu.concatenate %50, %54, %58, %62, %44, %66, %70, %74, %78 in 0 : vector<16x256xf32>, vector<16x256xf32>, vector<16x256xf32>, vector<16x256xf32>, vector<16x256xf32>, vector<16x256xf32>, vector<16x256xf32>, vector<16x256xf32>, vector<16x256xf32> -> vector<144x256xf32>
    %80 = arith.truncf %79 : vector<144x256xf32> to vector<144x256xbf16>
    %cst_40 = arith.constant dense<0.000000e+00> : vector<32x256xf32>
    %81 = tpu.matmul %45, %80, %cst_40 {dimension_numbers = #tpu.dot_dimension_numbers<[1], [0], [0], [1], [0, 0, 1, 1], [], []>} : vector<32x144xbf16>, vector<144x256xbf16>, vector<32x256xf32> -> vector<32x256xf32>
    %82 = vector.broadcast %46 : vector<32x1xf32> to vector<32x256xf32>
    %83 = arith.addf %81, %82 : vector<32x256xf32>
    %c0_41 = arith.constant 0 : index
    %c0_42 = arith.constant 0 : index
    %84 = vector.load %arg10[%c0_41, %c0_42] : memref<32x1xf32, #tpu.memory_space<vmem>>, vector<32x1xf32>
    %c0_43 = arith.constant 0 : index
    %c0_44 = arith.constant 0 : index
    %85 = vector.load %arg11[%c0_43, %c0_44] : memref<32x1xf32, #tpu.memory_space<vmem>>, vector<32x1xf32>
    %cst_45 = arith.constant dense<0.000000e+00> : vector<256xf32>
    %86 = vector.multi_reduction <add>, %83, %cst_45 [0] : vector<32x256xf32> to vector<256xf32>
    %87 = vector.shape_cast %86 : vector<256xf32> to vector<1x256xf32>
    %cst_46 = arith.constant 3.125000e-02 : f32
    %88 = vector.broadcast %cst_46 : f32 to vector<1x256xf32>
    %89 = arith.mulf %87, %88 : vector<1x256xf32>
    %90 = vector.broadcast %89 : vector<1x256xf32> to vector<32x256xf32>
    %91 = arith.subf %83, %90 : vector<32x256xf32>
    %92 = arith.mulf %91, %91 : vector<32x256xf32>
    %cst_47 = arith.constant dense<0.000000e+00> : vector<256xf32>
    %93 = vector.multi_reduction <add>, %92, %cst_47 [0] : vector<32x256xf32> to vector<256xf32>
    %94 = vector.shape_cast %93 : vector<256xf32> to vector<1x256xf32>
    %cst_48 = arith.constant 3.125000e-02 : f32
    %95 = vector.broadcast %cst_48 : f32 to vector<1x256xf32>
    %96 = arith.mulf %94, %95 : vector<1x256xf32>
    %cst_49 = arith.constant 9.99999974E-6 : f32
    %97 = vector.broadcast %cst_49 : f32 to vector<1x256xf32>
    %98 = arith.addf %96, %97 : vector<1x256xf32>
    %99 = math.rsqrt %98 : vector<1x256xf32>
    %100 = vector.broadcast %99 : vector<1x256xf32> to vector<32x256xf32>
    %101 = arith.mulf %91, %100 : vector<32x256xf32>
    %102 = vector.broadcast %84 : vector<32x1xf32> to vector<32x256xf32>
    %103 = arith.mulf %101, %102 : vector<32x256xf32>
    %104 = vector.broadcast %85 : vector<32x1xf32> to vector<32x256xf32>
    %105 = arith.addf %103, %104 : vector<32x256xf32>
    %106 = arith.truncf %105 : vector<32x256xf32> to vector<32x256xbf16>
    %c0_50 = arith.constant 0 : index
    %c0_51 = arith.constant 0 : index
    %c0_52 = arith.constant 0 : index
    %107 = vector.load %arg2[%c0_50, %c0_51, %c0_52] : memref<1x24x8xf32, #tpu.memory_space<vmem>>, vector<1x24x8xf32>
    %108 = vector.shape_cast %107 : vector<1x24x8xf32> to vector<24x8xf32>
    %109 = arith.truncf %108 : vector<24x8xf32> to vector<24x8xbf16>
    %c0_53 = arith.constant 0 : index
    %c0_54 = arith.constant 0 : index
    %110 = vector.load %arg13[%c0_53, %c0_54] : memref<64x32xbf16, #tpu.memory_space<vmem>>, vector<64x32xbf16>
    %cst_55 = arith.constant dense<0.000000e+00> : vector<64x256xf32>
    %111 = tpu.matmul %110, %106, %cst_55 {dimension_numbers = #tpu.dot_dimension_numbers<[1], [0], [0], [1], [0, 0, 1, 1], [], []>} : vector<64x32xbf16>, vector<32x256xbf16>, vector<64x256xf32> -> vector<64x256xf32>
    %cst_56 = arith.constant 2.500000e-01 : f32
    %112 = vector.broadcast %cst_56 : f32 to vector<64x256xf32>
    %113 = arith.mulf %111, %112 : vector<64x256xf32>
    %c0_57 = arith.constant 0 : index
    %c0_58 = arith.constant 0 : index
    %114 = vector.load %arg14[%c0_57, %c0_58] : memref<64x24xbf16, #tpu.memory_space<vmem>>, vector<64x24xbf16>
    %cst_59 = arith.constant dense<0.000000e+00> : vector<64x8xf32>
    %115 = tpu.matmul %114, %109, %cst_59 {dimension_numbers = #tpu.dot_dimension_numbers<[1], [0], [0], [1], [0, 0, 1, 1], [], []>} : vector<64x24xbf16>, vector<24x8xbf16>, vector<64x8xf32> -> vector<64x8xf32>
    %c0_60 = arith.constant 0 : index
    %c0_61 = arith.constant 0 : index
    %116 = vector.load %arg15[%c0_60, %c0_61] : memref<64x24xbf16, #tpu.memory_space<vmem>>, vector<64x24xbf16>
    %cst_62 = arith.constant dense<0.000000e+00> : vector<64x8xf32>
    %117 = tpu.matmul %116, %109, %cst_62 {dimension_numbers = #tpu.dot_dimension_numbers<[1], [0], [0], [1], [0, 0, 1, 1], [], []>} : vector<64x24xbf16>, vector<24x8xbf16>, vector<64x8xf32> -> vector<64x8xf32>
    %118 = vector.shape_cast %113 : vector<64x256xf32> to vector<4x16x256xf32>
    %119 = vector.shape_cast %115 : vector<64x8xf32> to vector<4x16x8xf32>
    %120 = arith.truncf %119 : vector<4x16x8xf32> to vector<4x16x8xbf16>
    %121 = vector.shape_cast %117 : vector<64x8xf32> to vector<4x16x8xf32>
    %122 = arith.truncf %121 : vector<4x16x8xf32> to vector<4x16x8xbf16>
    %123 = arith.truncf %118 : vector<4x16x256xf32> to vector<4x16x256xbf16>
    "tpu.trace_start"() <{level = 10 : i32, message = "hdm,hdn->hmn"}> : () -> ()
    %cst_63 = arith.constant dense<0.000000e+00> : vector<4x8x256xf32>
    %124 = tpu.matmul %120, %123, %cst_63 {dimension_numbers = #tpu.dot_dimension_numbers<[1], [1], [2], [2], [0, 0, 0, 2, 1, 2], [0], [0]>} : vector<4x16x8xbf16>, vector<4x16x256xbf16>, vector<4x8x256xf32> -> vector<4x8x256xf32>
    "tpu.trace_stop"() : () -> ()
    %c0_64 = arith.constant 0 : index
    %c0_65 = arith.constant 0 : index
    %125 = vector.load %arg12[%c0_64, %c0_65] : memref<16x2xf32, #tpu.memory_space<vmem>>, vector<16x1xf32>
    %126 = vector.shape_cast %125 : vector<16x1xf32> to vector<1x16x1xf32>
    %c0_66 = arith.constant 0 : index
    %c1_67 = arith.constant 1 : index
    %127 = vector.load %arg12[%c0_66, %c1_67] : memref<16x2xf32, #tpu.memory_space<vmem>>, vector<16x1xf32>
    %128 = vector.shape_cast %127 : vector<16x1xf32> to vector<1x16x1xf32>
    %129 = vector.broadcast %126 : vector<1x16x1xf32> to vector<4x16x256xf32>
    %130 = arith.mulf %118, %129 : vector<4x16x256xf32>
    %cst_68 = arith.constant dense<0.000000e+00> : vector<4x256xf32>
    %131 = vector.multi_reduction <add>, %130, %cst_68 [1] : vector<4x16x256xf32> to vector<4x256xf32>
    %132 = vector.shape_cast %131 : vector<4x256xf32> to vector<4x1x256xf32>
    %cst_69 = arith.constant dense<0xFF800000> : vector<4x256xf32>
    %133 = vector.multi_reduction <maximumf>, %124, %cst_69 [1] : vector<4x8x256xf32> to vector<4x256xf32>
    %134 = vector.shape_cast %133 : vector<4x256xf32> to vector<4x1x256xf32>
    %135 = arith.maximumf %134, %132 : vector<4x1x256xf32>
    %136 = vector.broadcast %135 : vector<4x1x256xf32> to vector<4x8x256xf32>
    %137 = arith.subf %124, %136 : vector<4x8x256xf32>
    %138 = math.exp %137 : vector<4x8x256xf32>
    %139 = arith.subf %132, %135 : vector<4x1x256xf32>
    %140 = math.exp %139 : vector<4x1x256xf32>
    %cst_70 = arith.constant dense<0.000000e+00> : vector<4x256xf32>
    %141 = vector.multi_reduction <add>, %138, %cst_70 [1] : vector<4x8x256xf32> to vector<4x256xf32>
    %142 = vector.shape_cast %141 : vector<4x256xf32> to vector<4x1x256xf32>
    %143 = arith.addf %142, %140 : vector<4x1x256xf32>
    %144 = tpu.reciprocal %143 {approx = true} : vector<4x1x256xf32> -> vector<4x1x256xf32>
    %145 = arith.truncf %138 : vector<4x8x256xf32> to vector<4x8x256xbf16>
    "tpu.trace_start"() <{level = 10 : i32, message = "hdm,hmn->hdn"}> : () -> ()
    %cst_71 = arith.constant dense<0.000000e+00> : vector<4x16x256xf32>
    %146 = tpu.matmul %122, %145, %cst_71 {dimension_numbers = #tpu.dot_dimension_numbers<[2], [1], [1], [2], [0, 0, 0, 1, 1, 2], [0], [0]>} : vector<4x16x8xbf16>, vector<4x8x256xbf16>, vector<4x16x256xf32> -> vector<4x16x256xf32>
    "tpu.trace_stop"() : () -> ()
    %147 = vector.broadcast %140 : vector<4x1x256xf32> to vector<4x16x256xf32>
    %148 = vector.broadcast %128 : vector<1x16x1xf32> to vector<4x16x256xf32>
    %149 = arith.mulf %147, %148 : vector<4x16x256xf32>
    %150 = arith.addf %146, %149 : vector<4x16x256xf32>
    %151 = vector.broadcast %144 : vector<4x1x256xf32> to vector<4x16x256xf32>
    %152 = arith.mulf %150, %151 : vector<4x16x256xf32>
    %c0_72 = arith.constant 0 : index
    %c0_73 = arith.constant 0 : index
    %153 = vector.load %arg16[%c0_72, %c0_73] : memref<32x64xbf16, #tpu.memory_space<vmem>>, vector<32x64xbf16>
    %154 = vector.shape_cast %152 : vector<4x16x256xf32> to vector<64x256xf32>
    %155 = arith.truncf %154 : vector<64x256xf32> to vector<64x256xbf16>
    %cst_74 = arith.constant dense<0.000000e+00> : vector<32x256xf32>
    %156 = tpu.matmul %153, %155, %cst_74 {dimension_numbers = #tpu.dot_dimension_numbers<[1], [0], [0], [1], [0, 0, 1, 1], [], []>} : vector<32x64xbf16>, vector<64x256xbf16>, vector<32x256xf32> -> vector<32x256xf32>
    %c0_75 = arith.constant 0 : index
    %c0_76 = arith.constant 0 : index
    %157 = vector.load %arg17[%c0_75, %c0_76] : memref<32x1xf32, #tpu.memory_space<vmem>>, vector<32x1xf32>
    %c0_77 = arith.constant 0 : index
    %c0_78 = arith.constant 0 : index
    %158 = vector.load %arg18[%c0_77, %c0_78] : memref<32x1xf32, #tpu.memory_space<vmem>>, vector<32x1xf32>
    %cst_79 = arith.constant dense<0.000000e+00> : vector<256xf32>
    %159 = vector.multi_reduction <add>, %156, %cst_79 [0] : vector<32x256xf32> to vector<256xf32>
    %160 = vector.shape_cast %159 : vector<256xf32> to vector<1x256xf32>
    %cst_80 = arith.constant 3.125000e-02 : f32
    %161 = vector.broadcast %cst_80 : f32 to vector<1x256xf32>
    %162 = arith.mulf %160, %161 : vector<1x256xf32>
    %163 = vector.broadcast %162 : vector<1x256xf32> to vector<32x256xf32>
    %164 = arith.subf %156, %163 : vector<32x256xf32>
    %165 = arith.mulf %164, %164 : vector<32x256xf32>
    %cst_81 = arith.constant dense<0.000000e+00> : vector<256xf32>
    %166 = vector.multi_reduction <add>, %165, %cst_81 [0] : vector<32x256xf32> to vector<256xf32>
    %167 = vector.shape_cast %166 : vector<256xf32> to vector<1x256xf32>
    %cst_82 = arith.constant 3.125000e-02 : f32
    %168 = vector.broadcast %cst_82 : f32 to vector<1x256xf32>
    %169 = arith.mulf %167, %168 : vector<1x256xf32>
    %cst_83 = arith.constant 9.99999974E-6 : f32
    %170 = vector.broadcast %cst_83 : f32 to vector<1x256xf32>
    %171 = arith.addf %169, %170 : vector<1x256xf32>
    %172 = math.rsqrt %171 : vector<1x256xf32>
    %173 = vector.broadcast %172 : vector<1x256xf32> to vector<32x256xf32>
    %174 = arith.mulf %164, %173 : vector<32x256xf32>
    %175 = vector.broadcast %157 : vector<32x1xf32> to vector<32x256xf32>
    %176 = arith.mulf %174, %175 : vector<32x256xf32>
    %177 = vector.broadcast %158 : vector<32x1xf32> to vector<32x256xf32>
    %178 = arith.addf %176, %177 : vector<32x256xf32>
    %179 = arith.addf %83, %178 : vector<32x256xf32>
    %c0_84 = arith.constant 0 : index
    %c0_85 = arith.constant 0 : index
    %180 = vector.load %arg19[%c0_84, %c0_85] : memref<32x32xf32, #tpu.memory_space<vmem>>, vector<32x32xf32>
    %c0_86 = arith.constant 0 : index
    %c0_87 = arith.constant 0 : index
    %181 = vector.load %arg20[%c0_86, %c0_87] : memref<32x1xf32, #tpu.memory_space<vmem>>, vector<32x1xf32>
    %c0_88 = arith.constant 0 : index
    %c0_89 = arith.constant 0 : index
    %182 = vector.load %arg21[%c0_88, %c0_89] : memref<32x1xf32, #tpu.memory_space<vmem>>, vector<32x1xf32>
    %cst_90 = arith.constant dense<0.000000e+00> : vector<32xf32>
    %183 = vector.multi_reduction <add>, %179, %cst_90 [1] : vector<32x256xf32> to vector<32xf32>
    %184 = vector.shape_cast %183 : vector<32xf32> to vector<32x1xf32>
    %cst_91 = arith.constant dense<0.000000e+00> : vector<32x1xf32>
    %185 = tpu.matmul %180, %184, %cst_91 {dimension_numbers = #tpu.dot_dimension_numbers<[1], [0], [0], [1], [0, 0, 1, 1], [], []>} : vector<32x32xf32>, vector<32x1xf32>, vector<32x1xf32> -> vector<32x1xf32>
    %186 = vector.broadcast %185 : vector<32x1xf32> to vector<32x256xf32>
    %187 = arith.subf %179, %186 : vector<32x256xf32>
    %188 = arith.mulf %187, %187 : vector<32x256xf32>
    %cst_92 = arith.constant dense<0.000000e+00> : vector<32xf32>
    %189 = vector.multi_reduction <add>, %188, %cst_92 [1] : vector<32x256xf32> to vector<32xf32>
    %190 = vector.shape_cast %189 : vector<32xf32> to vector<32x1xf32>
    %cst_93 = arith.constant dense<0.000000e+00> : vector<32x1xf32>
    %191 = tpu.matmul %180, %190, %cst_93 {dimension_numbers = #tpu.dot_dimension_numbers<[1], [0], [0], [1], [0, 0, 1, 1], [], []>} : vector<32x32xf32>, vector<32x1xf32>, vector<32x1xf32> -> vector<32x1xf32>
    %cst_94 = arith.constant 9.99999974E-6 : f32
    %192 = vector.broadcast %cst_94 : f32 to vector<32x1xf32>
    %193 = arith.addf %191, %192 : vector<32x1xf32>
    %194 = math.rsqrt %193 : vector<32x1xf32>
    %195 = vector.broadcast %194 : vector<32x1xf32> to vector<32x256xf32>
    %196 = arith.mulf %187, %195 : vector<32x256xf32>
    %197 = vector.broadcast %181 : vector<32x1xf32> to vector<32x256xf32>
    %198 = arith.mulf %196, %197 : vector<32x256xf32>
    %199 = vector.broadcast %182 : vector<32x1xf32> to vector<32x256xf32>
    %200 = arith.addf %198, %199 : vector<32x256xf32>
    %cst_95 = arith.constant 1.000000e+00 : f32
    %201 = vector.broadcast %cst_95 : f32 to vector<32x1xf32>
    %202 = arith.addf %13, %201 : vector<32x1xf32>
    %203 = vector.broadcast %202 : vector<32x1xf32> to vector<32x256xf32>
    %204 = arith.mulf %200, %203 : vector<32x256xf32>
    %205 = vector.broadcast %17 : vector<32x1xf32> to vector<32x256xf32>
    %206 = arith.addf %204, %205 : vector<32x256xf32>
    %207 = arith.negf %206 : vector<32x256xf32>
    %208 = math.exp %207 : vector<32x256xf32>
    %cst_96 = arith.constant 1.000000e+00 : f32
    %209 = vector.broadcast %cst_96 : f32 to vector<32x256xf32>
    %210 = arith.addf %209, %208 : vector<32x256xf32>
    %211 = arith.divf %209, %210 : vector<32x256xf32>
    %212 = arith.mulf %206, %211 : vector<32x256xf32>
    %c0_97 = arith.constant 0 : index
    %c0_98 = arith.constant 0 : index
    %213 = vector.load %arg22[%c0_97, %c0_98] : memref<32x288xbf16, #tpu.memory_space<vmem>>, vector<32x288xbf16>
    %c0_99 = arith.constant 0 : index
    %c0_100 = arith.constant 0 : index
    %214 = vector.load %arg23[%c0_99, %c0_100] : memref<32x1xf32, #tpu.memory_space<vmem>>, vector<32x1xf32>
    %c17_i32_101 = arith.constant 17 : i32
    %215 = tpu.dynamic_rotate %212 by %c17_i32_101 dim 1 : vector<32x256xf32>, i32 -> vector<32x256xf32>
    %c0_102 = arith.constant 0 : index
    %c0_103 = arith.constant 0 : index
    %216 = vector.load %arg4[%c0_102, %c0_103] : memref<9x256xf32, #tpu.memory_space<vmem>>, vector<1x256xf32>
    %217 = vector.broadcast %216 : vector<1x256xf32> to vector<32x256xf32>
    %218 = arith.mulf %215, %217 : vector<32x256xf32>
    %c16_i32_104 = arith.constant 16 : i32
    %219 = tpu.dynamic_rotate %212 by %c16_i32_104 dim 1 : vector<32x256xf32>, i32 -> vector<32x256xf32>
    %c1_105 = arith.constant 1 : index
    %c0_106 = arith.constant 0 : index
    %220 = vector.load %arg4[%c1_105, %c0_106] : memref<9x256xf32, #tpu.memory_space<vmem>>, vector<1x256xf32>
    %221 = vector.broadcast %220 : vector<1x256xf32> to vector<32x256xf32>
    %222 = arith.mulf %219, %221 : vector<32x256xf32>
    %c15_i32_107 = arith.constant 15 : i32
    %223 = tpu.dynamic_rotate %212 by %c15_i32_107 dim 1 : vector<32x256xf32>, i32 -> vector<32x256xf32>
    %c2_108 = arith.constant 2 : index
    %c0_109 = arith.constant 0 : index
    %224 = vector.load %arg4[%c2_108, %c0_109] : memref<9x256xf32, #tpu.memory_space<vmem>>, vector<1x256xf32>
    %225 = vector.broadcast %224 : vector<1x256xf32> to vector<32x256xf32>
    %226 = arith.mulf %223, %225 : vector<32x256xf32>
    %c1_i32_110 = arith.constant 1 : i32
    %227 = tpu.dynamic_rotate %212 by %c1_i32_110 dim 1 : vector<32x256xf32>, i32 -> vector<32x256xf32>
    %c3_111 = arith.constant 3 : index
    %c0_112 = arith.constant 0 : index
    %228 = vector.load %arg4[%c3_111, %c0_112] : memref<9x256xf32, #tpu.memory_space<vmem>>, vector<1x256xf32>
    %229 = vector.broadcast %228 : vector<1x256xf32> to vector<32x256xf32>
    %230 = arith.mulf %227, %229 : vector<32x256xf32>
    %c255_i32_113 = arith.constant 255 : i32
    %231 = tpu.dynamic_rotate %212 by %c255_i32_113 dim 1 : vector<32x256xf32>, i32 -> vector<32x256xf32>
    %c5_114 = arith.constant 5 : index
    %c0_115 = arith.constant 0 : index
    %232 = vector.load %arg4[%c5_114, %c0_115] : memref<9x256xf32, #tpu.memory_space<vmem>>, vector<1x256xf32>
    %233 = vector.broadcast %232 : vector<1x256xf32> to vector<32x256xf32>
    %234 = arith.mulf %231, %233 : vector<32x256xf32>
    %c241_i32_116 = arith.constant 241 : i32
    %235 = tpu.dynamic_rotate %212 by %c241_i32_116 dim 1 : vector<32x256xf32>, i32 -> vector<32x256xf32>
    %c6_117 = arith.constant 6 : index
    %c0_118 = arith.constant 0 : index
    %236 = vector.load %arg4[%c6_117, %c0_118] : memref<9x256xf32, #tpu.memory_space<vmem>>, vector<1x256xf32>
    %237 = vector.broadcast %236 : vector<1x256xf32> to vector<32x256xf32>
    %238 = arith.mulf %235, %237 : vector<32x256xf32>
    %c240_i32_119 = arith.constant 240 : i32
    %239 = tpu.dynamic_rotate %212 by %c240_i32_119 dim 1 : vector<32x256xf32>, i32 -> vector<32x256xf32>
    %c7_120 = arith.constant 7 : index
    %c0_121 = arith.constant 0 : index
    %240 = vector.load %arg4[%c7_120, %c0_121] : memref<9x256xf32, #tpu.memory_space<vmem>>, vector<1x256xf32>
    %241 = vector.broadcast %240 : vector<1x256xf32> to vector<32x256xf32>
    %242 = arith.mulf %239, %241 : vector<32x256xf32>
    %c239_i32_122 = arith.constant 239 : i32
    %243 = tpu.dynamic_rotate %212 by %c239_i32_122 dim 1 : vector<32x256xf32>, i32 -> vector<32x256xf32>
    %c8_123 = arith.constant 8 : index
    %c0_124 = arith.constant 0 : index
    %244 = vector.load %arg4[%c8_123, %c0_124] : memref<9x256xf32, #tpu.memory_space<vmem>>, vector<1x256xf32>
    %245 = vector.broadcast %244 : vector<1x256xf32> to vector<32x256xf32>
    %246 = arith.mulf %243, %245 : vector<32x256xf32>
    %247 = tpu.concatenate %218, %222, %226, %230, %212, %234, %238, %242, %246 in 0 : vector<32x256xf32>, vector<32x256xf32>, vector<32x256xf32>, vector<32x256xf32>, vector<32x256xf32>, vector<32x256xf32>, vector<32x256xf32>, vector<32x256xf32>, vector<32x256xf32> -> vector<288x256xf32>
    %248 = arith.truncf %247 : vector<288x256xf32> to vector<288x256xbf16>
    %cst_125 = arith.constant dense<0.000000e+00> : vector<32x256xf32>
    %249 = tpu.matmul %213, %248, %cst_125 {dimension_numbers = #tpu.dot_dimension_numbers<[1], [0], [0], [1], [0, 0, 1, 1], [], []>} : vector<32x288xbf16>, vector<288x256xbf16>, vector<32x256xf32> -> vector<32x256xf32>
    %250 = vector.broadcast %214 : vector<32x1xf32> to vector<32x256xf32>
    %251 = arith.addf %249, %250 : vector<32x256xf32>
    %c0_126 = arith.constant 0 : index
    %c0_127 = arith.constant 0 : index
    %252 = vector.load %arg28[%c0_126, %c0_127] : memref<32x16xbf16, #tpu.memory_space<vmem>>, vector<32x16xbf16>
    %253 = arith.truncf %1 : vector<16x256xf32> to vector<16x256xbf16>
    %cst_128 = arith.constant dense<0.000000e+00> : vector<32x256xf32>
    %254 = tpu.matmul %252, %253, %cst_128 {dimension_numbers = #tpu.dot_dimension_numbers<[1], [0], [0], [1], [0, 0, 1, 1], [], []>} : vector<32x16xbf16>, vector<16x256xbf16>, vector<32x256xf32> -> vector<32x256xf32>
    %c0_129 = arith.constant 0 : index
    %c0_130 = arith.constant 0 : index
    %255 = vector.load %arg29[%c0_129, %c0_130] : memref<32x1xf32, #tpu.memory_space<vmem>>, vector<32x1xf32>
    %256 = vector.broadcast %255 : vector<32x1xf32> to vector<32x256xf32>
    %257 = arith.addf %254, %256 : vector<32x256xf32>
    %258 = arith.addf %251, %257 : vector<32x256xf32>
    %c0_131 = arith.constant 0 : index
    %c0_132 = arith.constant 0 : index
    %c0_133 = arith.constant 0 : index
    %259 = vector.load %arg30[%c0_131, %c0_132, %c0_133] : memref<1x32x256xf32, #tpu.memory_space<vmem>>, vector<1x32x256xf32>
    %260 = vector.shape_cast %259 : vector<1x32x256xf32> to vector<32x256xf32>
    %261 = vector.shape_cast %258 : vector<32x256xf32> to vector<1x32x256xf32>
    tpu.vector_store %arg30[%c0_131, %c0_132, %c0_133], %261 {strides = array<i32>} : memref<1x32x256xf32, #tpu.memory_space<vmem>>, vector<1x32x256xf32>,
    return
  }
  func.func @transform_0(%arg0: i32) -> (i32, i32, i32) {
    %c0_i32 = arith.constant 0 : i32
    %c0_i32_0 = arith.constant 0 : i32
    %c0_i32_1 = arith.constant 0 : i32
    return %arg0, %c0_i32, %c0_i32_0 : i32, i32, i32
  }
  func.func @transform_1(%arg0: i32) -> (i32, i32, i32) {
    %c0_i32 = arith.constant 0 : i32
    %c0_i32_0 = arith.constant 0 : i32
    %c0_i32_1 = arith.constant 0 : i32
    return %arg0, %c0_i32, %c0_i32_0 : i32, i32, i32
  }
  func.func @transform_2(%arg0: i32) -> (i32, i32, i32) {
    %c0_i32 = arith.constant 0 : i32
    %c0_i32_0 = arith.constant 0 : i32
    %c0_i32_1 = arith.constant 0 : i32
    return %arg0, %c0_i32, %c0_i32_0 : i32, i32, i32
  }
  func.func @transform_3(%arg0: i32) -> (i32, i32) {
    %c0_i32 = arith.constant 0 : i32
    %c0_i32_0 = arith.constant 0 : i32
    %c0_i32_1 = arith.constant 0 : i32
    return %c0_i32, %c0_i32_0 : i32, i32
  }
  func.func @transform_4(%arg0: i32) -> (i32, i32) {
    %c0_i32 = arith.constant 0 : i32
    %c0_i32_0 = arith.constant 0 : i32
    %c0_i32_1 = arith.constant 0 : i32
    return %c0_i32, %c0_i32_0 : i32, i32
  }
  func.func @transform_5(%arg0: i32) -> (i32, i32) {
    %c0_i32 = arith.constant 0 : i32
    %c0_i32_0 = arith.constant 0 : i32
    %c0_i32_1 = arith.constant 0 : i32
    return %c0_i32, %c0_i32_0 : i32, i32
  }
  func.func @transform_6(%arg0: i32) -> (i32, i32) {
    %c0_i32 = arith.constant 0 : i32
    %c0_i32_0 = arith.constant 0 : i32
    %c0_i32_1 = arith.constant 0 : i32
    return %c0_i32, %c0_i32_0 : i32, i32
  }
  func.func @transform_7(%arg0: i32) -> (i32, i32) {
    %c0_i32 = arith.constant 0 : i32
    %c0_i32_0 = arith.constant 0 : i32
    %c0_i32_1 = arith.constant 0 : i32
    return %c0_i32, %c0_i32_0 : i32, i32
  }
  func.func @transform_8(%arg0: i32) -> (i32, i32) {
    %c0_i32 = arith.constant 0 : i32
    %c0_i32_0 = arith.constant 0 : i32
    %c0_i32_1 = arith.constant 0 : i32
    return %c0_i32, %c0_i32_0 : i32, i32
  }
  func.func @transform_9(%arg0: i32) -> (i32, i32) {
    %c0_i32 = arith.constant 0 : i32
    %c0_i32_0 = arith.constant 0 : i32
    %c0_i32_1 = arith.constant 0 : i32
    return %c0_i32, %c0_i32_0 : i32, i32
  }
  func.func @transform_10(%arg0: i32) -> (i32, i32) {
    %c0_i32 = arith.constant 0 : i32
    %c0_i32_0 = arith.constant 0 : i32
    %c0_i32_1 = arith.constant 0 : i32
    return %c0_i32, %c0_i32_0 : i32, i32
  }
  func.func @transform_11(%arg0: i32) -> (i32, i32) {
    %c0_i32 = arith.constant 0 : i32
    %c0_i32_0 = arith.constant 0 : i32
    %c0_i32_1 = arith.constant 0 : i32
    return %c0_i32, %c0_i32_0 : i32, i32
  }
  func.func @transform_12(%arg0: i32) -> (i32, i32) {
    %c0_i32 = arith.constant 0 : i32
    %c0_i32_0 = arith.constant 0 : i32
    %c0_i32_1 = arith.constant 0 : i32
    return %c0_i32, %c0_i32_0 : i32, i32
  }
  func.func @transform_13(%arg0: i32) -> (i32, i32) {
    %c0_i32 = arith.constant 0 : i32
    %c0_i32_0 = arith.constant 0 : i32
    %c0_i32_1 = arith.constant 0 : i32
    return %c0_i32, %c0_i32_0 : i32, i32
  }
  func.func @transform_14(%arg0: i32) -> (i32, i32) {
    %c0_i32 = arith.constant 0 : i32
    %c0_i32_0 = arith.constant 0 : i32
    %c0_i32_1 = arith.constant 0 : i32
    return %c0_i32, %c0_i32_0 : i32, i32
  }
  func.func @transform_15(%arg0: i32) -> (i32, i32) {
    %c0_i32 = arith.constant 0 : i32
    %c0_i32_0 = arith.constant 0 : i32
    %c0_i32_1 = arith.constant 0 : i32
    return %c0_i32, %c0_i32_0 : i32, i32
  }
  func.func @transform_16(%arg0: i32) -> (i32, i32) {
    %c0_i32 = arith.constant 0 : i32
    %c0_i32_0 = arith.constant 0 : i32
    %c0_i32_1 = arith.constant 0 : i32
    return %c0_i32, %c0_i32_0 : i32, i32
  }
  func.func @transform_17(%arg0: i32) -> (i32, i32) {
    %c0_i32 = arith.constant 0 : i32
    %c0_i32_0 = arith.constant 0 : i32
    %c0_i32_1 = arith.constant 0 : i32
    return %c0_i32, %c0_i32_0 : i32, i32
  }
  func.func @transform_18(%arg0: i32) -> (i32, i32) {
    %c0_i32 = arith.constant 0 : i32
    %c0_i32_0 = arith.constant 0 : i32
    %c0_i32_1 = arith.constant 0 : i32
    return %c0_i32, %c0_i32_0 : i32, i32
  }
  func.func @transform_19(%arg0: i32) -> (i32, i32) {
    %c0_i32 = arith.constant 0 : i32
    %c0_i32_0 = arith.constant 0 : i32
    %c0_i32_1 = arith.constant 0 : i32
    return %c0_i32, %c0_i32_0 : i32, i32
  }
  func.func @transform_20(%arg0: i32) -> (i32, i32) {
    %c0_i32 = arith.constant 0 : i32
    %c0_i32_0 = arith.constant 0 : i32
    %c0_i32_1 = arith.constant 0 : i32
    return %c0_i32, %c0_i32_0 : i32, i32
  }
  func.func @transform_21(%arg0: i32) -> (i32, i32) {
    %c0_i32 = arith.constant 0 : i32
    %c0_i32_0 = arith.constant 0 : i32
    %c0_i32_1 = arith.constant 0 : i32
    return %c0_i32, %c0_i32_0 : i32, i32
  }
  func.func @transform_22(%arg0: i32) -> (i32, i32) {
    %c0_i32 = arith.constant 0 : i32
    %c0_i32_0 = arith.constant 0 : i32
    %c0_i32_1 = arith.constant 0 : i32
    return %c0_i32, %c0_i32_0 : i32, i32
  }
  func.func @transform_23(%arg0: i32) -> (i32, i32) {
    %c0_i32 = arith.constant 0 : i32
    %c0_i32_0 = arith.constant 0 : i32
    %c0_i32_1 = arith.constant 0 : i32
    return %c0_i32, %c0_i32_0 : i32, i32
  }
  func.func @transform_24(%arg0: i32) -> (i32, i32) {
    %c0_i32 = arith.constant 0 : i32
    %c0_i32_0 = arith.constant 0 : i32
    %c0_i32_1 = arith.constant 0 : i32
    return %c0_i32, %c0_i32_0 : i32, i32
  }
  func.func @transform_25(%arg0: i32) -> (i32, i32) {
    %c0_i32 = arith.constant 0 : i32
    %c0_i32_0 = arith.constant 0 : i32
    %c0_i32_1 = arith.constant 0 : i32
    return %c0_i32, %c0_i32_0 : i32, i32
  }
  func.func @transform_26(%arg0: i32) -> (i32, i32) {
    %c0_i32 = arith.constant 0 : i32
    %c0_i32_0 = arith.constant 0 : i32
    %c0_i32_1 = arith.constant 0 : i32
    return %c0_i32, %c0_i32_0 : i32, i32
  }
  func.func @transform_27(%arg0: i32) -> (i32, i32) {
    %c0_i32 = arith.constant 0 : i32
    %c0_i32_0 = arith.constant 0 : i32
    %c0_i32_1 = arith.constant 0 : i32
    return %c0_i32, %c0_i32_0 : i32, i32
  }
  func.func @transform_28(%arg0: i32) -> (i32, i32) {
    %c0_i32 = arith.constant 0 : i32
    %c0_i32_0 = arith.constant 0 : i32
    %c0_i32_1 = arith.constant 0 : i32
    return %c0_i32, %c0_i32_0 : i32, i32
  }
  func.func @transform_29(%arg0: i32) -> (i32, i32, i32) {
    %c0_i32 = arith.constant 0 : i32
    %c0_i32_0 = arith.constant 0 : i32
    %c0_i32_1 = arith.constant 0 : i32
    return %arg0, %c0_i32, %c0_i32_0 : i32, i32, i32
  }
}

</mosaic_0001>

<bundles_post_ra>
// kernel: tpu_custom_call.1
= control target key start
LH: loop header
LB: loop body
LE: loop exit
PB: predicated region body
PF: predicated region fallthrough
CT: control target
= control target key end

     0   :  { %6 = vsyncpa [#allocation3], 0  ;;  %s106_s0 = inlined_call_operand.hbm [shape: f32[8,128], index: 0, kind: input, shape index: {}]   ;;  %s107_s1 = inlined_call_operand.hbm [shape: f32[8,128], index: 1, kind: output, shape index: {}]  }
   0x1   :  { %7 = vsyncpa [#allocation4], 0  ;;  %s87_s6 = smov [#allocation2]  }
   0x2   :  { %s14_s7 = sshll.u32 %s87_s6, 4  ;;  %s15_s7 = int_to_ptr.vmem [resolvable:$true] %s14_s7 }
   0x3   :  { %s51_s8 = scalar_lea.vmem %s15_s7, 128  ;;  %p56_p1 = scmp.lt.s32.totalorder %s15_s7, %s15_s7 }
   0x4   :  { %p52_p0 = scmp.ne.s32.totalorder %s15_s7, %s51_s8  ;;  %p57_p2 = scmp.lt.s32.totalorder %s51_s8, %s51_s8 }
   0x6   :  { %p58_p3 = por %p57_p2, %p56_p1 }
   0x8   :  { %p59_p4 = pnand %p58_p3, %p52_p0 }
   0xa   :  { %62 = shalt.err (!%p59_p4)
}
   0xb   :  { %17 = dma.hbm_to_vmem [thread:$0]  %s106_s0, 128, %s15_s7, [#allocation3]  }
   0xc   :  { %83 = dma.done.wait [#allocation3], 128  }
   0xd   :  { %84 = vsyncadd [#allocation3], 4294967168  ;;  %v21_v0 = vld [vmem:[#allocation2] sm:$0xff]  ;;  %s88_s11 = smov 1   ;;  %s89_s12 = smov [#allocation5]  }
   0xe   :  { %22 = vrot.lane.b32.xlu0 %v21_v0, %s88_s11  ;;  %s31_s13 = sshll.u32 %s89_s12, 4  ;;  %s32_s13 = int_to_ptr.vmem [resolvable:$true] %s31_s13 }
   0xf   :  { %s63_s14 = scalar_lea.vmem %s32_s13, 128  ;;  %p68_p6 = scmp.lt.s32.totalorder %s32_s13, %s32_s13 }
  0x10   :  { %p64_p5 = scmp.ne.s32.totalorder %s32_s13, %s63_s14  ;;  %p69_p7 = scmp.lt.s32.totalorder %s63_s14, %s63_s14 }
  0x12   :  { %p70_p8 = por %p69_p7, %p68_p6 }
  0x14   :  { %p71_p9 = pnand %p70_p8, %p64_p5 }
  0x80   :  { %v23_v1 = vpop.permute.xlu0 %22 }
  0x81   :  { %24 = vst [vmem:[#allocation5] sm:$0xff] %v23_v1 }
  0x82   :  { %74 = shalt.err (!%p71_p9)
}
  0x83   :  { %34 = dma.vmem_to_hbm [thread:$0]  %s32_s13, 128, %s107_s1, [#allocation4]  }
  0x84   :  { %85 = dma.done.wait [#allocation4], 128  }
  0x85   :  { %86 = vsyncadd [#allocation4], 4294967168 }
  0x86   :  { %38 = vsyncpa [#allocation3], 1 }
  0x87   :  { %39 = vsyncpa [#allocation4], 1 }

// kernel: tpu_custom_call.1
= control target key start
LH: loop header
LB: loop body
LE: loop exit
PB: predicated region body
PF: predicated region fallthrough
CT: control target
= control target key end

     0   :  { %s5142_s6 = smov 1   ;;  %s5143_s10 = smov 2   ;;  %s6724_s0 = inlined_call_operand.smem [shape: u32[30], index: -1, kind: input, shape index: {}] }
   0x1   :  { %s5191_s5 = sld [smem:[%s6724_s0]]   ;;  %s5144_s14 = smov 3  }
   0x2   :  { %s5196_s9 = sld [smem:[%s6724_s0 + %s5142_s6]]   ;;  %s5145_s18 = smov 4  }
   0x3   :  { %s5201_s13 = sld [smem:[%s6724_s0 + %s5143_s10]]   ;;  %s5146_s22 = smov 5  }
   0x4   :  { %s5206_s17 = sld [smem:[%s6724_s0 + %s5144_s14]]   ;;  %s5147_s26 = smov 6  }
   0x5   :  { %s5211_s21 = sld [smem:[%s6724_s0 + %s5145_s18]]   ;;  %s5148_s30 = smov 7  }
   0x6   :  { %s5216_s25 = sld [smem:[%s6724_s0 + %s5146_s22]]   ;;  %s5149_s4 = smov 8  }
   0x7   :  { %6783 = sst [smem:[#allocation5_spill]] %s5191_s5  ;;  %s5150_s10 = smov 9  }
   0x8   :  { %6784 = sst [smem:[#allocation6_spill]] %s5196_s9  ;;  %s5151_s15 = smov 10  }
   0x9   :  { %6785 = sst [smem:[#allocation7_spill]] %s5201_s13  ;;  %s5152_s20 = smov 11  }
   0xa   :  { %s5221_s29 = sld [smem:[%s6724_s0 + %s5147_s26]]   ;;  %s5153_s26 = smov 12  }
   0xb   :  { %s5226_s3 = sld [smem:[%s6724_s0 + %s5148_s30]]   ;;  %s5154_s1 = smov 13  }
   0xc   :  { %s5231_s8 = sld [smem:[%s6724_s0 + %s5149_s4]]   ;;  %s5155_s7 = smov 14  }
   0xd   :  { %s5236_s14 = sld [smem:[%s6724_s0 + %s5150_s10]]   ;;  %s5157_s22 = smov 16  }
   0xe   :  { %s5241_s19 = sld [smem:[%s6724_s0 + %s5151_s15]]   ;;  %s5156_s15 = smov 15  }
   0xf   :  { %s5246_s24 = sld [smem:[%s6724_s0 + %s5152_s20]]   ;;  %s5158_s28 = smov 17  }
  0x10   :  { %s5251_s30 = sld [smem:[%s6724_s0 + %s5153_s26]]  }
  0x11   :  { %6786 = sst [smem:[#allocation8_spill]] %s5226_s3 }
  0x12   :  { %6787 = sst [smem:[#allocation9_spill]] %s5231_s8 }
  0x13   :  { %6788 = sst [smem:[#allocation10_spill]] %s5236_s14 }
  0x14   :  { %s5256_s6 = sld [smem:[%s6724_s0 + %s5154_s1]]  }
  0x15   :  { %6789 = sst [smem:[#allocation11_spill]] %s5246_s24 }
  0x16   :  { %s5261_s12 = sld [smem:[%s6724_s0 + %s5155_s7]]   ;;  %s5159_s7 = smov 18  }
  0x17   :  { %s5266_s20 = sld [smem:[%s6724_s0 + %s5156_s15]]   ;;  %s5160_s15 = smov 19  }
  0x18   :  { %s5271_s27 = sld [smem:[%s6724_s0 + %s5157_s22]]   ;;  %s5161_s22 = smov 20  }
  0x19   :  { %s5276_s4 = sld [smem:[%s6724_s0 + %s5158_s28]]   ;;  %s5162_s28 = smov 21  }
  0x1a   :  { %6790 = sst [smem:[#allocation12_spill]] %s5256_s6 }
  0x1b   :  { %s5281_s24 = sld [smem:[%s6724_s0 + %s5159_s7]]   ;;  %s5163_s7 = smov 22  }
  0x1c   :  { %6791 = sst [smem:[#allocation13_spill]] %s5261_s12 }
  0x1d   :  { %6792 = sst [smem:[#allocation14_spill]] %s5266_s20 }
  0x1e   :  { %6793 = sst [smem:[#allocation15_spill]] %s5271_s27 }
  0x1f   :  { %6794 = sst [smem:[#allocation16_spill]] %s5276_s4 }
  0x20   :  { %s5286_s20 = sld [smem:[%s6724_s0 + %s5160_s15]]   ;;  %s5164_s15 = smov 23  }
  0x21   :  { %6795 = sst [smem:[#allocation17_spill]] %s5281_s24 }
  0x22   :  { %s5291_s27 = sld [smem:[%s6724_s0 + %s5161_s22]]   ;;  %s5165_s22 = smov 24  }
  0x23   :  { %s5296_s4 = sld [smem:[%s6724_s0 + %s5162_s28]]   ;;  %s5166_s28 = smov 25  }
  0x24   :  { %s5301_s24 = sld [smem:[%s6724_s0 + %s5163_s7]]   ;;  %s5167_s7 = smov 26  }
  0x26   :  { %6796 = sst [smem:[#allocation18_spill]] %s5286_s20 }
  0x27   :  { %s5306_s20 = sld [smem:[%s6724_s0 + %s5164_s15]]   ;;  %s5168_s15 = smov 27  }
  0x28   :  { %6797 = sst [smem:[#allocation19_spill]] %s5291_s27 }
  0x29   :  { %6798 = sst [smem:[#allocation20_spill]] %s5296_s4 }
  0x2a   :  { %6799 = sst [smem:[#allocation21_spill]] %s5301_s24 }
  0x2b   :  { %s5311_s27 = sld [smem:[%s6724_s0 + %s5165_s22]]   ;;  %s5169_s22 = smov 28  }
  0x2c   :  { %s5316_s4 = sld [smem:[%s6724_s0 + %s5166_s28]]   ;;  %s5170_s28 = smov 29  }
  0x2d   :  { %s5321_s24 = sld [smem:[%s6724_s0 + %s5167_s7]]  }
  0x2e   :  { %s5326_s12 = sld [smem:[%s6724_s0 + %s5168_s15]]  }
  0x2f   :  { %s5336_s6 = sld [smem:[%s6724_s0 + %s5170_s28]]  }
  0x31   :  { %6800 = sst [smem:[#allocation22_spill]] %s5311_s27 }
  0x32   :  { %6801 = sst [smem:[#allocation23_spill]] %s5316_s4 }
  0x33   :  { %s5331_s27 = sld [smem:[%s6724_s0 + %s5169_s22]]  }
  0x34   :  { %64 = vsyncpa [#allocation3], 0 }
  0x35   :  { %66 = vsyncpa [#allocation3 + $0x1], 0  ;;  %s5338_s7 = smov 0   ;;  %s5340_s10 = smov 0  }
  0x36   :  { %s5342_s11 = smov 0   ;;  %s5344_s15 = smov 0  }
  0x37 LB: > { %s6802_s14 = sld [smem:[#allocation10_spill]]  ;;  %s5359_s0 = sadd.s32 4294967295, %s5140_s15   ;;  %s5140_s15 = sphi %s5344_s15, %s6874_s15   ;;  %s5136_s11 = sphi %s5342_s11, %s6873_s11   ;;  %s5132_s10 = sphi %s5340_s10, %s6872_s10   ;;  %s5128_s7 = sphi %s5338_s7, %s6871_s7  }
  0x38   : > { %s6803_s8 = sld [smem:[#allocation9_spill]]  ;;  %s4554_s16 = sadd.s32 4294967294, %s5140_s15  }
  0x39   : > { %s6804_s3 = sld [smem:[#allocation8_spill]]  ;;  %s5363_s18 = sadd.s32 1, %s5140_s15  }
  0x3a   : > { %s6805_s4 = sld [smem:[#allocation23_spill]]  ;;  %s703_s22 = sadd.s32 1, %s5136_s11 }
  0x3b   : > { %s700_s23 = ssub.s32 %s5140_s15, %s5363_s18  ;;  %p713_p0 = scmp.ne.s32.totalorder %s5136_s11, %s5132_s10 }
  0x3c   : > { %p701_p1 = scmp.eq.s32.totalorder %s700_s23, 0  ;;  %p714_p2 = scmp.eq.s32.totalorder %s5359_s0, 1 }
  0x3d   : > { %p719_p3 = scmp.ne.s32.totalorder %s5132_s10, %s5128_s7  ;;  %p720_p4 = scmp.eq.s32.totalorder %s4554_s16, 1 }
  0x3e   : > { %s5374_s26 = scalar_select %p701_p1, %s5136_s11, %s703_s22  }
  0x3f   : > { %p5376_p5 = por %p714_p2, %p713_p0  ;;  %p5380_p6 = por %p720_p4, %p719_p3 }
  0x40   : > { %p4557_p7 = scmp.ge.s32.totalorder %s5140_s15, 1  ;;  %p840_p8 = scmp.lt.s32.totalorder %s5140_s15, 3 }
  0x42   : > { %p841_p9 = pnand %p4557_p7, %p840_p8 }
  0x44   : > { %844 = sbr.rel (%p841_p9) target bundleno = 4108 (0x100c), region = 136 }
  0x49   : > { %s6808_s5 = sld [smem:[#allocation5_spill]]  ;;  %p926_p10 = scmp.lt.s32.totalorder %s5359_s0, 1  ;;  %v978_v0 = vld [vmem:[%s5306_s20] sm:$0xff]  ;;  %vm986_vm0 = vcmask 261120   ;;  %v979_v31 = vld [vmem:[%s5306_s20 + $0x8] sm:$0xff]  ;;  %v980_v32 = vld [vmem:[%s5306_s20 + $0x10] sm:$0xff] }
  0x4a   : > { %s6809_s13 = sld [smem:[#allocation7_spill]]  ;;  %4740 = vmatprep.mubr.msk.f32.mxu0 %vm986_vm0, %v978_v0  ;;  %v981_v33 = vld [vmem:[%s5306_s20 + $0x18] sm:$0xff]  ;;  %v1189_v34 = vld [vmem:[%s5211_s21] sm:$0xff]  ;;  %vm1201_vm1 = vcmask 130048   ;;  %v6752_v35 = vmov 0   ;;  %v1190_v38 = vld [vmem:[%s5211_s21 + $0x8] sm:$0xff] }
  0x4b   : > { %s5390_s2 = scalar_select %p926_p10, %s5359_s0, 1  ;;  %4908 = vset.pattern.permute.xlu1 %v6752_v35  ;;  %4909 = vset.pattern.permute.xlu0 %v6752_v35  ;;  %v1084_v45 = vld [vmem:[%s6805_s4] sm:$0xff]  ;;  %v1085_v46 = vld [vmem:[%s6805_s4 + $0x8] sm:$0xff]  ;;  %v1086_v47 = vld [vmem:[%s6805_s4 + $0x10] sm:$0xff]  ;;  %vm2129_vm10 = vcmask 1043456   ;;  %vm2116_vm11 = vcmask 195584  }
  0x4c   : > { %4754 = vmatprep.mubr.msk.f32.mxu1 %vm986_vm0, %v1084_v45  ;;  %v1087_v60 = vld [vmem:[%s6805_s4 + $0x18] sm:$0xff]  ;;  %v1191_v63 = vld [vmem:[%s5216_s25] sm:$0xff]  ;;  %v1192_v0 = vld [vmem:[%s5216_s25 + $0x8] sm:$0xff]  ;;  %s6742_s4 = smov 127   ;;  %s6814_s9 = sld [smem:[#allocation6_spill]]  ;;  %vm2843_vm12 = vcmask 64512  }
  0x4d   : > { %s4677_s16 = sshll.u32 %s5390_s2, 5  ;;  %vm3090_vm13 = vcmask 523264  }
  0x4f   : > { %s5394_s22 = scalar_lea.vmem %s6808_s5, %s4677_s16  ;;  %s6834_s5 = smov 17  }
  0x50   : > { %s940_s23 = scalar_lea.vmem %s6809_s13, %s4677_s16  ;;  %v5398_v1 = vld [vmem:[%s5394_s22 + $0x10] sm:$0xff]  ;;  %v5401_v2 = vld [vmem:[%s5394_s22 + $0x18] sm:$0xff]  ;;  %v5404_v3 = vld [vmem:[%s5394_s22] sm:$0xff]  ;;  %s6738_s16 = smov 112  }
  0x51   : > { %v1198_v4 = vadd.f32 %v5401_v2, %v5398_v1  ;;  %v5409_v5 = vld [vmem:[%s5394_s22 + $0x8] sm:$0xff]  ;;  %v949_v6 = vld [vmem:[%s940_s23 + $0x18] sm:$0xff]  ;;  %v948_v7 = vld [vmem:[%s940_s23 + $0x10] sm:$0xff]  ;;  %s6837_s13 = smov 111  }
  0x52   : > { %v4567_v8 = vmul.f32 -1.442695, %v949_v6  ;;  %v4566_v9 = vmul.f32 -1.442695, %v948_v7  ;;  %v947_v10 = vld [vmem:[%s940_s23 + $0x8] sm:$0xff]  ;;  %v946_v11 = vld [vmem:[%s940_s23] sm:$0xff]  ;;  %v1195_v12 = vadd.f32 %v5409_v5, %v5404_v3 }
  0x53   : > { %1199 = vadd.xlane.f32.xlu0 %v1198_v4  ;;  %v4565_v13 = vmul.f32 -1.442695, %v947_v10  ;;  %v4564_v14 = vmul.f32 -1.442695, %v946_v11  ;;  %s6740_s23 = smov 113  }
  0x54   : > { %4944 = vpow2.f32 %v4567_v8 }
  0x55   : > { %4946 = vpow2.f32 %v4566_v9 }
  0x56   : > { %4948 = vpow2.f32 %v4565_v13 }
  0x57   : > { %1196 = vadd.xlane.f32.xlu0 %v1195_v12  ;;  %4950 = vpow2.f32 %v4564_v14  ;;  %v1194_v12 = vld [vmem:[%s5221_s29 + $0x8] sm:$0xff] }
  0x61   : > { %v4945_v15 = vpop.eup %4944 }
  0x62   : > { %v4947_v16 = vpop.eup %4946  ;;  %v965_v17 = vadd.f32 1.0, %v4945_v15 }
  0x63   : > { %v4949_v18 = vpop.eup %4948  ;;  %v964_v19 = vadd.f32 1.0, %v4947_v16 }
  0x64   : > { %v4951_v20 = vpop.eup %4950  ;;  %4952 = vrcp.f32 %v965_v17  ;;  %v963_v21 = vadd.f32 1.0, %v4949_v18 }
  0x65   : > { %4954 = vrcp.f32 %v964_v19  ;;  %v962_v22 = vadd.f32 1.0, %v4951_v20 }
  0x66   : > { %4956 = vrcp.f32 %v963_v21 }
  0x67   : > { %4958 = vrcp.f32 %v962_v22 }
  0x71   : > { %v4953_v23 = vpop.eup %4952 }
  0x72   : > { %v4955_v24 = vpop.eup %4954  ;;  %v977_v25 = vmul.f32 %v4953_v23, %v949_v6 }
  0x73   : > { %v4957_v26 = vpop.eup %4956  ;;  %v976_v27 = vmul.f32 %v4955_v24, %v948_v7 }
  0x74   : > { %v4959_v28 = vpop.eup %4958  ;;  %4732 = vmatprep.subr.mxu0 %v977_v25  ;;  %v975_v29 = vmul.f32 %v4957_v26, %v947_v10  ;;  %4746 = vmatprep.subr.mxu1 %v977_v25 }
  0x75   : > { %4733 = vmatpush3.msra.mxu0 %v977_v25  ;;  %4747 = vmatpush3.msra.mxu1 %v977_v25  ;;  %v974_v30 = vmul.f32 %v4959_v28, %v946_v11  ;;  %v1193_v11 = vld [vmem:[%s5221_s29] sm:$0xff] }
  0x76   : > { %4734 = vmatprep.subr.mxu0 %v976_v27  ;;  %4748 = vmatprep.subr.mxu1 %v976_v27 }
  0x77   : > { %4735 = vmatpush3.msra.mxu0 %v976_v27  ;;  %4749 = vmatpush3.msra.mxu1 %v976_v27 }
  0x78   : > { %4736 = vmatprep.subr.mxu0 %v975_v29  ;;  %4750 = vmatprep.subr.mxu1 %v975_v29 }
  0x79   : > { %4737 = vmatpush3.msra.mxu0 %v975_v29  ;;  %4751 = vmatpush3.msra.mxu1 %v975_v29 }
  0x7a   : > { %4738 = vmatprep.subr.mxu0 %v974_v30  ;;  %4752 = vmatprep.subr.mxu1 %v974_v30 }
  0x7b   : > { %4739 = vmatpush3.msra.mxu0 %v974_v30  ;;  %4753 = vmatpush3.msra.mxu1 %v974_v30 }
  0x7c   : > { %4741 = vmatmul.mubr.msk.f32.vlgmr.msra.gmra.mxu0 %vm986_vm0, %v979_v31  ;;  %4755 = vmatmul.mubr.msk.f32.vlgmr.msra.gmra.mxu1 %vm986_vm0, %v1085_v46 }
  0x7d   : > { %4743 = vmatprep.mubr.msk.f32.mxu0 %vm986_vm0, %v980_v32  ;;  %4757 = vmatprep.mubr.msk.f32.mxu1 %vm986_vm0, %v1086_v47 }
  0x80   : > { %4744 = vmatmul.mubr.msk.f32.gmra.mxu0 %vm986_vm0, %v981_v33  ;;  %4758 = vmatmul.mubr.msk.f32.gmra.mxu1 %vm986_vm0, %v1087_v60  ;;  %v1459_v60 = vld [vmem:[%s6803_s8 + $0x8] sm:$0xff] }
  0x81   : > { %4764 = vmatprep.mubr.msk.f32.mxu0 %vm1201_vm1, %v1189_v34  ;;  %4771 = vmatprep.mubr.msk.f32.mxu1 %vm1201_vm1, %v1189_v34 }
  0xdc   : > { %v1200_v36 = vpop.xlane.xlu0 %1199 }
  0xdd   : > { %4760 = vmatprep.subr.mxu0 %v1200_v36 }
  0xde   : > { %4761 = vmatpush3.msra.mxu0 %v1200_v36 }
  0xe0   : > { %v1197_v37 = vpop.xlane.xlu0 %1196 }
  0xe1   : > { %4762 = vmatprep.subr.mxu0 %v1197_v37 }
  0xe2   : > { %4763 = vmatpush3.msra.mxu0 %v1197_v37 }
  0xe3   : > { %4765 = vmatmul.mubr.msk.f32.vlgmr.msra.gmra.mxu0 %vm1201_vm1, %v1190_v38 }
 0x13c   : > { %v5425_v39 = vpop.f32.mrf.mxu0 }
 0x13e   : > { %v5427_v40 = vpop.f32.mrf.mxu0 }
 0x140   : > { %v5429_v41 = vpop.f32.mrf.mxu0 }
 0x142   : > { %v5431_v42 = vpop.f32.mrf.mxu0 }
 0x1a3   : > { %v4766_v43 = vpop.f32.mrf.mxu0 }
 0x1a4   : > { %1290 = vperm.xlu1 %4908, %v4766_v43  }
 0x1a5   : > { %v1274_v44 = vpop.f32.mrf.mxu0 }
 0x1a8   : > { %1285 = vperm.xlu1 %4908, %v1274_v44  }
 0x21f   : > { %v1291_v48 = vpop.permute.xlu1 %1290 }
 0x220   : > { %v1295_v49 = vsub.f32 %v5398_v1, %v1291_v48  ;;  %v1296_v50 = vsub.f32 %v5401_v2, %v1291_v48  ;;  %v5450_v1 = vpop.f32.mrf.mxu1 }
 0x222   : > { %v1299_v51 = vmul.f32 %v1295_v49, %v1295_v49  ;;  %v1300_v52 = vmul.f32 %v1296_v50, %v1296_v50  ;;  %v5452_v2 = vpop.f32.mrf.mxu1 }
 0x223   : > { %v1286_v53 = vpop.permute.xlu1 %1285  ;;  %6810 = vst [vmem:[#allocation24_spill] sm:$0xff] %v5452_v2 }
 0x224   : > { %v1293_v54 = vsub.f32 %v5404_v3, %v1286_v53  ;;  %v1294_v55 = vsub.f32 %v5409_v5, %v1286_v53  ;;  %v1304_v56 = vadd.f32 %v1300_v52, %v1299_v51  ;;  %v5454_v3 = vpop.f32.mrf.mxu1 }
 0x226   : > { %1305 = vadd.xlane.f32.xlu0 %v1304_v56  ;;  %v1297_v57 = vmul.f32 %v1293_v54, %v1293_v54  ;;  %v1298_v58 = vmul.f32 %v1294_v55, %v1294_v55  ;;  %v5456_v4 = vpop.f32.mrf.mxu1 }
 0x228   : > { %v1301_v59 = vadd.f32 %v1298_v58, %v1297_v57  ;;  %v4914_v58 = vld [vmem:[%s6804_s3 + $0x4] ss:$8 sps:$4 sm:$0xff]  }
 0x229   : > { %4595 = vmatprep.mubr.msk.bf16.mxu0 %vm1201_vm1, %v4914_v58 }
 0x22a   : > { %1302 = vadd.xlane.f32.xlu1 %v1301_v59  ;;  %v1458_v59 = vld [vmem:[%s6803_s8] sm:$0xff] }
 0x23c   : > { %1400 = vperm.xlu0 %4909, %v1191_v63   ;;  %v1820_v63 = vld [vmem:[%s6802_s14 + $0x10] sm:$0xff] }
 0x240   : > { %1405 = vperm.xlu0 %4909, %v1192_v0   ;;  %v1821_v0 = vld [vmem:[%s6802_s14 + $0x18] sm:$0xff] }
 0x2af   : > { %v1306_v61 = vpop.xlane.xlu0 %1305 }
 0x2b0   : > { %4767 = vmatprep.subr.mxu1 %v1306_v61 }
 0x2b1   : > { %4768 = vmatpush3.msra.mxu1 %v1306_v61  ;;  %v1460_v61 = vld [vmem:[%s6803_s8 + $0x10] sm:$0xff] }
 0x2b3   : > { %v1303_v62 = vpop.xlane.xlu1 %1302 }
 0x2b4   : > { %4769 = vmatprep.subr.mxu1 %v1303_v62 }
 0x2b5   : > { %4770 = vmatpush3.msra.mxu1 %v1303_v62  ;;  %v1461_v62 = vld [vmem:[%s6803_s8 + $0x18] sm:$0xff]  ;;  %s6835_s8 = smov 112  }
 0x2b6   : > { %4772 = vmatmul.mubr.msk.f32.vlgmr.msra.gmra.mxu1 %vm1201_vm1, %v1190_v38 }
 0x2b7   : > { %2031 = vmatprep.mubr.bf16.mxu1 %v6752_v35  ;;  %v1401_v13 = vpop.permute.xlu0 %1400 }
 0x2bb   : > { %v1406_v14 = vpop.permute.xlu0 %1405 }
 0x376   : > { %v4773_v5 = vpop.f32.mrf.mxu1 }
 0x377   : > { %v1379_v6 = vadd.f32 1e-05, %v4773_v5  ;;  %v1824_v5 = vld [vmem:[%s5241_s19 + $0x10] sm:$0xff] }
 0x378   : > { %v1373_v7 = vpop.f32.mrf.mxu1 }
 0x379   : > { %4960 = vrsqrt.f32 %v1379_v6  ;;  %v1374_v8 = vadd.f32 1e-05, %v1373_v7  ;;  %v1825_v6 = vld [vmem:[%s5241_s19 + $0x18] sm:$0xff]  ;;  %v1818_v7 = vld [vmem:[%s6802_s14] sm:$0xff] }
 0x37b   : > { %4962 = vrsqrt.f32 %v1374_v8  ;;  %v1819_v8 = vld [vmem:[%s6802_s14 + $0x8] sm:$0xff]  ;;  %s6838_s14 = smov 127  }
 0x386   : > { %v4961_v9 = vpop.eup %4960 }
 0x387   : > { %1391 = vperm.xlu1 %4908, %v4961_v9   ;;  %v1822_v9 = vld [vmem:[%s5241_s19] sm:$0xff] }
 0x388   : > { %v4963_v10 = vpop.eup %4962 }
 0x389   : > { %1386 = vperm.xlu0 %4909, %v4963_v10   ;;  %v1823_v10 = vld [vmem:[%s5241_s19 + $0x8] sm:$0xff] }
 0x38b   : > { %1414 = vperm.xlu1 %4908, %v1193_v11   ;;  %v1470_v11 = vlaneseq }
 0x38d   : > { %1419 = vperm.xlu0 %4909, %v1194_v12   ;;  %v1480_v12 = vshrl.u32 %v1470_v11, 7 }
 0x402   : > { %v1392_v15 = vpop.permute.xlu1 %1391 }
 0x403   : > { %v1396_v16 = vmul.f32 %v1392_v15, %v1295_v49  ;;  %v1397_v17 = vmul.f32 %v1392_v15, %v1296_v50  ;;  %v5554_v15 = vsub.s32 1, %v1480_v12 }
 0x404   : > { %v1387_v18 = vpop.permute.xlu0 %1386 }
 0x405   : > { %v1394_v19 = vmul.f32 %v1387_v18, %v1293_v54  ;;  %v1395_v20 = vmul.f32 %v1387_v18, %v1294_v55  ;;  %v1410_v23 = vmul.f32 %v1406_v14, %v1396_v16  ;;  %v1411_v24 = vmul.f32 %v1406_v14, %v1397_v17  ;;  %6813 = vst [vmem:[#allocation27_spill] sm:$0xff] %v5554_v15  ;;  %v4589_v16 = vld [vmem:[%s5206_s17 + $0x7] ss:$8 sm:$0x3] }
 0x406   : > { %v1415_v25 = vpop.permute.xlu1 %1414  ;;  %v5552_v14 = vsub.s32 0, %v1480_v12 }
 0x407   : > { %v1408_v21 = vmul.f32 %v1401_v13, %v1394_v19  ;;  %v1409_v22 = vmul.f32 %v1401_v13, %v1395_v20  ;;  %v5550_v13 = vand.u32 127, %v1470_v11  ;;  %v1666_v20 = vrot.slane %v4589_v16, %v5554_v15 }
 0x408   : > { %v1420_v26 = vpop.permute.xlu0 %1419  ;;  %6812 = vst [vmem:[#allocation26_spill] sm:$0xff] %v5552_v14  ;;  %v1662_v19 = vrot.slane %v4589_v16, %v5552_v14 }
 0x409   : > { %v1422_v27 = vadd.f32 %v1415_v25, %v1408_v21  ;;  %v1423_v28 = vadd.f32 %v1415_v25, %v1409_v22  ;;  %v1424_v29 = vadd.f32 %v1420_v26, %v1410_v23  ;;  %v1425_v30 = vadd.f32 %v1420_v26, %v1411_v24  ;;  %6811 = vst [vmem:[#allocation25_spill] sm:$0xff] %v5550_v13 }
 0x40a   : > { %vm1651_vm2 = vcmp.lt.s32.totalorder %v5550_v13, 112  ;;  %vm1621_vm3 = vcmp.lt.s32.totalorder %v5550_v13, 113  ;;  %vm1591_vm4 = vcmp.lt.s32.totalorder %v5550_v13, 127  ;;  %vm1561_vm5 = vcmp.lt.s32.totalorder %v5550_v13, 1 }
 0x40b   : > { %v4580_v31 = vmul.f32 -1.442695, %v1422_v27  ;;  %v4581_v32 = vmul.f32 -1.442695, %v1423_v28  ;;  %v4582_v33 = vmul.f32 -1.442695, %v1424_v29 }
 0x40c   : > { %v4583_v34 = vmul.f32 -1.442695, %v1425_v30  ;;  %vm1531_vm6 = vcmp.lt.s32.totalorder %v5550_v13, 15  ;;  %vm1501_vm7 = vcmp.lt.s32.totalorder %v5550_v13, 16  ;;  %vm1472_vm8 = vcmp.lt.s32.totalorder %v5550_v13, 17 }
 0x40d   : > { %4964 = vpow2.f32 %v4580_v31  ;;  %vm1681_vm9 = vcmp.lt.s32.totalorder %v5550_v13, 111 }
 0x40e   : > { %4966 = vpow2.f32 %v4581_v32 }
 0x40f   : > { %4968 = vpow2.f32 %v4582_v33 }
 0x410   : > { %4970 = vpow2.f32 %v4583_v34 }
 0x41a   : > { %v4965_v36 = vpop.eup %4964 }
 0x41b   : > { %v4967_v37 = vpop.eup %4966  ;;  %v1438_v38 = vadd.f32 1.0, %v4965_v36 }
 0x41c   : > { %v4969_v43 = vpop.eup %4968  ;;  %v1439_v44 = vadd.f32 1.0, %v4967_v37 }
 0x41d   : > { %v4971_v45 = vpop.eup %4970  ;;  %4972 = vrcp.f32 %v1438_v38  ;;  %v1440_v46 = vadd.f32 1.0, %v4969_v43 }
 0x41e   : > { %4974 = vrcp.f32 %v1439_v44  ;;  %v1441_v47 = vadd.f32 1.0, %v4971_v45 }
 0x41f   : > { %4976 = vrcp.f32 %v1440_v46 }
 0x420   : > { %4978 = vrcp.f32 %v1441_v47 }
 0x42a   : > { %v4973_v48 = vpop.eup %4972 }
 0x42b   : > { %v4975_v49 = vpop.eup %4974  ;;  %v5460_v50 = vmul.f32 %v4973_v48, %v1422_v27 }
 0x42c   : > { %v4977_v51 = vpop.eup %4976  ;;  %v5462_v52 = vmul.f32 %v4975_v49, %v1423_v28 }
 0x42d   : > { %v4979_v53 = vpop.eup %4978  ;;  %v5464_v54 = vmul.f32 %v4977_v51, %v1424_v29  ;;  %1643 = vrot.lane.b32.xlu1 %v5460_v50, %s6738_s16  ;;  %v4588_v29 = vld [vmem:[%s5206_s17 + $0x6] ss:$8 sm:$0x3] }
 0x42e   : > { %v5468_v55 = vmul.f32 %v4979_v53, %v1425_v30  ;;  %v1632_v37 = vrot.slane %v4588_v29, %v5552_v14  ;;  %v1636_v38 = vrot.slane %v4588_v29, %v5554_v15  ;;  %v4587_v53 = vld [vmem:[%s5206_s17 + $0x5] ss:$8 sm:$0x3] }
 0x42f   : > { %1645 = vrot.lane.b32.xlu0 %v5464_v54, %s6738_s16  ;;  %v1711_v56 = vpack.c.bf16 %v5464_v54, %v5460_v50 }
 0x430   : > { %v1712_v57 = vpack.c.bf16 %v5468_v55, %v5462_v52 }
 0x431   : > { %1647 = vrot.lane.b32.xlu1 %v5462_v52, %s6738_s16 }
 0x433   : > { %1649 = vrot.lane.b32.xlu0 %v5468_v55, %s6738_s16  ;;  %s6744_s16 = smov 1  }
 0x435   : > { %1613 = vrot.lane.b32.xlu1 %v5460_v50, %s6740_s23 }
 0x437   : > { %1615 = vrot.lane.b32.xlu0 %v5464_v54, %s6740_s23 }
 0x439   : > { %1617 = vrot.lane.b32.xlu1 %v5462_v52, %s6740_s23 }
 0x43b   : > { %1619 = vrot.lane.b32.xlu0 %v5468_v55, %s6740_s23  ;;  %s6746_s23 = smov 15  }
 0x43d   : > { %1583 = vrot.lane.b32.xlu1 %v5460_v50, %s6742_s4 }
 0x43f   : > { %1585 = vrot.lane.b32.xlu0 %v5464_v54, %s6742_s4 }
 0x441   : > { %1587 = vrot.lane.b32.xlu1 %v5462_v52, %s6742_s4 }
 0x443   : > { %1589 = vrot.lane.b32.xlu0 %v5468_v55, %s6742_s4  ;;  %s6760_s4 = smov 16  }
 0x445   : > { %1553 = vrot.lane.b32.xlu1 %v5460_v50, %s6744_s16 }
 0x447   : > { %1555 = vrot.lane.b32.xlu0 %v5464_v54, %s6744_s16 }
 0x449   : > { %1557 = vrot.lane.b32.xlu1 %v5462_v52, %s6744_s16 }
 0x44b   : > { %1559 = vrot.lane.b32.xlu0 %v5468_v55, %s6744_s16  ;;  %s6750_s16 = smov 17  }
 0x44d   : > { %1523 = vrot.lane.b32.xlu1 %v5460_v50, %s6746_s23 }
 0x44f   : > { %1525 = vrot.lane.b32.xlu0 %v5464_v54, %s6746_s23 }
 0x451   : > { %1527 = vrot.lane.b32.xlu1 %v5462_v52, %s6746_s23 }
 0x453   : > { %1529 = vrot.lane.b32.xlu0 %v5468_v55, %s6746_s23  ;;  %s6748_s23 = smov 111  }
 0x455   : > { %1493 = vrot.lane.b32.xlu1 %v5460_v50, %s6760_s4 }
 0x457   : > { %1495 = vrot.lane.b32.xlu0 %v5464_v54, %s6760_s4 }
 0x459   : > { %1497 = vrot.lane.b32.xlu1 %v5462_v52, %s6760_s4 }
 0x45b   : > { %1499 = vrot.lane.b32.xlu0 %v5468_v55, %s6760_s4  ;;  %s6819_s4 = sld [smem:[#allocation15_spill]] }
 0x45d   : > { %1462 = vrot.lane.b32.xlu1 %v5460_v50, %s6750_s16 }
 0x45f   : > { %1464 = vrot.lane.b32.xlu0 %v5464_v54, %s6750_s16 }
 0x461   : > { %1466 = vrot.lane.b32.xlu1 %v5462_v52, %s6750_s16 }
 0x463   : > { %1468 = vrot.lane.b32.xlu0 %v5468_v55, %s6750_s16 }
 0x465   : > { %1673 = vrot.lane.b32.xlu1 %v5460_v50, %s6748_s23 }
 0x467   : > { %1675 = vrot.lane.b32.xlu0 %v5464_v54, %s6748_s23 }
 0x469   : > { %1677 = vrot.lane.b32.xlu1 %v5462_v52, %s6748_s23 }
 0x46b   : > { %1679 = vrot.lane.b32.xlu0 %v5468_v55, %s6748_s23  ;;  %s4828_s23 = smul.u32 24, %s5390_s2  ;;  %s6815_s2 = sld [smem:[#allocation12_spill]] }
 0x46d   : > { %1723 = vperm.xlu1 %4908, %v1458_v59   ;;  %s935_s16 = scalar_lea.vmem %s6814_s9, %s4828_s23  ;;  %s6817_s23 = sld [smem:[#allocation11_spill]] }
 0x46e   : > { %s6836_s9 = smov 113  }
 0x46f   : > { %1728 = vperm.xlu0 %4909, %v1459_v60  }
 0x471   : > { %1733 = vperm.xlu1 %4908, %v1460_v61  }
 0x473   : > { %1738 = vperm.xlu0 %4909, %v1461_v62  }
 0x475   : > { %1906 = vperm.xlu1 %4908, %v1820_v63  }
 0x477   : > { %1911 = vperm.xlu0 %4909, %v1821_v0   ;;  %v1602_v0 = vrot.slane %v4587_v53, %v5552_v14 }
 0x479   : > { %1934 = vperm.xlu1 %4908, %v1824_v5   ;;  %v1606_v5 = vrot.slane %v4587_v53, %v5554_v15 }
 0x47b   : > { %1939 = vperm.xlu0 %4909, %v1825_v6  }
 0x47d   : > { %1896 = vperm.xlu1 %4908, %v1818_v7  }
 0x47f   : > { %1901 = vperm.xlu0 %4909, %v1819_v8  }
 0x481   : > { %1924 = vperm.xlu1 %4908, %v1822_v9  }
 0x483   : > { %1929 = vperm.xlu0 %4909, %v1823_v10  }
 0x49f   : > { %v1644_v17 = vpop.permute.xlu1 %1643 }
 0x4a1   : > { %v1646_v18 = vpop.permute.xlu0 %1645 }
 0x4a3   : > { %v1648_v21 = vpop.permute.xlu1 %1647 }
 0x4a4   : > { %v1652_v22 = vsel %vm1651_vm2, %v1644_v17, %v1648_v21  ;;  %v1654_v23 = vsel %vm1651_vm2, %v1648_v21, %v1644_v17  ;;  %v4586_v17 = vld [vmem:[%s5206_s17 + $0x3] ss:$8 sm:$0x3] }
 0x4a5   : > { %v1669_v24 = vmul.f32 %v1662_v19, %v1652_v22  ;;  %v1670_v25 = vmul.f32 %v1666_v20, %v1654_v23  ;;  %v1650_v26 = vpop.permute.xlu0 %1649 }
 0x4a6   : > { %v1653_v27 = vsel %vm1651_vm2, %v1646_v18, %v1650_v26  ;;  %v1655_v28 = vsel %vm1651_vm2, %v1650_v26, %v1646_v18 }
 0x4a7   : > { %v1671_v30 = vmul.f32 %v1662_v19, %v1653_v27  ;;  %v1672_v31 = vmul.f32 %v1666_v20, %v1655_v28  ;;  %v1614_v32 = vpop.permute.xlu1 %1613 }
 0x4a9   : > { %v1717_v33 = vpack.c.bf16 %v1671_v30, %v1669_v24  ;;  %v1616_v34 = vpop.permute.xlu0 %1615  ;;  %v1718_v36 = vpack.c.bf16 %v1672_v31, %v1670_v25  ;;  %v1572_v24 = vrot.slane %v4586_v17, %v5552_v14  ;;  %v1576_v25 = vrot.slane %v4586_v17, %v5554_v15 }
 0x4ab   : > { %1765 = vmatprep.subr.bf16.mxu0 %v1718_v36  ;;  %v1618_v43 = vpop.permute.xlu1 %1617 }
 0x4ac   : > { %1766 = vmatpush1.bf16.msra.mxu0 %v1717_v33  ;;  %v1622_v44 = vsel %vm1621_vm3, %v1614_v32, %v1618_v43  ;;  %v1624_v45 = vsel %vm1621_vm3, %v1618_v43, %v1614_v32 }
 0x4ad   : > { %v1639_v46 = vmul.f32 %v1632_v37, %v1622_v44  ;;  %v1640_v47 = vmul.f32 %v1636_v38, %v1624_v45  ;;  %v1620_v48 = vpop.permute.xlu0 %1619 }
 0x4ae   : > { %v1623_v49 = vsel %vm1621_vm3, %v1616_v34, %v1620_v48  ;;  %v1625_v51 = vsel %vm1621_vm3, %v1620_v48, %v1616_v34  ;;  %v4585_v34 = vld [vmem:[%s5206_s17 + $0x2] ss:$8 sm:$0x3] }
 0x4af   : > { %v1641_v58 = vmul.f32 %v1632_v37, %v1623_v49  ;;  %v1642_v59 = vmul.f32 %v1636_v38, %v1625_v51  ;;  %v1584_v60 = vpop.permute.xlu1 %1583  ;;  %v1542_v43 = vrot.slane %v4585_v34, %v5552_v14  ;;  %v1546_v44 = vrot.slane %v4585_v34, %v5554_v15  ;;  %v4584_v51 = vld [vmem:[%s5206_s17 + $0x1] ss:$8 sm:$0x3] }
 0x4b1   : > { %v1715_v61 = vpack.c.bf16 %v1641_v58, %v1639_v46  ;;  %v1586_v62 = vpop.permute.xlu0 %1585  ;;  %v1716_v63 = vpack.c.bf16 %v1642_v59, %v1640_v47 }
 0x4b3   : > { %1767 = vmatprep.subr.bf16.mxu0 %v1716_v63  ;;  %v1588_v6 = vpop.permute.xlu1 %1587  ;;  %v1512_v63 = vrot.slane %v4584_v51, %v5552_v14 }
 0x4b4   : > { %1768 = vmatpush1.bf16.msra.mxu0 %v1715_v61  ;;  %v1592_v7 = vsel %vm1591_vm4, %v1584_v60, %v1588_v6  ;;  %v1594_v8 = vsel %vm1591_vm4, %v1588_v6, %v1584_v60 }
 0x4b5   : > { %v1609_v9 = vmul.f32 %v1602_v0, %v1592_v7  ;;  %v1610_v10 = vmul.f32 %v1606_v5, %v1594_v8  ;;  %v1590_v11 = vpop.permute.xlu0 %1589 }
 0x4b6   : > { %v1593_v12 = vsel %vm1591_vm4, %v1586_v62, %v1590_v11  ;;  %v1595_v16 = vsel %vm1591_vm4, %v1590_v11, %v1586_v62 }
 0x4b7   : > { %v1611_v18 = vmul.f32 %v1602_v0, %v1593_v12  ;;  %v1612_v19 = vmul.f32 %v1606_v5, %v1595_v16  ;;  %v1554_v20 = vpop.permute.xlu1 %1553  ;;  %v1516_v0 = vrot.slane %v4584_v51, %v5554_v15  ;;  %v1477_v16 = vld [vmem:[%s5206_s17] ss:$8 sm:$0x3] }
 0x4b9   : > { %v1713_v21 = vpack.c.bf16 %v1611_v18, %v1609_v9  ;;  %v1556_v22 = vpop.permute.xlu0 %1555  ;;  %v1714_v23 = vpack.c.bf16 %v1612_v19, %v1610_v10 }
 0x4bb   : > { %1769 = vmatprep.subr.bf16.mxu0 %v1714_v23  ;;  %v1558_v26 = vpop.permute.xlu1 %1557  ;;  %v1482_v23 = vrot.slane %v1477_v16, %v5552_v14 }
 0x4bc   : > { %1770 = vmatpush1.bf16.msra.mxu0 %v1713_v21  ;;  %v1562_v27 = vsel %vm1561_vm5, %v1554_v20, %v1558_v26  ;;  %v1564_v28 = vsel %vm1561_vm5, %v1558_v26, %v1554_v20 }
 0x4bd   : > { %v1579_v29 = vmul.f32 %v1572_v24, %v1564_v28  ;;  %v1580_v30 = vmul.f32 %v1576_v25, %v1562_v27  ;;  %1771 = vmatprep.subr.bf16.mxu0 %v1712_v57  ;;  %v1560_v31 = vpop.permute.xlu0 %1559 }
 0x4be   : > { %v1563_v32 = vsel %vm1561_vm5, %v1556_v22, %v1560_v31  ;;  %v1565_v33 = vsel %vm1561_vm5, %v1560_v31, %v1556_v22 }
 0x4bf   : > { %v1581_v36 = vmul.f32 %v1572_v24, %v1565_v33  ;;  %v1582_v37 = vmul.f32 %v1576_v25, %v1563_v32  ;;  %v1524_v38 = vpop.permute.xlu1 %1523  ;;  %v1486_v24 = vrot.slane %v1477_v16, %v5554_v15  ;;  %v4590_v33 = vld [vmem:[%s5206_s17 + $0x10] ss:$8 sm:$0x3] }
 0x4c0   : > { %1772 = vmatpush1.bf16.msra.mxu0 %v1711_v56 }
 0x4c1   : > { %v1709_v52 = vpack.c.bf16 %v1581_v36, %v1579_v29  ;;  %v1526_v55 = vpop.permute.xlu0 %1525  ;;  %v1710_v57 = vpack.c.bf16 %v1582_v37, %v1580_v30 }
 0x4c3   : > { %1773 = vmatprep.subr.bf16.mxu0 %v1710_v57  ;;  %v1528_v45 = vpop.permute.xlu1 %1527  ;;  %v1692_v57 = vrot.slane %v4590_v33, %v5552_v14 }
 0x4c4   : > { %1774 = vmatpush1.bf16.msra.mxu0 %v1709_v52  ;;  %v1532_v46 = vsel %vm1531_vm6, %v1524_v38, %v1528_v45  ;;  %v1534_v50 = vsel %vm1531_vm6, %v1528_v45, %v1524_v38 }
 0x4c5   : > { %v1549_v54 = vmul.f32 %v1542_v43, %v1534_v50  ;;  %v1550_v56 = vmul.f32 %v1546_v44, %v1532_v46  ;;  %v1530_v47 = vpop.permute.xlu0 %1529 }
 0x4c6   : > { %v1533_v48 = vsel %vm1531_vm6, %v1526_v55, %v1530_v47  ;;  %v1535_v49 = vsel %vm1531_vm6, %v1530_v47, %v1526_v55 }
 0x4c7   : > { %v1551_v53 = vmul.f32 %v1542_v43, %v1535_v49  ;;  %v1552_v58 = vmul.f32 %v1546_v44, %v1533_v48  ;;  %v1494_v59 = vpop.permute.xlu1 %1493  ;;  %v1696_v43 = vrot.slane %v4590_v33, %v5554_v15 }
 0x4c9   : > { %v1707_v60 = vpack.c.bf16 %v1551_v53, %v1549_v54  ;;  %v1496_v61 = vpop.permute.xlu0 %1495  ;;  %v1708_v62 = vpack.c.bf16 %v1552_v58, %v1550_v56 }
 0x4cb   : > { %1775 = vmatprep.subr.bf16.mxu0 %v1708_v62  ;;  %v1498_v5 = vpop.permute.xlu1 %1497 }
 0x4cc   : > { %1776 = vmatpush1.bf16.msra.mxu0 %v1707_v60  ;;  %v1502_v6 = vsel %vm1501_vm7, %v1494_v59, %v1498_v5  ;;  %v1504_v7 = vsel %vm1501_vm7, %v1498_v5, %v1494_v59  ;;  %v4916_v59 = vld [vmem:[%s6804_s3] ss:$8 sps:$4 sm:$0xff]   ;;  %v4917_v60 = vld [vmem:[%s6804_s3 + $0x14] ss:$8 sps:$4 sm:$0xff]  }
 0x4cd   : > { %v1519_v8 = vmul.f32 %v1512_v63, %v1504_v7  ;;  %v1520_v9 = vmul.f32 %v1516_v0, %v1502_v6  ;;  %v1500_v10 = vpop.permute.xlu0 %1499 }
 0x4ce   : > { %v1503_v11 = vsel %vm1501_vm7, %v1496_v61, %v1500_v10  ;;  %v1505_v12 = vsel %vm1501_vm7, %v1500_v10, %v1496_v61  ;;  %v4919_v61 = vld [vmem:[%s6804_s3 + $0x10] ss:$8 sps:$4 sm:$0xff]   ;;  %s6824_s3 = sld [smem:[#allocation19_spill]] }
 0x4cf   : > { %v1521_v17 = vmul.f32 %v1512_v63, %v1505_v12  ;;  %v1522_v18 = vmul.f32 %v1516_v0, %v1503_v11  ;;  %v1463_v19 = vpop.permute.xlu1 %1462 }
 0x4d1   : > { %v1705_v20 = vpack.c.bf16 %v1521_v17, %v1519_v8  ;;  %v1465_v21 = vpop.permute.xlu0 %1464  ;;  %v1706_v22 = vpack.c.bf16 %v1522_v18, %v1520_v9 }
 0x4d3   : > { %1777 = vmatprep.subr.bf16.mxu0 %v1706_v22  ;;  %v1467_v25 = vpop.permute.xlu1 %1466 }
 0x4d4   : > { %1778 = vmatpush1.bf16.msra.mxu0 %v1705_v20  ;;  %v1473_v26 = vsel %vm1472_vm8, %v1463_v19, %v1467_v25  ;;  %v1475_v27 = vsel %vm1472_vm8, %v1467_v25, %v1463_v19 }
 0x4d5   : > { %v1489_v28 = vmul.f32 %v1482_v23, %v1475_v27  ;;  %v1490_v29 = vmul.f32 %v1486_v24, %v1473_v26  ;;  %v1469_v30 = vpop.permute.xlu0 %1468 }
 0x4d6   : > { %v1474_v31 = vsel %vm1472_vm8, %v1465_v21, %v1469_v30  ;;  %v1476_v32 = vsel %vm1472_vm8, %v1469_v30, %v1465_v21 }
 0x4d7   : > { %v1491_v34 = vmul.f32 %v1482_v23, %v1476_v32  ;;  %v1492_v36 = vmul.f32 %v1486_v24, %v1474_v31  ;;  %v1674_v37 = vpop.permute.xlu1 %1673 }
 0x4d9   : > { %v1703_v38 = vpack.c.bf16 %v1491_v34, %v1489_v28  ;;  %v1676_v52 = vpop.permute.xlu0 %1675  ;;  %v1704_v55 = vpack.c.bf16 %v1492_v36, %v1490_v29 }
 0x4db   : > { %1779 = vmatprep.subr.bf16.mxu0 %v1704_v55  ;;  %v1678_v44 = vpop.permute.xlu1 %1677 }
 0x4dc   : > { %1780 = vmatpush1.bf16.msra.mxu0 %v1703_v38  ;;  %v1682_v45 = vsel %vm1681_vm9, %v1674_v37, %v1678_v44  ;;  %v1684_v46 = vsel %vm1681_vm9, %v1678_v44, %v1674_v37 }
 0x4dd   : > { %v1699_v50 = vmul.f32 %v1692_v57, %v1682_v45  ;;  %v1700_v54 = vmul.f32 %v1696_v43, %v1684_v46  ;;  %v1680_v56 = vpop.permute.xlu0 %1679 }
 0x4de   : > { %v1683_v47 = vsel %vm1681_vm9, %v1676_v52, %v1680_v56  ;;  %v1685_v48 = vsel %vm1681_vm9, %v1680_v56, %v1676_v52 }
 0x4df   : > { %v1701_v49 = vmul.f32 %v1692_v57, %v1683_v47  ;;  %v1702_v51 = vmul.f32 %v1696_v43, %v1685_v48 }
 0x4e1   : > { %v1719_v53 = vpack.c.bf16 %v1701_v49, %v1699_v50  ;;  %v1720_v58 = vpack.c.bf16 %v1702_v51, %v1700_v54 }
 0x4e3   : > { %1795 = vmatprep.subr.bf16.mxu0 %v1720_v58 }
 0x4e4   : > { %1796 = vmatpush2.bf16.msra.mxu0 %v1719_v53 }
 0x4e7   : > { %1798 = vmatmul.mubr.bf16.vlgmr.msra.gmra.mxu0 %v4916_v59 }
 0x4e8   : > { %4596 = vmatprep.mubr.msk.bf16.mxu0 %vm1201_vm1, %v4917_v60  ;;  %v1724_v63 = vpop.permute.xlu1 %1723 }
 0x4ea   : > { %v1729_v6 = vpop.permute.xlu0 %1728 }
 0x4ec   : > { %v1734_v9 = vpop.permute.xlu1 %1733 }
 0x4ee   : > { %v1739_v21 = vpop.permute.xlu0 %1738 }
 0x4ef   : > { %1808 = vmatmul.mubr.bf16.gmra.mxu0 %v4919_v61 }
 0x4f0   : > { %2490 = vmatprep.mubr.bf16.mxu0 %v6752_v35 }
 0x5a7   : > { %v1799_v62 = vpop.f32.mrf.mxu0 }
 0x5a8   : > { %v5665_v11 = vadd.f32 %v1799_v62, %v1724_v63 }
 0x5a9   : > { %v1801_v0 = vpop.f32.mrf.mxu0 }
 0x5aa   : > { %v5671_v18 = vadd.f32 %v1801_v0, %v1724_v63 }
 0x5ab   : > { %v1803_v5 = vpop.f32.mrf.mxu0 }
 0x5ac   : > { %v5663_v8 = vadd.f32 %v1803_v5, %v1729_v6 }
 0x5ad   : > { %v1805_v7 = vpop.f32.mrf.mxu0 }
 0x5ae   : > { %v5667_v12 = vadd.f32 %v1805_v7, %v1729_v6  ;;  %v1826_v19 = vadd.f32 %v5663_v8, %v5665_v11 }
 0x5af   : > { %v1809_v10 = vpop.f32.mrf.mxu0 }
 0x5b0   : > { %v5669_v16 = vadd.f32 %v1809_v10, %v1734_v9  ;;  %v1835_v23 = vadd.f32 %v5667_v12, %v5671_v18 }
 0x5b1   : > { %v1811_v17 = vpop.f32.mrf.mxu0 }
 0x5b2   : > { %v5675_v20 = vadd.f32 %v1811_v17, %v1734_v9  ;;  %v1827_v24 = vadd.f32 %v1826_v19, %v5669_v16 }
 0x5b3   : > { %v1813_v22 = vpop.f32.mrf.mxu0 }
 0x5b4   : > { %v5680_v25 = vadd.f32 %v1813_v22, %v1739_v21  ;;  %v1836_v27 = vadd.f32 %v1835_v23, %v5675_v20 }
 0x5b5   : > { %v1815_v26 = vpop.f32.mrf.mxu0 }
 0x5b6   : > { %v1828_v28 = vadd.f32 %v1827_v24, %v5680_v25  ;;  %v5684_v29 = vadd.f32 %v1815_v26, %v1739_v21 }
 0x5b8   : > { %v1829_v30 = vrot.slane %v1828_v28, 4  ;;  %v1837_v31 = vadd.f32 %v1836_v27, %v5684_v29 }
 0x5ba   : > { %v1830_v32 = vadd.f32 %v1829_v30, %v1828_v28  ;;  %v1838_v33 = vrot.slane %v1837_v31, 4 }
 0x5bc   : > { %v1831_v34 = vrot.slane %v1830_v32, 2  ;;  %v1839_v36 = vadd.f32 %v1838_v33, %v1837_v31 }
 0x5be   : > { %v1832_v37 = vadd.f32 %v1831_v34, %v1830_v32  ;;  %v1840_v38 = vrot.slane %v1839_v36, 2 }
 0x5c0   : > { %v1833_v52 = vrot.slane %v1832_v37, 1  ;;  %v1841_v55 = vadd.f32 %v1840_v38, %v1839_v36 }
 0x5c2   : > { %v1834_v57 = vadd.f32 %v1833_v52, %v1832_v37  ;;  %v1842_v43 = vrot.slane %v1841_v55, 1 }
 0x5c4   : > { %v1844_v44 = vmul.f32 0.03125, %v1834_v57  ;;  %v1843_v45 = vadd.f32 %v1842_v43, %v1841_v55  ;;  %v1907_v55 = vpop.permute.xlu1 %1906  ;;  %v1912_v57 = vpop.permute.xlu0 %1911 }
 0x5c6   : > { %v1846_v46 = vsub.f32 %v5665_v11, %v1844_v44  ;;  %v1848_v50 = vsub.f32 %v5663_v8, %v1844_v44  ;;  %v1850_v54 = vsub.f32 %v5669_v16, %v1844_v44  ;;  %v1845_v56 = vmul.f32 0.03125, %v1843_v45 }
 0x5c7   : > { %v1852_v47 = vsub.f32 %v5680_v25, %v1844_v44 }
 0x5c8   : > { %v1854_v48 = vmul.f32 %v1846_v46, %v1846_v46  ;;  %v1856_v49 = vmul.f32 %v1848_v50, %v1848_v50  ;;  %v1847_v51 = vsub.f32 %v5671_v18, %v1845_v56  ;;  %v1849_v53 = vsub.f32 %v5667_v12, %v1845_v56  ;;  %v1935_v43 = vpop.permute.xlu1 %1934  ;;  %v1940_v44 = vpop.permute.xlu0 %1939 }
 0x5c9   : > { %v1851_v58 = vsub.f32 %v5675_v20, %v1845_v56  ;;  %v1858_v59 = vmul.f32 %v1850_v54, %v1850_v54  ;;  %v1853_v61 = vsub.f32 %v5684_v29, %v1845_v56  ;;  %v1860_v0 = vmul.f32 %v1852_v47, %v1852_v47 }
 0x5ca   : > { %v1862_v60 = vadd.f32 %v1856_v49, %v1854_v48  ;;  %v1855_v62 = vmul.f32 %v1847_v51, %v1847_v51  ;;  %v1857_v63 = vmul.f32 %v1849_v53, %v1849_v53 }
 0x5cb   : > { %v1859_v6 = vmul.f32 %v1851_v58, %v1851_v58  ;;  %v1861_v10 = vmul.f32 %v1853_v61, %v1853_v61 }
 0x5cc   : > { %v1863_v5 = vadd.f32 %v1862_v60, %v1858_v59  ;;  %v1871_v7 = vadd.f32 %v1857_v63, %v1855_v62  ;;  %v1897_v56 = vpop.permute.xlu1 %1896  ;;  %v1902_v48 = vpop.permute.xlu0 %1901 }
 0x5ce   : > { %v1864_v9 = vadd.f32 %v1863_v5, %v1860_v0  ;;  %v1872_v17 = vadd.f32 %v1871_v7, %v1859_v6 }
 0x5d0   : > { %v1865_v19 = vrot.slane %v1864_v9, 4  ;;  %v1873_v21 = vadd.f32 %v1872_v17, %v1861_v10 }
 0x5d2   : > { %v1866_v22 = vadd.f32 %v1865_v19, %v1864_v9  ;;  %v1874_v23 = vrot.slane %v1873_v21, 4 }
 0x5d4   : > { %v1867_v24 = vrot.slane %v1866_v22, 2  ;;  %v1875_v26 = vadd.f32 %v1874_v23, %v1873_v21  ;;  %v1925_v23 = vpop.permute.xlu1 %1924 }
 0x5d6   : > { %v1868_v27 = vadd.f32 %v1867_v24, %v1866_v22  ;;  %v1876_v28 = vrot.slane %v1875_v26, 2  ;;  %v1930_v24 = vpop.permute.xlu0 %1929 }
 0x5d8   : > { %v1869_v30 = vrot.slane %v1868_v27, 1  ;;  %v1877_v31 = vadd.f32 %v1876_v28, %v1875_v26 }
 0x5da   : > { %v1870_v32 = vadd.f32 %v1869_v30, %v1868_v27  ;;  %v1878_v33 = vrot.slane %v1877_v31, 1 }
 0x5dc   : > { %v1880_v34 = vmul.f32 0.03125, %v1870_v32  ;;  %v1879_v36 = vadd.f32 %v1878_v33, %v1877_v31  ;;  %v1956_v31 = vld [vmem:[%s935_s16 + $0x10] sm:$0xff] }
 0x5dd   : > { %v1958_v33 = vpack.c.bf16 %v1956_v31, %v1956_v31 }
 0x5de   : > { %v1882_v37 = vadd.f32 1e-05, %v1880_v34  ;;  %v1881_v38 = vmul.f32 0.03125, %v1879_v36  ;;  %v1954_v36 = vld [vmem:[%s935_s16] sm:$0xff] }
 0x5e0   : > { %4980 = vrsqrt.f32 %v1882_v37  ;;  %v1883_v52 = vadd.f32 1e-05, %v1881_v38  ;;  %v1955_v37 = vld [vmem:[%s935_s16 + $0x8] sm:$0xff]  ;;  %v4920_v38 = vld [vmem:[%s5251_s30] sm:$0xff]   ;;  %s6816_s16 = sld [smem:[#allocation13_spill]] }
 0x5e2   : > { %4982 = vrsqrt.f32 %v1883_v52  ;;  %v2131_v52 = vsel %vm2129_vm10, %v1958_v33, 0 }
 0x5ed   : > { %v4981_v45 = vpop.eup %4980 }
 0x5ee   : > { %v1892_v49 = vmul.f32 %v4981_v45, %v1852_v47  ;;  %v1890_v59 = vmul.f32 %v4981_v45, %v1850_v54  ;;  %v1886_v0 = vmul.f32 %v4981_v45, %v1846_v46  ;;  %v1888_v5 = vmul.f32 %v4981_v45, %v1848_v50  ;;  %v4924_v45 = vld [vmem:[%s6815_s2] sm:$0xff]  }
 0x5ef   : > { %v4983_v60 = vpop.eup %4982 }
 0x5f0   : > { %v1920_v62 = vmul.f32 %v1912_v57, %v1892_v49  ;;  %v1918_v63 = vmul.f32 %v1907_v55, %v1890_v59  ;;  %v1893_v6 = vmul.f32 %v4983_v60, %v1853_v61  ;;  %v1891_v7 = vmul.f32 %v4983_v60, %v1851_v58  ;;  %v4927_v49 = vld [vmem:[%s6815_s2 + $0x18] sm:$0xff]   ;;  %v4928_v59 = vld [vmem:[%s6816_s16] sm:$0xff]  }
 0x5f1   : > { %v1887_v9 = vmul.f32 %v4983_v60, %v1847_v51  ;;  %v1889_v10 = vmul.f32 %v4983_v60, %v1849_v53  ;;  %v1914_v54 = vmul.f32 %v1897_v56, %v1886_v0  ;;  %v1916_v27 = vmul.f32 %v1902_v48, %v1888_v5  ;;  %v4929_v60 = vld [vmem:[%s6816_s16 + $0x8] sm:$0xff]  }
 0x5f2   : > { %v1919_v17 = vmul.f32 %v1907_v55, %v1891_v7  ;;  %v1921_v19 = vmul.f32 %v1912_v57, %v1893_v6  ;;  %v1946_v26 = vadd.f32 %v1935_v43, %v1918_v63  ;;  %v1948_v47 = vadd.f32 %v1940_v44, %v1920_v62  ;;  %v4921_v57 = vld [vmem:[%s5251_s30 + $0x8] sm:$0xff]   ;;  %v4930_v62 = vld [vmem:[%s6816_s16 + $0x10] sm:$0xff]   ;;  %v4931_v63 = vld [vmem:[%s6816_s16 + $0x18] sm:$0xff]  }
 0x5f3   : > { %v1915_v21 = vmul.f32 %v1897_v56, %v1887_v9  ;;  %v1917_v22 = vmul.f32 %v1902_v48, %v1889_v10  ;;  %v1942_v58 = vadd.f32 %v1925_v23, %v1914_v54  ;;  %v1944_v61 = vadd.f32 %v1930_v24, %v1916_v27  ;;  %v4925_v56 = vld [vmem:[%s6815_s2 + $0x8] sm:$0xff]   ;;  %v4926_v48 = vld [vmem:[%s6815_s2 + $0x10] sm:$0xff]   ;;  %s6820_s2 = sld [smem:[#allocation16_spill]] }
 0x5f4   : > { %v1947_v28 = vadd.f32 %v1935_v43, %v1919_v17  ;;  %v1949_v30 = vadd.f32 %v1940_v44, %v1921_v19  ;;  %v1952_v53 = vpack.c.bf16 %v1948_v47, %v1946_v26  ;;  %v1957_v55 = vpack.c.bf16 %v1955_v37, %v1954_v36  ;;  %v4922_v43 = vld [vmem:[%s5251_s30 + $0x10] sm:$0xff]   ;;  %v4923_v44 = vld [vmem:[%s5251_s30 + $0x18] sm:$0xff]  }
 0x5f5   : > { %v1943_v46 = vadd.f32 %v1925_v23, %v1915_v21  ;;  %v1945_v50 = vadd.f32 %v1930_v24, %v1917_v22  ;;  %v1950_v34 = vpack.c.bf16 %v1944_v61, %v1942_v58 }
 0x5f6   : > { %v1953_v51 = vpack.c.bf16 %v1949_v30, %v1947_v28 }
 0x5f7   : > { %v1951_v32 = vpack.c.bf16 %v1945_v50, %v1943_v46 }
 0x5f8   : > { %2011 = vmatprep.subr.bf16.mxu1 %v1953_v51 }
 0x5f9   : > { %2012 = vmatpush1.bf16.msra.mxu1 %v1952_v53 }
 0x5fa   : > { %2013 = vmatprep.subr.bf16.mxu1 %v1951_v32 }
 0x5fd   : > { %2014 = vmatpush1.bf16.msra.mxu1 %v1950_v34 }
 0x5fe   : > { %4826 = vmatprep.subr.msk.bf16.mxu1 %vm2129_vm10, %v1958_v33 }
 0x600   : > { %4601 = vmatmul.mubr.msk.bf16.vlgmr.msra.gmra.mxu1 %vm986_vm0, %v4920_v38 }
 0x601   : > { %4775 = vmatpush3.bf16.msra.mxu1 %v2131_v52  ;;  %2041 = vmatprep.mubr.bf16.mxu1 %v6752_v35 }
 0x602   : > { %4776 = vmatprep.subr.bf16.mxu1 %v1957_v55 }
 0x605   : > { %4777 = vmatpush3.bf16.msra.mxu1 %v1957_v55 }
 0x606   : > { %4827 = vmatprep.subr.msk.bf16.mxu1 %vm2129_vm10, %v1958_v33 }
 0x608   : > { %4602 = vmatmul.mubr.msk.bf16.gmra.mxu1 %vm986_vm0, %v4921_v57 }
 0x609   : > { %2051 = vmatprep.mubr.bf16.mxu1 %v6752_v35 }
 0x610   : > { %4603 = vmatmul.mubr.msk.bf16.gmra.mxu1 %vm986_vm0, %v4922_v43 }
 0x611   : > { %2061 = vmatprep.mubr.bf16.mxu1 %v6752_v35 }
 0x618   : > { %4604 = vmatmul.mubr.msk.bf16.gmra.mxu1 %vm986_vm0, %v4923_v44 }
 0x619   : > { %4778 = vmatprep.mubr.msk.bf16.mxu1 %vm2116_vm11, %v4924_v45 }
 0x620   : > { %4779 = vmatmul.mubr.msk.bf16.vlgmr.msra.gmra.mxu1 %vm2116_vm11, %v4925_v56 }
 0x621   : > { %4782 = vmatprep.mubr.msk.bf16.mxu1 %vm2116_vm11, %v4926_v48  ;;  %4787 = vmatpush3.bf16.msra.mxu1 %v2131_v52 }
 0x622   : > { %4788 = vmatprep.subr.bf16.mxu1 %v1957_v55 }
 0x625   : > { %4789 = vmatpush3.bf16.msra.mxu1 %v1957_v55 }
 0x628   : > { %4783 = vmatmul.mubr.msk.bf16.gmra.mxu1 %vm2116_vm11, %v4927_v49 }
 0x629   : > { %4790 = vmatprep.mubr.msk.bf16.mxu1 %vm2116_vm11, %v4928_v59 }
 0x630   : > { %4791 = vmatmul.mubr.msk.bf16.vlgmr.msra.gmra.mxu1 %vm2116_vm11, %v4929_v60 }
 0x631   : > { %4794 = vmatprep.mubr.msk.bf16.mxu1 %vm2116_vm11, %v4930_v62 }
 0x638   : > { %4795 = vmatmul.mubr.msk.bf16.gmra.mxu1 %vm2116_vm11, %v4931_v63  ;;  %v2560_v63 = vld [vmem:[%s6817_s23 + $0x8] sm:$0xff] }
 0x639   : > { %2370 = vmatprep.mubr.bf16.mxu1 %v6752_v35 }
 0x6c0   : > { %v2033_v0 = vpop.f32.mrf.mxu1 }
 0x6c1   : > { %v5734_v19 = vmul.f32 0.25, %v2033_v0  ;;  %v2559_v0 = vld [vmem:[%s6817_s23] sm:$0xff] }
 0x6c2   : > { %v2035_v5 = vpop.f32.mrf.mxu1 }
 0x6c3   : > { %v5730_v10 = vmul.f32 0.25, %v2035_v5  ;;  %v5180_v5 = vmov 1  }
 0x6c4   : > { %v2037_v6 = vpop.f32.mrf.mxu1 }
 0x6c5   : > { %v5728_v7 = vmul.f32 0.25, %v2037_v6 }
 0x6c6   : > { %v2039_v9 = vpop.f32.mrf.mxu1 }
 0x6c7   : > { %v5732_v17 = vmul.f32 0.25, %v2039_v9  ;;  %v2311_v23 = vpack.c.bf16 %v5728_v7, %v5734_v19 }
 0x6c8   : > { %v2043_v21 = vpop.f32.mrf.mxu1 }
 0x6c9   : > { %v2312_v22 = vpack.c.bf16 %v5732_v17, %v5730_v10 }
 0x6ca   : > { %v2045_v24 = vpop.f32.mrf.mxu1 }
 0x6cb   : > { %2352 = vmatprep.subr.bf16.mxu1 %v2312_v22  ;;  %v5740_v54 = vmul.f32 0.25, %v2045_v24  ;;  %v2076_v22 = vmul.f32 0.25, %v2043_v21 }
 0x6cc   : > { %v2047_v26 = vpop.f32.mrf.mxu1  ;;  %2353 = vmatpush1.bf16.msra.mxu1 %v2311_v23 }
 0x6cd   : > { %v2078_v6 = vmul.f32 0.25, %v2047_v26 }
 0x6ce   : > { %v2049_v47 = vpop.f32.mrf.mxu1 }
 0x6cf   : > { %v5742_v27 = vmul.f32 0.25, %v2049_v47  ;;  %v2313_v24 = vpack.c.bf16 %v2078_v6, %v2076_v22 }
 0x6d0   : > { %v2053_v28 = vpop.f32.mrf.mxu1 }
 0x6d1   : > { %v2314_v30 = vpack.c.bf16 %v5742_v27, %v5740_v54  ;;  %v5752_v31 = vmul.f32 0.25, %v2053_v28 }
 0x6d2   : > { %v2055_v46 = vpop.f32.mrf.mxu1 }
 0x6d3   : > { %2412 = vmatprep.subr.bf16.mxu1 %v2314_v30  ;;  %v5748_v58 = vmul.f32 0.25, %v2055_v46 }
 0x6d4   : > { %v2057_v50 = vpop.f32.mrf.mxu1 }
 0x6d5   : > { %v5746_v51 = vmul.f32 0.25, %v2057_v50 }
 0x6d6   : > { %v2059_v53 = vpop.f32.mrf.mxu1 }
 0x6d7   : > { %v5750_v61 = vmul.f32 0.25, %v2059_v53  ;;  %v2315_v34 = vpack.c.bf16 %v5746_v51, %v5752_v31 }
 0x6d8   : > { %v2063_v32 = vpop.f32.mrf.mxu1 }
 0x6d9   : > { %v2316_v33 = vpack.c.bf16 %v5750_v61, %v5748_v58  ;;  %v2084_v46 = vmul.f32 0.25, %v2063_v32 }
 0x6da   : > { %v2065_v36 = vpop.f32.mrf.mxu1 }
 0x6db   : > { %2472 = vmatprep.subr.bf16.mxu0 %v2316_v33  ;;  %v2085_v23 = vmul.f32 0.25, %v2065_v36 }
 0x6dc   : > { %v2067_v37 = vpop.f32.mrf.mxu1  ;;  %2473 = vmatpush1.bf16.msra.mxu0 %v2315_v34 }
 0x6dd   : > { %v2086_v30 = vmul.f32 0.25, %v2067_v37 }
 0x6de   : > { %v2069_v38 = vpop.f32.mrf.mxu1 }
 0x6df   : > { %v2087_v9 = vmul.f32 0.25, %v2069_v38  ;;  %v2317_v53 = vpack.c.bf16 %v2086_v30, %v2084_v46 }
 0x6e0   : > { %v4780_v52 = vpop.f32.mrf.mxu1 }
 0x6e1   : > { %v2318_v28 = vpack.c.bf16 %v2087_v9, %v2085_v23 }
 0x6e2   : > { %v2167_v55 = vpop.f32.mrf.mxu1 }
 0x6e4   : > { %v4781_v57 = vpop.f32.mrf.mxu1 }
 0x6e5   : > { %v2304_v43 = vpack.c.bf16 %v4781_v57, %v4780_v52 }
 0x6e6   : > { %v2170_v44 = vpop.f32.mrf.mxu1 }
 0x6e7   : > { %v2303_v45 = vpack.c.bf16 %v2170_v44, %v2167_v55  ;;  %2379 = vxpose.xlu0.c.b16.start.end [1/1] (short) (narrow) %v2304_v43, 16 }
 0x6e8   : > { %v4784_v56 = vpop.f32.mrf.mxu1 }
 0x6e9   : > { %2319 = vxpose.xlu1.c.b16.start.end [1/1] (short) (narrow) %v2303_v45, 16 }
 0x6ea   : > { %v2183_v48 = vpop.f32.mrf.mxu1 }
 0x6ec   : > { %v4785_v49 = vpop.f32.mrf.mxu1 }
 0x6ed   : > { %v2306_v59 = vpack.c.bf16 %v4785_v49, %v4784_v56 }
 0x6ee   : > { %v2186_v60 = vpop.f32.mrf.mxu1 }
 0x6ef   : > { %v2305_v62 = vpack.c.bf16 %v2186_v60, %v2183_v48  ;;  %2499 = vxpose.xlu0.c.b16.start.end [1/1] (short) (narrow) %v2306_v59, 16 }
 0x6f0   : > { %v5770_v26 = vpop.f32.mrf.mxu1 }
 0x6f1   : > { %2439 = vxpose.xlu1.c.b16.start.end [1/1] (short) (narrow) %v2305_v62, 16 }
 0x6f2   : > { %v5772_v32 = vpop.f32.mrf.mxu1 }
 0x6f4   : > { %v5774_v34 = vpop.f32.mrf.mxu1 }
 0x6f5   : > { %2568 = vperm.xlu1 %4908, %v2560_v63  }
 0x6f6   : > { %v5776_v38 = vpop.f32.mrf.mxu1 }
 0x6f8   : > { %2563 = vperm.xlu0 %4909, %v2559_v0   ;;  %v5781_v43 = vpop.f32.mrf.mxu1 }
 0x6f9   : > { %4910 = vset.pattern.permute.xlu1 %v5180_v5 }
 0x6fa   : > { %2820 = vperm.xlu1 %4910, %v2559_v0  }
 0x6fc   : > { %4911 = vset.pattern.permute.xlu0 %v5180_v5 }
 0x6fd   : > { %2824 = vperm.xlu0 %4911, %v2560_v63   ;;  %v5788_v63 = vpop.f32.mrf.mxu1 }
 0x6fe   : > { %4912 = vset.pattern.permute.xlu1 %v6752_v35 }
 0x701   : > { %4913 = vset.pattern.permute.xlu0 %v6752_v35 }
 0x749   : > { %v2387_v50 = vpop.trf.xlu0 }
 0x74b   : > { %v2327_v47 = vpop.trf.xlu1 }
 0x74c   : > { %4621 = vmatmul.mubr.msk.bf16.vlgmr.msra.gmra.mxu1 %vm1201_vm1, %v2327_v47 }
 0x74d   : > { %2413 = vmatpush1.bf16.msra.mxu1 %v2313_v24  ;;  %2430 = vmatprep.mubr.bf16.mxu1 %v6752_v35 }
 0x74e   : > { %2532 = vmatprep.subr.bf16.mxu1 %v2318_v28 }
 0x751   : > { %v2507_v21 = vpop.trf.xlu0 }
 0x753   : > { %v2447_v33 = vpop.trf.xlu1 }
 0x754   : > { %4622 = vmatmul.mubr.msk.bf16.vlgmr.msra.gmra.mxu1 %vm1201_vm1, %v2387_v50  ;;  %4623 = vmatmul.mubr.msk.bf16.vlgmr.msra.gmra.mxu0 %vm1201_vm1, %v2447_v33 }
 0x755   : > { %2533 = vmatpush1.bf16.msra.mxu1 %v2317_v53  ;;  %2550 = vmatprep.mubr.bf16.mxu1 %v6752_v35 }
 0x756   : > { %2885 = vmatprep.mubr.bf16.mxu0 %v6752_v35 }
 0x75c   : > { %4624 = vmatmul.mubr.msk.bf16.vlgmr.msra.gmra.mxu1 %vm1201_vm1, %v2507_v21 }
 0x75d   : > { %2937 = vmatprep.mubr.bf16.mxu1 %v6752_v35 }
 0x770   : > { %v2569_v37 = vpop.permute.xlu1 %2568 }
 0x771   : > { %v2573_v55 = vmul.f32 %v2569_v37, %v5728_v7  ;;  %v2574_v45 = vmul.f32 %v2569_v37, %v5732_v17  ;;  %v2577_v60 = vmul.f32 %v2569_v37, %v2078_v6  ;;  %v2581_v62 = vmul.f32 %v2569_v37, %v5746_v51  ;;  %v5792_v6 = vpop.f32.mrf.mxu1 }
 0x772   : > { %v2582_v17 = vmul.f32 %v2569_v37, %v5750_v61  ;;  %v2585_v24 = vmul.f32 %v2569_v37, %v2086_v30 }
 0x773   : > { %v2564_v36 = vpop.permute.xlu0 %2563 }
 0x774   : > { %v2571_v52 = vmul.f32 %v2564_v36, %v5734_v19  ;;  %v2572_v57 = vmul.f32 %v2564_v36, %v5730_v10  ;;  %v2575_v48 = vmul.f32 %v2564_v36, %v2076_v22  ;;  %v2579_v49 = vmul.f32 %v2564_v36, %v5752_v31 }
 0x775   : > { %v2576_v59 = vmul.f32 %v2564_v36, %v5740_v54  ;;  %v2578_v19 = vmul.f32 %v2569_v37, %v5742_v27  ;;  %v2580_v10 = vmul.f32 %v2564_v36, %v5748_v58  ;;  %v2583_v0 = vmul.f32 %v2564_v36, %v2084_v46  ;;  %v5794_v46 = vpop.f32.mrf.mxu1 }
 0x776   : > { %v2587_v44 = vadd.f32 %v2573_v55, %v2571_v52  ;;  %v2594_v56 = vadd.f32 %v2574_v45, %v2572_v57  ;;  %v2584_v5 = vmul.f32 %v2564_v36, %v2085_v23  ;;  %v2586_v22 = vmul.f32 %v2569_v37, %v2087_v9 }
 0x777   : > { %v2601_v31 = vadd.f32 %v2577_v60, %v2575_v48  ;;  %v2615_v28 = vadd.f32 %v2581_v62, %v2579_v49  ;;  %v2608_v54 = vadd.f32 %v2578_v19, %v2576_v59  ;;  %v2622_v50 = vadd.f32 %v2582_v17, %v2580_v10 }
 0x778   : > { %v2588_v7 = vrot.slane %v2587_v44, 4  ;;  %v2595_v47 = vrot.slane %v2594_v56, 4  ;;  %v2629_v27 = vadd.f32 %v2585_v24, %v2583_v0  ;;  %v2636_v53 = vadd.f32 %v2586_v22, %v2584_v5 }
 0x779   : > { %v2602_v21 = vrot.slane %v2601_v31, 4  ;;  %v2616_v52 = vrot.slane %v2615_v28, 4  ;;  %v2609_v58 = vrot.slane %v2608_v54, 4  ;;  %v2623_v61 = vrot.slane %v2622_v50, 4 }
 0x77a   : > { %v2589_v51 = vadd.f32 %v2588_v7, %v2587_v44  ;;  %v2596_v33 = vadd.f32 %v2595_v47, %v2594_v56  ;;  %v2630_v30 = vrot.slane %v2629_v27, 4  ;;  %v2637_v9 = vrot.slane %v2636_v53, 4 }
 0x77b   : > { %v2603_v55 = vadd.f32 %v2602_v21, %v2601_v31  ;;  %v2617_v57 = vadd.f32 %v2616_v52, %v2615_v28  ;;  %v2610_v45 = vadd.f32 %v2609_v58, %v2608_v54  ;;  %v2624_v56 = vadd.f32 %v2623_v61, %v2622_v50 }
 0x77c   : > { %v2590_v23 = vrot.slane %v2589_v51, 2  ;;  %v2597_v37 = vrot.slane %v2596_v33, 2  ;;  %v2631_v59 = vadd.f32 %v2630_v30, %v2629_v27  ;;  %v2638_v60 = vadd.f32 %v2637_v9, %v2636_v53 }
 0x77d   : > { %v2604_v0 = vrot.slane %v2603_v55, 2  ;;  %v2618_v5 = vrot.slane %v2617_v57, 2  ;;  %v2611_v17 = vrot.slane %v2610_v45, 2  ;;  %v2625_v28 = vrot.slane %v2624_v56, 2 }
 0x77e   : > { %v2591_v48 = vadd.f32 %v2590_v23, %v2589_v51  ;;  %v2598_v7 = vadd.f32 %v2597_v37, %v2596_v33  ;;  %v2632_v54 = vrot.slane %v2631_v59, 2  ;;  %v2639_v51 = vrot.slane %v2638_v60, 2 }
 0x77f   : > { %v2605_v52 = vadd.f32 %v2604_v0, %v2603_v55  ;;  %v2619_v33 = vadd.f32 %v2618_v5, %v2617_v57  ;;  %v5808_v23 = vadd.f32 %v2611_v17, %v2610_v45 }
 0x780   : > { %v2592_v47 = vrot.slane %v2591_v48, 1  ;;  %v2599_v53 = vrot.slane %v2598_v7, 1  ;;  %v5820_v55 = vadd.f32 %v2639_v51, %v2638_v60 }
 0x781   : > { %v2613_v51 = vrot.slane %v5808_v23, 1 }
 0x782   : > { %v5824_v17 = vadd.f32 %v2599_v53, %v2598_v7 }
 0x80c   : > { %v5796_v36 = vpop.f32.mrf.mxu1 }
 0x80d   : > { %v2643_v44 = vrot.slane %v5796_v36, 4 }
 0x80e   : > { %v5799_v49 = vpop.f32.mrf.mxu1 }
 0x80f   : > { %v2644_v62 = vmax.f32 %v5796_v36, %v2643_v44  ;;  %v2649_v19 = vrot.slane %v5799_v49, 4  ;;  %v5812_v44 = vadd.f32 %v2592_v47, %v2591_v48 }
 0x810   : > { %v2376_v10 = vpop.f32.mrf.mxu1 }
 0x811   : > { %v2645_v24 = vrot.slane %v2644_v62, 2  ;;  %v2650_v22 = vmax.f32 %v5799_v49, %v2649_v19  ;;  %v2626_v10 = vadd.f32 %v2625_v28, %v2624_v56 }
 0x812   : > { %v2377_v31 = vpop.f32.mrf.mxu1 }
 0x813   : > { %v2646_v50 = vmax.f32 %v2644_v62, %v2645_v24  ;;  %v2651_v27 = vrot.slane %v2650_v22, 2  ;;  %v5818_v24 = vadd.f32 %v2632_v54, %v2631_v59  ;;  %v2620_v54 = vrot.slane %v2619_v33, 1 }
 0x814   : > { %v5804_v21 = vpop.f32.mrf.mxu1  ;;  %v5806_v58 = vpop.f32.mrf.mxu0 }
 0x815   : > { %v2647_v61 = vrot.slane %v2646_v50, 1  ;;  %v2652_v30 = vmax.f32 %v2650_v22, %v2651_v27  ;;  %v2655_v9 = vrot.slane %v5804_v21, 4  ;;  %v2667_v37 = vrot.slane %v5806_v58, 4 }
 0x816   : > { %v5814_v19 = vpop.f32.mrf.mxu1  ;;  %v5816_v62 = vpop.f32.mrf.mxu0  ;;  %v2606_v22 = vrot.slane %v2605_v52, 1 }
 0x817   : > { %v2648_v57 = vmax.f32 %v2646_v50, %v2647_v61  ;;  %v2653_v45 = vrot.slane %v2652_v30, 1  ;;  %v2656_v0 = vmax.f32 %v5804_v21, %v2655_v9  ;;  %v2668_v5 = vmax.f32 %v5806_v58, %v2667_v37 }
 0x818   : > { %v2661_v48 = vrot.slane %v5814_v19, 4  ;;  %v2673_v47 = vrot.slane %v5816_v62, 4  ;;  %v2436_v31 = vpop.f32.mrf.mxu1  ;;  %v2496_v27 = vpop.f32.mrf.mxu0 }
 0x819   : > { %v2691_v56 = vmax.f32 %v2648_v57, %v5812_v44  ;;  %v2654_v59 = vmax.f32 %v2652_v30, %v2653_v45  ;;  %v2657_v60 = vrot.slane %v2656_v0, 2  ;;  %v2669_v28 = vrot.slane %v2668_v5, 2 }
 0x81a   : > { %v2662_v50 = vmax.f32 %v5814_v19, %v2661_v48  ;;  %v2674_v7 = vmax.f32 %v5816_v62, %v2673_v47  ;;  %v2437_v53 = vpop.f32.mrf.mxu1  ;;  %v2497_v61 = vpop.f32.mrf.mxu0  ;;  %v2627_v27 = vrot.slane %v2626_v10, 1 }
 0x81b   : > { %v2699_v9 = vsub.f32 %v5796_v36, %v2691_v56  ;;  %v2723_v37 = vsub.f32 %v5812_v44, %v2691_v56  ;;  %v5835_v31 = vmax.f32 %v2654_v59, %v5824_v17  ;;  %v2658_v57 = vmax.f32 %v2656_v0, %v2657_v60 }
 0x81c   : > { %v2670_v30 = vmax.f32 %v2668_v5, %v2669_v28  ;;  %v2663_v45 = vrot.slane %v2662_v50, 2  ;;  %v2675_v35 = vrot.slane %v2674_v7, 2  ;;  %v5837_v13 = vpop.f32.mrf.mxu1  ;;  %v2634_v36 = vrot.slane %v5818_v24, 1 }
 0x81d   : > { %v2707_v15 = vmul.f32 1.442695, %v2699_v9  ;;  %v2700_v48 = vsub.f32 %v5799_v49, %v5835_v31  ;;  %v2724_v47 = vsub.f32 %v5824_v17, %v5835_v31  ;;  %v2659_v44 = vrot.slane %v2658_v57, 1 }
 0x81e   : > { %v2671_v56 = vrot.slane %v2670_v30, 1  ;;  %v2664_v59 = vmax.f32 %v2662_v50, %v2663_v45  ;;  %v2676_v53 = vmax.f32 %v2674_v7, %v2675_v35  ;;  %v5844_v0 = vpop.f32.mrf.mxu1  ;;  %v2607_v60 = vadd.f32 %v2606_v22, %v2605_v52 }
 0x81f   : > { %4984 = vpow2.f32 %v2707_v15  ;;  %v2709_v5 = vmul.f32 1.442695, %v2700_v48  ;;  %v2679_v28 = vrot.slane %v5837_v13, 4  ;;  %v2660_v61 = vmax.f32 %v2658_v57, %v2659_v44 }
 0x820   : > { %v5847_v9 = vadd.f32 %v2620_v54, %v2619_v33  ;;  %v2672_v49 = vmax.f32 %v2670_v30, %v2671_v56  ;;  %v2665_v14 = vrot.slane %v2664_v59, 1  ;;  %v2556_v2 = vpop.f32.mrf.mxu1  ;;  %v2677_v17 = vrot.slane %v2676_v53, 1 }
 0x821   : > { %4986 = vpow2.f32 %v2709_v5  ;;  %v2680_v31 = vmax.f32 %v5837_v13, %v2679_v28  ;;  %v2685_v50 = vrot.slane %v5844_v0, 4  ;;  %v2693_v35 = vmax.f32 %v2660_v61, %v2607_v60 }
 0x822   : > { %v2695_v7 = vmax.f32 %v2672_v49, %v5847_v9  ;;  %v5853_v15 = vadd.f32 %v2613_v51, %v5808_v23  ;;  %v2666_v52 = vmax.f32 %v2664_v59, %v2665_v14  ;;  %v2557_v22 = vpop.f32.mrf.mxu1  ;;  %v5855_v57 = vadd.f32 %v2627_v27, %v2626_v10 }
 0x823   : > { %v2678_v33 = vmax.f32 %v2676_v53, %v2677_v17  ;;  %v2681_v54 = vrot.slane %v2680_v31, 2  ;;  %v2686_v2 = vmax.f32 %v5844_v0, %v2685_v50  ;;  %v2701_v30 = vsub.f32 %v5804_v21, %v2693_v35 }
 0x824   : > { %v2725_v45 = vsub.f32 %v2607_v60, %v2693_v35  ;;  %v2703_v48 = vsub.f32 %v5806_v58, %v2695_v7  ;;  %v2727_v44 = vsub.f32 %v5847_v9, %v2695_v7  ;;  %v2694_v56 = vmax.f32 %v2666_v52, %v5853_v15 }
 0x825   : > { %v2696_v23 = vmax.f32 %v2678_v33, %v5855_v57  ;;  %v2682_v51 = vmax.f32 %v2680_v31, %v2681_v54  ;;  %v2687_v14 = vrot.slane %v2686_v2, 2  ;;  %v2711_v59 = vmul.f32 1.442695, %v2701_v30 }
 0x826   : > { %v2715_v10 = vmul.f32 1.442695, %v2703_v48  ;;  %v2641_v27 = vrot.slane %v5820_v55, 1  ;;  %v2731_v53 = vmul.f32 1.442695, %v2723_v37  ;;  %v2702_v5 = vsub.f32 %v5814_v19, %v2694_v56 }
 0x827   : > { %v2726_v21 = vsub.f32 %v5853_v15, %v2694_v56  ;;  %v2704_v60 = vsub.f32 %v5816_v62, %v2696_v23  ;;  %4988 = vpow2.f32 %v2711_v59  ;;  %v2728_v58 = vsub.f32 %v5855_v57, %v2696_v23 }
 0x828   : > { %v2683_v28 = vrot.slane %v2682_v51, 1  ;;  %v2688_v61 = vmax.f32 %v2686_v2, %v2687_v14  ;;  %v2713_v9 = vmul.f32 1.442695, %v2702_v5  ;;  %v5869_v49 = vadd.f32 %v2634_v36, %v5818_v24 }
 0x829   : > { %4990 = vpow2.f32 %v2715_v10  ;;  %v2717_v17 = vmul.f32 1.442695, %v2704_v60  ;;  %v2733_v37 = vmul.f32 1.442695, %v2724_v47  ;;  %v5873_v62 = vadd.f32 %v2641_v27, %v5820_v55 }
 0x82a   : > { %v2684_v31 = vmax.f32 %v2682_v51, %v2683_v28  ;;  %v2689_v50 = vrot.slane %v2688_v61, 1  ;;  %4992 = vpow2.f32 %v2731_v53  ;;  %v2735_v47 = vmul.f32 1.442695, %v2725_v45 }
 0x82b   : > { %4994 = vpow2.f32 %v2713_v9  ;;  %v2307_v45 = vpack.c.bf16 %v5776_v38, %v5772_v32  ;;  %v2741_v27 = vmul.f32 1.442695, %v2728_v58 }
 0x82c   : > { %v4985_v19 = vpop.eup %4984  ;;  %v2697_v35 = vmax.f32 %v2684_v31, %v5869_v49  ;;  %v2690_v7 = vmax.f32 %v2688_v61, %v2689_v50  ;;  %4996 = vpow2.f32 %v2717_v17 }
 0x82d   : > { %v2811_v15 = vpack.c.bf16 %v4985_v19, %v4985_v19  ;;  %v2747_v52 = vrot.slane %v4985_v19, 4  ;;  %4998 = vpow2.f32 %v2733_v37 }
 0x82e   : > { %v4987_v22 = vpop.eup %4986  ;;  %v2705_v24 = vsub.f32 %v5837_v13, %v2697_v35  ;;  %v2729_v36 = vsub.f32 %v5869_v49, %v2697_v35  ;;  %v2698_v57 = vmax.f32 %v2690_v7, %v5873_v62  ;;  %v2739_v13 = vmul.f32 1.442695, %v2727_v44 }
 0x82f   : > { %v2812_v33 = vpack.c.bf16 %v4987_v22, %v4987_v22  ;;  %v2748_v54 = vadd.f32 %v4985_v19, %v2747_v52  ;;  %v2848_v48 = vsel %vm2129_vm10, %v2811_v15, 0  ;;  %v2753_v23 = vrot.slane %v4987_v22, 4 }
 0x830   : > { %v2719_v2 = vmul.f32 1.442695, %v2705_v24  ;;  %v2706_v30 = vsub.f32 %v5844_v0, %v2698_v57  ;;  %v2730_v55 = vsub.f32 %v5873_v62, %v2698_v57  ;;  %v2737_v0 = vmul.f32 1.442695, %v2726_v21 }
 0x831   : > { %4625 = vmatprep.subr.msk.bf16.mxu0 %vm2129_vm10, %v2812_v33  ;;  %v2749_v56 = vrot.slane %v2748_v54, 2  ;;  %v2754_v59 = vadd.f32 %v4987_v22, %v2753_v23  ;;  %v6818_v44 = vmov 0   ;;  %v2743_v7 = vmul.f32 1.442695, %v2729_v36 }
 0x832   : > { %5000 = vpow2.f32 %v2719_v2  ;;  %v2721_v51 = vmul.f32 1.442695, %v2706_v30  ;;  %2868 = vmatpush1.bf16.msra.mxu0 %v2848_v48  ;;  %v2308_v2 = vpack.c.bf16 %v5774_v34, %v5770_v26  ;;  %v2745_v30 = vmul.f32 1.442695, %v2730_v55 }
 0x833   : > { %5002 = vpow2.f32 %v2735_v47  ;;  %v2750_v14 = vadd.f32 %v2749_v56, %v2748_v54  ;;  %v2755_v5 = vrot.slane %v2754_v59, 2 }
 0x834   : > { %5004 = vpow2.f32 %v2721_v51  ;;  %v4989_v10 = vpop.eup %4988 }
 0x835   : > { %4626 = vmatmul.mubr.msk.bf16.vlgmr.msra.gmra.mxu0 %vm2843_vm12, %v2307_v45  ;;  %v2751_v53 = vrot.slane %v2750_v14, 1  ;;  %5006 = vpow2.f32 %v2739_v13  ;;  %v2759_v60 = vrot.slane %v4989_v10, 4  ;;  %v2813_v61 = vpack.c.bf16 %v4989_v10, %v4989_v10 }
 0x836   : > { %2989 = vmatprep.mubr.bf16.mxu0 %v6818_v44  ;;  %v4991_v28 = vpop.eup %4990  ;;  %v2756_v49 = vadd.f32 %v2755_v5, %v2754_v59  ;;  %5008 = vpow2.f32 %v2737_v0 }
 0x837   : > { %v2752_v9 = vadd.f32 %v2751_v53, %v2750_v14  ;;  %v5886_v32 = vpop.eup %4992  ;;  %v2760_v38 = vadd.f32 %v4989_v10, %v2759_v60  ;;  %v2771_v21 = vrot.slane %v4991_v28, 4  ;;  %5010 = vpow2.f32 %v2741_v27 }
 0x838   : > { %v4995_v17 = vpop.eup %4994  ;;  %v2757_v31 = vrot.slane %v2756_v49, 1  ;;  %v2815_v37 = vpack.c.bf16 %v4991_v28, %v4991_v28  ;;  %v2900_v15 = vsel %vm2129_vm10, %v2813_v61, 0  ;;  %v2309_v14 = vpack.c.bf16 %v5794_v46, %v5788_v63 }
 0x839   : > { %v5889_v58 = vadd.f32 %v5886_v32, %v2752_v9  ;;  %v2814_v50 = vpack.c.bf16 %v4995_v17, %v4995_v17  ;;  %v2761_v19 = vrot.slane %v2760_v38, 2  ;;  %v2772_v35 = vadd.f32 %v4991_v28, %v2771_v21  ;;  %v4997_v62 = vpop.eup %4996 }
 0x83a   : > { %v2758_v52 = vadd.f32 %v2757_v31, %v2756_v49  ;;  %v2765_v22 = vrot.slane %v4995_v17, 4  ;;  %v5892_v24 = vpop.eup %4998  ;;  %v2816_v57 = vpack.c.bf16 %v4997_v62, %v4997_v62  ;;  %v2777_v54 = vrot.slane %v4997_v62, 4 }
 0x83b   : > { %4627 = vmatprep.subr.msk.bf16.mxu1 %vm2129_vm10, %v2814_v50  ;;  %v2762_v47 = vadd.f32 %v2761_v19, %v2760_v38  ;;  %v2773_v33 = vrot.slane %v2772_v35, 2  ;;  %v2952_v56 = vsel %vm2129_vm10, %v2815_v37, 0  ;;  %5012 = vpow2.f32 %v2743_v7 }
 0x83c   : > { %2920 = vmatpush1.bf16.msra.mxu1 %v2900_v15  ;;  %v5898_v48 = vadd.f32 %v5892_v24, %v2758_v52  ;;  %v2766_v36 = vadd.f32 %v4995_v17, %v2765_v22  ;;  %4629 = vmatprep.subr.msk.bf16.mxu0 %vm2129_vm10, %v2816_v57  ;;  %v2778_v51 = vadd.f32 %v4997_v62, %v2777_v54  ;;  %5014 = vpow2.f32 %v2745_v30 }
 0x83d   : > { %v2763_v23 = vrot.slane %v2762_v47, 1  ;;  %v2774_v13 = vadd.f32 %v2773_v33, %v2772_v35  ;;  %2972 = vmatpush1.bf16.msra.mxu0 %v2952_v56  ;;  %v2310_v7 = vpack.c.bf16 %v5792_v6, %v5781_v43  ;;  %5016 = vrcp.f32 %v5889_v58 }
 0x83e   : > { %v2767_v26 = vrot.slane %v2766_v36, 2  ;;  %v2779_v10 = vrot.slane %v2778_v51, 2  ;;  %5018 = vrcp.f32 %v5898_v48 }
 0x83f   : > { %v5001_v45 = vpop.eup %5000  ;;  %4628 = vmatmul.mubr.msk.bf16.vlgmr.msra.gmra.mxu1 %vm2843_vm12, %v2308_v2  ;;  %v2764_v59 = vadd.f32 %v2763_v23, %v2762_v47  ;;  %v2775_v0 = vrot.slane %v2774_v13, 1 }
 0x840   : > { %v5904_v34 = vpop.eup %5002  ;;  %v2817_v55 = vpack.c.bf16 %v5001_v45, %v5001_v45  ;;  %3041 = vmatprep.mubr.bf16.mxu1 %v6818_v44  ;;  %v2768_v53 = vadd.f32 %v2767_v26, %v2766_v36  ;;  %v2783_v5 = vrot.slane %v5001_v45, 4  ;;  %4630 = vmatmul.mubr.msk.bf16.vlgmr.msra.gmra.mxu0 %vm2843_vm12, %v2309_v14  ;;  %v2780_v9 = vadd.f32 %v2779_v10, %v2778_v51  ;;  %v3157_v51 = vld [vmem:[%s6820_s2 + $0x18] sm:$0xff]  ;;  %v3150_v14 = vld [vmem:[%s6819_s4] sm:$0xff]  ;;  %v3151_v26 = vld [vmem:[%s6819_s4 + $0x8] sm:$0xff]  ;;  %v2821_v10 = vpop.permute.xlu1 %2820 }
 0x841   : > { %v5005_v27 = vpop.eup %5004  ;;  %v2797_v46 = vadd.f32 %v5904_v34, %v2764_v59  ;;  %v2776_v60 = vadd.f32 %v2775_v0, %v2774_v13  ;;  %3129 = vmatprep.mubr.bf16.mxu0 %v6818_v44  ;;  %v3153_v13 = vld [vmem:[%s6819_s4 + $0x18] sm:$0xff]  ;;  %3271 = vperm.xlu0 %4913, %v3157_v51   ;;  %v3156_v59 = vld [vmem:[%s6820_s2 + $0x10] sm:$0xff]  ;;  %v3155_v0 = vld [vmem:[%s6820_s2 + $0x8] sm:$0xff] }
 0x842   : > { %v2818_v63 = vpack.c.bf16 %v5005_v27, %v5005_v27  ;;  %v5910_v28 = vpop.eup %5006  ;;  %v2769_v61 = vrot.slane %v2768_v53, 1  ;;  %v2784_v49 = vadd.f32 %v5001_v45, %v2783_v5  ;;  %v2789_v38 = vrot.slane %v5005_v27, 4  ;;  %3243 = vperm.xlu1 %4912, %v3153_v13   ;;  %v3152_v45 = vld [vmem:[%s6819_s4 + $0x10] sm:$0xff]  ;;  %s6825_s4 = sld [smem:[#allocation22_spill]] }
 0x843   : > { %v3004_v21 = vsel %vm2129_vm10, %v2817_v55, 0  ;;  %v2799_v17 = vadd.f32 %v5910_v28, %v2776_v60  ;;  %v5916_v31 = vpop.eup %5008  ;;  %v2781_v37 = vrot.slane %v2780_v9, 1  ;;  %v3154_v55 = vld [vmem:[%s6820_s2] sm:$0xff]  ;;  %5020 = vrcp.f32 %v2797_v46  ;;  %s6821_s2 = sld [smem:[#allocation14_spill]] }
 0x844   : > { %4631 = vmatprep.subr.msk.bf16.mxu1 %vm2129_vm10, %v2818_v63  ;;  %v2770_v50 = vadd.f32 %v2769_v61, %v2768_v53  ;;  %v2785_v19 = vrot.slane %v2784_v49, 2  ;;  %v2790_v35 = vadd.f32 %v5005_v27, %v2789_v38  ;;  %v5918_v62 = vpop.eup %5010  ;;  %v2827_v27 = vmul.f32 %v5886_v32, %v2821_v10  ;;  %v5942_v53 = vpop.permute.xlu0 %2824 }
 0x845   : > { %3024 = vmatpush1.bf16.msra.mxu1 %v3004_v21  ;;  %v2782_v52 = vadd.f32 %v2781_v37, %v2780_v9  ;;  %3228 = vperm.xlu0 %4913, %v3150_v14   ;;  %v2828_v60 = vmul.f32 %v5892_v24, %v2821_v10  ;;  %5022 = vrcp.f32 %v2799_v17  ;;  %v2829_v58 = vmul.f32 %v5886_v32, %v5942_v53 }
 0x846   : > { %v2798_v15 = vadd.f32 %v5916_v31, %v2770_v50  ;;  %v2786_v22 = vadd.f32 %v2785_v19, %v2784_v49  ;;  %v2791_v57 = vrot.slane %v2790_v35, 2  ;;  %3238 = vperm.xlu1 %4912, %v3152_v45   ;;  %v2830_v46 = vmul.f32 %v5892_v24, %v5942_v53 }
 0x847   : > { %v2800_v47 = vadd.f32 %v5918_v62, %v2782_v52  ;;  %v2831_v32 = vmul.f32 %v5904_v34, %v2821_v10  ;;  %v2835_v24 = vmul.f32 %v5910_v28, %v2821_v10 }
 0x848   : > { %4632 = vmatmul.mubr.msk.bf16.vlgmr.msra.gmra.mxu1 %vm2843_vm12, %v2310_v7  ;;  %v2787_v33 = vrot.slane %v2786_v22, 1  ;;  %v2792_v54 = vadd.f32 %v2791_v57, %v2790_v35  ;;  %v5925_v43 = vpop.eup %5012  ;;  %5024 = vrcp.f32 %v2798_v15 }
 0x849   : > { %v5928_v56 = vpop.eup %5014  ;;  %3256 = vperm.xlu0 %4913, %v3154_v55   ;;  %5026 = vrcp.f32 %v2800_v47  ;;  %v2832_v47 = vmul.f32 %v5916_v31, %v2821_v10  ;;  %v2837_v55 = vmul.f32 %v5910_v28, %v5942_v53  ;;  %v2839_v28 = vmul.f32 %v5925_v43, %v2821_v10 }
 0x84a   : > { %v2788_v2 = vadd.f32 %v2787_v33, %v2786_v22  ;;  %v2793_v30 = vrot.slane %v2792_v54, 1  ;;  %3233 = vperm.xlu1 %4912, %v3151_v26   ;;  %v5017_v61 = vpop.eup %5016 }
 0x84b   : > { %v5019_v48 = vpop.eup %5018 }
 0x84c   : > { %v2801_v6 = vadd.f32 %v5925_v43, %v2788_v2  ;;  %v2794_v36 = vadd.f32 %v2793_v30, %v2792_v54  ;;  %v2833_v30 = vmul.f32 %v5904_v34, %v5942_v53 }
 0x84e   : > { %v2802_v23 = vadd.f32 %v5928_v56, %v2794_v36  ;;  %3266 = vperm.xlu1 %4912, %v3156_v59   ;;  %5028 = vrcp.f32 %v2801_v6  ;;  %v2834_v59 = vmul.f32 %v5916_v31, %v5942_v53  ;;  %v2840_v31 = vmul.f32 %v5928_v56, %v2821_v10 }
 0x850   : > { %5030 = vrcp.f32 %v2802_v23  ;;  %v5021_v33 = vpop.eup %5020  ;;  %v2836_v23 = vmul.f32 %v5918_v62, %v2821_v10  ;;  %v2842_v10 = vmul.f32 %v5928_v56, %v5942_v53  ;;  %v4933_v56 = vld [vmem:[%s6821_s2 + $0x8] sm:$0xff]  }
 0x852   : > { %3261 = vperm.xlu1 %4912, %v3155_v0   ;;  %v5023_v36 = vpop.eup %5022 }
 0x855   : > { %v5025_v45 = vpop.eup %5024 }
 0x856   : > { %v5027_v34 = vpop.eup %5026 }
 0x8f5   : > { %v2887_v5 = vpop.f32.mrf.mxu0 }
 0x8f6   : > { %v2888_v63 = vadd.f32 %v2887_v5, %v2827_v27 }
 0x8f7   : > { %v2889_v9 = vpop.f32.mrf.mxu0 }
 0x8f8   : > { %v5945_v49 = vmul.f32 %v5017_v61, %v2888_v63  ;;  %v2890_v38 = vadd.f32 %v2889_v9, %v2828_v60  ;;  %v2838_v9 = vmul.f32 %v5918_v62, %v5942_v53  ;;  %v5029_v62 = vpop.eup %5028 }
 0x8f9   : > { %v2891_v21 = vpop.f32.mrf.mxu0 }
 0x8fa   : > { %v5949_v50 = vmul.f32 %v5019_v48, %v2890_v38  ;;  %v2892_v37 = vadd.f32 %v2891_v21, %v2829_v58 }
 0x8fb   : > { %v2893_v19 = vpop.f32.mrf.mxu0 }
 0x8fc   : > { %v5953_v17 = vmul.f32 %v5017_v61, %v2892_v37  ;;  %v2894_v35 = vadd.f32 %v2893_v19, %v2830_v46 }
 0x8fe   : > { %v3072_v7 = vpack.c.bf16 %v5953_v17, %v5945_v49  ;;  %v5957_v15 = vmul.f32 %v5019_v48, %v2894_v35 }
 0x8ff   : > { %v2939_v52 = vpop.f32.mrf.mxu1 }
 0x900   : > { %v3073_v22 = vpack.c.bf16 %v5957_v15, %v5949_v50  ;;  %v2940_v57 = vadd.f32 %v2939_v52, %v2831_v32  ;;  %v2991_v54 = vpop.f32.mrf.mxu0 }
 0x901   : > { %v2941_v2 = vpop.f32.mrf.mxu1  ;;  %v2992_v13 = vadd.f32 %v2991_v54, %v2835_v24 }
 0x902   : > { %v3056_v6 = vmul.f32 %v5021_v33, %v2940_v57  ;;  %v2942_v51 = vadd.f32 %v2941_v2, %v2832_v47  ;;  %v2993_v14 = vpop.f32.mrf.mxu0  ;;  %v2841_v47 = vmul.f32 %v5925_v43, %v5942_v53 }
 0x903   : > { %v2943_v26 = vpop.f32.mrf.mxu1  ;;  %v3060_v0 = vmul.f32 %v5023_v36, %v2992_v13  ;;  %v2994_v5 = vadd.f32 %v2993_v14, %v2836_v23  ;;  %v5031_v13 = vpop.eup %5030 }
 0x904   : > { %v3057_v27 = vmul.f32 %v5025_v45, %v2942_v51  ;;  %v2944_v63 = vadd.f32 %v2943_v26, %v2833_v30  ;;  %v2995_v60 = vpop.f32.mrf.mxu0 }
 0x905   : > { %v2945_v61 = vpop.f32.mrf.mxu1  ;;  %v3061_v38 = vmul.f32 %v5027_v34, %v2994_v5  ;;  %v2996_v48 = vadd.f32 %v2995_v60, %v2837_v55 }
 0x906   : > { %v3058_v58 = vmul.f32 %v5021_v33, %v2944_v63  ;;  %v2946_v21 = vadd.f32 %v2945_v61, %v2834_v59  ;;  %v2997_v37 = vpop.f32.mrf.mxu0 }
 0x907   : > { %v3062_v35 = vmul.f32 %v5023_v36, %v2996_v48  ;;  %v2998_v52 = vadd.f32 %v2997_v37, %v2838_v9 }
 0x908   : > { %v3043_v46 = vpop.f32.mrf.mxu1  ;;  %v3074_v19 = vpack.c.bf16 %v3058_v58, %v3056_v6  ;;  %v3059_v32 = vmul.f32 %v5025_v45, %v2946_v21 }
 0x909   : > { %v3044_v57 = vadd.f32 %v3043_v46, %v2839_v28  ;;  %v3076_v54 = vpack.c.bf16 %v3062_v35, %v3060_v0  ;;  %v3063_v33 = vmul.f32 %v5027_v34, %v2998_v52 }
 0x90a   : > { %v3045_v24 = vpop.f32.mrf.mxu1  ;;  %v3075_v30 = vpack.c.bf16 %v3059_v32, %v3057_v27  ;;  %v4932_v27 = vld [vmem:[%s6821_s2] sm:$0xff]   ;;  %s6822_s2 = sld [smem:[#allocation17_spill]] }
 0x90b   : > { %v3046_v2 = vadd.f32 %v3045_v24, %v2840_v31  ;;  %v3064_v51 = vmul.f32 %v5029_v62, %v3044_v57  ;;  %v3077_v36 = vpack.c.bf16 %v3063_v33, %v3061_v38 }
 0x90c   : > { %v3047_v23 = vpop.f32.mrf.mxu1 }
 0x90d   : > { %v3065_v14 = vmul.f32 %v5031_v13, %v3046_v2  ;;  %v3048_v26 = vadd.f32 %v3047_v23, %v2841_v47 }
 0x90e   : > { %v3049_v6 = vpop.f32.mrf.mxu1 }
 0x90f   : > { %v3066_v45 = vmul.f32 %v5029_v62, %v3048_v26  ;;  %v3050_v55 = vadd.f32 %v3049_v6, %v2842_v10 }
 0x911   : > { %v3078_v43 = vpack.c.bf16 %v3066_v45, %v3064_v51  ;;  %v3067_v59 = vmul.f32 %v5031_v13, %v3050_v55 }
 0x913   : > { %v3079_v0 = vpack.c.bf16 %v3067_v59, %v3065_v14 }
 0x915   : > { %3105 = vmatprep.subr.bf16.mxu0 %v3079_v0 }
 0x916   : > { %3106 = vmatpush1.bf16.msra.mxu0 %v3078_v43 }
 0x917   : > { %3107 = vmatprep.subr.bf16.mxu0 %v3077_v36 }
 0x91a   : > { %3108 = vmatpush1.bf16.msra.mxu0 %v3076_v54 }
 0x91b   : > { %3109 = vmatprep.subr.bf16.mxu0 %v3075_v30 }
 0x91e   : > { %3110 = vmatpush1.bf16.msra.mxu0 %v3074_v19 }
 0x91f   : > { %3111 = vmatprep.subr.bf16.mxu0 %v3073_v22 }
 0x922   : > { %3112 = vmatpush1.bf16.msra.mxu0 %v3072_v7 }
 0x925   : > { %4635 = vmatmul.mubr.msk.bf16.vlgmr.msra.gmra.mxu0 %vm3090_vm13, %v4932_v27 }
 0x926   : > { %3139 = vmatprep.mubr.bf16.mxu0 %v6818_v44 }
 0x92d   : > { %4636 = vmatmul.mubr.msk.bf16.gmra.mxu0 %vm3090_vm13, %v4933_v56 }
 0x9e5   : > { %v3131_v53 = vpop.f32.mrf.mxu0 }
 0x9e7   : > { %v3133_v5 = vpop.f32.mrf.mxu0 }
 0x9e9   : > { %v3135_v63 = vpop.f32.mrf.mxu0 }
 0x9ea   : > { %v3158_v61 = vadd.f32 %v3135_v63, %v3131_v53 }
 0x9eb   : > { %v3137_v34 = vpop.f32.mrf.mxu0 }
 0x9ec   : > { %v3167_v50 = vadd.f32 %v3137_v34, %v3133_v5 }
 0x9ed   : > { %v3141_v60 = vpop.f32.mrf.mxu0 }
 0x9ee   : > { %v3159_v15 = vadd.f32 %v3158_v61, %v3141_v60 }
 0x9ef   : > { %v3143_v9 = vpop.f32.mrf.mxu0 }
 0x9f0   : > { %v3168_v38 = vadd.f32 %v3167_v50, %v3143_v9 }
 0x9f1   : > { %v3145_v22 = vpop.f32.mrf.mxu0 }
 0x9f2   : > { %v3160_v58 = vadd.f32 %v3159_v15, %v3145_v22 }
 0x9f3   : > { %v3147_v49 = vpop.f32.mrf.mxu0 }
 0x9f4   : > { %v3161_v17 = vrot.slane %v3160_v58, 4  ;;  %v3169_v7 = vadd.f32 %v3168_v38, %v3147_v49 }
 0x9f6   : > { %v3162_v48 = vadd.f32 %v3161_v17, %v3160_v58  ;;  %v3170_v21 = vrot.slane %v3169_v7, 4 }
 0x9f8   : > { %v3163_v37 = vrot.slane %v3162_v48, 2  ;;  %v3171_v28 = vadd.f32 %v3170_v21, %v3169_v7  ;;  %v3244_v7 = vpop.permute.xlu1 %3243 }
 0x9fa   : > { %v3164_v46 = vadd.f32 %v3163_v37, %v3162_v48  ;;  %v3172_v31 = vrot.slane %v3171_v28, 2 }
 0x9fc   : > { %v3165_v19 = vrot.slane %v3164_v46, 1  ;;  %v3173_v35 = vadd.f32 %v3172_v31, %v3171_v28  ;;  %v3272_v31 = vpop.permute.xlu0 %3271 }
 0x9fe   : > { %v3166_v32 = vadd.f32 %v3165_v19, %v3164_v46  ;;  %v3174_v52 = vrot.slane %v3173_v35, 1  ;;  %v3239_v46 = vpop.permute.xlu1 %3238 }
 0xa00   : > { %v3176_v57 = vmul.f32 0.03125, %v3166_v32  ;;  %v3175_v24 = vadd.f32 %v3174_v52, %v3173_v35  ;;  %v3229_v32 = vpop.permute.xlu0 %3228 }
 0xa02   : > { %v3178_v47 = vsub.f32 %v3131_v53, %v3176_v57  ;;  %v3180_v62 = vsub.f32 %v3135_v63, %v3176_v57  ;;  %v3182_v54 = vsub.f32 %v3141_v60, %v3176_v57  ;;  %v3177_v33 = vmul.f32 0.03125, %v3175_v24  ;;  %v3234_v19 = vpop.permute.xlu1 %3233 }
 0xa03   : > { %v3184_v2 = vsub.f32 %v3145_v22, %v3176_v57 }
 0xa04   : > { %v3186_v30 = vmul.f32 %v3178_v47, %v3178_v47  ;;  %v3188_v13 = vmul.f32 %v3180_v62, %v3180_v62  ;;  %v3179_v51 = vsub.f32 %v3133_v5, %v3177_v33  ;;  %v3181_v23 = vsub.f32 %v3137_v34, %v3177_v33 }
 0xa05   : > { %v3183_v14 = vsub.f32 %v3143_v9, %v3177_v33  ;;  %v3190_v26 = vmul.f32 %v3182_v54, %v3182_v54  ;;  %v3185_v36 = vsub.f32 %v3147_v49, %v3177_v33  ;;  %v3192_v55 = vmul.f32 %v3184_v2, %v3184_v2 }
 0xa06   : > { %v3194_v10 = vadd.f32 %v3188_v13, %v3186_v30  ;;  %v3187_v6 = vmul.f32 %v3179_v51, %v3179_v51  ;;  %v3189_v45 = vmul.f32 %v3181_v23, %v3181_v23  ;;  %v3267_v33 = vpop.permute.xlu1 %3266 }
 0xa07   : > { %v3191_v59 = vmul.f32 %v3183_v14, %v3183_v14  ;;  %v3193_v56 = vmul.f32 %v3185_v36, %v3185_v36 }
 0xa08   : > { %v3195_v43 = vadd.f32 %v3194_v10, %v3190_v26  ;;  %v3203_v0 = vadd.f32 %v3189_v45, %v3187_v6 }
 0xa0a   : > { %v3196_v27 = vadd.f32 %v3195_v43, %v3192_v55  ;;  %v3204_v53 = vadd.f32 %v3203_v0, %v3191_v59 }
 0xa0c   : > { %v3197_v63 = vrot.slane %v3196_v27, 4  ;;  %v3205_v60 = vadd.f32 %v3204_v53, %v3193_v56 }
 0xa0e   : > { %v3198_v61 = vadd.f32 %v3197_v63, %v3196_v27  ;;  %v3206_v50 = vrot.slane %v3205_v60, 4 }
 0xa10   : > { %v3199_v15 = vrot.slane %v3198_v61, 2  ;;  %v3207_v5 = vadd.f32 %v3206_v50, %v3205_v60 }
 0xa12   : > { %v3200_v34 = vadd.f32 %v3199_v15, %v3198_v61  ;;  %v3208_v9 = vrot.slane %v3207_v5, 2 }
 0xa14   : > { %v3201_v22 = vrot.slane %v3200_v34, 1  ;;  %v3209_v38 = vadd.f32 %v3208_v9, %v3207_v5 }
 0xa16   : > { %v3202_v58 = vadd.f32 %v3201_v22, %v3200_v34  ;;  %v3210_v49 = vrot.slane %v3209_v38, 1 }
 0xa18   : > { %v3212_v17 = vmul.f32 0.03125, %v3202_v58  ;;  %v3211_v48 = vadd.f32 %v3210_v49, %v3209_v38 }
 0xa1a   : > { %v3214_v21 = vadd.f32 1e-05, %v3212_v17  ;;  %v3213_v37 = vmul.f32 0.03125, %v3211_v48  ;;  %v6009_v48 = vld [vmem:[%s6822_s2 + $0x18] sm:$0xff] }
 0xa1c   : > { %5032 = vrsqrt.f32 %v3214_v21  ;;  %v3215_v28 = vadd.f32 1e-05, %v3213_v37 }
 0xa1e   : > { %5034 = vrsqrt.f32 %v3215_v28 }
 0xa29   : > { %v5033_v35 = vpop.eup %5032 }
 0xa2a   : > { %v3224_v52 = vmul.f32 %v5033_v35, %v3184_v2  ;;  %v3222_v57 = vmul.f32 %v5033_v35, %v3182_v54  ;;  %v3220_v24 = vmul.f32 %v5033_v35, %v3180_v62  ;;  %v3218_v30 = vmul.f32 %v5033_v35, %v3178_v47  ;;  %v3257_v2 = vpop.permute.xlu0 %3256  ;;  %v3262_v54 = vpop.permute.xlu1 %3261 }
 0xa2b   : > { %v5035_v13 = vpop.eup %5034 }
 0xa2c   : > { %v3252_v26 = vmul.f32 %v3244_v7, %v3224_v52  ;;  %v3250_v10 = vmul.f32 %v3239_v46, %v3222_v57  ;;  %v3225_v6 = vmul.f32 %v5035_v13, %v3185_v36  ;;  %v3223_v45 = vmul.f32 %v5035_v13, %v3183_v14 }
 0xa2d   : > { %v3221_v55 = vmul.f32 %v5035_v13, %v3181_v23  ;;  %v3219_v43 = vmul.f32 %v5035_v13, %v3179_v51  ;;  %v3248_v59 = vmul.f32 %v3234_v19, %v3220_v24  ;;  %v3246_v56 = vmul.f32 %v3229_v32, %v3218_v30 }
 0xa2e   : > { %v3278_v0 = vadd.f32 %v3267_v33, %v3250_v10  ;;  %v3280_v27 = vadd.f32 %v3272_v31, %v3252_v26  ;;  %v3253_v53 = vmul.f32 %v3244_v7, %v3225_v6  ;;  %v3251_v63 = vmul.f32 %v3239_v46, %v3223_v45 }
 0xa2f   : > { %v3249_v60 = vmul.f32 %v3234_v19, %v3221_v55  ;;  %v3247_v61 = vmul.f32 %v3229_v32, %v3219_v43  ;;  %v3276_v5 = vadd.f32 %v3262_v54, %v3248_v59  ;;  %v3274_v34 = vadd.f32 %v3257_v2, %v3246_v56 }
 0xa30   : > { %v3279_v62 = vadd.f32 %v3267_v33, %v3251_v63  ;;  %v3281_v50 = vadd.f32 %v3272_v31, %v3253_v53  ;;  %v3288_v14 = vadd.f32 %v3280_v27, %v5680_v25  ;;  %v3286_v23 = vadd.f32 %v3278_v0, %v5669_v16  ;;  %v3290_v16 = vld [vmem:[%s6822_s2] sm:$0xff] }
 0xa31   : > { %v3277_v47 = vadd.f32 %v3262_v54, %v3249_v60  ;;  %v3275_v15 = vadd.f32 %v3257_v2, %v3247_v61  ;;  %v3284_v49 = vadd.f32 %v3276_v5, %v5663_v8  ;;  %v3282_v17 = vadd.f32 %v3274_v34, %v5665_v11  ;;  %4806 = vmatprep.mubr.msk.f32.mxu1 %vm986_vm0, %v3290_v16  ;;  %v5999_v11 = vld [vmem:[%s6822_s2 + $0x8] sm:$0xff]  ;;  %v3300_v54 = vld [vmem:[%s6824_s3 + $0x10] sm:$0xff]  ;;  %v3301_v5 = vld [vmem:[%s6824_s3 + $0x18] sm:$0xff] }
 0xa32   : > { %v3289_v51 = vadd.f32 %v3281_v50, %v5684_v29  ;;  %v3287_v36 = vadd.f32 %v3279_v62, %v5675_v20  ;;  %v6002_v29 = vld [vmem:[%s6822_s2 + $0x10] sm:$0xff]  ;;  %s6823_s2 = sld [smem:[#allocation18_spill]] }
 0xa33   : > { %v3285_v38 = vadd.f32 %v3277_v47, %v5667_v12  ;;  %v3283_v58 = vadd.f32 %v3275_v15, %v5671_v18  ;;  %v984_v62 = vld [vmem:[%s6825_s4 + $0x10] sm:$0xff] }
 0xa34   : > { %v3311_v9 = vadd.f32 %v3289_v51, %v3288_v14  ;;  %v3308_v22 = vadd.f32 %v3287_v36, %v3286_v23  ;;  %v1076_v15 = vadd.f32 %v5431_v42, %v984_v62 }
 0xa35   : > { %v3305_v25 = vadd.f32 %v3285_v38, %v3284_v49  ;;  %v3302_v7 = vadd.f32 %v3283_v58, %v3282_v17 }
 0xa36   : > { %3312 = vadd.xlane.f32.xlu1 %v3311_v9  ;;  %3309 = vadd.xlane.f32.xlu0 %v3308_v22  ;;  %v3634_v34 = vadd.f32 1.0, %v1076_v15  ;;  %v3299_v22 = vld [vmem:[%s6824_s3 + $0x8] sm:$0xff] }
 0xa38   : > { %v3296_v2 = vld [vmem:[%s6823_s2 + $0x10] sm:$0xff]  ;;  %v3297_v50 = vld [vmem:[%s6823_s2 + $0x18] sm:$0xff]  ;;  %v3294_v47 = vld [vmem:[%s6823_s2] sm:$0xff] }
 0xa3a   : > { %3306 = vadd.xlane.f32.xlu0 %v3305_v25  ;;  %3303 = vadd.xlane.f32.xlu1 %v3302_v7 }
 0xabf   : > { %v3313_v20 = vpop.xlane.xlu1 %3312  ;;  %v3310_v12 = vpop.xlane.xlu0 %3309 }
 0xac0   : > { %4798 = vmatprep.subr.mxu1 %v3313_v20 }
 0xac1   : > { %4799 = vmatpush3.msra.mxu1 %v3313_v20 }
 0xac2   : > { %4800 = vmatprep.subr.mxu1 %v3310_v12 }
 0xac3   : > { %4801 = vmatpush3.msra.mxu1 %v3310_v12  ;;  %v3307_v18 = vpop.xlane.xlu0 %3306  ;;  %v3304_v8 = vpop.xlane.xlu1 %3303 }
 0xac4   : > { %4802 = vmatprep.subr.mxu1 %v3307_v18 }
 0xac5   : > { %4803 = vmatpush3.msra.mxu1 %v3307_v18 }
 0xac6   : > { %4804 = vmatprep.subr.mxu1 %v3304_v8 }
 0xac7   : > { %4805 = vmatpush3.msra.mxu1 %v3304_v8 }
 0xac8   : > { %4807 = vmatmul.mubr.msk.f32.vlgmr.msra.gmra.mxu1 %vm986_vm0, %v5999_v11 }
 0xac9   : > { %4809 = vmatprep.mubr.msk.f32.mxu1 %vm986_vm0, %v6002_v29 }
 0xacc   : > { %4810 = vmatmul.mubr.msk.f32.gmra.mxu1 %vm986_vm0, %v6009_v48 }
 0xacd   : > { %4820 = vmatprep.mubr.msk.f32.mxu1 %vm986_vm0, %v3290_v16 }
 0xb88   : > { %v4808_v21 = vpop.f32.mrf.mxu1 }
 0xb8a   : > { %v3392_v37 = vpop.f32.mrf.mxu1 }
 0xb8c   : > { %v4811_v28 = vpop.f32.mrf.mxu1 }
 0xb8d   : > { %3428 = vperm.xlu0 %4913, %v4811_v28   ;;  %v1091_v28 = vld [vmem:[%s5321_s24 + $0x18] sm:$0xff] }
 0xb8e   : > { %v3402_v46 = vpop.f32.mrf.mxu1 }
 0xb8f   : > { %3423 = vperm.xlu1 %4912, %v3402_v46   ;;  %v1090_v46 = vld [vmem:[%s5321_s24 + $0x10] sm:$0xff] }
 0xb91   : > { %3413 = vperm.xlu0 %4913, %v3392_v37   ;;  %v982_v37 = vld [vmem:[%s6825_s4] sm:$0xff] }
 0xb93   : > { %3418 = vperm.xlu1 %4912, %v4808_v21  }
 0xc08   : > { %v3429_v31 = vpop.permute.xlu0 %3428 }
 0xc09   : > { %v6014_v19 = vsub.f32 %v3288_v14, %v3429_v31  ;;  %v6016_v35 = vsub.f32 %v3289_v51, %v3429_v31  ;;  %v985_v14 = vld [vmem:[%s6825_s4 + $0x18] sm:$0xff]  ;;  %v3295_v51 = vld [vmem:[%s6823_s2 + $0x8] sm:$0xff]  ;;  %s6829_s2 = smov 1  }
 0xc0a   : > { %v3424_v32 = vpop.permute.xlu1 %3423 }
 0xc0b   : > { %v6018_v52 = vsub.f32 %v3286_v23, %v3424_v32  ;;  %v6020_v57 = vsub.f32 %v3287_v36, %v3424_v32  ;;  %v3445_v24 = vmul.f32 %v6014_v19, %v6014_v19  ;;  %v3446_v33 = vmul.f32 %v6016_v35, %v6016_v35  ;;  %v3298_v23 = vld [vmem:[%s6824_s3] sm:$0xff]  ;;  %s6832_s3 = smov 15  }
 0xc0c   : > { %v3414_v30 = vpop.permute.xlu0 %3413  ;;  %v1081_v36 = vadd.f32 %v5429_v41, %v985_v14  ;;  %v1066_v32 = vadd.f32 %v5427_v40, %v982_v37 }
 0xc0d   : > { %v6026_v13 = vsub.f32 %v3282_v17, %v3414_v30  ;;  %v6028_v26 = vsub.f32 %v3283_v58, %v3414_v30  ;;  %v3456_v10 = vadd.f32 %v3446_v33, %v3445_v24  ;;  %v3443_v6 = vmul.f32 %v6018_v52, %v6018_v52 }
 0xc0e   : > { %v3419_v45 = vpop.permute.xlu1 %3418  ;;  %v3444_v55 = vmul.f32 %v6020_v57, %v6020_v57  ;;  %v3635_v9 = vadd.f32 1.0, %v1081_v36  ;;  %v1186_v24 = vadd.f32 %v5454_v3, %v1091_v28  ;;  %v1181_v33 = vadd.f32 %v5456_v4, %v1090_v46 }
 0xc0f   : > { %v6034_v43 = vsub.f32 %v3284_v49, %v3419_v45  ;;  %v6036_v59 = vsub.f32 %v3285_v38, %v3419_v45  ;;  %3457 = vadd.xlane.f32.xlu1 %v3456_v10  ;;  %v3439_v0 = vmul.f32 %v6026_v13, %v6026_v13  ;;  %v3440_v27 = vmul.f32 %v6028_v26, %v6028_v26  ;;  %v1088_v45 = vld [vmem:[%s5321_s24] sm:$0xff] }
 0xc10   : > { %v3453_v56 = vadd.f32 %v3444_v55, %v3443_v6  ;;  %v3632_v10 = vadd.f32 1.0, %v1066_v32  ;;  %v1089_v6 = vld [vmem:[%s5321_s24 + $0x8] sm:$0xff] }
 0xc11   : > { %v3447_v53 = vadd.f32 %v3440_v27, %v3439_v0  ;;  %v3441_v63 = vmul.f32 %v6034_v43, %v6034_v43  ;;  %v3442_v60 = vmul.f32 %v6036_v59, %v6036_v59  ;;  %v1176_v55 = vadd.f32 %v5450_v1, %v1089_v6  ;;  %v6826_v0 = vld [vmem:[#allocation24_spill] sm:$0xff] }
 0xc12   : > { %3454 = vadd.xlane.f32.xlu0 %v3453_v56  ;;  %v1171_v27 = vadd.f32 %v6826_v0, %v1088_v45 }
 0xc13   : > { %3448 = vadd.xlane.f32.xlu1 %v3447_v53  ;;  %v3450_v61 = vadd.f32 %v3442_v60, %v3441_v63 }
 0xc16   : > { %3451 = vadd.xlane.f32.xlu0 %v3450_v61 }
 0xc24   : > { %3588 = vperm.xlu1 %4912, %v3296_v2  }
 0xc28   : > { %3616 = vperm.xlu1 %4912, %v3300_v54  }
 0xc2c   : > { %3593 = vperm.xlu0 %4913, %v3297_v50   ;;  %3578 = vperm.xlu1 %4912, %v3294_v47  }
 0xc30   : > { %3621 = vperm.xlu0 %4913, %v3301_v5   ;;  %3648 = vperm.xlu1 %4912, %v3634_v34  }
 0xc34   : > { %3583 = vperm.xlu0 %4913, %v3295_v51   ;;  %3606 = vperm.xlu1 %4912, %v3298_v23  }
 0xc38   : > { %3653 = vperm.xlu0 %4913, %v3635_v9  }
 0xc3c   : > { %3611 = vperm.xlu0 %4913, %v3299_v22  }
 0xc98   : > { %v3458_v38 = vpop.xlane.xlu1 %3457 }
 0xc99   : > { %4812 = vmatprep.subr.mxu1 %v3458_v38 }
 0xc9a   : > { %4813 = vmatpush3.msra.mxu1 %v3458_v38 }
 0xc9b   : > { %v3455_v42 = vpop.xlane.xlu0 %3454 }
 0xc9c   : > { %4814 = vmatprep.subr.mxu1 %v3455_v42  ;;  %v3449_v49 = vpop.xlane.xlu1 %3448 }
 0xc9d   : > { %4815 = vmatpush3.msra.mxu1 %v3455_v42 }
 0xc9f   : > { %v3452_v58 = vpop.xlane.xlu0 %3451 }
 0xca0   : > { %4816 = vmatprep.subr.mxu1 %v3452_v58 }
 0xca1   : > { %4817 = vmatpush3.msra.mxu1 %v3452_v58 }
 0xca2   : > { %4818 = vmatprep.subr.mxu1 %v3449_v49 }
 0xca3   : > { %4819 = vmatpush3.msra.mxu1 %v3449_v49 }
 0xca4   : > { %4821 = vmatmul.mubr.msk.f32.vlgmr.msra.gmra.mxu1 %vm986_vm0, %v5999_v11 }
 0xca5   : > { %4823 = vmatprep.mubr.msk.f32.mxu1 %vm986_vm0, %v6002_v29 }
 0xca7   : > { %v6077_v40 = vpop.permute.xlu0 %3593 }
 0xca8   : > { %4824 = vmatmul.mubr.msk.f32.gmra.mxu1 %vm986_vm0, %v6009_v48  ;;  %v983_v48 = vld [vmem:[%s6825_s4 + $0x8] sm:$0xff]  ;;  %s6833_s4 = smov 16  }
 0xca9   : > { %4289 = vmatprep.mubr.bf16.mxu1 %v6818_v44  ;;  %v1071_v31 = vadd.f32 %v5425_v39, %v983_v48  ;;  %v3589_v39 = vpop.permute.xlu1 %3588 }
 0xcab   : > { %v3633_v30 = vadd.f32 1.0, %v1071_v31  ;;  %v6079_v56 = vpop.permute.xlu0 %3621 }
 0xcad   : > { %v3617_v3 = vpop.permute.xlu1 %3616 }
 0xcaf   : > { %v3584_v53 = vpop.permute.xlu0 %3583 }
 0xcb1   : > { %v3579_v4 = vpop.permute.xlu1 %3578 }
 0xcb3   : > { %v6081_v60 = vpop.permute.xlu0 %3653 }
 0xcb5   : > { %v3649_v63 = vpop.permute.xlu1 %3648 }
 0xcb7   : > { %v3612_v2 = vpop.permute.xlu0 %3611 }
 0xcb9   : > { %v3607_v61 = vpop.permute.xlu1 %3606 }
 0xd64   : > { %v4822_v41 = vpop.f32.mrf.mxu1 }
 0xd65   : > { %v3531_v17 = vadd.f32 1e-05, %v4822_v41 }
 0xd66   : > { %v3525_v25 = vpop.f32.mrf.mxu1 }
 0xd67   : > { %5036 = vrsqrt.f32 %v3531_v17  ;;  %v3526_v7 = vadd.f32 1e-05, %v3525_v25 }
 0xd68   : > { %v4825_v16 = vpop.f32.mrf.mxu1 }
 0xd69   : > { %5038 = vrsqrt.f32 %v3526_v7  ;;  %v3541_v20 = vadd.f32 1e-05, %v4825_v16 }
 0xd6a   : > { %v3535_v12 = vpop.f32.mrf.mxu1 }
 0xd6b   : > { %v3536_v18 = vadd.f32 1e-05, %v3535_v12  ;;  %5040 = vrsqrt.f32 %v3541_v20 }
 0xd6d   : > { %5042 = vrsqrt.f32 %v3536_v18 }
 0xd74   : > { %v5037_v8 = vpop.eup %5036 }
 0xd75   : > { %3555 = vperm.xlu0 %4913, %v5037_v8  }
 0xd76   : > { %v5039_v11 = vpop.eup %5038 }
 0xd77   : > { %3550 = vperm.xlu1 %4912, %v5039_v11  }
 0xd78   : > { %v5041_v29 = vpop.eup %5040 }
 0xd7a   : > { %v5043_v21 = vpop.eup %5042 }
 0xd7b   : > { %3560 = vperm.xlu0 %4913, %v5043_v21   ;;  %3565 = vperm.xlu1 %4912, %v5041_v29  }
 0xd7f   : > { %3681 = vperm.xlu0 %4913, %v1186_v24   ;;  %3676 = vperm.xlu1 %4912, %v1181_v33  }
 0xd83   : > { %3643 = vperm.xlu0 %4913, %v3633_v30   ;;  %3638 = vperm.xlu1 %4912, %v3632_v10  }
 0xd87   : > { %3671 = vperm.xlu0 %4913, %v1176_v55   ;;  %3666 = vperm.xlu1 %4912, %v1171_v27  }
 0xdf0   : > { %v3556_v54 = vpop.permute.xlu0 %3555 }
 0xdf1   : > { %v3570_v1 = vmul.f32 %v3556_v54, %v6034_v43  ;;  %v3571_v50 = vmul.f32 %v3556_v54, %v6036_v59 }
 0xdf2   : > { %v3551_v62 = vpop.permute.xlu1 %3550 }
 0xdf3   : > { %v3568_v5 = vmul.f32 %v3551_v62, %v6026_v13  ;;  %v3569_v23 = vmul.f32 %v3551_v62, %v6028_v26  ;;  %v3598_v38 = vmul.f32 %v3584_v53, %v3570_v1  ;;  %v3599_v43 = vmul.f32 %v3584_v53, %v3571_v50 }
 0xdf5   : > { %v3596_v58 = vmul.f32 %v3579_v4, %v3568_v5  ;;  %v3597_v41 = vmul.f32 %v3579_v4, %v3569_v23  ;;  %v3626_v26 = vadd.f32 %v3612_v2, %v3598_v38  ;;  %v3627_v25 = vadd.f32 %v3612_v2, %v3599_v43 }
 0xdf6   : > { %v3561_v47 = vpop.permute.xlu0 %3560  ;;  %v3566_v15 = vpop.permute.xlu1 %3565 }
 0xdf7   : > { %v3572_v34 = vmul.f32 %v3561_v47, %v6018_v52  ;;  %v3573_v14 = vmul.f32 %v3561_v47, %v6020_v57  ;;  %v3575_v51 = vmul.f32 %v3566_v15, %v6016_v35  ;;  %v3624_v8 = vadd.f32 %v3607_v61, %v3596_v58 }
 0xdf8   : > { %v3625_v11 = vadd.f32 %v3607_v61, %v3597_v41  ;;  %v3574_v54 = vmul.f32 %v3566_v15, %v6014_v19 }
 0xdf9   : > { %v3600_v36 = vmul.f32 %v3589_v39, %v3572_v34  ;;  %v3601_v9 = vmul.f32 %v3589_v39, %v3573_v14  ;;  %v3603_v22 = vmul.f32 %v6077_v40, %v3575_v51 }
 0xdfa   : > { %v6091_v42 = vpop.permute.xlu0 %3681  ;;  %v3677_v59 = vpop.permute.xlu1 %3676  ;;  %v3602_v5 = vmul.f32 %v6077_v40, %v3574_v54 }
 0xdfb   : > { %v3631_v13 = vadd.f32 %v6079_v56, %v3603_v22  ;;  %v3628_v49 = vadd.f32 %v3617_v3, %v3600_v36  ;;  %v3629_v52 = vadd.f32 %v3617_v3, %v3601_v9 }
 0xdfc   : > { %v3630_v15 = vadd.f32 %v6079_v56, %v3602_v5 }
 0xdfd   : > { %v3663_v57 = vmul.f32 %v6081_v60, %v3631_v13  ;;  %v3660_v35 = vmul.f32 %v3649_v63, %v3628_v49  ;;  %v3661_v17 = vmul.f32 %v3649_v63, %v3629_v52 }
 0xdfe   : > { %v3644_v7 = vpop.permute.xlu0 %3643  ;;  %v3639_v16 = vpop.permute.xlu1 %3638  ;;  %v3662_v40 = vmul.f32 %v6081_v60, %v3630_v15 }
 0xdff   : > { %v6096_v20 = vadd.f32 %v6091_v42, %v3663_v57  ;;  %v6098_v12 = vadd.f32 %v3677_v59, %v3660_v35  ;;  %v6100_v18 = vadd.f32 %v3677_v59, %v3661_v17  ;;  %v3658_v29 = vmul.f32 %v3644_v7, %v3626_v26 }
 0xe00   : > { %v3659_v48 = vmul.f32 %v3644_v7, %v3627_v25  ;;  %v3656_v21 = vmul.f32 %v3639_v16, %v3624_v8  ;;  %v3657_v37 = vmul.f32 %v3639_v16, %v3625_v11  ;;  %v3690_v51 = vadd.f32 %v6091_v42, %v3662_v40  ;;  %v4655_v7 = vld [vmem:[%s5206_s17 + $0x3] ss:$8 sm:$0x3]  ;;  %v6844_v8 = vld [vmem:[#allocation27_spill] sm:$0xff] }
 0xe01   : > { %v4649_v60 = vmul.f32 -1.442695, %v6098_v12  ;;  %v4652_v23 = vmul.f32 -1.442695, %v6096_v20  ;;  %v4650_v36 = vmul.f32 -1.442695, %v6100_v18  ;;  %v6254_v11 = vrot.slane %v4655_v7, %v6844_v8 }
 0xe02   : > { %v3672_v28 = vpop.permute.xlu0 %3671  ;;  %v3667_v46 = vpop.permute.xlu1 %3666  ;;  %v4651_v56 = vmul.f32 -1.442695, %v3690_v51 }
 0xe03   : > { %v3686_v31 = vadd.f32 %v3672_v28, %v3658_v29  ;;  %v3687_v32 = vadd.f32 %v3672_v28, %v3659_v48  ;;  %v3684_v24 = vadd.f32 %v3667_v46, %v3656_v21  ;;  %v3685_v33 = vadd.f32 %v3667_v46, %v3657_v37 }
 0xe05   : > { %v4647_v30 = vmul.f32 -1.442695, %v3686_v31  ;;  %v4648_v10 = vmul.f32 -1.442695, %v3687_v32  ;;  %v4645_v6 = vmul.f32 -1.442695, %v3684_v24 }
 0xe06   : > { %v4646_v45 = vmul.f32 -1.442695, %v3685_v33 }
 0xe07   : > { %5044 = vpow2.f32 %v4647_v30 }
 0xe08   : > { %5046 = vpow2.f32 %v4648_v10 }
 0xe09   : > { %5048 = vpow2.f32 %v4645_v6 }
 0xe0a   : > { %5050 = vpow2.f32 %v4646_v45 }
 0xe14   : > { %v5045_v55 = vpop.eup %5044 }
 0xe15   : > { %v5047_v0 = vpop.eup %5046  ;;  %v3718_v27 = vadd.f32 1.0, %v5045_v55 }
 0xe16   : > { %v5049_v39 = vpop.eup %5048  ;;  %v3719_v3 = vadd.f32 1.0, %v5047_v0 }
 0xe17   : > { %v5051_v4 = vpop.eup %5050  ;;  %5052 = vrcp.f32 %v3718_v27  ;;  %v3716_v53 = vadd.f32 1.0, %v5049_v39 }
 0xe18   : > { %5054 = vrcp.f32 %v3719_v3  ;;  %v3717_v63 = vadd.f32 1.0, %v5051_v4 }
 0xe19   : > { %5056 = vrcp.f32 %v3716_v53 }
 0xe1a   : > { %5058 = vrcp.f32 %v3717_v63 }
 0xe1b   : > { %5060 = vpow2.f32 %v4651_v56 }
 0xe1c   : > { %5062 = vpow2.f32 %v4649_v60 }
 0xe1d   : > { %5064 = vpow2.f32 %v4652_v23 }
 0xe1e   : > { %5066 = vpow2.f32 %v4650_v36 }
 0xe24   : > { %v5053_v61 = vpop.eup %5052 }
 0xe25   : > { %v5055_v2 = vpop.eup %5054  ;;  %v6103_v62 = vmul.f32 %v5053_v61, %v3686_v31 }
 0xe26   : > { %v5057_v1 = vpop.eup %5056  ;;  %v6110_v34 = vmul.f32 %v5055_v2, %v3687_v32 }
 0xe27   : > { %6827 = vst [vmem:[#allocation24_spill] sm:$0xff] %v6103_v62  ;;  %v6105_v50 = vmul.f32 %v5057_v1, %v3684_v24  ;;  %3894 = vrot.lane.b32.xlu0 %v6103_v62, %s6829_s2  ;;  %v5059_v47 = vpop.eup %5058 }
 0xe28   : > { %6830 = vst [vmem:[#allocation29_spill] sm:$0xff] %v6110_v34  ;;  %v6116_v19 = vmul.f32 %v5059_v47, %v3685_v33  ;;  %v5061_v9 = vpop.eup %5060  ;;  %v4654_v33 = vld [vmem:[%s5206_s17 + $0x2] ss:$8 sm:$0x3] }
 0xe29   : > { %6828 = vst [vmem:[#allocation28_spill] sm:$0xff] %v6105_v50  ;;  %3892 = vrot.lane.b32.xlu1 %v6105_v50, %s6829_s2  ;;  %v5063_v22 = vpop.eup %5062  ;;  %v3722_v38 = vadd.f32 1.0, %v5061_v9  ;;  %v6291_v27 = vrot.slane %v4654_v33, %v6844_v8 }
 0xe2a   : > { %6831 = vst [vmem:[#allocation30_spill] sm:$0xff] %v6116_v19  ;;  %v5065_v43 = vpop.eup %5064  ;;  %v3720_v42 = vadd.f32 1.0, %v5063_v22 }
 0xe2b   : > { %3902 = vrot.lane.b32.xlu0 %v6110_v34, %s6829_s2  ;;  %v5067_v59 = vpop.eup %5066  ;;  %v3723_v58 = vadd.f32 1.0, %v5065_v43  ;;  %5068 = vrcp.f32 %v3722_v38 }
 0xe2c   : > { %v3721_v13 = vadd.f32 1.0, %v5067_v59  ;;  %5070 = vrcp.f32 %v3720_v42  ;;  %v4317_v59 = vld [vmem:[%s5331_s27 + $0x8] sm:$0xff] }
 0xe2d   : > { %3900 = vrot.lane.b32.xlu1 %v6116_v19, %s6829_s2  ;;  %5072 = vrcp.f32 %v3723_v58 }
 0xe2e   : > { %5074 = vrcp.f32 %v3721_v13 }
 0xe2f   : > { %3850 = vrot.lane.b32.xlu0 %v6103_v62, %s6832_s3 }
 0xe31   : > { %3848 = vrot.lane.b32.xlu1 %v6105_v50, %s6832_s3 }
 0xe33   : > { %3858 = vrot.lane.b32.xlu0 %v6110_v34, %s6832_s3 }
 0xe35   : > { %3856 = vrot.lane.b32.xlu1 %v6116_v19, %s6832_s3 }
 0xe37   : > { %3806 = vrot.lane.b32.xlu0 %v6103_v62, %s6833_s4 }
 0xe38   : > { %v5069_v49 = vpop.eup %5068 }
 0xe39   : > { %3804 = vrot.lane.b32.xlu1 %v6105_v50, %s6833_s4  ;;  %v5071_v52 = vpop.eup %5070  ;;  %v6178_v41 = vmul.f32 %v5069_v49, %v3690_v51  ;;  %v4653_v51 = vld [vmem:[%s5206_s17 + $0x1] ss:$8 sm:$0x3] }
 0xe3a   : > { %v5073_v57 = vpop.eup %5072  ;;  %v6183_v35 = vmul.f32 %v5071_v52, %v6098_v12  ;;  %v6843_v12 = vld [vmem:[#allocation26_spill] sm:$0xff]  ;;  %v6329_v43 = vrot.slane %v4653_v51, %v6844_v8  ;;  %v4316_v52 = vld [vmem:[%s5331_s27] sm:$0xff] }
 0xe3b   : > { %3814 = vrot.lane.b32.xlu0 %v6110_v34, %s6833_s4  ;;  %6839 = vst [vmem:[#allocation31_spill] sm:$0xff] %v6178_v41  ;;  %v5075_v17 = vpop.eup %5074  ;;  %v6188_v26 = vmul.f32 %v5073_v57, %v6096_v20  ;;  %v6288_v0 = vrot.slane %v4654_v33, %v6843_v12  ;;  %v6326_v38 = vrot.slane %v4653_v51, %v6843_v12  ;;  %v4658_v51 = vld [vmem:[%s5206_s17 + $0x7] ss:$8 sm:$0x3] }
 0xe3c   : > { %6840 = vst [vmem:[#allocation32_spill] sm:$0xff] %v6183_v35  ;;  %v6193_v25 = vmul.f32 %v5075_v17, %v6100_v18  ;;  %v6251_v18 = vrot.slane %v4655_v7, %v6843_v12 }
 0xe3d   : > { %3812 = vrot.lane.b32.xlu1 %v6116_v19, %s6833_s4  ;;  %6841 = vst [vmem:[#allocation33_spill] sm:$0xff] %v6188_v26 }
 0xe3e   : > { %6842 = vst [vmem:[#allocation34_spill] sm:$0xff] %v6193_v25 }
 0xe3f   : > { %3762 = vrot.lane.b32.xlu0 %v6103_v62, %s6834_s5 }
 0xe41   : > { %3760 = vrot.lane.b32.xlu1 %v6105_v50, %s6834_s5 }
 0xe43   : > { %3770 = vrot.lane.b32.xlu0 %v6110_v34, %s6834_s5 }
 0xe45   : > { %3768 = vrot.lane.b32.xlu1 %v6116_v19, %s6834_s5 }
 0xe47   : > { %4026 = vrot.lane.b32.xlu0 %v6103_v62, %s6835_s8 }
 0xe49   : > { %4024 = vrot.lane.b32.xlu1 %v6105_v50, %s6835_s8 }
 0xe4b   : > { %4034 = vrot.lane.b32.xlu0 %v6110_v34, %s6835_s8 }
 0xe4d   : > { %4032 = vrot.lane.b32.xlu1 %v6116_v19, %s6835_s8 }
 0xe4f   : > { %3982 = vrot.lane.b32.xlu0 %v6103_v62, %s6836_s9 }
 0xe51   : > { %3980 = vrot.lane.b32.xlu1 %v6105_v50, %s6836_s9 }
 0xe53   : > { %3990 = vrot.lane.b32.xlu0 %v6110_v34, %s6836_s9 }
 0xe55   : > { %3988 = vrot.lane.b32.xlu1 %v6116_v19, %s6836_s9 }
 0xe57   : > { %4070 = vrot.lane.b32.xlu0 %v6103_v62, %s6837_s13 }
 0xe59   : > { %4068 = vrot.lane.b32.xlu1 %v6105_v50, %s6837_s13 }
 0xe5b   : > { %4078 = vrot.lane.b32.xlu0 %v6110_v34, %s6837_s13 }
 0xe5d   : > { %4076 = vrot.lane.b32.xlu1 %v6116_v19, %s6837_s13 }
 0xe5f   : > { %3938 = vrot.lane.b32.xlu0 %v6103_v62, %s6838_s14 }
 0xe61   : > { %3936 = vrot.lane.b32.xlu1 %v6105_v50, %s6838_s14 }
 0xe63   : > { %3898 = vrot.lane.b32.xlu0 %v6178_v41, %s6829_s2 }
 0xe65   : > { %3896 = vrot.lane.b32.xlu1 %v6183_v35, %s6829_s2 }
 0xe67   : > { %3906 = vrot.lane.b32.xlu0 %v6188_v26, %s6829_s2 }
 0xe69   : > { %3904 = vrot.lane.b32.xlu1 %v6193_v25, %s6829_s2 }
 0xe6b   : > { %3854 = vrot.lane.b32.xlu0 %v6178_v41, %s6832_s3 }
 0xe6d   : > { %3852 = vrot.lane.b32.xlu1 %v6183_v35, %s6832_s3 }
 0xe6f   : > { %3862 = vrot.lane.b32.xlu0 %v6188_v26, %s6832_s3 }
 0xe71   : > { %3860 = vrot.lane.b32.xlu1 %v6193_v25, %s6832_s3 }
 0xe73   : > { %3810 = vrot.lane.b32.xlu0 %v6178_v41, %s6833_s4 }
 0xe75   : > { %3808 = vrot.lane.b32.xlu1 %v6183_v35, %s6833_s4 }
 0xe77   : > { %3818 = vrot.lane.b32.xlu0 %v6188_v26, %s6833_s4 }
 0xe79   : > { %3816 = vrot.lane.b32.xlu1 %v6193_v25, %s6833_s4 }
 0xe7b   : > { %3766 = vrot.lane.b32.xlu0 %v6178_v41, %s6834_s5 }
 0xe7d   : > { %3764 = vrot.lane.b32.xlu1 %v6183_v35, %s6834_s5 }
 0xe7f   : > { %3774 = vrot.lane.b32.xlu0 %v6188_v26, %s6834_s5 }
 0xe81   : > { %3772 = vrot.lane.b32.xlu1 %v6193_v25, %s6834_s5  ;;  %s6846_s5 = sld [smem:[#allocation21_spill]] }
 0xe83   : > { %4030 = vrot.lane.b32.xlu0 %v6178_v41, %s6835_s8 }
 0xe85   : > { %4028 = vrot.lane.b32.xlu1 %v6183_v35, %s6835_s8 }
 0xe87   : > { %4038 = vrot.lane.b32.xlu0 %v6188_v26, %s6835_s8  ;;  %v3757_v3 = vld [vmem:[%s6846_s5 + $0x8] sm:$0xff]  ;;  %v3756_v61 = vld [vmem:[%s6846_s5] sm:$0xff]  ;;  %v3759_v40 = vld [vmem:[%s6846_s5 + $0x18] sm:$0xff] }
 0xe88   : > { %v3758_v36 = vld [vmem:[%s6846_s5 + $0x10] sm:$0xff] }
 0xe89   : > { %4036 = vrot.lane.b32.xlu1 %v6193_v25, %s6835_s8 }
 0xe8b   : > { %3986 = vrot.lane.b32.xlu0 %v6178_v41, %s6836_s9 }
 0xe8d   : > { %3984 = vrot.lane.b32.xlu1 %v6183_v35, %s6836_s9 }
 0xe8f   : > { %3994 = vrot.lane.b32.xlu0 %v6188_v26, %s6836_s9 }
 0xe91   : > { %3992 = vrot.lane.b32.xlu1 %v6193_v25, %s6836_s9  ;;  %s6847_s9 = sld [smem:[#allocation20_spill]] }
 0xe93   : > { %4074 = vrot.lane.b32.xlu0 %v6178_v41, %s6837_s13 }
 0xe95   : > { %4072 = vrot.lane.b32.xlu1 %v6183_v35, %s6837_s13 }
 0xe97   : > { %4082 = vrot.lane.b32.xlu0 %v6188_v26, %s6837_s13  ;;  %v4938_v2 = vld [vmem:[%s6847_s9 + $0x4] ss:$12 sps:$4 sm:$0xff]   ;;  %v4935_v48 = vld [vmem:[%s6847_s9 + $0x20] ss:$12 sps:$4 sm:$0xff]  }
 0xe98   : > { %4236 = vmatprep.mubr.bf16.mxu0 %v4938_v2 }
 0xe99   : > { %4080 = vrot.lane.b32.xlu1 %v6193_v25, %s6837_s13  ;;  %v3895_v16 = vpop.permute.xlu0 %3894  ;;  %s923_s13 = sand.u32 1, %s5132_s10  }
 0xe9a   : > { %s4558_s3 = sshll.u32 %s923_s13, 6 }
 0xe9b   : > { %v3893_v20 = vpop.permute.xlu1 %3892  ;;  %3942 = vrot.lane.b32.xlu0 %v6178_v41, %s6838_s14  ;;  %s6668_s8 = scalar_lea.vmem [#allocation2], %s4558_s3  ;;  %s6687_s3 = scalar_lea.sflag [#allocation3], %s923_s13 }
 0xe9d   : > { %3940 = vrot.lane.b32.xlu1 %v6183_v35, %s6838_s14  ;;  %v3903_v29 = vpop.permute.xlu0 %3902 }
 0xe9e   : > { %v3909_v21 = vsel %vm1561_vm5, %v3895_v16, %v3903_v29  ;;  %v3913_v37 = vsel %vm1561_vm5, %v3903_v29, %v3895_v16  ;;  %v4319_v29 = vld [vmem:[%s5331_s27 + $0x18] sm:$0xff] }
 0xe9f   : > { %v6263_v28 = vmul.f32 %v6251_v18, %v3913_v37  ;;  %v6266_v46 = vmul.f32 %v6254_v11, %v3909_v21  ;;  %v3901_v31 = vpop.permute.xlu1 %3900  ;;  %3950 = vrot.lane.b32.xlu0 %v6188_v26, %s6838_s14  ;;  %v3784_v21 = vld [vmem:[%s5206_s17] ss:$8 sm:$0x3] }
 0xea0   : > { %v3908_v32 = vsel %vm1561_vm5, %v3893_v20, %v3901_v31  ;;  %v3912_v24 = vsel %vm1561_vm5, %v3901_v31, %v3893_v20 }
 0xea1   : > { %v6276_v30 = vmul.f32 %v6251_v18, %v3912_v24  ;;  %v6279_v10 = vmul.f32 %v6254_v11, %v3908_v32  ;;  %3948 = vrot.lane.b32.xlu1 %v6193_v25, %s6838_s14  ;;  %v3851_v6 = vpop.permute.xlu0 %3850  ;;  %v4318_v24 = vld [vmem:[%s5331_s27 + $0x10] sm:$0xff] }
 0xea3   : > { %v3849_v55 = vpop.permute.xlu1 %3848  ;;  %3946 = vrot.lane.b32.xlu0 %v6110_v34, %s6838_s14 }
 0xea5   : > { %3944 = vrot.lane.b32.xlu1 %v6116_v19, %s6838_s14  ;;  %v3859_v4 = vpop.permute.xlu0 %3858  ;;  %s4679_s14 = sshll.u32 %s5359_s0, 10  ;;  %s5181_s0 = smov [#allocation2]  }
 0xea6   : > { %v3865_v53 = vsel %vm1531_vm6, %v3851_v6, %v3859_v4  ;;  %v3869_v63 = vsel %vm1531_vm6, %v3859_v4, %v3851_v6  ;;  %s6679_s2 = scalar_lea.hbm %s5336_s6, %s4679_s14 }
 0xea7   : > { %v6305_v54 = vmul.f32 %v6288_v0, %v3869_v63  ;;  %v6308_v1 = vmul.f32 %v6291_v27, %v3865_v53  ;;  %v3857_v47 = vpop.permute.xlu1 %3856  ;;  %4155 = vperm.xlu0 %4913, %v3757_v3   ;;  %v6364_v3 = vrot.slane %v3784_v21, %v6844_v8 }
 0xea8   : > { %v3864_v5 = vsel %vm1531_vm6, %v3849_v55, %v3857_v47  ;;  %v3868_v15 = vsel %vm1531_vm6, %v3857_v47, %v3849_v55  ;;  %v6361_v55 = vrot.slane %v3784_v21, %v6843_v12 }
 0xea9   : > { %v6317_v56 = vmul.f32 %v6288_v0, %v3868_v15  ;;  %v6320_v60 = vmul.f32 %v6291_v27, %v3864_v5  ;;  %4150 = vperm.xlu1 %4912, %v3756_v61   ;;  %v3807_v23 = vpop.permute.xlu0 %3806 }
 0xeab   : > { %v3805_v22 = vpop.permute.xlu1 %3804  ;;  %4165 = vperm.xlu0 %4913, %v3759_v40  }
 0xead   : > { %4160 = vperm.xlu1 %4912, %v3758_v36   ;;  %v3815_v58 = vpop.permute.xlu0 %3814 }
 0xeae   : > { %v3821_v13 = vsel %vm1501_vm7, %v3807_v23, %v3815_v58  ;;  %v3825_v49 = vsel %vm1501_vm7, %v3815_v58, %v3807_v23 }
 0xeaf   : > { %v6340_v57 = vmul.f32 %v6326_v38, %v3825_v49  ;;  %v6343_v17 = vmul.f32 %v6329_v43, %v3821_v13  ;;  %v3813_v7 = vpop.permute.xlu1 %3812  ;;  %4327 = vperm.xlu0 %4913, %v4317_v59   ;;  %v6392_v13 = vrot.slane %v4658_v51, %v6843_v12  ;;  %v6395_v49 = vrot.slane %v4658_v51, %v6844_v8 }
 0xeb0   : > { %v3820_v16 = vsel %vm1501_vm7, %v3805_v22, %v3813_v7  ;;  %v3824_v20 = vsel %vm1501_vm7, %v3813_v7, %v3805_v22 }
 0xeb1   : > { %v6352_v37 = vmul.f32 %v6326_v38, %v3824_v20  ;;  %v6355_v31 = vmul.f32 %v6329_v43, %v3820_v16  ;;  %4322 = vperm.xlu1 %4912, %v4316_v52   ;;  %v3763_v32 = vpop.permute.xlu0 %3762 }
 0xeb3   : > { %v3761_v6 = vpop.permute.xlu1 %3760  ;;  %4337 = vperm.xlu0 %4913, %v4319_v29  }
 0xeb5   : > { %4332 = vperm.xlu1 %4912, %v4318_v24   ;;  %v3771_v53 = vpop.permute.xlu0 %3770 }
 0xeb6   : > { %v3777_v63 = vsel %vm1472_vm8, %v3763_v32, %v3771_v53  ;;  %v3781_v61 = vsel %vm1472_vm8, %v3771_v53, %v3763_v32  ;;  %v4657_v53 = vld [vmem:[%s5206_s17 + $0x6] ss:$8 sm:$0x3] }
 0xeb7   : > { %v6373_v2 = vmul.f32 %v6361_v55, %v3781_v61  ;;  %v6376_v47 = vmul.f32 %v6364_v3, %v3777_v63  ;;  %v3769_v5 = vpop.permute.xlu1 %3768  ;;  %v6423_v51 = vrot.slane %v4657_v53, %v6843_v12 }
 0xeb8   : > { %v3776_v15 = vsel %vm1472_vm8, %v3761_v6, %v3769_v5  ;;  %v3780_v40 = vsel %vm1472_vm8, %v3769_v5, %v3761_v6 }
 0xeb9   : > { %v6384_v23 = vmul.f32 %v6361_v55, %v3780_v40  ;;  %v6387_v36 = vmul.f32 %v6364_v3, %v3776_v15  ;;  %v4027_v22 = vpop.permute.xlu0 %4026  ;;  %v4659_v15 = vld [vmem:[%s5206_s17 + $0x10] ss:$8 sm:$0x3] }
 0xeba   : > { %v6457_v52 = vrot.slane %v4659_v15, %v6844_v8 }
 0xebb   : > { %v4025_v58 = vpop.permute.xlu1 %4024 }
 0xebd   : > { %v4035_v7 = vpop.permute.xlu0 %4034 }
 0xebe   : > { %v4041_v16 = vsel %vm1651_vm2, %v4027_v22, %v4035_v7  ;;  %v4045_v20 = vsel %vm1651_vm2, %v4035_v7, %v4027_v22  ;;  %v6426_v22 = vrot.slane %v4657_v53, %v6844_v8 }
 0xebf   : > { %v6404_v29 = vmul.f32 %v6392_v13, %v4041_v16  ;;  %v6407_v21 = vmul.f32 %v6395_v49, %v4045_v20  ;;  %v4033_v32 = vpop.permute.xlu1 %4032 }
 0xec0   : > { %v4040_v24 = vsel %vm1651_vm2, %v4025_v58, %v4033_v32  ;;  %v4044_v6 = vsel %vm1651_vm2, %v4033_v32, %v4025_v58 }
 0xec1   : > { %v6415_v63 = vmul.f32 %v6392_v13, %v4040_v24  ;;  %v6418_v61 = vmul.f32 %v6395_v49, %v4044_v6  ;;  %v3983_v5 = vpop.permute.xlu0 %3982 }
 0xec3   : > { %v3981_v40 = vpop.permute.xlu1 %3980 }
 0xec5   : > { %v3991_v7 = vpop.permute.xlu0 %3990 }
 0xec6   : > { %v3997_v16 = vsel %vm1621_vm3, %v3983_v5, %v3991_v7  ;;  %v4001_v20 = vsel %vm1621_vm3, %v3991_v7, %v3983_v5 }
 0xec7   : > { %v6435_v32 = vmul.f32 %v6423_v51, %v3997_v16  ;;  %v6438_v24 = vmul.f32 %v6426_v22, %v4001_v20  ;;  %v3989_v6 = vpop.permute.xlu1 %3988  ;;  %v6454_v20 = vrot.slane %v4659_v15, %v6843_v12 }
 0xec8   : > { %v3996_v53 = vsel %vm1621_vm3, %v3981_v40, %v3989_v6  ;;  %v4000_v14 = vsel %vm1621_vm3, %v3989_v6, %v3981_v40 }
 0xec9   : > { %v6446_v58 = vmul.f32 %v6423_v51, %v3996_v53  ;;  %v6449_v59 = vmul.f32 %v6426_v22, %v4000_v14  ;;  %v4071_v5 = vpop.permute.xlu0 %4070 }
 0xecb   : > { %v4069_v16 = vpop.permute.xlu1 %4068 }
 0xecd   : > { %v4079_v6 = vpop.permute.xlu0 %4078 }
 0xece   : > { %v4085_v53 = vsel %vm1681_vm9, %v4071_v5, %v4079_v6  ;;  %v4089_v14 = vsel %vm1681_vm9, %v4079_v6, %v4071_v5 }
 0xecf   : > { %v6466_v33 = vmul.f32 %v6454_v20, %v4085_v53  ;;  %v6469_v7 = vmul.f32 %v6457_v52, %v4089_v14  ;;  %v4077_v4 = vpop.permute.xlu1 %4076 }
 0xed0   : > { %v4084_v15 = vsel %vm1681_vm9, %v4069_v16, %v4077_v4  ;;  %v4088_v40 = vsel %vm1681_vm9, %v4077_v4, %v4069_v16 }
 0xed1   : > { %v6476_v9 = vmul.f32 %v6454_v20, %v4084_v15  ;;  %v6479_v42 = vmul.f32 %v6457_v52, %v4088_v40  ;;  %v6481_v5 = vpop.permute.xlu0 %3938 }
 0xed3   : > { %v6485_v53 = vpop.permute.xlu1 %3936 }
 0xed5   : > { %v3899_v45 = vpop.permute.xlu0 %3898 }
 0xed7   : > { %v3897_v39 = vpop.permute.xlu1 %3896 }
 0xed9   : > { %v3907_v50 = vpop.permute.xlu0 %3906 }
 0xeda   : > { %v3911_v4 = vsel %vm1561_vm5, %v3899_v45, %v3907_v50  ;;  %v3915_v16 = vsel %vm1561_vm5, %v3907_v50, %v3899_v45 }
 0xedb   : > { %v3934_v40 = vmul.f32 %v6251_v18, %v3915_v16  ;;  %v3935_v15 = vmul.f32 %v6254_v11, %v3911_v4  ;;  %v3905_v62 = vpop.permute.xlu1 %3904 }
 0xedc   : > { %v3910_v6 = vsel %vm1561_vm5, %v3897_v39, %v3905_v62  ;;  %v3914_v14 = vsel %vm1561_vm5, %v3905_v62, %v3897_v39  ;;  %v6849_v39 = vpack.c.bf16 %v6263_v28, %v6276_v30  ;;  %v6850_v28 = vpack.c.bf16 %v6308_v1, %v6320_v60 }
 0xedd   : > { %v3932_v34 = vmul.f32 %v6251_v18, %v3914_v14  ;;  %v3933_v19 = vmul.f32 %v6254_v11, %v3910_v6  ;;  %v3855_v41 = vpop.permute.xlu0 %3854  ;;  %v6848_v18 = vpack.c.bf16 %v6266_v46, %v6279_v10 }
 0xedf   : > { %v4126_v35 = vpack.c.bf16 %v3934_v40, %v3932_v34  ;;  %v3853_v26 = vpop.permute.xlu1 %3852  ;;  %v4127_v25 = vpack.c.bf16 %v3935_v15, %v3933_v19 }
 0xee1   : > { %4204 = vmatprep.subr.bf16.mxu0 %v4127_v25  ;;  %v3863_v50 = vpop.permute.xlu0 %3862 }
 0xee2   : > { %4205 = vmatpush1.bf16.msra.mxu0 %v4126_v35  ;;  %v3867_v45 = vsel %vm1531_vm6, %v3855_v41, %v3863_v50  ;;  %v3871_v4 = vsel %vm1531_vm6, %v3863_v50, %v3855_v41 }
 0xee3   : > { %v3890_v16 = vmul.f32 %v6288_v0, %v3871_v4  ;;  %v3891_v62 = vmul.f32 %v6291_v27, %v3867_v45  ;;  %4206 = vmatprep.subr.bf16.mxu0 %v6848_v18  ;;  %v3861_v34 = vpop.permute.xlu1 %3860 }
 0xee4   : > { %v3866_v19 = vsel %vm1531_vm6, %v3853_v26, %v3861_v34  ;;  %v3870_v35 = vsel %vm1531_vm6, %v3861_v34, %v3853_v26 }
 0xee5   : > { %v3888_v25 = vmul.f32 %v6288_v0, %v3870_v35  ;;  %v3889_v11 = vmul.f32 %v6291_v27, %v3866_v19  ;;  %v3811_v41 = vpop.permute.xlu0 %3810 }
 0xee6   : > { %4207 = vmatpush1.bf16.msra.mxu0 %v6849_v39 }
 0xee7   : > { %v4122_v6 = vpack.c.bf16 %v3890_v16, %v3888_v25  ;;  %v3809_v14 = vpop.permute.xlu1 %3808  ;;  %v4123_v46 = vpack.c.bf16 %v3891_v62, %v3889_v11  ;;  %v6851_v62 = vpack.c.bf16 %v6305_v54, %v6317_v56  ;;  %v6852_v54 = vpack.c.bf16 %v6343_v17, %v6355_v31 }
 0xee9   : > { %4208 = vmatprep.subr.bf16.mxu0 %v4123_v46  ;;  %v3819_v10 = vpop.permute.xlu0 %3818 }
 0xeea   : > { %4209 = vmatpush1.bf16.msra.mxu0 %v4122_v6  ;;  %v3823_v40 = vsel %vm1501_vm7, %v3811_v41, %v3819_v10  ;;  %v3827_v26 = vsel %vm1501_vm7, %v3819_v10, %v3811_v41 }
 0xeeb   : > { %v3846_v0 = vmul.f32 %v6326_v38, %v3827_v26  ;;  %v3847_v27 = vmul.f32 %v6329_v43, %v3823_v40  ;;  %4210 = vmatprep.subr.bf16.mxu0 %v6850_v28  ;;  %v3817_v30 = vpop.permute.xlu1 %3816 }
 0xeec   : > { %v3822_v15 = vsel %vm1501_vm7, %v3809_v14, %v3817_v30  ;;  %v3826_v50 = vsel %vm1501_vm7, %v3817_v30, %v3809_v14  ;;  %v6853_v14 = vpack.c.bf16 %v6340_v57, %v6352_v37  ;;  %v6854_v57 = vpack.c.bf16 %v6376_v47, %v6387_v36 }
 0xeed   : > { %v3844_v45 = vmul.f32 %v6326_v38, %v3826_v50  ;;  %v3845_v4 = vmul.f32 %v6329_v43, %v3822_v15  ;;  %v3767_v16 = vpop.permute.xlu0 %3766  ;;  %v6855_v50 = vpack.c.bf16 %v6373_v2, %v6384_v23  ;;  %v6856_v2 = vpack.c.bf16 %v6407_v21, %v6418_v61 }
 0xeee   : > { %4211 = vmatpush1.bf16.msra.mxu0 %v6851_v62 }
 0xeef   : > { %v4118_v18 = vpack.c.bf16 %v3846_v0, %v3844_v45  ;;  %v3765_v34 = vpop.permute.xlu1 %3764  ;;  %v4119_v1 = vpack.c.bf16 %v3847_v27, %v3845_v4 }
 0xef1   : > { %4212 = vmatprep.subr.bf16.mxu0 %v4119_v1  ;;  %v3775_v60 = vpop.permute.xlu0 %3774 }
 0xef2   : > { %4213 = vmatpush1.bf16.msra.mxu0 %v4118_v18  ;;  %v3779_v19 = vsel %vm1472_vm8, %v3767_v16, %v3775_v60  ;;  %v3783_v35 = vsel %vm1472_vm8, %v3775_v60, %v3767_v16 }
 0xef3   : > { %v3802_v38 = vmul.f32 %v6361_v55, %v3783_v35  ;;  %v3803_v43 = vmul.f32 %v6364_v3, %v3779_v19  ;;  %4214 = vmatprep.subr.bf16.mxu0 %v6852_v54  ;;  %v3773_v56 = vpop.permute.xlu1 %3772  ;;  %v6857_v35 = vpack.c.bf16 %v6404_v29, %v6415_v63  ;;  %v6858_v29 = vpack.c.bf16 %v6438_v24, %v6449_v59 }
 0xef4   : > { %v3778_v25 = vsel %vm1472_vm8, %v3765_v34, %v3773_v56  ;;  %v3782_v11 = vsel %vm1472_vm8, %v3773_v56, %v3765_v34 }
 0xef5   : > { %v3800_v41 = vmul.f32 %v6361_v55, %v3782_v11  ;;  %v3801_v39 = vmul.f32 %v6364_v3, %v3778_v25  ;;  %v4031_v6 = vpop.permute.xlu0 %4030 }
 0xef6   : > { %4215 = vmatpush1.bf16.msra.mxu0 %v6853_v14 }
 0xef7   : > { %v4114_v46 = vpack.c.bf16 %v3802_v38, %v3800_v41  ;;  %v4029_v10 = vpop.permute.xlu1 %4028  ;;  %v4115_v17 = vpack.c.bf16 %v3803_v43, %v3801_v39  ;;  %v4656_v41 = vld [vmem:[%s5206_s17 + $0x5] ss:$8 sm:$0x3] }
 0xef9   : > { %4216 = vmatprep.subr.bf16.mxu0 %v4115_v17  ;;  %v4039_v31 = vpop.permute.xlu0 %4038  ;;  %v3965_v17 = vrot.slane %v4656_v41, %v6843_v12 }
 0xefa   : > { %4217 = vmatpush1.bf16.msra.mxu0 %v4114_v46  ;;  %v4043_v40 = vsel %vm1651_vm2, %v4031_v6, %v4039_v31  ;;  %v4047_v26 = vsel %vm1651_vm2, %v4039_v31, %v4031_v6  ;;  %v6859_v46 = vpack.c.bf16 %v6435_v32, %v6446_v58  ;;  %v3969_v31 = vrot.slane %v4656_v41, %v6844_v8  ;;  %v5076_v8 = vld [vmem:[%s5394_s22 + $0x18] sm:$0xff] }
 0xefb   : > { %v4066_v55 = vmul.f32 %v6392_v13, %v4043_v40  ;;  %v4067_v3 = vmul.f32 %v6395_v49, %v4047_v26  ;;  %4218 = vmatprep.subr.bf16.mxu0 %v6854_v57  ;;  %v4037_v37 = vpop.permute.xlu1 %4036  ;;  %v6860_v26 = vpack.c.bf16 %v6469_v7, %v6479_v42  ;;  %v6861_v42 = vpack.c.bf16 %v6466_v33, %v6476_v9 }
 0xefc   : > { %v4042_v0 = vsel %vm1651_vm2, %v4029_v10, %v4037_v37  ;;  %v4046_v27 = vsel %vm1651_vm2, %v4037_v37, %v4029_v10 }
 0xefd   : > { %v4064_v28 = vmul.f32 %v6392_v13, %v4042_v0  ;;  %v4065_v30 = vmul.f32 %v6395_v49, %v4046_v27  ;;  %v3987_v15 = vpop.permute.xlu0 %3986 }
 0xefe   : > { %4219 = vmatpush1.bf16.msra.mxu0 %v6855_v50  ;;  %v5079_v50 = vld [vmem:[%s5394_s22] sm:$0xff] }
 0xeff   : > { %v4142_v45 = vpack.c.bf16 %v4066_v55, %v4064_v28  ;;  %v3985_v4 = vpop.permute.xlu1 %3984  ;;  %v4143_v47 = vpack.c.bf16 %v4067_v3, %v4065_v30  ;;  %v5077_v55 = vld [vmem:[%s5394_s22 + $0x8] sm:$0xff] }
 0xf00   : > { %v4315_v3 = vpack.c.bf16 %v5076_v8, %v5077_v55  ;;  %v4934_v30 = vld [vmem:[%s6847_s9 + $0x8] ss:$12 sps:$4 sm:$0xff]  }
 0xf01   : > { %4220 = vmatprep.subr.bf16.mxu0 %v4143_v47  ;;  %v3995_v36 = vpop.permute.xlu0 %3994 }
 0xf02   : > { %4221 = vmatpush2.bf16.msra.mxu0 %v4142_v45  ;;  %v3999_v16 = vsel %vm1621_vm3, %v3987_v15, %v3995_v36  ;;  %v4003_v62 = vsel %vm1621_vm3, %v3995_v36, %v3987_v15  ;;  %v5078_v15 = vld [vmem:[%s5394_s22 + $0x10] sm:$0xff]  ;;  %s4439_s22 = sshll.u32 %s6668_s8, 4  ;;  %s6682_s22 = int_to_ptr.vmem [resolvable:$true] %s4439_s22 }
 0xf03   : > { %v4022_v13 = vmul.f32 %v6423_v51, %v3999_v16  ;;  %v4023_v49 = vmul.f32 %v6426_v22, %v4003_v62  ;;  %4222 = vmatprep.subr.bf16.mxu0 %v6856_v2  ;;  %v3993_v23 = vpop.permute.xlu1 %3992  ;;  %v4314_v45 = vpack.c.bf16 %v5078_v15, %v5079_v50  ;;  %s5080_s5 = scalar_lea.vmem %s6682_s22, 1024 }
 0xf04   : > { %v3998_v18 = vsel %vm1621_vm3, %v3985_v4, %v3993_v23  ;;  %v4002_v34 = vsel %vm1621_vm3, %v3993_v23, %v3985_v4  ;;  %p5081_p11 = scmp.ne.s32.totalorder %s6682_s22, %s5080_s5 }
 0xf05   : > { %v4020_v1 = vmul.f32 %v6423_v51, %v3998_v18  ;;  %v4021_v60 = vmul.f32 %v6426_v22, %v4002_v34  ;;  %v4075_v19 = vpop.permute.xlu0 %4074  ;;  %v6862_v18 = vld [vmem:[#allocation34_spill] sm:$0xff]  ;;  %v6863_v34 = vld [vmem:[#allocation33_spill] sm:$0xff] }
 0xf06   : > { %4223 = vmatpush2.bf16.msra.mxu0 %v6857_v35  ;;  %v6866_v35 = vld [vmem:[#allocation30_spill] sm:$0xff]  ;;  %p5082_p12 = pnand %p5081_p11, %p5376_p5 }
 0xf07   : > { %v4138_v38 = vpack.c.bf16 %v4022_v13, %v4020_v1  ;;  %v4073_v21 = vpop.permute.xlu1 %4072  ;;  %v4139_v61 = vpack.c.bf16 %v4023_v49, %v4021_v60  ;;  %v4131_v1 = vpack.c.bf16 %v6863_v34, %v6862_v18  ;;  %v6865_v60 = vld [vmem:[#allocation31_spill] sm:$0xff] }
 0xf08   : > { %p5083_p13 = pneg %p5082_p12 }
 0xf09   : > { %4224 = vmatprep.subr.bf16.mxu0 %v4139_v61  ;;  %v4083_v43 = vpop.permute.xlu0 %4082  ;;  %v4936_v61 = vld [vmem:[%s6847_s9] ss:$12 sps:$4 sm:$0xff]  }
 0xf0a   : > { %4225 = vmatpush2.bf16.msra.mxu0 %v4138_v38  ;;  %v4087_v54 = vsel %vm1681_vm9, %v4075_v19, %v4083_v43  ;;  %v4091_v51 = vsel %vm1681_vm9, %v4083_v43, %v4075_v19  ;;  %v6867_v38 = vld [vmem:[#allocation29_spill] sm:$0xff]  ;;  %v4939_v43 = vld [vmem:[%s5326_s12] sm:$0xff]  }
 0xf0b   : > { %v4110_v22 = vmul.f32 %v6454_v20, %v4087_v54  ;;  %v4111_v56 = vmul.f32 %v6457_v52, %v4091_v51  ;;  %4226 = vmatprep.subr.bf16.mxu0 %v6858_v29  ;;  %v4081_v63 = vpop.permute.xlu1 %4080  ;;  %v6868_v54 = vld [vmem:[#allocation24_spill] sm:$0xff] }
 0xf0c   : > { %v4086_v25 = vsel %vm1681_vm9, %v4073_v21, %v4081_v63  ;;  %v4090_v11 = vsel %vm1681_vm9, %v4081_v63, %v4073_v21  ;;  %v4129_v21 = vpack.c.bf16 %v6867_v38, %v6866_v35  ;;  %v6869_v51 = vld [vmem:[#allocation28_spill] sm:$0xff]  ;;  %v4943_v63 = vld [vmem:[%s5326_s12 + $0x8] sm:$0xff]  }
 0xf0d   : > { %v4108_v39 = vmul.f32 %v6454_v20, %v4086_v25  ;;  %v4109_v6 = vmul.f32 %v6457_v52, %v4090_v11  ;;  %v3943_v14 = vpop.permute.xlu0 %3942  ;;  %v4942_v29 = vld [vmem:[%s6847_s9 + $0x18] ss:$12 sps:$4 sm:$0xff]  }
 0xf0e   : > { %4227 = vmatpush2.bf16.msra.mxu0 %v6859_v46 }
 0xf0f   : > { %v4146_v59 = vpack.c.bf16 %v4110_v22, %v4108_v39  ;;  %v3941_v24 = vpop.permute.xlu1 %3940  ;;  %v4147_v10 = vpack.c.bf16 %v4111_v56, %v4109_v6  ;;  %v6870_v22 = vpack.c.bf16 %v6868_v54, %v6869_v51  ;;  %v4940_v56 = vld [vmem:[%s6847_s9 + $0x1c] ss:$12 sps:$4 sm:$0xff]   ;;  %s5084_s9 = sshll.u32 %s5181_s0, 4  ;;  %s5085_s9 = int_to_ptr.vmem [resolvable:$false] %s5084_s9 }
 0xf10   : > { %s5086_s14 = scalar_lea.vmem %s5085_s9, 2048  ;;  %p5087_p0 = scmp.lt.s32.totalorder %s6682_s22, %s5085_s9 }
 0xf11   : > { %4269 = vmatprep.subr.bf16.mxu1 %v4147_v10  ;;  %v3951_v40 = vpop.permute.xlu0 %3950  ;;  %p5088_p1 = scmp.lt.s32.totalorder %s5086_s14, %s5080_s5 }
 0xf12   : > { %4270 = vmatpush1.bf16.msra.mxu1 %v4146_v59  ;;  %v3955_v52 = vsel %vm1591_vm4, %v3943_v14, %v3951_v40  ;;  %v3959_v58 = vsel %vm1591_vm4, %v3951_v40, %v3943_v14 }
 0xf13   : > { %v3978_v32 = vmul.f32 %v3965_v17, %v3955_v52  ;;  %v3979_v20 = vmul.f32 %v3969_v31, %v3959_v58  ;;  %4271 = vmatprep.subr.bf16.mxu1 %v6860_v26  ;;  %v3949_v12 = vpop.permute.xlu1 %3948  ;;  %p5089_p2 = por %p5088_p1, %p5087_p0 }
 0xf14   : > { %v3954_v57 = vsel %vm1591_vm4, %v3941_v24, %v3949_v12  ;;  %v3958_v37 = vsel %vm1591_vm4, %v3949_v12, %v3941_v24 }
 0xf15   : > { %v3976_v0 = vmul.f32 %v3965_v17, %v3954_v57  ;;  %v3977_v27 = vmul.f32 %v3969_v31, %v3958_v37  ;;  %v3947_v28 = vpop.permute.xlu0 %3946  ;;  %p5090_p3 = pnand %p5089_p2, %p5083_p13 }
 0xf16   : > { %4272 = vmatpush1.bf16.msra.mxu1 %v6861_v42  ;;  %v3953_v7 = vsel %vm1591_vm4, %v6481_v5, %v3947_v28  ;;  %v3957_v4 = vsel %vm1591_vm4, %v3947_v28, %v6481_v5 }
 0xf17   : > { %v4134_v47 = vpack.c.bf16 %v3978_v32, %v3976_v0  ;;  %v3974_v36 = vmul.f32 %v3965_v17, %v3953_v7  ;;  %v3975_v16 = vmul.f32 %v3969_v31, %v3957_v4  ;;  %v3945_v62 = vpop.permute.xlu1 %3944  ;;  %v4135_v13 = vpack.c.bf16 %v3979_v20, %v3977_v27  ;;  %4370 = vmatprep.subr.bf16.mxu1 %v4315_v3 }
 0xf18   : > { %v3952_v9 = vsel %vm1591_vm4, %v6485_v53, %v3945_v62  ;;  %v3956_v33 = vsel %vm1591_vm4, %v3945_v62, %v6485_v53  ;;  %v6864_v53 = vld [vmem:[#allocation32_spill] sm:$0xff] }
 0xf19   : > { %v3972_v49 = vmul.f32 %v3965_v17, %v3952_v9  ;;  %v3973_v2 = vmul.f32 %v3969_v31, %v3956_v33  ;;  %4228 = vmatprep.subr.bf16.mxu0 %v4135_v13  ;;  %4666 = vmatmul.mubr.msk.bf16.vlgmr.msra.gmra.mxu1 %vm986_vm0, %v4934_v30  ;;  %v4130_v19 = vpack.c.bf16 %v6865_v60, %v6864_v53 }
 0xf1a   : > { %4229 = vmatpush2.bf16.msra.mxu0 %v4134_v47  ;;  %4299 = vmatprep.mubr.bf16.mxu1 %v6818_v44 }
 0xf1b   : > { %v4132_v5 = vpack.c.bf16 %v3974_v36, %v3972_v49  ;;  %v4133_v23 = vpack.c.bf16 %v3975_v16, %v3973_v2  ;;  %4371 = vmatpush1.bf16.msra.mxu1 %v4314_v45 }
 0xf1d   : > { %4230 = vmatprep.subr.bf16.mxu0 %v4133_v23 }
 0xf1e   : > { %4231 = vmatpush2.bf16.msra.mxu0 %v4132_v5 }
 0xf1f   : > { %4232 = vmatprep.subr.bf16.mxu0 %v4131_v1 }
 0xf21   : > { %4667 = vmatmul.mubr.msk.bf16.gmra.mxu1 %vm986_vm0, %v4935_v48 }
 0xf22   : > { %4233 = vmatpush2.bf16.msra.mxu0 %v4130_v19  ;;  %4388 = vmatprep.mubr.bf16.mxu1 %v6818_v44  ;;  %v4156_v46 = vpop.permute.xlu0 %4155 }
 0xf23   : > { %4234 = vmatprep.subr.bf16.mxu0 %v4129_v21 }
 0xf24   : > { %v4151_v39 = vpop.permute.xlu1 %4150 }
 0xf26   : > { %4235 = vmatpush2.bf16.msra.mxu0 %v6870_v22 }
 0xf28   : > { %v4161_v24 = vpop.permute.xlu1 %4160 }
 0xf29   : > { %4237 = vmatmul.mubr.bf16.vlgmr.msra.gmra.mxu0 %v4936_v61  ;;  %4670 = vmatmul.mubr.msk.bf16.vlgmr.msra.gmra.mxu1 %vm1201_vm1, %v4939_v43 }
 0xf2a   : > { %4398 = vmatprep.mubr.bf16.mxu1 %v6818_v44  ;;  %4246 = vmatprep.mubr.bf16.mxu0 %v4940_v56  ;;  %v4166_v44 = vpop.permute.xlu0 %4165 }
 0xf2c   : > { %v4323_v52 = vpop.permute.xlu1 %4322 }
 0xf2e   : > { %v4328_v57 = vpop.permute.xlu0 %4327 }
 0xf30   : > { %v4333_v36 = vpop.permute.xlu1 %4332 }
 0xf31   : > { %4247 = vmatmul.mubr.bf16.gmra.mxu0 %v4942_v29  ;;  %4671 = vmatmul.mubr.msk.bf16.gmra.mxu1 %vm1201_vm1, %v4943_v63 }
 0xf32   : > { %v4338_v48 = vpop.permute.xlu0 %4337 }
 0xfd9   : > { %v4291_v25 = vpop.f32.mrf.mxu1 }
 0xfdb   : > { %v4293_v11 = vpop.f32.mrf.mxu1 }
 0xfdd   : > { %v4295_v41 = vpop.f32.mrf.mxu1 }
 0xfdf   : > { %v4297_v6 = vpop.f32.mrf.mxu1 }
 0xfe1   : > { %v4301_v14 = vpop.f32.mrf.mxu1 }
 0xfe3   : > { %v4303_v59 = vpop.f32.mrf.mxu1 }
 0xfe5   : > { %v4305_v10 = vpop.f32.mrf.mxu1 }
 0xfe7   : > { %v4307_v17 = vpop.f32.mrf.mxu1 }
 0xfe9   : > { %v4238_v31 = vpop.f32.mrf.mxu0  ;;  %v4390_v40 = vpop.f32.mrf.mxu1 }
 0xfea   : > { %v4239_v58 = vadd.f32 %v4238_v31, %v4151_v39  ;;  %v4391_v12 = vadd.f32 %v4390_v40, %v4323_v52 }
 0xfeb   : > { %v4240_v32 = vpop.f32.mrf.mxu0  ;;  %v4392_v20 = vpop.f32.mrf.mxu1 }
 0xfec   : > { %v4292_v26 = vadd.f32 %v4291_v25, %v4239_v58  ;;  %v4241_v8 = vadd.f32 %v4240_v32, %v4151_v39  ;;  %v4393_v27 = vadd.f32 %v4392_v20, %v4323_v52 }
 0xfed   : > { %v4242_v55 = vpop.f32.mrf.mxu0  ;;  %v4394_v3 = vpop.f32.mrf.mxu1 }
 0xfee   : > { %v4409_v37 = vadd.f32 %v4391_v12, %v4292_v26  ;;  %v4294_v0 = vadd.f32 %v4293_v11, %v4241_v8  ;;  %v4243_v28 = vadd.f32 %v4242_v55, %v4156_v46  ;;  %v4395_v42 = vadd.f32 %v4394_v3, %v4328_v57 }
 0xfef   : > { %v4244_v30 = vpop.f32.mrf.mxu0  ;;  %v4396_v15 = vpop.f32.mrf.mxu1 }
 0xff0   : > { %4417 = vst [vmem:[%s6668_s8] sm:$0xff] %v4409_v37  ;;  %v4410_v50 = vadd.f32 %v4393_v27, %v4294_v0  ;;  %v4296_v45 = vadd.f32 %v4295_v41, %v4243_v28  ;;  %v4245_v7 = vadd.f32 %v4244_v30, %v4156_v46  ;;  %v4397_v13 = vadd.f32 %v4396_v15, %v4328_v57 }
 0xff1   : > { %v4248_v4 = vpop.f32.mrf.mxu0  ;;  %v4400_v47 = vpop.f32.mrf.mxu1 }
 0xff2   : > { %4418 = vst [vmem:[%s6668_s8 + $0x8] sm:$0xff] %v4410_v50  ;;  %v4411_v16 = vadd.f32 %v4395_v42, %v4296_v45  ;;  %v4298_v62 = vadd.f32 %v4297_v6, %v4245_v7  ;;  %v4249_v9 = vadd.f32 %v4248_v4, %v4161_v24  ;;  %v4401_v23 = vadd.f32 %v4400_v47, %v4333_v36 }
 0xff3   : > { %v4250_v33 = vpop.f32.mrf.mxu0  ;;  %v4402_v49 = vpop.f32.mrf.mxu1 }
 0xff4   : > { %4419 = vst [vmem:[%s6668_s8 + $0x10] sm:$0xff] %v4411_v16  ;;  %v4412_v2 = vadd.f32 %v4397_v13, %v4298_v62  ;;  %v4302_v5 = vadd.f32 %v4301_v14, %v4249_v9  ;;  %v4251_v18 = vadd.f32 %v4250_v33, %v4161_v24  ;;  %v4403_v19 = vadd.f32 %v4402_v49, %v4333_v36 }
 0xff5   : > { %v4252_v34 = vpop.f32.mrf.mxu0  ;;  %v4404_v1 = vpop.f32.mrf.mxu1 }
 0xff6   : > { %4420 = vst [vmem:[%s6668_s8 + $0x18] sm:$0xff] %v4412_v2  ;;  %v4413_v53 = vadd.f32 %v4401_v23, %v4302_v5  ;;  %v4304_v60 = vadd.f32 %v4303_v59, %v4251_v18  ;;  %v4253_v35 = vadd.f32 %v4252_v34, %v4166_v44  ;;  %v4405_v54 = vadd.f32 %v4404_v1, %v4338_v48 }
 0xff7   : > { %v4254_v38 = vpop.f32.mrf.mxu0  ;;  %v4406_v21 = vpop.f32.mrf.mxu1 }
 0xff8   : > { %4421 = vst [vmem:[%s6668_s8 + $0x20] sm:$0xff] %v4413_v53  ;;  %v4414_v61 = vadd.f32 %v4403_v19, %v4304_v60  ;;  %v4306_v43 = vadd.f32 %v4305_v10, %v4253_v35  ;;  %v4255_v51 = vadd.f32 %v4254_v38, %v4166_v44  ;;  %v4407_v29 = vadd.f32 %v4406_v21, %v4338_v48 }
 0xffa   : > { %4422 = vst [vmem:[%s6668_s8 + $0x28] sm:$0xff] %v4414_v61  ;;  %v4415_v22 = vadd.f32 %v4405_v54, %v4306_v43  ;;  %v4308_v56 = vadd.f32 %v4307_v17, %v4255_v51 }
 0xffc   : > { %4423 = vst [vmem:[%s6668_s8 + $0x30] sm:$0xff] %v4415_v22  ;;  %v4416_v63 = vadd.f32 %v4407_v29, %v4308_v56 }
 0xffe   : > { %4424 = vst [vmem:[%s6668_s8 + $0x38] sm:$0xff] %v4416_v63 }
 0xfff   : > { %5093 = shalt.err (!%p5090_p3)
}
0x1000   : > { %s5094_s13 = scalar_lea.hbm %s6679_s2, 1024  ;;  %s5098_s8 = scalar_lea.hbm %s5336_s6, 2048 }
0x1001   : > { %p5095_p4 = scmp.ne.s32.totalorder %s6679_s2, %s5094_s13  ;;  %p5099_p9 = scmp.lt.s32.totalorder %s6679_s2, %s5336_s6 }
0x1002   : > { %p5100_p10 = scmp.lt.s32.totalorder %s5098_s8, %s5094_s13 }
0x1003   : > { %p5096_p7 = pnand %p5095_p4, %p5376_p5 }
0x1004   : > { %p5101_p11 = por %p5100_p10, %p5099_p9 }
0x1005   : > { %p5097_p8 = pneg %p5096_p7 }
0x1007   : > { %p5102_p12 = pnand %p5101_p11, %p5097_p8 }
0x1009   : > { %5105 = shalt.err (!%p5102_p12)
}
0x100a   : > { %s5182_s5 = smov 256  }
0x100b   : > { %4829 = dma.vmem_to_hbm [thread:$0]  (%p5376_p5), %s6682_s22, 1024, %s6679_s2, %s6687_s3, %s5182_s5, %s5182_s5, %s6833_s4  }
0x100c PF: > { %p4835_p13 = scmp.ge.s32.totalorder %s5140_s15, 2  ;;  %s4454_s9 = sand.u32 1, %s5128_s7  }
0x100d   : > { %s4455_s0 = scalar_lea.sflag [#allocation3], %s4454_s9 }
0x100e   : > { %p4832_p0 = pnand %p4835_p13, %p5380_p6 }
0x1010   : > { %p4833_p1 = pneg %p4832_p0 }
0x1012   : > { %5123 = dma.done.wait (%p4833_p1), %s4455_s0, 1024  }
0x1013   : > { %5125 = vsyncadd (%p4833_p1), %s4455_s0, 4294966272  ;;  %p69_p2 = scmp.ge.s32.totalorder %s5363_s18, 4   ;;  %s6871_s7 = smov %s5132_s10 }
0x1014   : > { %s6872_s10 = smov %s5136_s11  ;;  %s6873_s11 = smov %s5374_s26 }
0x1015   : > { %s6874_s15 = smov %s5363_s18  ;;  %71 = sbr.rel (!%p69_p2) target bundleno = 55 (0x37), region = 213 }
0x101a   :  { %4460 = vsyncpa [#allocation3], 1 }
0x101b   :  { %4462 = vsyncpa [#allocation3 + $0x1], 1 }

// kernel: tpu_custom_call.1
= control target key start
LH: loop header
LB: loop body
LE: loop exit
PB: predicated region body
PF: predicated region fallthrough
CT: control target
= control target key end

     0   :  { %s5142_s6 = smov 1   ;;  %s5143_s10 = smov 2   ;;  %s6724_s0 = inlined_call_operand.smem [shape: u32[30], index: -1, kind: input, shape index: {}] }
   0x1   :  { %s5191_s5 = sld [smem:[%s6724_s0]]   ;;  %s5144_s14 = smov 3  }
   0x2   :  { %s5196_s9 = sld [smem:[%s6724_s0 + %s5142_s6]]   ;;  %s5145_s18 = smov 4  }
   0x3   :  { %s5201_s13 = sld [smem:[%s6724_s0 + %s5143_s10]]   ;;  %s5146_s22 = smov 5  }
   0x4   :  { %s5206_s17 = sld [smem:[%s6724_s0 + %s5144_s14]]   ;;  %s5147_s26 = smov 6  }
   0x5   :  { %s5211_s21 = sld [smem:[%s6724_s0 + %s5145_s18]]   ;;  %s5148_s30 = smov 7  }
   0x6   :  { %s5216_s25 = sld [smem:[%s6724_s0 + %s5146_s22]]   ;;  %s5149_s4 = smov 8  }
   0x7   :  { %6783 = sst [smem:[#allocation5_spill]] %s5191_s5  ;;  %s5150_s10 = smov 9  }
   0x8   :  { %6784 = sst [smem:[#allocation6_spill]] %s5196_s9  ;;  %s5151_s15 = smov 10  }
   0x9   :  { %6785 = sst [smem:[#allocation7_spill]] %s5201_s13  ;;  %s5152_s20 = smov 11  }
   0xa   :  { %s5221_s29 = sld [smem:[%s6724_s0 + %s5147_s26]]   ;;  %s5153_s26 = smov 12  }
   0xb   :  { %s5226_s3 = sld [smem:[%s6724_s0 + %s5148_s30]]   ;;  %s5154_s1 = smov 13  }
   0xc   :  { %s5231_s8 = sld [smem:[%s6724_s0 + %s5149_s4]]   ;;  %s5155_s7 = smov 14  }
   0xd   :  { %s5236_s14 = sld [smem:[%s6724_s0 + %s5150_s10]]   ;;  %s5157_s22 = smov 16  }
   0xe   :  { %s5241_s19 = sld [smem:[%s6724_s0 + %s5151_s15]]   ;;  %s5156_s15 = smov 15  }
   0xf   :  { %s5246_s24 = sld [smem:[%s6724_s0 + %s5152_s20]]   ;;  %s5158_s28 = smov 17  }
  0x10   :  { %s5251_s30 = sld [smem:[%s6724_s0 + %s5153_s26]]  }
  0x11   :  { %6786 = sst [smem:[#allocation8_spill]] %s5226_s3 }
  0x12   :  { %6787 = sst [smem:[#allocation9_spill]] %s5231_s8 }
  0x13   :  { %6788 = sst [smem:[#allocation10_spill]] %s5236_s14 }
  0x14   :  { %s5256_s6 = sld [smem:[%s6724_s0 + %s5154_s1]]  }
  0x15   :  { %6789 = sst [smem:[#allocation11_spill]] %s5246_s24 }
  0x16   :  { %s5261_s12 = sld [smem:[%s6724_s0 + %s5155_s7]]   ;;  %s5159_s7 = smov 18  }
  0x17   :  { %s5266_s20 = sld [smem:[%s6724_s0 + %s5156_s15]]   ;;  %s5160_s15 = smov 19  }
  0x18   :  { %s5271_s27 = sld [smem:[%s6724_s0 + %s5157_s22]]   ;;  %s5161_s22 = smov 20  }
  0x19   :  { %s5276_s4 = sld [smem:[%s6724_s0 + %s5158_s28]]   ;;  %s5162_s28 = smov 21  }
  0x1a   :  { %6790 = sst [smem:[#allocation12_spill]] %s5256_s6 }
  0x1b   :  { %s5281_s24 = sld [smem:[%s6724_s0 + %s5159_s7]]   ;;  %s5163_s7 = smov 22  }
  0x1c   :  { %6791 = sst [smem:[#allocation13_spill]] %s5261_s12 }
  0x1d   :  { %6792 = sst [smem:[#allocation14_spill]] %s5266_s20 }
  0x1e   :  { %6793 = sst [smem:[#allocation15_spill]] %s5271_s27 }
  0x1f   :  { %6794 = sst [smem:[#allocation16_spill]] %s5276_s4 }
  0x20   :  { %s5286_s20 = sld [smem:[%s6724_s0 + %s5160_s15]]   ;;  %s5164_s15 = smov 23  }
  0x21   :  { %6795 = sst [smem:[#allocation17_spill]] %s5281_s24 }
  0x22   :  { %s5291_s27 = sld [smem:[%s6724_s0 + %s5161_s22]]   ;;  %s5165_s22 = smov 24  }
  0x23   :  { %s5296_s4 = sld [smem:[%s6724_s0 + %s5162_s28]]   ;;  %s5166_s28 = smov 25  }
  0x24   :  { %s5301_s24 = sld [smem:[%s6724_s0 + %s5163_s7]]   ;;  %s5167_s7 = smov 26  }
  0x26   :  { %6796 = sst [smem:[#allocation18_spill]] %s5286_s20 }
  0x27   :  { %s5306_s20 = sld [smem:[%s6724_s0 + %s5164_s15]]   ;;  %s5168_s15 = smov 27  }
  0x28   :  { %6797 = sst [smem:[#allocation19_spill]] %s5291_s27 }
  0x29   :  { %6798 = sst [smem:[#allocation20_spill]] %s5296_s4 }
  0x2a   :  { %6799 = sst [smem:[#allocation21_spill]] %s5301_s24 }
  0x2b   :  { %s5311_s27 = sld [smem:[%s6724_s0 + %s5165_s22]]   ;;  %s5169_s22 = smov 28  }
  0x2c   :  { %s5316_s4 = sld [smem:[%s6724_s0 + %s5166_s28]]   ;;  %s5170_s28 = smov 29  }
  0x2d   :  { %s5321_s24 = sld [smem:[%s6724_s0 + %s5167_s7]]  }
  0x2e   :  { %s5326_s12 = sld [smem:[%s6724_s0 + %s5168_s15]]  }
  0x2f   :  { %s5336_s6 = sld [smem:[%s6724_s0 + %s5170_s28]]  }
  0x31   :  { %6800 = sst [smem:[#allocation22_spill]] %s5311_s27 }
  0x32   :  { %6801 = sst [smem:[#allocation23_spill]] %s5316_s4 }
  0x33   :  { %s5331_s27 = sld [smem:[%s6724_s0 + %s5169_s22]]  }
  0x34   :  { %64 = vsyncpa [#allocation3], 0 }
  0x35   :  { %66 = vsyncpa [#allocation3 + $0x1], 0  ;;  %s5338_s7 = smov 0   ;;  %s5340_s10 = smov 0  }
  0x36   :  { %s5342_s11 = smov 0   ;;  %s5344_s15 = smov 0  }
  0x37 LB: > { %s6802_s14 = sld [smem:[#allocation10_spill]]  ;;  %s5359_s0 = sadd.s32 4294967295, %s5140_s15   ;;  %s5140_s15 = sphi %s5344_s15, %s6874_s15   ;;  %s5136_s11 = sphi %s5342_s11, %s6873_s11   ;;  %s5132_s10 = sphi %s5340_s10, %s6872_s10   ;;  %s5128_s7 = sphi %s5338_s7, %s6871_s7  }
  0x38   : > { %s6803_s8 = sld [smem:[#allocation9_spill]]  ;;  %s4554_s16 = sadd.s32 4294967294, %s5140_s15  }
  0x39   : > { %s6804_s3 = sld [smem:[#allocation8_spill]]  ;;  %s5363_s18 = sadd.s32 1, %s5140_s15  }
  0x3a   : > { %s6805_s4 = sld [smem:[#allocation23_spill]]  ;;  %s703_s22 = sadd.s32 1, %s5136_s11 }
  0x3b   : > { %s700_s23 = ssub.s32 %s5140_s15, %s5363_s18  ;;  %p713_p0 = scmp.ne.s32.totalorder %s5136_s11, %s5132_s10 }
  0x3c   : > { %p701_p1 = scmp.eq.s32.totalorder %s700_s23, 0  ;;  %p714_p2 = scmp.eq.s32.totalorder %s5359_s0, 1 }
  0x3d   : > { %p719_p3 = scmp.ne.s32.totalorder %s5132_s10, %s5128_s7  ;;  %p720_p4 = scmp.eq.s32.totalorder %s4554_s16, 1 }
  0x3e   : > { %s5374_s26 = scalar_select %p701_p1, %s5136_s11, %s703_s22  }
  0x3f   : > { %p5376_p5 = por %p714_p2, %p713_p0  ;;  %p5380_p6 = por %p720_p4, %p719_p3 }
  0x40   : > { %p4557_p7 = scmp.ge.s32.totalorder %s5140_s15, 1  ;;  %p840_p8 = scmp.lt.s32.totalorder %s5140_s15, 3 }
  0x42   : > { %p841_p9 = pnand %p4557_p7, %p840_p8 }
  0x44   : > { %844 = sbr.rel (%p841_p9) target bundleno = 4108 (0x100c), region = 136 }
  0x49   : > { %s6808_s5 = sld [smem:[#allocation5_spill]]  ;;  %p926_p10 = scmp.lt.s32.totalorder %s5359_s0, 1  ;;  %v978_v0 = vld [vmem:[%s5306_s20] sm:$0xff]  ;;  %vm986_vm0 = vcmask 261120   ;;  %v979_v31 = vld [vmem:[%s5306_s20 + $0x8] sm:$0xff]  ;;  %v980_v32 = vld [vmem:[%s5306_s20 + $0x10] sm:$0xff] }
  0x4a   : > { %s6809_s13 = sld [smem:[#allocation7_spill]]  ;;  %4740 = vmatprep.mubr.msk.f32.mxu0 %vm986_vm0, %v978_v0  ;;  %v981_v33 = vld [vmem:[%s5306_s20 + $0x18] sm:$0xff]  ;;  %v1189_v34 = vld [vmem:[%s5211_s21] sm:$0xff]  ;;  %vm1201_vm1 = vcmask 130048   ;;  %v6752_v35 = vmov 0   ;;  %v1190_v38 = vld [vmem:[%s5211_s21 + $0x8] sm:$0xff] }
  0x4b   : > { %s5390_s2 = scalar_select %p926_p10, %s5359_s0, 1  ;;  %4908 = vset.pattern.permute.xlu1 %v6752_v35  ;;  %4909 = vset.pattern.permute.xlu0 %v6752_v35  ;;  %v1084_v45 = vld [vmem:[%s6805_s4] sm:$0xff]  ;;  %v1085_v46 = vld [vmem:[%s6805_s4 + $0x8] sm:$0xff]  ;;  %v1086_v47 = vld [vmem:[%s6805_s4 + $0x10] sm:$0xff]  ;;  %vm2129_vm10 = vcmask 1043456   ;;  %vm2116_vm11 = vcmask 195584  }
  0x4c   : > { %4754 = vmatprep.mubr.msk.f32.mxu1 %vm986_vm0, %v1084_v45  ;;  %v1087_v60 = vld [vmem:[%s6805_s4 + $0x18] sm:$0xff]  ;;  %v1191_v63 = vld [vmem:[%s5216_s25] sm:$0xff]  ;;  %v1192_v0 = vld [vmem:[%s5216_s25 + $0x8] sm:$0xff]  ;;  %s6742_s4 = smov 127   ;;  %s6814_s9 = sld [smem:[#allocation6_spill]]  ;;  %vm2843_vm12 = vcmask 64512  }
  0x4d   : > { %s4677_s16 = sshll.u32 %s5390_s2, 5  ;;  %vm3090_vm13 = vcmask 523264  }
  0x4f   : > { %s5394_s22 = scalar_lea.vmem %s6808_s5, %s4677_s16  ;;  %s6834_s5 = smov 17  }
  0x50   : > { %s940_s23 = scalar_lea.vmem %s6809_s13, %s4677_s16  ;;  %v5398_v1 = vld [vmem:[%s5394_s22 + $0x10] sm:$0xff]  ;;  %v5401_v2 = vld [vmem:[%s5394_s22 + $0x18] sm:$0xff]  ;;  %v5404_v3 = vld [vmem:[%s5394_s22] sm:$0xff]  ;;  %s6738_s16 = smov 112  }
  0x51   : > { %v1198_v4 = vadd.f32 %v5401_v2, %v5398_v1  ;;  %v5409_v5 = vld [vmem:[%s5394_s22 + $0x8] sm:$0xff]  ;;  %v949_v6 = vld [vmem:[%s940_s23 + $0x18] sm:$0xff]  ;;  %v948_v7 = vld [vmem:[%s940_s23 + $0x10] sm:$0xff]  ;;  %s6837_s13 = smov 111  }
  0x52   : > { %v4567_v8 = vmul.f32 -1.442695, %v949_v6  ;;  %v4566_v9 = vmul.f32 -1.442695, %v948_v7  ;;  %v947_v10 = vld [vmem:[%s940_s23 + $0x8] sm:$0xff]  ;;  %v946_v11 = vld [vmem:[%s940_s23] sm:$0xff]  ;;  %v1195_v12 = vadd.f32 %v5409_v5, %v5404_v3 }
  0x53   : > { %1199 = vadd.xlane.f32.xlu0 %v1198_v4  ;;  %v4565_v13 = vmul.f32 -1.442695, %v947_v10  ;;  %v4564_v14 = vmul.f32 -1.442695, %v946_v11  ;;  %s6740_s23 = smov 113  }
  0x54   : > { %4944 = vpow2.f32 %v4567_v8 }
  0x55   : > { %4946 = vpow2.f32 %v4566_v9 }
  0x56   : > { %4948 = vpow2.f32 %v4565_v13 }
  0x57   : > { %1196 = vadd.xlane.f32.xlu0 %v1195_v12  ;;  %4950 = vpow2.f32 %v4564_v14  ;;  %v1194_v12 = vld [vmem:[%s5221_s29 + $0x8] sm:$0xff] }
  0x61   : > { %v4945_v15 = vpop.eup %4944 }
  0x62   : > { %v4947_v16 = vpop.eup %4946  ;;  %v965_v17 = vadd.f32 1.0, %v4945_v15 }
  0x63   : > { %v4949_v18 = vpop.eup %4948  ;;  %v964_v19 = vadd.f32 1.0, %v4947_v16 }
  0x64   : > { %v4951_v20 = vpop.eup %4950  ;;  %4952 = vrcp.f32 %v965_v17  ;;  %v963_v21 = vadd.f32 1.0, %v4949_v18 }
  0x65   : > { %4954 = vrcp.f32 %v964_v19  ;;  %v962_v22 = vadd.f32 1.0, %v4951_v20 }
  0x66   : > { %4956 = vrcp.f32 %v963_v21 }
  0x67   : > { %4958 = vrcp.f32 %v962_v22 }
  0x71   : > { %v4953_v23 = vpop.eup %4952 }
  0x72   : > { %v4955_v24 = vpop.eup %4954  ;;  %v977_v25 = vmul.f32 %v4953_v23, %v949_v6 }
  0x73   : > { %v4957_v26 = vpop.eup %4956  ;;  %v976_v27 = vmul.f32 %v4955_v24, %v948_v7 }
  0x74   : > { %v4959_v28 = vpop.eup %4958  ;;  %4732 = vmatprep.subr.mxu0 %v977_v25  ;;  %v975_v29 = vmul.f32 %v4957_v26, %v947_v10  ;;  %4746 = vmatprep.subr.mxu1 %v977_v25 }
  0x75   : > { %4733 = vmatpush3.msra.mxu0 %v977_v25  ;;  %4747 = vmatpush3.msra.mxu1 %v977_v25  ;;  %v974_v30 = vmul.f32 %v4959_v28, %v946_v11  ;;  %v1193_v11 = vld [vmem:[%s5221_s29] sm:$0xff] }
  0x76   : > { %4734 = vmatprep.subr.mxu0 %v976_v27  ;;  %4748 = vmatprep.subr.mxu1 %v976_v27 }
  0x77   : > { %4735 = vmatpush3.msra.mxu0 %v976_v27  ;;  %4749 = vmatpush3.msra.mxu1 %v976_v27 }
  0x78   : > { %4736 = vmatprep.subr.mxu0 %v975_v29  ;;  %4750 = vmatprep.subr.mxu1 %v975_v29 }
  0x79   : > { %4737 = vmatpush3.msra.mxu0 %v975_v29  ;;  %4751 = vmatpush3.msra.mxu1 %v975_v29 }
  0x7a   : > { %4738 = vmatprep.subr.mxu0 %v974_v30  ;;  %4752 = vmatprep.subr.mxu1 %v974_v30 }
  0x7b   : > { %4739 = vmatpush3.msra.mxu0 %v974_v30  ;;  %4753 = vmatpush3.msra.mxu1 %v974_v30 }
  0x7c   : > { %4741 = vmatmul.mubr.msk.f32.vlgmr.msra.gmra.mxu0 %vm986_vm0, %v979_v31  ;;  %4755 = vmatmul.mubr.msk.f32.vlgmr.msra.gmra.mxu1 %vm986_vm0, %v1085_v46 }
  0x7d   : > { %4743 = vmatprep.mubr.msk.f32.mxu0 %vm986_vm0, %v980_v32  ;;  %4757 = vmatprep.mubr.msk.f32.mxu1 %vm986_vm0, %v1086_v47 }
  0x80   : > { %4744 = vmatmul.mubr.msk.f32.gmra.mxu0 %vm986_vm0, %v981_v33  ;;  %4758 = vmatmul.mubr.msk.f32.gmra.mxu1 %vm986_vm0, %v1087_v60  ;;  %v1459_v60 = vld [vmem:[%s6803_s8 + $0x8] sm:$0xff] }
  0x81   : > { %4764 = vmatprep.mubr.msk.f32.mxu0 %vm1201_vm1, %v1189_v34  ;;  %4771 = vmatprep.mubr.msk.f32.mxu1 %vm1201_vm1, %v1189_v34 }
  0xdc   : > { %v1200_v36 = vpop.xlane.xlu0 %1199 }
  0xdd   : > { %4760 = vmatprep.subr.mxu0 %v1200_v36 }
  0xde   : > { %4761 = vmatpush3.msra.mxu0 %v1200_v36 }
  0xe0   : > { %v1197_v37 = vpop.xlane.xlu0 %1196 }
  0xe1   : > { %4762 = vmatprep.subr.mxu0 %v1197_v37 }
  0xe2   : > { %4763 = vmatpush3.msra.mxu0 %v1197_v37 }
  0xe3   : > { %4765 = vmatmul.mubr.msk.f32.vlgmr.msra.gmra.mxu0 %vm1201_vm1, %v1190_v38 }
 0x13c   : > { %v5425_v39 = vpop.f32.mrf.mxu0 }
 0x13e   : > { %v5427_v40 = vpop.f32.mrf.mxu0 }
 0x140   : > { %v5429_v41 = vpop.f32.mrf.mxu0 }
 0x142   : > { %v5431_v42 = vpop.f32.mrf.mxu0 }
 0x1a3   : > { %v4766_v43 = vpop.f32.mrf.mxu0 }
 0x1a4   : > { %1290 = vperm.xlu1 %4908, %v4766_v43  }
 0x1a5   : > { %v1274_v44 = vpop.f32.mrf.mxu0 }
 0x1a8   : > { %1285 = vperm.xlu1 %4908, %v1274_v44  }
 0x21f   : > { %v1291_v48 = vpop.permute.xlu1 %1290 }
 0x220   : > { %v1295_v49 = vsub.f32 %v5398_v1, %v1291_v48  ;;  %v1296_v50 = vsub.f32 %v5401_v2, %v1291_v48  ;;  %v5450_v1 = vpop.f32.mrf.mxu1 }
 0x222   : > { %v1299_v51 = vmul.f32 %v1295_v49, %v1295_v49  ;;  %v1300_v52 = vmul.f32 %v1296_v50, %v1296_v50  ;;  %v5452_v2 = vpop.f32.mrf.mxu1 }
 0x223   : > { %v1286_v53 = vpop.permute.xlu1 %1285  ;;  %6810 = vst [vmem:[#allocation24_spill] sm:$0xff] %v5452_v2 }
 0x224   : > { %v1293_v54 = vsub.f32 %v5404_v3, %v1286_v53  ;;  %v1294_v55 = vsub.f32 %v5409_v5, %v1286_v53  ;;  %v1304_v56 = vadd.f32 %v1300_v52, %v1299_v51  ;;  %v5454_v3 = vpop.f32.mrf.mxu1 }
 0x226   : > { %1305 = vadd.xlane.f32.xlu0 %v1304_v56  ;;  %v1297_v57 = vmul.f32 %v1293_v54, %v1293_v54  ;;  %v1298_v58 = vmul.f32 %v1294_v55, %v1294_v55  ;;  %v5456_v4 = vpop.f32.mrf.mxu1 }
 0x228   : > { %v1301_v59 = vadd.f32 %v1298_v58, %v1297_v57  ;;  %v4914_v58 = vld [vmem:[%s6804_s3 + $0x4] ss:$8 sps:$4 sm:$0xff]  }
 0x229   : > { %4595 = vmatprep.mubr.msk.bf16.mxu0 %vm1201_vm1, %v4914_v58 }
 0x22a   : > { %1302 = vadd.xlane.f32.xlu1 %v1301_v59  ;;  %v1458_v59 = vld [vmem:[%s6803_s8] sm:$0xff] }
 0x23c   : > { %1400 = vperm.xlu0 %4909, %v1191_v63   ;;  %v1820_v63 = vld [vmem:[%s6802_s14 + $0x10] sm:$0xff] }
 0x240   : > { %1405 = vperm.xlu0 %4909, %v1192_v0   ;;  %v1821_v0 = vld [vmem:[%s6802_s14 + $0x18] sm:$0xff] }
 0x2af   : > { %v1306_v61 = vpop.xlane.xlu0 %1305 }
 0x2b0   : > { %4767 = vmatprep.subr.mxu1 %v1306_v61 }
 0x2b1   : > { %4768 = vmatpush3.msra.mxu1 %v1306_v61  ;;  %v1460_v61 = vld [vmem:[%s6803_s8 + $0x10] sm:$0xff] }
 0x2b3   : > { %v1303_v62 = vpop.xlane.xlu1 %1302 }
 0x2b4   : > { %4769 = vmatprep.subr.mxu1 %v1303_v62 }
 0x2b5   : > { %4770 = vmatpush3.msra.mxu1 %v1303_v62  ;;  %v1461_v62 = vld [vmem:[%s6803_s8 + $0x18] sm:$0xff]  ;;  %s6835_s8 = smov 112  }
 0x2b6   : > { %4772 = vmatmul.mubr.msk.f32.vlgmr.msra.gmra.mxu1 %vm1201_vm1, %v1190_v38 }
 0x2b7   : > { %2031 = vmatprep.mubr.bf16.mxu1 %v6752_v35  ;;  %v1401_v13 = vpop.permute.xlu0 %1400 }
 0x2bb   : > { %v1406_v14 = vpop.permute.xlu0 %1405 }
 0x376   : > { %v4773_v5 = vpop.f32.mrf.mxu1 }
 0x377   : > { %v1379_v6 = vadd.f32 1e-05, %v4773_v5  ;;  %v1824_v5 = vld [vmem:[%s5241_s19 + $0x10] sm:$0xff] }
 0x378   : > { %v1373_v7 = vpop.f32.mrf.mxu1 }
 0x379   : > { %4960 = vrsqrt.f32 %v1379_v6  ;;  %v1374_v8 = vadd.f32 1e-05, %v1373_v7  ;;  %v1825_v6 = vld [vmem:[%s5241_s19 + $0x18] sm:$0xff]  ;;  %v1818_v7 = vld [vmem:[%s6802_s14] sm:$0xff] }
 0x37b   : > { %4962 = vrsqrt.f32 %v1374_v8  ;;  %v1819_v8 = vld [vmem:[%s6802_s14 + $0x8] sm:$0xff]  ;;  %s6838_s14 = smov 127  }
 0x386   : > { %v4961_v9 = vpop.eup %4960 }
 0x387   : > { %1391 = vperm.xlu1 %4908, %v4961_v9   ;;  %v1822_v9 = vld [vmem:[%s5241_s19] sm:$0xff] }
 0x388   : > { %v4963_v10 = vpop.eup %4962 }
 0x389   : > { %1386 = vperm.xlu0 %4909, %v4963_v10   ;;  %v1823_v10 = vld [vmem:[%s5241_s19 + $0x8] sm:$0xff] }
 0x38b   : > { %1414 = vperm.xlu1 %4908, %v1193_v11   ;;  %v1470_v11 = vlaneseq }
 0x38d   : > { %1419 = vperm.xlu0 %4909, %v1194_v12   ;;  %v1480_v12 = vshrl.u32 %v1470_v11, 7 }
 0x402   : > { %v1392_v15 = vpop.permute.xlu1 %1391 }
 0x403   : > { %v1396_v16 = vmul.f32 %v1392_v15, %v1295_v49  ;;  %v1397_v17 = vmul.f32 %v1392_v15, %v1296_v50  ;;  %v5554_v15 = vsub.s32 1, %v1480_v12 }
 0x404   : > { %v1387_v18 = vpop.permute.xlu0 %1386 }
 0x405   : > { %v1394_v19 = vmul.f32 %v1387_v18, %v1293_v54  ;;  %v1395_v20 = vmul.f32 %v1387_v18, %v1294_v55  ;;  %v1410_v23 = vmul.f32 %v1406_v14, %v1396_v16  ;;  %v1411_v24 = vmul.f32 %v1406_v14, %v1397_v17  ;;  %6813 = vst [vmem:[#allocation27_spill] sm:$0xff] %v5554_v15  ;;  %v4589_v16 = vld [vmem:[%s5206_s17 + $0x7] ss:$8 sm:$0x3] }
 0x406   : > { %v1415_v25 = vpop.permute.xlu1 %1414  ;;  %v5552_v14 = vsub.s32 0, %v1480_v12 }
 0x407   : > { %v1408_v21 = vmul.f32 %v1401_v13, %v1394_v19  ;;  %v1409_v22 = vmul.f32 %v1401_v13, %v1395_v20  ;;  %v5550_v13 = vand.u32 127, %v1470_v11  ;;  %v1666_v20 = vrot.slane %v4589_v16, %v5554_v15 }
 0x408   : > { %v1420_v26 = vpop.permute.xlu0 %1419  ;;  %6812 = vst [vmem:[#allocation26_spill] sm:$0xff] %v5552_v14  ;;  %v1662_v19 = vrot.slane %v4589_v16, %v5552_v14 }
 0x409   : > { %v1422_v27 = vadd.f32 %v1415_v25, %v1408_v21  ;;  %v1423_v28 = vadd.f32 %v1415_v25, %v1409_v22  ;;  %v1424_v29 = vadd.f32 %v1420_v26, %v1410_v23  ;;  %v1425_v30 = vadd.f32 %v1420_v26, %v1411_v24  ;;  %6811 = vst [vmem:[#allocation25_spill] sm:$0xff] %v5550_v13 }
 0x40a   : > { %vm1651_vm2 = vcmp.lt.s32.totalorder %v5550_v13, 112  ;;  %vm1621_vm3 = vcmp.lt.s32.totalorder %v5550_v13, 113  ;;  %vm1591_vm4 = vcmp.lt.s32.totalorder %v5550_v13, 127  ;;  %vm1561_vm5 = vcmp.lt.s32.totalorder %v5550_v13, 1 }
 0x40b   : > { %v4580_v31 = vmul.f32 -1.442695, %v1422_v27  ;;  %v4581_v32 = vmul.f32 -1.442695, %v1423_v28  ;;  %v4582_v33 = vmul.f32 -1.442695, %v1424_v29 }
 0x40c   : > { %v4583_v34 = vmul.f32 -1.442695, %v1425_v30  ;;  %vm1531_vm6 = vcmp.lt.s32.totalorder %v5550_v13, 15  ;;  %vm1501_vm7 = vcmp.lt.s32.totalorder %v5550_v13, 16  ;;  %vm1472_vm8 = vcmp.lt.s32.totalorder %v5550_v13, 17 }
 0x40d   : > { %4964 = vpow2.f32 %v4580_v31  ;;  %vm1681_vm9 = vcmp.lt.s32.totalorder %v5550_v13, 111 }
 0x40e   : > { %4966 = vpow2.f32 %v4581_v32 }
 0x40f   : > { %4968 = vpow2.f32 %v4582_v33 }
 0x410   : > { %4970 = vpow2.f32 %v4583_v34 }
 0x41a   : > { %v4965_v36 = vpop.eup %4964 }
 0x41b   : > { %v4967_v37 = vpop.eup %4966  ;;  %v1438_v38 = vadd.f32 1.0, %v4965_v36 }
 0x41c   : > { %v4969_v43 = vpop.eup %4968  ;;  %v1439_v44 = vadd.f32 1.0, %v4967_v37 }
 0x41d   : > { %v4971_v45 = vpop.eup %4970  ;;  %4972 = vrcp.f32 %v1438_v38  ;;  %v1440_v46 = vadd.f32 1.0, %v4969_v43 }
 0x41e   : > { %4974 = vrcp.f32 %v1439_v44  ;;  %v1441_v47 = vadd.f32 1.0, %v4971_v45 }
 0x41f   : > { %4976 = vrcp.f32 %v1440_v46 }
 0x420   : > { %4978 = vrcp.f32 %v1441_v47 }
 0x42a   : > { %v4973_v48 = vpop.eup %4972 }
 0x42b   : > { %v4975_v49 = vpop.eup %4974  ;;  %v5460_v50 = vmul.f32 %v4973_v48, %v1422_v27 }
 0x42c   : > { %v4977_v51 = vpop.eup %4976  ;;  %v5462_v52 = vmul.f32 %v4975_v49, %v1423_v28 }
 0x42d   : > { %v4979_v53 = vpop.eup %4978  ;;  %v5464_v54 = vmul.f32 %v4977_v51, %v1424_v29  ;;  %1643 = vrot.lane.b32.xlu1 %v5460_v50, %s6738_s16  ;;  %v4588_v29 = vld [vmem:[%s5206_s17 + $0x6] ss:$8 sm:$0x3] }
 0x42e   : > { %v5468_v55 = vmul.f32 %v4979_v53, %v1425_v30  ;;  %v1632_v37 = vrot.slane %v4588_v29, %v5552_v14  ;;  %v1636_v38 = vrot.slane %v4588_v29, %v5554_v15  ;;  %v4587_v53 = vld [vmem:[%s5206_s17 + $0x5] ss:$8 sm:$0x3] }
 0x42f   : > { %1645 = vrot.lane.b32.xlu0 %v5464_v54, %s6738_s16  ;;  %v1711_v56 = vpack.c.bf16 %v5464_v54, %v5460_v50 }
 0x430   : > { %v1712_v57 = vpack.c.bf16 %v5468_v55, %v5462_v52 }
 0x431   : > { %1647 = vrot.lane.b32.xlu1 %v5462_v52, %s6738_s16 }
 0x433   : > { %1649 = vrot.lane.b32.xlu0 %v5468_v55, %s6738_s16  ;;  %s6744_s16 = smov 1  }
 0x435   : > { %1613 = vrot.lane.b32.xlu1 %v5460_v50, %s6740_s23 }
 0x437   : > { %1615 = vrot.lane.b32.xlu0 %v5464_v54, %s6740_s23 }
 0x439   : > { %1617 = vrot.lane.b32.xlu1 %v5462_v52, %s6740_s23 }
 0x43b   : > { %1619 = vrot.lane.b32.xlu0 %v5468_v55, %s6740_s23  ;;  %s6746_s23 = smov 15  }
 0x43d   : > { %1583 = vrot.lane.b32.xlu1 %v5460_v50, %s6742_s4 }
 0x43f   : > { %1585 = vrot.lane.b32.xlu0 %v5464_v54, %s6742_s4 }
 0x441   : > { %1587 = vrot.lane.b32.xlu1 %v5462_v52, %s6742_s4 }
 0x443   : > { %1589 = vrot.lane.b32.xlu0 %v5468_v55, %s6742_s4  ;;  %s6760_s4 = smov 16  }
 0x445   : > { %1553 = vrot.lane.b32.xlu1 %v5460_v50, %s6744_s16 }
 0x447   : > { %1555 = vrot.lane.b32.xlu0 %v5464_v54, %s6744_s16 }
 0x449   : > { %1557 = vrot.lane.b32.xlu1 %v5462_v52, %s6744_s16 }
 0x44b   : > { %1559 = vrot.lane.b32.xlu0 %v5468_v55, %s6744_s16  ;;  %s6750_s16 = smov 17  }
 0x44d   : > { %1523 = vrot.lane.b32.xlu1 %v5460_v50, %s6746_s23 }
 0x44f   : > { %1525 = vrot.lane.b32.xlu0 %v5464_v54, %s6746_s23 }
 0x451   : > { %1527 = vrot.lane.b32.xlu1 %v5462_v52, %s6746_s23 }
 0x453   : > { %1529 = vrot.lane.b32.xlu0 %v5468_v55, %s6746_s23  ;;  %s6748_s23 = smov 111  }
 0x455   : > { %1493 = vrot.lane.b32.xlu1 %v5460_v50, %s6760_s4 }
 0x457   : > { %1495 = vrot.lane.b32.xlu0 %v5464_v54, %s6760_s4 }
 0x459   : > { %1497 = vrot.lane.b32.xlu1 %v5462_v52, %s6760_s4 }
 0x45b   : > { %1499 = vrot.lane.b32.xlu0 %v5468_v55, %s6760_s4  ;;  %s6819_s4 = sld [smem:[#allocation15_spill]] }
 0x45d   : > { %1462 = vrot.lane.b32.xlu1 %v5460_v50, %s6750_s16 }
 0x45f   : > { %1464 = vrot.lane.b32.xlu0 %v5464_v54, %s6750_s16 }
 0x461   : > { %1466 = vrot.lane.b32.xlu1 %v5462_v52, %s6750_s16 }
 0x463   : > { %1468 = vrot.lane.b32.xlu0 %v5468_v55, %s6750_s16 }
 0x465   : > { %1673 = vrot.lane.b32.xlu1 %v5460_v50, %s6748_s23 }
 0x467   : > { %1675 = vrot.lane.b32.xlu0 %v5464_v54, %s6748_s23 }
 0x469   : > { %1677 = vrot.lane.b32.xlu1 %v5462_v52, %s6748_s23 }
 0x46b   : > { %1679 = vrot.lane.b32.xlu0 %v5468_v55, %s6748_s23  ;;  %s4828_s23 = smul.u32 24, %s5390_s2  ;;  %s6815_s2 = sld [smem:[#allocation12_spill]] }
 0x46d   : > { %1723 = vperm.xlu1 %4908, %v1458_v59   ;;  %s935_s16 = scalar_lea.vmem %s6814_s9, %s4828_s23  ;;  %s6817_s23 = sld [smem:[#allocation11_spill]] }
 0x46e   : > { %s6836_s9 = smov 113  }
 0x46f   : > { %1728 = vperm.xlu0 %4909, %v1459_v60  }
 0x471   : > { %1733 = vperm.xlu1 %4908, %v1460_v61  }
 0x473   : > { %1738 = vperm.xlu0 %4909, %v1461_v62  }
 0x475   : > { %1906 = vperm.xlu1 %4908, %v1820_v63  }
 0x477   : > { %1911 = vperm.xlu0 %4909, %v1821_v0   ;;  %v1602_v0 = vrot.slane %v4587_v53, %v5552_v14 }
 0x479   : > { %1934 = vperm.xlu1 %4908, %v1824_v5   ;;  %v1606_v5 = vrot.slane %v4587_v53, %v5554_v15 }
 0x47b   : > { %1939 = vperm.xlu0 %4909, %v1825_v6  }
 0x47d   : > { %1896 = vperm.xlu1 %4908, %v1818_v7  }
 0x47f   : > { %1901 = vperm.xlu0 %4909, %v1819_v8  }
 0x481   : > { %1924 = vperm.xlu1 %4908, %v1822_v9  }
 0x483   : > { %1929 = vperm.xlu0 %4909, %v1823_v10  }
 0x49f   : > { %v1644_v17 = vpop.permute.xlu1 %1643 }
 0x4a1   : > { %v1646_v18 = vpop.permute.xlu0 %1645 }
 0x4a3   : > { %v1648_v21 = vpop.permute.xlu1 %1647 }
 0x4a4   : > { %v1652_v22 = vsel %vm1651_vm2, %v1644_v17, %v1648_v21  ;;  %v1654_v23 = vsel %vm1651_vm2, %v1648_v21, %v1644_v17  ;;  %v4586_v17 = vld [vmem:[%s5206_s17 + $0x3] ss:$8 sm:$0x3] }
 0x4a5   : > { %v1669_v24 = vmul.f32 %v1662_v19, %v1652_v22  ;;  %v1670_v25 = vmul.f32 %v1666_v20, %v1654_v23  ;;  %v1650_v26 = vpop.permute.xlu0 %1649 }
 0x4a6   : > { %v1653_v27 = vsel %vm1651_vm2, %v1646_v18, %v1650_v26  ;;  %v1655_v28 = vsel %vm1651_vm2, %v1650_v26, %v1646_v18 }
 0x4a7   : > { %v1671_v30 = vmul.f32 %v1662_v19, %v1653_v27  ;;  %v1672_v31 = vmul.f32 %v1666_v20, %v1655_v28  ;;  %v1614_v32 = vpop.permute.xlu1 %1613 }
 0x4a9   : > { %v1717_v33 = vpack.c.bf16 %v1671_v30, %v1669_v24  ;;  %v1616_v34 = vpop.permute.xlu0 %1615  ;;  %v1718_v36 = vpack.c.bf16 %v1672_v31, %v1670_v25  ;;  %v1572_v24 = vrot.slane %v4586_v17, %v5552_v14  ;;  %v1576_v25 = vrot.slane %v4586_v17, %v5554_v15 }
 0x4ab   : > { %1765 = vmatprep.subr.bf16.mxu0 %v1718_v36  ;;  %v1618_v43 = vpop.permute.xlu1 %1617 }
 0x4ac   : > { %1766 = vmatpush1.bf16.msra.mxu0 %v1717_v33  ;;  %v1622_v44 = vsel %vm1621_vm3, %v1614_v32, %v1618_v43  ;;  %v1624_v45 = vsel %vm1621_vm3, %v1618_v43, %v1614_v32 }
 0x4ad   : > { %v1639_v46 = vmul.f32 %v1632_v37, %v1622_v44  ;;  %v1640_v47 = vmul.f32 %v1636_v38, %v1624_v45  ;;  %v1620_v48 = vpop.permute.xlu0 %1619 }
 0x4ae   : > { %v1623_v49 = vsel %vm1621_vm3, %v1616_v34, %v1620_v48  ;;  %v1625_v51 = vsel %vm1621_vm3, %v1620_v48, %v1616_v34  ;;  %v4585_v34 = vld [vmem:[%s5206_s17 + $0x2] ss:$8 sm:$0x3] }
 0x4af   : > { %v1641_v58 = vmul.f32 %v1632_v37, %v1623_v49  ;;  %v1642_v59 = vmul.f32 %v1636_v38, %v1625_v51  ;;  %v1584_v60 = vpop.permute.xlu1 %1583  ;;  %v1542_v43 = vrot.slane %v4585_v34, %v5552_v14  ;;  %v1546_v44 = vrot.slane %v4585_v34, %v5554_v15  ;;  %v4584_v51 = vld [vmem:[%s5206_s17 + $0x1] ss:$8 sm:$0x3] }
 0x4b1   : > { %v1715_v61 = vpack.c.bf16 %v1641_v58, %v1639_v46  ;;  %v1586_v62 = vpop.permute.xlu0 %1585  ;;  %v1716_v63 = vpack.c.bf16 %v1642_v59, %v1640_v47 }
 0x4b3   : > { %1767 = vmatprep.subr.bf16.mxu0 %v1716_v63  ;;  %v1588_v6 = vpop.permute.xlu1 %1587  ;;  %v1512_v63 = vrot.slane %v4584_v51, %v5552_v14 }
 0x4b4   : > { %1768 = vmatpush1.bf16.msra.mxu0 %v1715_v61  ;;  %v1592_v7 = vsel %vm1591_vm4, %v1584_v60, %v1588_v6  ;;  %v1594_v8 = vsel %vm1591_vm4, %v1588_v6, %v1584_v60 }
 0x4b5   : > { %v1609_v9 = vmul.f32 %v1602_v0, %v1592_v7  ;;  %v1610_v10 = vmul.f32 %v1606_v5, %v1594_v8  ;;  %v1590_v11 = vpop.permute.xlu0 %1589 }
 0x4b6   : > { %v1593_v12 = vsel %vm1591_vm4, %v1586_v62, %v1590_v11  ;;  %v1595_v16 = vsel %vm1591_vm4, %v1590_v11, %v1586_v62 }
 0x4b7   : > { %v1611_v18 = vmul.f32 %v1602_v0, %v1593_v12  ;;  %v1612_v19 = vmul.f32 %v1606_v5, %v1595_v16  ;;  %v1554_v20 = vpop.permute.xlu1 %1553  ;;  %v1516_v0 = vrot.slane %v4584_v51, %v5554_v15  ;;  %v1477_v16 = vld [vmem:[%s5206_s17] ss:$8 sm:$0x3] }
 0x4b9   : > { %v1713_v21 = vpack.c.bf16 %v1611_v18, %v1609_v9  ;;  %v1556_v22 = vpop.permute.xlu0 %1555  ;;  %v1714_v23 = vpack.c.bf16 %v1612_v19, %v1610_v10 }
 0x4bb   : > { %1769 = vmatprep.subr.bf16.mxu0 %v1714_v23  ;;  %v1558_v26 = vpop.permute.xlu1 %1557  ;;  %v1482_v23 = vrot.slane %v1477_v16, %v5552_v14 }
 0x4bc   : > { %1770 = vmatpush1.bf16.msra.mxu0 %v1713_v21  ;;  %v1562_v27 = vsel %vm1561_vm5, %v1554_v20, %v1558_v26  ;;  %v1564_v28 = vsel %vm1561_vm5, %v1558_v26, %v1554_v20 }
 0x4bd   : > { %v1579_v29 = vmul.f32 %v1572_v24, %v1564_v28  ;;  %v1580_v30 = vmul.f32 %v1576_v25, %v1562_v27  ;;  %1771 = vmatprep.subr.bf16.mxu0 %v1712_v57  ;;  %v1560_v31 = vpop.permute.xlu0 %1559 }
 0x4be   : > { %v1563_v32 = vsel %vm1561_vm5, %v1556_v22, %v1560_v31  ;;  %v1565_v33 = vsel %vm1561_vm5, %v1560_v31, %v1556_v22 }
 0x4bf   : > { %v1581_v36 = vmul.f32 %v1572_v24, %v1565_v33  ;;  %v1582_v37 = vmul.f32 %v1576_v25, %v1563_v32  ;;  %v1524_v38 = vpop.permute.xlu1 %1523  ;;  %v1486_v24 = vrot.slane %v1477_v16, %v5554_v15  ;;  %v4590_v33 = vld [vmem:[%s5206_s17 + $0x10] ss:$8 sm:$0x3] }
 0x4c0   : > { %1772 = vmatpush1.bf16.msra.mxu0 %v1711_v56 }
 0x4c1   : > { %v1709_v52 = vpack.c.bf16 %v1581_v36, %v1579_v29  ;;  %v1526_v55 = vpop.permute.xlu0 %1525  ;;  %v1710_v57 = vpack.c.bf16 %v1582_v37, %v1580_v30 }
 0x4c3   : > { %1773 = vmatprep.subr.bf16.mxu0 %v1710_v57  ;;  %v1528_v45 = vpop.permute.xlu1 %1527  ;;  %v1692_v57 = vrot.slane %v4590_v33, %v5552_v14 }
 0x4c4   : > { %1774 = vmatpush1.bf16.msra.mxu0 %v1709_v52  ;;  %v1532_v46 = vsel %vm1531_vm6, %v1524_v38, %v1528_v45  ;;  %v1534_v50 = vsel %vm1531_vm6, %v1528_v45, %v1524_v38 }
 0x4c5   : > { %v1549_v54 = vmul.f32 %v1542_v43, %v1534_v50  ;;  %v1550_v56 = vmul.f32 %v1546_v44, %v1532_v46  ;;  %v1530_v47 = vpop.permute.xlu0 %1529 }
 0x4c6   : > { %v1533_v48 = vsel %vm1531_vm6, %v1526_v55, %v1530_v47  ;;  %v1535_v49 = vsel %vm1531_vm6, %v1530_v47, %v1526_v55 }
 0x4c7   : > { %v1551_v53 = vmul.f32 %v1542_v43, %v1535_v49  ;;  %v1552_v58 = vmul.f32 %v1546_v44, %v1533_v48  ;;  %v1494_v59 = vpop.permute.xlu1 %1493  ;;  %v1696_v43 = vrot.slane %v4590_v33, %v5554_v15 }
 0x4c9   : > { %v1707_v60 = vpack.c.bf16 %v1551_v53, %v1549_v54  ;;  %v1496_v61 = vpop.permute.xlu0 %1495  ;;  %v1708_v62 = vpack.c.bf16 %v1552_v58, %v1550_v56 }
 0x4cb   : > { %1775 = vmatprep.subr.bf16.mxu0 %v1708_v62  ;;  %v1498_v5 = vpop.permute.xlu1 %1497 }
 0x4cc   : > { %1776 = vmatpush1.bf16.msra.mxu0 %v1707_v60  ;;  %v1502_v6 = vsel %vm1501_vm7, %v1494_v59, %v1498_v5  ;;  %v1504_v7 = vsel %vm1501_vm7, %v1498_v5, %v1494_v59  ;;  %v4916_v59 = vld [vmem:[%s6804_s3] ss:$8 sps:$4 sm:$0xff]   ;;  %v4917_v60 = vld [vmem:[%s6804_s3 + $0x14] ss:$8 sps:$4 sm:$0xff]  }
 0x4cd   : > { %v1519_v8 = vmul.f32 %v1512_v63, %v1504_v7  ;;  %v1520_v9 = vmul.f32 %v1516_v0, %v1502_v6  ;;  %v1500_v10 = vpop.permute.xlu0 %1499 }
 0x4ce   : > { %v1503_v11 = vsel %vm1501_vm7, %v1496_v61, %v1500_v10  ;;  %v1505_v12 = vsel %vm1501_vm7, %v1500_v10, %v1496_v61  ;;  %v4919_v61 = vld [vmem:[%s6804_s3 + $0x10] ss:$8 sps:$4 sm:$0xff]   ;;  %s6824_s3 = sld [smem:[#allocation19_spill]] }
 0x4cf   : > { %v1521_v17 = vmul.f32 %v1512_v63, %v1505_v12  ;;  %v1522_v18 = vmul.f32 %v1516_v0, %v1503_v11  ;;  %v1463_v19 = vpop.permute.xlu1 %1462 }
 0x4d1   : > { %v1705_v20 = vpack.c.bf16 %v1521_v17, %v1519_v8  ;;  %v1465_v21 = vpop.permute.xlu0 %1464  ;;  %v1706_v22 = vpack.c.bf16 %v1522_v18, %v1520_v9 }
 0x4d3   : > { %1777 = vmatprep.subr.bf16.mxu0 %v1706_v22  ;;  %v1467_v25 = vpop.permute.xlu1 %1466 }
 0x4d4   : > { %1778 = vmatpush1.bf16.msra.mxu0 %v1705_v20  ;;  %v1473_v26 = vsel %vm1472_vm8, %v1463_v19, %v1467_v25  ;;  %v1475_v27 = vsel %vm1472_vm8, %v1467_v25, %v1463_v19 }
 0x4d5   : > { %v1489_v28 = vmul.f32 %v1482_v23, %v1475_v27  ;;  %v1490_v29 = vmul.f32 %v1486_v24, %v1473_v26  ;;  %v1469_v30 = vpop.permute.xlu0 %1468 }
 0x4d6   : > { %v1474_v31 = vsel %vm1472_vm8, %v1465_v21, %v1469_v30  ;;  %v1476_v32 = vsel %vm1472_vm8, %v1469_v30, %v1465_v21 }
 0x4d7   : > { %v1491_v34 = vmul.f32 %v1482_v23, %v1476_v32  ;;  %v1492_v36 = vmul.f32 %v1486_v24, %v1474_v31  ;;  %v1674_v37 = vpop.permute.xlu1 %1673 }
 0x4d9   : > { %v1703_v38 = vpack.c.bf16 %v1491_v34, %v1489_v28  ;;  %v1676_v52 = vpop.permute.xlu0 %1675  ;;  %v1704_v55 = vpack.c.bf16 %v1492_v36, %v1490_v29 }
 0x4db   : > { %1779 = vmatprep.subr.bf16.mxu0 %v1704_v55  ;;  %v1678_v44 = vpop.permute.xlu1 %1677 }
 0x4dc   : > { %1780 = vmatpush1.bf16.msra.mxu0 %v1703_v38  ;;  %v1682_v45 = vsel %vm1681_vm9, %v1674_v37, %v1678_v44  ;;  %v1684_v46 = vsel %vm1681_vm9, %v1678_v44, %v1674_v37 }
 0x4dd   : > { %v1699_v50 = vmul.f32 %v1692_v57, %v1682_v45  ;;  %v1700_v54 = vmul.f32 %v1696_v43, %v1684_v46  ;;  %v1680_v56 = vpop.permute.xlu0 %1679 }
 0x4de   : > { %v1683_v47 = vsel %vm1681_vm9, %v1676_v52, %v1680_v56  ;;  %v1685_v48 = vsel %vm1681_vm9, %v1680_v56, %v1676_v52 }
 0x4df   : > { %v1701_v49 = vmul.f32 %v1692_v57, %v1683_v47  ;;  %v1702_v51 = vmul.f32 %v1696_v43, %v1685_v48 }
 0x4e1   : > { %v1719_v53 = vpack.c.bf16 %v1701_v49, %v1699_v50  ;;  %v1720_v58 = vpack.c.bf16 %v1702_v51, %v1700_v54 }
 0x4e3   : > { %1795 = vmatprep.subr.bf16.mxu0 %v1720_v58 }
 0x4e4   : > { %1796 = vmatpush2.bf16.msra.mxu0 %v1719_v53 }
 0x4e7   : > { %1798 = vmatmul.mubr.bf16.vlgmr.msra.gmra.mxu0 %v4916_v59 }
 0x4e8   : > { %4596 = vmatprep.mubr.msk.bf16.mxu0 %vm1201_vm1, %v4917_v60  ;;  %v1724_v63 = vpop.permute.xlu1 %1723 }
 0x4ea   : > { %v1729_v6 = vpop.permute.xlu0 %1728 }
 0x4ec   : > { %v1734_v9 = vpop.permute.xlu1 %1733 }
 0x4ee   : > { %v1739_v21 = vpop.permute.xlu0 %1738 }
 0x4ef   : > { %1808 = vmatmul.mubr.bf16.gmra.mxu0 %v4919_v61 }
 0x4f0   : > { %2490 = vmatprep.mubr.bf16.mxu0 %v6752_v35 }
 0x5a7   : > { %v1799_v62 = vpop.f32.mrf.mxu0 }
 0x5a8   : > { %v5665_v11 = vadd.f32 %v1799_v62, %v1724_v63 }
 0x5a9   : > { %v1801_v0 = vpop.f32.mrf.mxu0 }
 0x5aa   : > { %v5671_v18 = vadd.f32 %v1801_v0, %v1724_v63 }
 0x5ab   : > { %v1803_v5 = vpop.f32.mrf.mxu0 }
 0x5ac   : > { %v5663_v8 = vadd.f32 %v1803_v5, %v1729_v6 }
 0x5ad   : > { %v1805_v7 = vpop.f32.mrf.mxu0 }
 0x5ae   : > { %v5667_v12 = vadd.f32 %v1805_v7, %v1729_v6  ;;  %v1826_v19 = vadd.f32 %v5663_v8, %v5665_v11 }
 0x5af   : > { %v1809_v10 = vpop.f32.mrf.mxu0 }
 0x5b0   : > { %v5669_v16 = vadd.f32 %v1809_v10, %v1734_v9  ;;  %v1835_v23 = vadd.f32 %v5667_v12, %v5671_v18 }
 0x5b1   : > { %v1811_v17 = vpop.f32.mrf.mxu0 }
 0x5b2   : > { %v5675_v20 = vadd.f32 %v1811_v17, %v1734_v9  ;;  %v1827_v24 = vadd.f32 %v1826_v19, %v5669_v16 }
 0x5b3   : > { %v1813_v22 = vpop.f32.mrf.mxu0 }
 0x5b4   : > { %v5680_v25 = vadd.f32 %v1813_v22, %v1739_v21  ;;  %v1836_v27 = vadd.f32 %v1835_v23, %v5675_v20 }
 0x5b5   : > { %v1815_v26 = vpop.f32.mrf.mxu0 }
 0x5b6   : > { %v1828_v28 = vadd.f32 %v1827_v24, %v5680_v25  ;;  %v5684_v29 = vadd.f32 %v1815_v26, %v1739_v21 }
 0x5b8   : > { %v1829_v30 = vrot.slane %v1828_v28, 4  ;;  %v1837_v31 = vadd.f32 %v1836_v27, %v5684_v29 }
 0x5ba   : > { %v1830_v32 = vadd.f32 %v1829_v30, %v1828_v28  ;;  %v1838_v33 = vrot.slane %v1837_v31, 4 }
 0x5bc   : > { %v1831_v34 = vrot.slane %v1830_v32, 2  ;;  %v1839_v36 = vadd.f32 %v1838_v33, %v1837_v31 }
 0x5be   : > { %v1832_v37 = vadd.f32 %v1831_v34, %v1830_v32  ;;  %v1840_v38 = vrot.slane %v1839_v36, 2 }
 0x5c0   : > { %v1833_v52 = vrot.slane %v1832_v37, 1  ;;  %v1841_v55 = vadd.f32 %v1840_v38, %v1839_v36 }
 0x5c2   : > { %v1834_v57 = vadd.f32 %v1833_v52, %v1832_v37  ;;  %v1842_v43 = vrot.slane %v1841_v55, 1 }
 0x5c4   : > { %v1844_v44 = vmul.f32 0.03125, %v1834_v57  ;;  %v1843_v45 = vadd.f32 %v1842_v43, %v1841_v55  ;;  %v1907_v55 = vpop.permute.xlu1 %1906  ;;  %v1912_v57 = vpop.permute.xlu0 %1911 }
 0x5c6   : > { %v1846_v46 = vsub.f32 %v5665_v11, %v1844_v44  ;;  %v1848_v50 = vsub.f32 %v5663_v8, %v1844_v44  ;;  %v1850_v54 = vsub.f32 %v5669_v16, %v1844_v44  ;;  %v1845_v56 = vmul.f32 0.03125, %v1843_v45 }
 0x5c7   : > { %v1852_v47 = vsub.f32 %v5680_v25, %v1844_v44 }
 0x5c8   : > { %v1854_v48 = vmul.f32 %v1846_v46, %v1846_v46  ;;  %v1856_v49 = vmul.f32 %v1848_v50, %v1848_v50  ;;  %v1847_v51 = vsub.f32 %v5671_v18, %v1845_v56  ;;  %v1849_v53 = vsub.f32 %v5667_v12, %v1845_v56  ;;  %v1935_v43 = vpop.permute.xlu1 %1934  ;;  %v1940_v44 = vpop.permute.xlu0 %1939 }
 0x5c9   : > { %v1851_v58 = vsub.f32 %v5675_v20, %v1845_v56  ;;  %v1858_v59 = vmul.f32 %v1850_v54, %v1850_v54  ;;  %v1853_v61 = vsub.f32 %v5684_v29, %v1845_v56  ;;  %v1860_v0 = vmul.f32 %v1852_v47, %v1852_v47 }
 0x5ca   : > { %v1862_v60 = vadd.f32 %v1856_v49, %v1854_v48  ;;  %v1855_v62 = vmul.f32 %v1847_v51, %v1847_v51  ;;  %v1857_v63 = vmul.f32 %v1849_v53, %v1849_v53 }
 0x5cb   : > { %v1859_v6 = vmul.f32 %v1851_v58, %v1851_v58  ;;  %v1861_v10 = vmul.f32 %v1853_v61, %v1853_v61 }
 0x5cc   : > { %v1863_v5 = vadd.f32 %v1862_v60, %v1858_v59  ;;  %v1871_v7 = vadd.f32 %v1857_v63, %v1855_v62  ;;  %v1897_v56 = vpop.permute.xlu1 %1896  ;;  %v1902_v48 = vpop.permute.xlu0 %1901 }
 0x5ce   : > { %v1864_v9 = vadd.f32 %v1863_v5, %v1860_v0  ;;  %v1872_v17 = vadd.f32 %v1871_v7, %v1859_v6 }
 0x5d0   : > { %v1865_v19 = vrot.slane %v1864_v9, 4  ;;  %v1873_v21 = vadd.f32 %v1872_v17, %v1861_v10 }
 0x5d2   : > { %v1866_v22 = vadd.f32 %v1865_v19, %v1864_v9  ;;  %v1874_v23 = vrot.slane %v1873_v21, 4 }
 0x5d4   : > { %v1867_v24 = vrot.slane %v1866_v22, 2  ;;  %v1875_v26 = vadd.f32 %v1874_v23, %v1873_v21  ;;  %v1925_v23 = vpop.permute.xlu1 %1924 }
 0x5d6   : > { %v1868_v27 = vadd.f32 %v1867_v24, %v1866_v22  ;;  %v1876_v28 = vrot.slane %v1875_v26, 2  ;;  %v1930_v24 = vpop.permute.xlu0 %1929 }
 0x5d8   : > { %v1869_v30 = vrot.slane %v1868_v27, 1  ;;  %v1877_v31 = vadd.f32 %v1876_v28, %v1875_v26 }
 0x5da   : > { %v1870_v32 = vadd.f32 %v1869_v30, %v1868_v27  ;;  %v1878_v33 = vrot.slane %v1877_v31, 1 }
 0x5dc   : > { %v1880_v34 = vmul.f32 0.03125, %v1870_v32  ;;  %v1879_v36 = vadd.f32 %v1878_v33, %v1877_v31  ;;  %v1956_v31 = vld [vmem:[%s935_s16 + $0x10] sm:$0xff] }
 0x5dd   : > { %v1958_v33 = vpack.c.bf16 %v1956_v31, %v1956_v31 }
 0x5de   : > { %v1882_v37 = vadd.f32 1e-05, %v1880_v34  ;;  %v1881_v38 = vmul.f32 0.03125, %v1879_v36  ;;  %v1954_v36 = vld [vmem:[%s935_s16] sm:$0xff] }
 0x5e0   : > { %4980 = vrsqrt.f32 %v1882_v37  ;;  %v1883_v52 = vadd.f32 1e-05, %v1881_v38  ;;  %v1955_v37 = vld [vmem:[%s935_s16 + $0x8] sm:$0xff]  ;;  %v4920_v38 = vld [vmem:[%s5251_s30] sm:$0xff]   ;;  %s6816_s16 = sld [smem:[#allocation13_spill]] }
 0x5e2   : > { %4982 = vrsqrt.f32 %v1883_v52  ;;  %v2131_v52 = vsel %vm2129_vm10, %v1958_v33, 0 }
 0x5ed   : > { %v4981_v45 = vpop.eup %4980 }
 0x5ee   : > { %v1892_v49 = vmul.f32 %v4981_v45, %v1852_v47  ;;  %v1890_v59 = vmul.f32 %v4981_v45, %v1850_v54  ;;  %v1886_v0 = vmul.f32 %v4981_v45, %v1846_v46  ;;  %v1888_v5 = vmul.f32 %v4981_v45, %v1848_v50  ;;  %v4924_v45 = vld [vmem:[%s6815_s2] sm:$0xff]  }
 0x5ef   : > { %v4983_v60 = vpop.eup %4982 }
 0x5f0   : > { %v1920_v62 = vmul.f32 %v1912_v57, %v1892_v49  ;;  %v1918_v63 = vmul.f32 %v1907_v55, %v1890_v59  ;;  %v1893_v6 = vmul.f32 %v4983_v60, %v1853_v61  ;;  %v1891_v7 = vmul.f32 %v4983_v60, %v1851_v58  ;;  %v4927_v49 = vld [vmem:[%s6815_s2 + $0x18] sm:$0xff]   ;;  %v4928_v59 = vld [vmem:[%s6816_s16] sm:$0xff]  }
 0x5f1   : > { %v1887_v9 = vmul.f32 %v4983_v60, %v1847_v51  ;;  %v1889_v10 = vmul.f32 %v4983_v60, %v1849_v53  ;;  %v1914_v54 = vmul.f32 %v1897_v56, %v1886_v0  ;;  %v1916_v27 = vmul.f32 %v1902_v48, %v1888_v5  ;;  %v4929_v60 = vld [vmem:[%s6816_s16 + $0x8] sm:$0xff]  }
 0x5f2   : > { %v1919_v17 = vmul.f32 %v1907_v55, %v1891_v7  ;;  %v1921_v19 = vmul.f32 %v1912_v57, %v1893_v6  ;;  %v1946_v26 = vadd.f32 %v1935_v43, %v1918_v63  ;;  %v1948_v47 = vadd.f32 %v1940_v44, %v1920_v62  ;;  %v4921_v57 = vld [vmem:[%s5251_s30 + $0x8] sm:$0xff]   ;;  %v4930_v62 = vld [vmem:[%s6816_s16 + $0x10] sm:$0xff]   ;;  %v4931_v63 = vld [vmem:[%s6816_s16 + $0x18] sm:$0xff]  }
 0x5f3   : > { %v1915_v21 = vmul.f32 %v1897_v56, %v1887_v9  ;;  %v1917_v22 = vmul.f32 %v1902_v48, %v1889_v10  ;;  %v1942_v58 = vadd.f32 %v1925_v23, %v1914_v54  ;;  %v1944_v61 = vadd.f32 %v1930_v24, %v1916_v27  ;;  %v4925_v56 = vld [vmem:[%s6815_s2 + $0x8] sm:$0xff]   ;;  %v4926_v48 = vld [vmem:[%s6815_s2 + $0x10] sm:$0xff]   ;;  %s6820_s2 = sld [smem:[#allocation16_spill]] }
 0x5f4   : > { %v1947_v28 = vadd.f32 %v1935_v43, %v1919_v17  ;;  %v1949_v30 = vadd.f32 %v1940_v44, %v1921_v19  ;;  %v1952_v53 = vpack.c.bf16 %v1948_v47, %v1946_v26  ;;  %v1957_v55 = vpack.c.bf16 %v1955_v37, %v1954_v36  ;;  %v4922_v43 = vld [vmem:[%s5251_s30 + $0x10] sm:$0xff]   ;;  %v4923_v44 = vld [vmem:[%s5251_s30 + $0x18] sm:$0xff]  }
 0x5f5   : > { %v1943_v46 = vadd.f32 %v1925_v23, %v1915_v21  ;;  %v1945_v50 = vadd.f32 %v1930_v24, %v1917_v22  ;;  %v1950_v34 = vpack.c.bf16 %v1944_v61, %v1942_v58 }
 0x5f6   : > { %v1953_v51 = vpack.c.bf16 %v1949_v30, %v1947_v28 }
 0x5f7   : > { %v1951_v32 = vpack.c.bf16 %v1945_v50, %v1943_v46 }
 0x5f8   : > { %2011 = vmatprep.subr.bf16.mxu1 %v1953_v51 }
 0x5f9   : > { %2012 = vmatpush1.bf16.msra.mxu1 %v1952_v53 }
 0x5fa   : > { %2013 = vmatprep.subr.bf16.mxu1 %v1951_v32 }
 0x5fd   : > { %2014 = vmatpush1.bf16.msra.mxu1 %v1950_v34 }
 0x5fe   : > { %4826 = vmatprep.subr.msk.bf16.mxu1 %vm2129_vm10, %v1958_v33 }
 0x600   : > { %4601 = vmatmul.mubr.msk.bf16.vlgmr.msra.gmra.mxu1 %vm986_vm0, %v4920_v38 }
 0x601   : > { %4775 = vmatpush3.bf16.msra.mxu1 %v2131_v52  ;;  %2041 = vmatprep.mubr.bf16.mxu1 %v6752_v35 }
 0x602   : > { %4776 = vmatprep.subr.bf16.mxu1 %v1957_v55 }
 0x605   : > { %4777 = vmatpush3.bf16.msra.mxu1 %v1957_v55 }
 0x606   : > { %4827 = vmatprep.subr.msk.bf16.mxu1 %vm2129_vm10, %v1958_v33 }
 0x608   : > { %4602 = vmatmul.mubr.msk.bf16.gmra.mxu1 %vm986_vm0, %v4921_v57 }
 0x609   : > { %2051 = vmatprep.mubr.bf16.mxu1 %v6752_v35 }
 0x610   : > { %4603 = vmatmul.mubr.msk.bf16.gmra.mxu1 %vm986_vm0, %v4922_v43 }
 0x611   : > { %2061 = vmatprep.mubr.bf16.mxu1 %v6752_v35 }
 0x618   : > { %4604 = vmatmul.mubr.msk.bf16.gmra.mxu1 %vm986_vm0, %v4923_v44 }
 0x619   : > { %4778 = vmatprep.mubr.msk.bf16.mxu1 %vm2116_vm11, %v4924_v45 }
 0x620   : > { %4779 = vmatmul.mubr.msk.bf16.vlgmr.msra.gmra.mxu1 %vm2116_vm11, %v4925_v56 }
 0x621   : > { %4782 = vmatprep.mubr.msk.bf16.mxu1 %vm2116_vm11, %v4926_v48  ;;  %4787 = vmatpush3.bf16.msra.mxu1 %v2131_v52 }
 0x622   : > { %4788 = vmatprep.subr.bf16.mxu1 %v1957_v55 }
 0x625   : > { %4789 = vmatpush3.bf16.msra.mxu1 %v1957_v55 }
 0x628   : > { %4783 = vmatmul.mubr.msk.bf16.gmra.mxu1 %vm2116_vm11, %v4927_v49 }
 0x629   : > { %4790 = vmatprep.mubr.msk.bf16.mxu1 %vm2116_vm11, %v4928_v59 }
 0x630   : > { %4791 = vmatmul.mubr.msk.bf16.vlgmr.msra.gmra.mxu1 %vm2116_vm11, %v4929_v60 }
 0x631   : > { %4794 = vmatprep.mubr.msk.bf16.mxu1 %vm2116_vm11, %v4930_v62 }
 0x638   : > { %4795 = vmatmul.mubr.msk.bf16.gmra.mxu1 %vm2116_vm11, %v4931_v63  ;;  %v2560_v63 = vld [vmem:[%s6817_s23 + $0x8] sm:$0xff] }
 0x639   : > { %2370 = vmatprep.mubr.bf16.mxu1 %v6752_v35 }
 0x6c0   : > { %v2033_v0 = vpop.f32.mrf.mxu1 }
 0x6c1   : > { %v5734_v19 = vmul.f32 0.25, %v2033_v0  ;;  %v2559_v0 = vld [vmem:[%s6817_s23] sm:$0xff] }
 0x6c2   : > { %v2035_v5 = vpop.f32.mrf.mxu1 }
 0x6c3   : > { %v5730_v10 = vmul.f32 0.25, %v2035_v5  ;;  %v5180_v5 = vmov 1  }
 0x6c4   : > { %v2037_v6 = vpop.f32.mrf.mxu1 }
 0x6c5   : > { %v5728_v7 = vmul.f32 0.25, %v2037_v6 }
 0x6c6   : > { %v2039_v9 = vpop.f32.mrf.mxu1 }
 0x6c7   : > { %v5732_v17 = vmul.f32 0.25, %v2039_v9  ;;  %v2311_v23 = vpack.c.bf16 %v5728_v7, %v5734_v19 }
 0x6c8   : > { %v2043_v21 = vpop.f32.mrf.mxu1 }
 0x6c9   : > { %v2312_v22 = vpack.c.bf16 %v5732_v17, %v5730_v10 }
 0x6ca   : > { %v2045_v24 = vpop.f32.mrf.mxu1 }
 0x6cb   : > { %2352 = vmatprep.subr.bf16.mxu1 %v2312_v22  ;;  %v5740_v54 = vmul.f32 0.25, %v2045_v24  ;;  %v2076_v22 = vmul.f32 0.25, %v2043_v21 }
 0x6cc   : > { %v2047_v26 = vpop.f32.mrf.mxu1  ;;  %2353 = vmatpush1.bf16.msra.mxu1 %v2311_v23 }
 0x6cd   : > { %v2078_v6 = vmul.f32 0.25, %v2047_v26 }
 0x6ce   : > { %v2049_v47 = vpop.f32.mrf.mxu1 }
 0x6cf   : > { %v5742_v27 = vmul.f32 0.25, %v2049_v47  ;;  %v2313_v24 = vpack.c.bf16 %v2078_v6, %v2076_v22 }
 0x6d0   : > { %v2053_v28 = vpop.f32.mrf.mxu1 }
 0x6d1   : > { %v2314_v30 = vpack.c.bf16 %v5742_v27, %v5740_v54  ;;  %v5752_v31 = vmul.f32 0.25, %v2053_v28 }
 0x6d2   : > { %v2055_v46 = vpop.f32.mrf.mxu1 }
 0x6d3   : > { %2412 = vmatprep.subr.bf16.mxu1 %v2314_v30  ;;  %v5748_v58 = vmul.f32 0.25, %v2055_v46 }
 0x6d4   : > { %v2057_v50 = vpop.f32.mrf.mxu1 }
 0x6d5   : > { %v5746_v51 = vmul.f32 0.25, %v2057_v50 }
 0x6d6   : > { %v2059_v53 = vpop.f32.mrf.mxu1 }
 0x6d7   : > { %v5750_v61 = vmul.f32 0.25, %v2059_v53  ;;  %v2315_v34 = vpack.c.bf16 %v5746_v51, %v5752_v31 }
 0x6d8   : > { %v2063_v32 = vpop.f32.mrf.mxu1 }
 0x6d9   : > { %v2316_v33 = vpack.c.bf16 %v5750_v61, %v5748_v58  ;;  %v2084_v46 = vmul.f32 0.25, %v2063_v32 }
 0x6da   : > { %v2065_v36 = vpop.f32.mrf.mxu1 }
 0x6db   : > { %2472 = vmatprep.subr.bf16.mxu0 %v2316_v33  ;;  %v2085_v23 = vmul.f32 0.25, %v2065_v36 }
 0x6dc   : > { %v2067_v37 = vpop.f32.mrf.mxu1  ;;  %2473 = vmatpush1.bf16.msra.mxu0 %v2315_v34 }
 0x6dd   : > { %v2086_v30 = vmul.f32 0.25, %v2067_v37 }
 0x6de   : > { %v2069_v38 = vpop.f32.mrf.mxu1 }
 0x6df   : > { %v2087_v9 = vmul.f32 0.25, %v2069_v38  ;;  %v2317_v53 = vpack.c.bf16 %v2086_v30, %v2084_v46 }
 0x6e0   : > { %v4780_v52 = vpop.f32.mrf.mxu1 }
 0x6e1   : > { %v2318_v28 = vpack.c.bf16 %v2087_v9, %v2085_v23 }
 0x6e2   : > { %v2167_v55 = vpop.f32.mrf.mxu1 }
 0x6e4   : > { %v4781_v57 = vpop.f32.mrf.mxu1 }
 0x6e5   : > { %v2304_v43 = vpack.c.bf16 %v4781_v57, %v4780_v52 }
 0x6e6   : > { %v2170_v44 = vpop.f32.mrf.mxu1 }
 0x6e7   : > { %v2303_v45 = vpack.c.bf16 %v2170_v44, %v2167_v55  ;;  %2379 = vxpose.xlu0.c.b16.start.end [1/1] (short) (narrow) %v2304_v43, 16 }
 0x6e8   : > { %v4784_v56 = vpop.f32.mrf.mxu1 }
 0x6e9   : > { %2319 = vxpose.xlu1.c.b16.start.end [1/1] (short) (narrow) %v2303_v45, 16 }
 0x6ea   : > { %v2183_v48 = vpop.f32.mrf.mxu1 }
 0x6ec   : > { %v4785_v49 = vpop.f32.mrf.mxu1 }
 0x6ed   : > { %v2306_v59 = vpack.c.bf16 %v4785_v49, %v4784_v56 }
 0x6ee   : > { %v2186_v60 = vpop.f32.mrf.mxu1 }
 0x6ef   : > { %v2305_v62 = vpack.c.bf16 %v2186_v60, %v2183_v48  ;;  %2499 = vxpose.xlu0.c.b16.start.end [1/1] (short) (narrow) %v2306_v59, 16 }
 0x6f0   : > { %v5770_v26 = vpop.f32.mrf.mxu1 }
 0x6f1   : > { %2439 = vxpose.xlu1.c.b16.start.end [1/1] (short) (narrow) %v2305_v62, 16 }
 0x6f2   : > { %v5772_v32 = vpop.f32.mrf.mxu1 }
 0x6f4   : > { %v5774_v34 = vpop.f32.mrf.mxu1 }
 0x6f5   : > { %2568 = vperm.xlu1 %4908, %v2560_v63  }
 0x6f6   : > { %v5776_v38 = vpop.f32.mrf.mxu1 }
 0x6f8   : > { %2563 = vperm.xlu0 %4909, %v2559_v0   ;;  %v5781_v43 = vpop.f32.mrf.mxu1 }
 0x6f9   : > { %4910 = vset.pattern.permute.xlu1 %v5180_v5 }
 0x6fa   : > { %2820 = vperm.xlu1 %4910, %v2559_v0  }
 0x6fc   : > { %4911 = vset.pattern.permute.xlu0 %v5180_v5 }
 0x6fd   : > { %2824 = vperm.xlu0 %4911, %v2560_v63   ;;  %v5788_v63 = vpop.f32.mrf.mxu1 }
 0x6fe   : > { %4912 = vset.pattern.permute.xlu1 %v6752_v35 }
 0x701   : > { %4913 = vset.pattern.permute.xlu0 %v6752_v35 }
 0x749   : > { %v2387_v50 = vpop.trf.xlu0 }
 0x74b   : > { %v2327_v47 = vpop.trf.xlu1 }
 0x74c   : > { %4621 = vmatmul.mubr.msk.bf16.vlgmr.msra.gmra.mxu1 %vm1201_vm1, %v2327_v47 }
 0x74d   : > { %2413 = vmatpush1.bf16.msra.mxu1 %v2313_v24  ;;  %2430 = vmatprep.mubr.bf16.mxu1 %v6752_v35 }
 0x74e   : > { %2532 = vmatprep.subr.bf16.mxu1 %v2318_v28 }
 0x751   : > { %v2507_v21 = vpop.trf.xlu0 }
 0x753   : > { %v2447_v33 = vpop.trf.xlu1 }
 0x754   : > { %4622 = vmatmul.mubr.msk.bf16.vlgmr.msra.gmra.mxu1 %vm1201_vm1, %v2387_v50  ;;  %4623 = vmatmul.mubr.msk.bf16.vlgmr.msra.gmra.mxu0 %vm1201_vm1, %v2447_v33 }
 0x755   : > { %2533 = vmatpush1.bf16.msra.mxu1 %v2317_v53  ;;  %2550 = vmatprep.mubr.bf16.mxu1 %v6752_v35 }
 0x756   : > { %2885 = vmatprep.mubr.bf16.mxu0 %v6752_v35 }
 0x75c   : > { %4624 = vmatmul.mubr.msk.bf16.vlgmr.msra.gmra.mxu1 %vm1201_vm1, %v2507_v21 }
 0x75d   : > { %2937 = vmatprep.mubr.bf16.mxu1 %v6752_v35 }
 0x770   : > { %v2569_v37 = vpop.permute.xlu1 %2568 }
 0x771   : > { %v2573_v55 = vmul.f32 %v2569_v37, %v5728_v7  ;;  %v2574_v45 = vmul.f32 %v2569_v37, %v5732_v17  ;;  %v2577_v60 = vmul.f32 %v2569_v37, %v2078_v6  ;;  %v2581_v62 = vmul.f32 %v2569_v37, %v5746_v51  ;;  %v5792_v6 = vpop.f32.mrf.mxu1 }
 0x772   : > { %v2582_v17 = vmul.f32 %v2569_v37, %v5750_v61  ;;  %v2585_v24 = vmul.f32 %v2569_v37, %v2086_v30 }
 0x773   : > { %v2564_v36 = vpop.permute.xlu0 %2563 }
 0x774   : > { %v2571_v52 = vmul.f32 %v2564_v36, %v5734_v19  ;;  %v2572_v57 = vmul.f32 %v2564_v36, %v5730_v10  ;;  %v2575_v48 = vmul.f32 %v2564_v36, %v2076_v22  ;;  %v2579_v49 = vmul.f32 %v2564_v36, %v5752_v31 }
 0x775   : > { %v2576_v59 = vmul.f32 %v2564_v36, %v5740_v54  ;;  %v2578_v19 = vmul.f32 %v2569_v37, %v5742_v27  ;;  %v2580_v10 = vmul.f32 %v2564_v36, %v5748_v58  ;;  %v2583_v0 = vmul.f32 %v2564_v36, %v2084_v46  ;;  %v5794_v46 = vpop.f32.mrf.mxu1 }
 0x776   : > { %v2587_v44 = vadd.f32 %v2573_v55, %v2571_v52  ;;  %v2594_v56 = vadd.f32 %v2574_v45, %v2572_v57  ;;  %v2584_v5 = vmul.f32 %v2564_v36, %v2085_v23  ;;  %v2586_v22 = vmul.f32 %v2569_v37, %v2087_v9 }
 0x777   : > { %v2601_v31 = vadd.f32 %v2577_v60, %v2575_v48  ;;  %v2615_v28 = vadd.f32 %v2581_v62, %v2579_v49  ;;  %v2608_v54 = vadd.f32 %v2578_v19, %v2576_v59  ;;  %v2622_v50 = vadd.f32 %v2582_v17, %v2580_v10 }
 0x778   : > { %v2588_v7 = vrot.slane %v2587_v44, 4  ;;  %v2595_v47 = vrot.slane %v2594_v56, 4  ;;  %v2629_v27 = vadd.f32 %v2585_v24, %v2583_v0  ;;  %v2636_v53 = vadd.f32 %v2586_v22, %v2584_v5 }
 0x779   : > { %v2602_v21 = vrot.slane %v2601_v31, 4  ;;  %v2616_v52 = vrot.slane %v2615_v28, 4  ;;  %v2609_v58 = vrot.slane %v2608_v54, 4  ;;  %v2623_v61 = vrot.slane %v2622_v50, 4 }
 0x77a   : > { %v2589_v51 = vadd.f32 %v2588_v7, %v2587_v44  ;;  %v2596_v33 = vadd.f32 %v2595_v47, %v2594_v56  ;;  %v2630_v30 = vrot.slane %v2629_v27, 4  ;;  %v2637_v9 = vrot.slane %v2636_v53, 4 }
 0x77b   : > { %v2603_v55 = vadd.f32 %v2602_v21, %v2601_v31  ;;  %v2617_v57 = vadd.f32 %v2616_v52, %v2615_v28  ;;  %v2610_v45 = vadd.f32 %v2609_v58, %v2608_v54  ;;  %v2624_v56 = vadd.f32 %v2623_v61, %v2622_v50 }
 0x77c   : > { %v2590_v23 = vrot.slane %v2589_v51, 2  ;;  %v2597_v37 = vrot.slane %v2596_v33, 2  ;;  %v2631_v59 = vadd.f32 %v2630_v30, %v2629_v27  ;;  %v2638_v60 = vadd.f32 %v2637_v9, %v2636_v53 }
 0x77d   : > { %v2604_v0 = vrot.slane %v2603_v55, 2  ;;  %v2618_v5 = vrot.slane %v2617_v57, 2  ;;  %v2611_v17 = vrot.slane %v2610_v45, 2  ;;  %v2625_v28 = vrot.slane %v2624_v56, 2 }
 0x77e   : > { %v2591_v48 = vadd.f32 %v2590_v23, %v2589_v51  ;;  %v2598_v7 = vadd.f32 %v2597_v37, %v2596_v33  ;;  %v2632_v54 = vrot.slane %v2631_v59, 2  ;;  %v2639_v51 = vrot.slane %v2638_v60, 2 }
 0x77f   : > { %v2605_v52 = vadd.f32 %v2604_v0, %v2603_v55  ;;  %v2619_v33 = vadd.f32 %v2618_v5, %v2617_v57  ;;  %v5808_v23 = vadd.f32 %v2611_v17, %v2610_v45 }
 0x780   : > { %v2592_v47 = vrot.slane %v2591_v48, 1  ;;  %v2599_v53 = vrot.slane %v2598_v7, 1  ;;  %v5820_v55 = vadd.f32 %v2639_v51, %v2638_v60 }
 0x781   : > { %v2613_v51 = vrot.slane %v5808_v23, 1 }
 0x782   : > { %v5824_v17 = vadd.f32 %v2599_v53, %v2598_v7 }
 0x80c   : > { %v5796_v36 = vpop.f32.mrf.mxu1 }
 0x80d   : > { %v2643_v44 = vrot.slane %v5796_v36, 4 }
 0x80e   : > { %v5799_v49 = vpop.f32.mrf.mxu1 }
 0x80f   : > { %v2644_v62 = vmax.f32 %v5796_v36, %v2643_v44  ;;  %v2649_v19 = vrot.slane %v5799_v49, 4  ;;  %v5812_v44 = vadd.f32 %v2592_v47, %v2591_v48 }
 0x810   : > { %v2376_v10 = vpop.f32.mrf.mxu1 }
 0x811   : > { %v2645_v24 = vrot.slane %v2644_v62, 2  ;;  %v2650_v22 = vmax.f32 %v5799_v49, %v2649_v19  ;;  %v2626_v10 = vadd.f32 %v2625_v28, %v2624_v56 }
 0x812   : > { %v2377_v31 = vpop.f32.mrf.mxu1 }
 0x813   : > { %v2646_v50 = vmax.f32 %v2644_v62, %v2645_v24  ;;  %v2651_v27 = vrot.slane %v2650_v22, 2  ;;  %v5818_v24 = vadd.f32 %v2632_v54, %v2631_v59  ;;  %v2620_v54 = vrot.slane %v2619_v33, 1 }
 0x814   : > { %v5804_v21 = vpop.f32.mrf.mxu1  ;;  %v5806_v58 = vpop.f32.mrf.mxu0 }
 0x815   : > { %v2647_v61 = vrot.slane %v2646_v50, 1  ;;  %v2652_v30 = vmax.f32 %v2650_v22, %v2651_v27  ;;  %v2655_v9 = vrot.slane %v5804_v21, 4  ;;  %v2667_v37 = vrot.slane %v5806_v58, 4 }
 0x816   : > { %v5814_v19 = vpop.f32.mrf.mxu1  ;;  %v5816_v62 = vpop.f32.mrf.mxu0  ;;  %v2606_v22 = vrot.slane %v2605_v52, 1 }
 0x817   : > { %v2648_v57 = vmax.f32 %v2646_v50, %v2647_v61  ;;  %v2653_v45 = vrot.slane %v2652_v30, 1  ;;  %v2656_v0 = vmax.f32 %v5804_v21, %v2655_v9  ;;  %v2668_v5 = vmax.f32 %v5806_v58, %v2667_v37 }
 0x818   : > { %v2661_v48 = vrot.slane %v5814_v19, 4  ;;  %v2673_v47 = vrot.slane %v5816_v62, 4  ;;  %v2436_v31 = vpop.f32.mrf.mxu1  ;;  %v2496_v27 = vpop.f32.mrf.mxu0 }
 0x819   : > { %v2691_v56 = vmax.f32 %v2648_v57, %v5812_v44  ;;  %v2654_v59 = vmax.f32 %v2652_v30, %v2653_v45  ;;  %v2657_v60 = vrot.slane %v2656_v0, 2  ;;  %v2669_v28 = vrot.slane %v2668_v5, 2 }
 0x81a   : > { %v2662_v50 = vmax.f32 %v5814_v19, %v2661_v48  ;;  %v2674_v7 = vmax.f32 %v5816_v62, %v2673_v47  ;;  %v2437_v53 = vpop.f32.mrf.mxu1  ;;  %v2497_v61 = vpop.f32.mrf.mxu0  ;;  %v2627_v27 = vrot.slane %v2626_v10, 1 }
 0x81b   : > { %v2699_v9 = vsub.f32 %v5796_v36, %v2691_v56  ;;  %v2723_v37 = vsub.f32 %v5812_v44, %v2691_v56  ;;  %v5835_v31 = vmax.f32 %v2654_v59, %v5824_v17  ;;  %v2658_v57 = vmax.f32 %v2656_v0, %v2657_v60 }
 0x81c   : > { %v2670_v30 = vmax.f32 %v2668_v5, %v2669_v28  ;;  %v2663_v45 = vrot.slane %v2662_v50, 2  ;;  %v2675_v35 = vrot.slane %v2674_v7, 2  ;;  %v5837_v13 = vpop.f32.mrf.mxu1  ;;  %v2634_v36 = vrot.slane %v5818_v24, 1 }
 0x81d   : > { %v2707_v15 = vmul.f32 1.442695, %v2699_v9  ;;  %v2700_v48 = vsub.f32 %v5799_v49, %v5835_v31  ;;  %v2724_v47 = vsub.f32 %v5824_v17, %v5835_v31  ;;  %v2659_v44 = vrot.slane %v2658_v57, 1 }
 0x81e   : > { %v2671_v56 = vrot.slane %v2670_v30, 1  ;;  %v2664_v59 = vmax.f32 %v2662_v50, %v2663_v45  ;;  %v2676_v53 = vmax.f32 %v2674_v7, %v2675_v35  ;;  %v5844_v0 = vpop.f32.mrf.mxu1  ;;  %v2607_v60 = vadd.f32 %v2606_v22, %v2605_v52 }
 0x81f   : > { %4984 = vpow2.f32 %v2707_v15  ;;  %v2709_v5 = vmul.f32 1.442695, %v2700_v48  ;;  %v2679_v28 = vrot.slane %v5837_v13, 4  ;;  %v2660_v61 = vmax.f32 %v2658_v57, %v2659_v44 }
 0x820   : > { %v5847_v9 = vadd.f32 %v2620_v54, %v2619_v33  ;;  %v2672_v49 = vmax.f32 %v2670_v30, %v2671_v56  ;;  %v2665_v14 = vrot.slane %v2664_v59, 1  ;;  %v2556_v2 = vpop.f32.mrf.mxu1  ;;  %v2677_v17 = vrot.slane %v2676_v53, 1 }
 0x821   : > { %4986 = vpow2.f32 %v2709_v5  ;;  %v2680_v31 = vmax.f32 %v5837_v13, %v2679_v28  ;;  %v2685_v50 = vrot.slane %v5844_v0, 4  ;;  %v2693_v35 = vmax.f32 %v2660_v61, %v2607_v60 }
 0x822   : > { %v2695_v7 = vmax.f32 %v2672_v49, %v5847_v9  ;;  %v5853_v15 = vadd.f32 %v2613_v51, %v5808_v23  ;;  %v2666_v52 = vmax.f32 %v2664_v59, %v2665_v14  ;;  %v2557_v22 = vpop.f32.mrf.mxu1  ;;  %v5855_v57 = vadd.f32 %v2627_v27, %v2626_v10 }
 0x823   : > { %v2678_v33 = vmax.f32 %v2676_v53, %v2677_v17  ;;  %v2681_v54 = vrot.slane %v2680_v31, 2  ;;  %v2686_v2 = vmax.f32 %v5844_v0, %v2685_v50  ;;  %v2701_v30 = vsub.f32 %v5804_v21, %v2693_v35 }
 0x824   : > { %v2725_v45 = vsub.f32 %v2607_v60, %v2693_v35  ;;  %v2703_v48 = vsub.f32 %v5806_v58, %v2695_v7  ;;  %v2727_v44 = vsub.f32 %v5847_v9, %v2695_v7  ;;  %v2694_v56 = vmax.f32 %v2666_v52, %v5853_v15 }
 0x825   : > { %v2696_v23 = vmax.f32 %v2678_v33, %v5855_v57  ;;  %v2682_v51 = vmax.f32 %v2680_v31, %v2681_v54  ;;  %v2687_v14 = vrot.slane %v2686_v2, 2  ;;  %v2711_v59 = vmul.f32 1.442695, %v2701_v30 }
 0x826   : > { %v2715_v10 = vmul.f32 1.442695, %v2703_v48  ;;  %v2641_v27 = vrot.slane %v5820_v55, 1  ;;  %v2731_v53 = vmul.f32 1.442695, %v2723_v37  ;;  %v2702_v5 = vsub.f32 %v5814_v19, %v2694_v56 }
 0x827   : > { %v2726_v21 = vsub.f32 %v5853_v15, %v2694_v56  ;;  %v2704_v60 = vsub.f32 %v5816_v62, %v2696_v23  ;;  %4988 = vpow2.f32 %v2711_v59  ;;  %v2728_v58 = vsub.f32 %v5855_v57, %v2696_v23 }
 0x828   : > { %v2683_v28 = vrot.slane %v2682_v51, 1  ;;  %v2688_v61 = vmax.f32 %v2686_v2, %v2687_v14  ;;  %v2713_v9 = vmul.f32 1.442695, %v2702_v5  ;;  %v5869_v49 = vadd.f32 %v2634_v36, %v5818_v24 }
 0x829   : > { %4990 = vpow2.f32 %v2715_v10  ;;  %v2717_v17 = vmul.f32 1.442695, %v2704_v60  ;;  %v2733_v37 = vmul.f32 1.442695, %v2724_v47  ;;  %v5873_v62 = vadd.f32 %v2641_v27, %v5820_v55 }
 0x82a   : > { %v2684_v31 = vmax.f32 %v2682_v51, %v2683_v28  ;;  %v2689_v50 = vrot.slane %v2688_v61, 1  ;;  %4992 = vpow2.f32 %v2731_v53  ;;  %v2735_v47 = vmul.f32 1.442695, %v2725_v45 }
 0x82b   : > { %4994 = vpow2.f32 %v2713_v9  ;;  %v2307_v45 = vpack.c.bf16 %v5776_v38, %v5772_v32  ;;  %v2741_v27 = vmul.f32 1.442695, %v2728_v58 }
 0x82c   : > { %v4985_v19 = vpop.eup %4984  ;;  %v2697_v35 = vmax.f32 %v2684_v31, %v5869_v49  ;;  %v2690_v7 = vmax.f32 %v2688_v61, %v2689_v50  ;;  %4996 = vpow2.f32 %v2717_v17 }
 0x82d   : > { %v2811_v15 = vpack.c.bf16 %v4985_v19, %v4985_v19  ;;  %v2747_v52 = vrot.slane %v4985_v19, 4  ;;  %4998 = vpow2.f32 %v2733_v37 }
 0x82e   : > { %v4987_v22 = vpop.eup %4986  ;;  %v2705_v24 = vsub.f32 %v5837_v13, %v2697_v35  ;;  %v2729_v36 = vsub.f32 %v5869_v49, %v2697_v35  ;;  %v2698_v57 = vmax.f32 %v2690_v7, %v5873_v62  ;;  %v2739_v13 = vmul.f32 1.442695, %v2727_v44 }
 0x82f   : > { %v2812_v33 = vpack.c.bf16 %v4987_v22, %v4987_v22  ;;  %v2748_v54 = vadd.f32 %v4985_v19, %v2747_v52  ;;  %v2848_v48 = vsel %vm2129_vm10, %v2811_v15, 0  ;;  %v2753_v23 = vrot.slane %v4987_v22, 4 }
 0x830   : > { %v2719_v2 = vmul.f32 1.442695, %v2705_v24  ;;  %v2706_v30 = vsub.f32 %v5844_v0, %v2698_v57  ;;  %v2730_v55 = vsub.f32 %v5873_v62, %v2698_v57  ;;  %v2737_v0 = vmul.f32 1.442695, %v2726_v21 }
 0x831   : > { %4625 = vmatprep.subr.msk.bf16.mxu0 %vm2129_vm10, %v2812_v33  ;;  %v2749_v56 = vrot.slane %v2748_v54, 2  ;;  %v2754_v59 = vadd.f32 %v4987_v22, %v2753_v23  ;;  %v6818_v44 = vmov 0   ;;  %v2743_v7 = vmul.f32 1.442695, %v2729_v36 }
 0x832   : > { %5000 = vpow2.f32 %v2719_v2  ;;  %v2721_v51 = vmul.f32 1.442695, %v2706_v30  ;;  %2868 = vmatpush1.bf16.msra.mxu0 %v2848_v48  ;;  %v2308_v2 = vpack.c.bf16 %v5774_v34, %v5770_v26  ;;  %v2745_v30 = vmul.f32 1.442695, %v2730_v55 }
 0x833   : > { %5002 = vpow2.f32 %v2735_v47  ;;  %v2750_v14 = vadd.f32 %v2749_v56, %v2748_v54  ;;  %v2755_v5 = vrot.slane %v2754_v59, 2 }
 0x834   : > { %5004 = vpow2.f32 %v2721_v51  ;;  %v4989_v10 = vpop.eup %4988 }
 0x835   : > { %4626 = vmatmul.mubr.msk.bf16.vlgmr.msra.gmra.mxu0 %vm2843_vm12, %v2307_v45  ;;  %v2751_v53 = vrot.slane %v2750_v14, 1  ;;  %5006 = vpow2.f32 %v2739_v13  ;;  %v2759_v60 = vrot.slane %v4989_v10, 4  ;;  %v2813_v61 = vpack.c.bf16 %v4989_v10, %v4989_v10 }
 0x836   : > { %2989 = vmatprep.mubr.bf16.mxu0 %v6818_v44  ;;  %v4991_v28 = vpop.eup %4990  ;;  %v2756_v49 = vadd.f32 %v2755_v5, %v2754_v59  ;;  %5008 = vpow2.f32 %v2737_v0 }
 0x837   : > { %v2752_v9 = vadd.f32 %v2751_v53, %v2750_v14  ;;  %v5886_v32 = vpop.eup %4992  ;;  %v2760_v38 = vadd.f32 %v4989_v10, %v2759_v60  ;;  %v2771_v21 = vrot.slane %v4991_v28, 4  ;;  %5010 = vpow2.f32 %v2741_v27 }
 0x838   : > { %v4995_v17 = vpop.eup %4994  ;;  %v2757_v31 = vrot.slane %v2756_v49, 1  ;;  %v2815_v37 = vpack.c.bf16 %v4991_v28, %v4991_v28  ;;  %v2900_v15 = vsel %vm2129_vm10, %v2813_v61, 0  ;;  %v2309_v14 = vpack.c.bf16 %v5794_v46, %v5788_v63 }
 0x839   : > { %v5889_v58 = vadd.f32 %v5886_v32, %v2752_v9  ;;  %v2814_v50 = vpack.c.bf16 %v4995_v17, %v4995_v17  ;;  %v2761_v19 = vrot.slane %v2760_v38, 2  ;;  %v2772_v35 = vadd.f32 %v4991_v28, %v2771_v21  ;;  %v4997_v62 = vpop.eup %4996 }
 0x83a   : > { %v2758_v52 = vadd.f32 %v2757_v31, %v2756_v49  ;;  %v2765_v22 = vrot.slane %v4995_v17, 4  ;;  %v5892_v24 = vpop.eup %4998  ;;  %v2816_v57 = vpack.c.bf16 %v4997_v62, %v4997_v62  ;;  %v2777_v54 = vrot.slane %v4997_v62, 4 }
 0x83b   : > { %4627 = vmatprep.subr.msk.bf16.mxu1 %vm2129_vm10, %v2814_v50  ;;  %v2762_v47 = vadd.f32 %v2761_v19, %v2760_v38  ;;  %v2773_v33 = vrot.slane %v2772_v35, 2  ;;  %v2952_v56 = vsel %vm2129_vm10, %v2815_v37, 0  ;;  %5012 = vpow2.f32 %v2743_v7 }
 0x83c   : > { %2920 = vmatpush1.bf16.msra.mxu1 %v2900_v15  ;;  %v5898_v48 = vadd.f32 %v5892_v24, %v2758_v52  ;;  %v2766_v36 = vadd.f32 %v4995_v17, %v2765_v22  ;;  %4629 = vmatprep.subr.msk.bf16.mxu0 %vm2129_vm10, %v2816_v57  ;;  %v2778_v51 = vadd.f32 %v4997_v62, %v2777_v54  ;;  %5014 = vpow2.f32 %v2745_v30 }
 0x83d   : > { %v2763_v23 = vrot.slane %v2762_v47, 1  ;;  %v2774_v13 = vadd.f32 %v2773_v33, %v2772_v35  ;;  %2972 = vmatpush1.bf16.msra.mxu0 %v2952_v56  ;;  %v2310_v7 = vpack.c.bf16 %v5792_v6, %v5781_v43  ;;  %5016 = vrcp.f32 %v5889_v58 }
 0x83e   : > { %v2767_v26 = vrot.slane %v2766_v36, 2  ;;  %v2779_v10 = vrot.slane %v2778_v51, 2  ;;  %5018 = vrcp.f32 %v5898_v48 }
 0x83f   : > { %v5001_v45 = vpop.eup %5000  ;;  %4628 = vmatmul.mubr.msk.bf16.vlgmr.msra.gmra.mxu1 %vm2843_vm12, %v2308_v2  ;;  %v2764_v59 = vadd.f32 %v2763_v23, %v2762_v47  ;;  %v2775_v0 = vrot.slane %v2774_v13, 1 }
 0x840   : > { %v5904_v34 = vpop.eup %5002  ;;  %v2817_v55 = vpack.c.bf16 %v5001_v45, %v5001_v45  ;;  %3041 = vmatprep.mubr.bf16.mxu1 %v6818_v44  ;;  %v2768_v53 = vadd.f32 %v2767_v26, %v2766_v36  ;;  %v2783_v5 = vrot.slane %v5001_v45, 4  ;;  %4630 = vmatmul.mubr.msk.bf16.vlgmr.msra.gmra.mxu0 %vm2843_vm12, %v2309_v14  ;;  %v2780_v9 = vadd.f32 %v2779_v10, %v2778_v51  ;;  %v3157_v51 = vld [vmem:[%s6820_s2 + $0x18] sm:$0xff]  ;;  %v3150_v14 = vld [vmem:[%s6819_s4] sm:$0xff]  ;;  %v3151_v26 = vld [vmem:[%s6819_s4 + $0x8] sm:$0xff]  ;;  %v2821_v10 = vpop.permute.xlu1 %2820 }
 0x841   : > { %v5005_v27 = vpop.eup %5004  ;;  %v2797_v46 = vadd.f32 %v5904_v34, %v2764_v59  ;;  %v2776_v60 = vadd.f32 %v2775_v0, %v2774_v13  ;;  %3129 = vmatprep.mubr.bf16.mxu0 %v6818_v44  ;;  %v3153_v13 = vld [vmem:[%s6819_s4 + $0x18] sm:$0xff]  ;;  %3271 = vperm.xlu0 %4913, %v3157_v51   ;;  %v3156_v59 = vld [vmem:[%s6820_s2 + $0x10] sm:$0xff]  ;;  %v3155_v0 = vld [vmem:[%s6820_s2 + $0x8] sm:$0xff] }
 0x842   : > { %v2818_v63 = vpack.c.bf16 %v5005_v27, %v5005_v27  ;;  %v5910_v28 = vpop.eup %5006  ;;  %v2769_v61 = vrot.slane %v2768_v53, 1  ;;  %v2784_v49 = vadd.f32 %v5001_v45, %v2783_v5  ;;  %v2789_v38 = vrot.slane %v5005_v27, 4  ;;  %3243 = vperm.xlu1 %4912, %v3153_v13   ;;  %v3152_v45 = vld [vmem:[%s6819_s4 + $0x10] sm:$0xff]  ;;  %s6825_s4 = sld [smem:[#allocation22_spill]] }
 0x843   : > { %v3004_v21 = vsel %vm2129_vm10, %v2817_v55, 0  ;;  %v2799_v17 = vadd.f32 %v5910_v28, %v2776_v60  ;;  %v5916_v31 = vpop.eup %5008  ;;  %v2781_v37 = vrot.slane %v2780_v9, 1  ;;  %v3154_v55 = vld [vmem:[%s6820_s2] sm:$0xff]  ;;  %5020 = vrcp.f32 %v2797_v46  ;;  %s6821_s2 = sld [smem:[#allocation14_spill]] }
 0x844   : > { %4631 = vmatprep.subr.msk.bf16.mxu1 %vm2129_vm10, %v2818_v63  ;;  %v2770_v50 = vadd.f32 %v2769_v61, %v2768_v53  ;;  %v2785_v19 = vrot.slane %v2784_v49, 2  ;;  %v2790_v35 = vadd.f32 %v5005_v27, %v2789_v38  ;;  %v5918_v62 = vpop.eup %5010  ;;  %v2827_v27 = vmul.f32 %v5886_v32, %v2821_v10  ;;  %v5942_v53 = vpop.permute.xlu0 %2824 }
 0x845   : > { %3024 = vmatpush1.bf16.msra.mxu1 %v3004_v21  ;;  %v2782_v52 = vadd.f32 %v2781_v37, %v2780_v9  ;;  %3228 = vperm.xlu0 %4913, %v3150_v14   ;;  %v2828_v60 = vmul.f32 %v5892_v24, %v2821_v10  ;;  %5022 = vrcp.f32 %v2799_v17  ;;  %v2829_v58 = vmul.f32 %v5886_v32, %v5942_v53 }
 0x846   : > { %v2798_v15 = vadd.f32 %v5916_v31, %v2770_v50  ;;  %v2786_v22 = vadd.f32 %v2785_v19, %v2784_v49  ;;  %v2791_v57 = vrot.slane %v2790_v35, 2  ;;  %3238 = vperm.xlu1 %4912, %v3152_v45   ;;  %v2830_v46 = vmul.f32 %v5892_v24, %v5942_v53 }
 0x847   : > { %v2800_v47 = vadd.f32 %v5918_v62, %v2782_v52  ;;  %v2831_v32 = vmul.f32 %v5904_v34, %v2821_v10  ;;  %v2835_v24 = vmul.f32 %v5910_v28, %v2821_v10 }
 0x848   : > { %4632 = vmatmul.mubr.msk.bf16.vlgmr.msra.gmra.mxu1 %vm2843_vm12, %v2310_v7  ;;  %v2787_v33 = vrot.slane %v2786_v22, 1  ;;  %v2792_v54 = vadd.f32 %v2791_v57, %v2790_v35  ;;  %v5925_v43 = vpop.eup %5012  ;;  %5024 = vrcp.f32 %v2798_v15 }
 0x849   : > { %v5928_v56 = vpop.eup %5014  ;;  %3256 = vperm.xlu0 %4913, %v3154_v55   ;;  %5026 = vrcp.f32 %v2800_v47  ;;  %v2832_v47 = vmul.f32 %v5916_v31, %v2821_v10  ;;  %v2837_v55 = vmul.f32 %v5910_v28, %v5942_v53  ;;  %v2839_v28 = vmul.f32 %v5925_v43, %v2821_v10 }
 0x84a   : > { %v2788_v2 = vadd.f32 %v2787_v33, %v2786_v22  ;;  %v2793_v30 = vrot.slane %v2792_v54, 1  ;;  %3233 = vperm.xlu1 %4912, %v3151_v26   ;;  %v5017_v61 = vpop.eup %5016 }
 0x84b   : > { %v5019_v48 = vpop.eup %5018 }
 0x84c   : > { %v2801_v6 = vadd.f32 %v5925_v43, %v2788_v2  ;;  %v2794_v36 = vadd.f32 %v2793_v30, %v2792_v54  ;;  %v2833_v30 = vmul.f32 %v5904_v34, %v5942_v53 }
 0x84e   : > { %v2802_v23 = vadd.f32 %v5928_v56, %v2794_v36  ;;  %3266 = vperm.xlu1 %4912, %v3156_v59   ;;  %5028 = vrcp.f32 %v2801_v6  ;;  %v2834_v59 = vmul.f32 %v5916_v31, %v5942_v53  ;;  %v2840_v31 = vmul.f32 %v5928_v56, %v2821_v10 }
 0x850   : > { %5030 = vrcp.f32 %v2802_v23  ;;  %v5021_v33 = vpop.eup %5020  ;;  %v2836_v23 = vmul.f32 %v5918_v62, %v2821_v10  ;;  %v2842_v10 = vmul.f32 %v5928_v56, %v5942_v53  ;;  %v4933_v56 = vld [vmem:[%s6821_s2 + $0x8] sm:$0xff]  }
 0x852   : > { %3261 = vperm.xlu1 %4912, %v3155_v0   ;;  %v5023_v36 = vpop.eup %5022 }
 0x855   : > { %v5025_v45 = vpop.eup %5024 }
 0x856   : > { %v5027_v34 = vpop.eup %5026 }
 0x8f5   : > { %v2887_v5 = vpop.f32.mrf.mxu0 }
 0x8f6   : > { %v2888_v63 = vadd.f32 %v2887_v5, %v2827_v27 }
 0x8f7   : > { %v2889_v9 = vpop.f32.mrf.mxu0 }
 0x8f8   : > { %v5945_v49 = vmul.f32 %v5017_v61, %v2888_v63  ;;  %v2890_v38 = vadd.f32 %v2889_v9, %v2828_v60  ;;  %v2838_v9 = vmul.f32 %v5918_v62, %v5942_v53  ;;  %v5029_v62 = vpop.eup %5028 }
 0x8f9   : > { %v2891_v21 = vpop.f32.mrf.mxu0 }
 0x8fa   : > { %v5949_v50 = vmul.f32 %v5019_v48, %v2890_v38  ;;  %v2892_v37 = vadd.f32 %v2891_v21, %v2829_v58 }
 0x8fb   : > { %v2893_v19 = vpop.f32.mrf.mxu0 }
 0x8fc   : > { %v5953_v17 = vmul.f32 %v5017_v61, %v2892_v37  ;;  %v2894_v35 = vadd.f32 %v2893_v19, %v2830_v46 }
 0x8fe   : > { %v3072_v7 = vpack.c.bf16 %v5953_v17, %v5945_v49  ;;  %v5957_v15 = vmul.f32 %v5019_v48, %v2894_v35 }
 0x8ff   : > { %v2939_v52 = vpop.f32.mrf.mxu1 }
 0x900   : > { %v3073_v22 = vpack.c.bf16 %v5957_v15, %v5949_v50  ;;  %v2940_v57 = vadd.f32 %v2939_v52, %v2831_v32  ;;  %v2991_v54 = vpop.f32.mrf.mxu0 }
 0x901   : > { %v2941_v2 = vpop.f32.mrf.mxu1  ;;  %v2992_v13 = vadd.f32 %v2991_v54, %v2835_v24 }
 0x902   : > { %v3056_v6 = vmul.f32 %v5021_v33, %v2940_v57  ;;  %v2942_v51 = vadd.f32 %v2941_v2, %v2832_v47  ;;  %v2993_v14 = vpop.f32.mrf.mxu0  ;;  %v2841_v47 = vmul.f32 %v5925_v43, %v5942_v53 }
 0x903   : > { %v2943_v26 = vpop.f32.mrf.mxu1  ;;  %v3060_v0 = vmul.f32 %v5023_v36, %v2992_v13  ;;  %v2994_v5 = vadd.f32 %v2993_v14, %v2836_v23  ;;  %v5031_v13 = vpop.eup %5030 }
 0x904   : > { %v3057_v27 = vmul.f32 %v5025_v45, %v2942_v51  ;;  %v2944_v63 = vadd.f32 %v2943_v26, %v2833_v30  ;;  %v2995_v60 = vpop.f32.mrf.mxu0 }
 0x905   : > { %v2945_v61 = vpop.f32.mrf.mxu1  ;;  %v3061_v38 = vmul.f32 %v5027_v34, %v2994_v5  ;;  %v2996_v48 = vadd.f32 %v2995_v60, %v2837_v55 }
 0x906   : > { %v3058_v58 = vmul.f32 %v5021_v33, %v2944_v63  ;;  %v2946_v21 = vadd.f32 %v2945_v61, %v2834_v59  ;;  %v2997_v37 = vpop.f32.mrf.mxu0 }
 0x907   : > { %v3062_v35 = vmul.f32 %v5023_v36, %v2996_v48  ;;  %v2998_v52 = vadd.f32 %v2997_v37, %v2838_v9 }
 0x908   : > { %v3043_v46 = vpop.f32.mrf.mxu1  ;;  %v3074_v19 = vpack.c.bf16 %v3058_v58, %v3056_v6  ;;  %v3059_v32 = vmul.f32 %v5025_v45, %v2946_v21 }
 0x909   : > { %v3044_v57 = vadd.f32 %v3043_v46, %v2839_v28  ;;  %v3076_v54 = vpack.c.bf16 %v3062_v35, %v3060_v0  ;;  %v3063_v33 = vmul.f32 %v5027_v34, %v2998_v52 }
 0x90a   : > { %v3045_v24 = vpop.f32.mrf.mxu1  ;;  %v3075_v30 = vpack.c.bf16 %v3059_v32, %v3057_v27  ;;  %v4932_v27 = vld [vmem:[%s6821_s2] sm:$0xff]   ;;  %s6822_s2 = sld [smem:[#allocation17_spill]] }
 0x90b   : > { %v3046_v2 = vadd.f32 %v3045_v24, %v2840_v31  ;;  %v3064_v51 = vmul.f32 %v5029_v62, %v3044_v57  ;;  %v3077_v36 = vpack.c.bf16 %v3063_v33, %v3061_v38 }
 0x90c   : > { %v3047_v23 = vpop.f32.mrf.mxu1 }
 0x90d   : > { %v3065_v14 = vmul.f32 %v5031_v13, %v3046_v2  ;;  %v3048_v26 = vadd.f32 %v3047_v23, %v2841_v47 }
 0x90e   : > { %v3049_v6 = vpop.f32.mrf.mxu1 }
 0x90f   : > { %v3066_v45 = vmul.f32 %v5029_v62, %v3048_v26  ;;  %v3050_v55 = vadd.f32 %v3049_v6, %v2842_v10 }
 0x911   : > { %v3078_v43 = vpack.c.bf16 %v3066_v45, %v3064_v51  ;;  %v3067_v59 = vmul.f32 %v5031_v13, %v3050_v55 }
 0x913   : > { %v3079_v0 = vpack.c.bf16 %v3067_v59, %v3065_v14 }
 0x915   : > { %3105 = vmatprep.subr.bf16.mxu0 %v3079_v0 }
 0x916   : > { %3106 = vmatpush1.bf16.msra.mxu0 %v3078_v43 }
 0x917   : > { %3107 = vmatprep.subr.bf16.mxu0 %v3077_v36 }
 0x91a   : > { %3108 = vmatpush1.bf16.msra.mxu0 %v3076_v54 }
 0x91b   : > { %3109 = vmatprep.subr.bf16.mxu0 %v3075_v30 }
 0x91e   : > { %3110 = vmatpush1.bf16.msra.mxu0 %v3074_v19 }
 0x91f   : > { %3111 = vmatprep.subr.bf16.mxu0 %v3073_v22 }
 0x922   : > { %3112 = vmatpush1.bf16.msra.mxu0 %v3072_v7 }
 0x925   : > { %4635 = vmatmul.mubr.msk.bf16.vlgmr.msra.gmra.mxu0 %vm3090_vm13, %v4932_v27 }
 0x926   : > { %3139 = vmatprep.mubr.bf16.mxu0 %v6818_v44 }
 0x92d   : > { %4636 = vmatmul.mubr.msk.bf16.gmra.mxu0 %vm3090_vm13, %v4933_v56 }
 0x9e5   : > { %v3131_v53 = vpop.f32.mrf.mxu0 }
 0x9e7   : > { %v3133_v5 = vpop.f32.mrf.mxu0 }
 0x9e9   : > { %v3135_v63 = vpop.f32.mrf.mxu0 }
 0x9ea   : > { %v3158_v61 = vadd.f32 %v3135_v63, %v3131_v53 }
 0x9eb   : > { %v3137_v34 = vpop.f32.mrf.mxu0 }
 0x9ec   : > { %v3167_v50 = vadd.f32 %v3137_v34, %v3133_v5 }
 0x9ed   : > { %v3141_v60 = vpop.f32.mrf.mxu0 }
 0x9ee   : > { %v3159_v15 = vadd.f32 %v3158_v61, %v3141_v60 }
 0x9ef   : > { %v3143_v9 = vpop.f32.mrf.mxu0 }
 0x9f0   : > { %v3168_v38 = vadd.f32 %v3167_v50, %v3143_v9 }
 0x9f1   : > { %v3145_v22 = vpop.f32.mrf.mxu0 }
 0x9f2   : > { %v3160_v58 = vadd.f32 %v3159_v15, %v3145_v22 }
 0x9f3   : > { %v3147_v49 = vpop.f32.mrf.mxu0 }
 0x9f4   : > { %v3161_v17 = vrot.slane %v3160_v58, 4  ;;  %v3169_v7 = vadd.f32 %v3168_v38, %v3147_v49 }
 0x9f6   : > { %v3162_v48 = vadd.f32 %v3161_v17, %v3160_v58  ;;  %v3170_v21 = vrot.slane %v3169_v7, 4 }
 0x9f8   : > { %v3163_v37 = vrot.slane %v3162_v48, 2  ;;  %v3171_v28 = vadd.f32 %v3170_v21, %v3169_v7  ;;  %v3244_v7 = vpop.permute.xlu1 %3243 }
 0x9fa   : > { %v3164_v46 = vadd.f32 %v3163_v37, %v3162_v48  ;;  %v3172_v31 = vrot.slane %v3171_v28, 2 }
 0x9fc   : > { %v3165_v19 = vrot.slane %v3164_v46, 1  ;;  %v3173_v35 = vadd.f32 %v3172_v31, %v3171_v28  ;;  %v3272_v31 = vpop.permute.xlu0 %3271 }
 0x9fe   : > { %v3166_v32 = vadd.f32 %v3165_v19, %v3164_v46  ;;  %v3174_v52 = vrot.slane %v3173_v35, 1  ;;  %v3239_v46 = vpop.permute.xlu1 %3238 }
 0xa00   : > { %v3176_v57 = vmul.f32 0.03125, %v3166_v32  ;;  %v3175_v24 = vadd.f32 %v3174_v52, %v3173_v35  ;;  %v3229_v32 = vpop.permute.xlu0 %3228 }
 0xa02   : > { %v3178_v47 = vsub.f32 %v3131_v53, %v3176_v57  ;;  %v3180_v62 = vsub.f32 %v3135_v63, %v3176_v57  ;;  %v3182_v54 = vsub.f32 %v3141_v60, %v3176_v57  ;;  %v3177_v33 = vmul.f32 0.03125, %v3175_v24  ;;  %v3234_v19 = vpop.permute.xlu1 %3233 }
 0xa03   : > { %v3184_v2 = vsub.f32 %v3145_v22, %v3176_v57 }
 0xa04   : > { %v3186_v30 = vmul.f32 %v3178_v47, %v3178_v47  ;;  %v3188_v13 = vmul.f32 %v3180_v62, %v3180_v62  ;;  %v3179_v51 = vsub.f32 %v3133_v5, %v3177_v33  ;;  %v3181_v23 = vsub.f32 %v3137_v34, %v3177_v33 }
 0xa05   : > { %v3183_v14 = vsub.f32 %v3143_v9, %v3177_v33  ;;  %v3190_v26 = vmul.f32 %v3182_v54, %v3182_v54  ;;  %v3185_v36 = vsub.f32 %v3147_v49, %v3177_v33  ;;  %v3192_v55 = vmul.f32 %v3184_v2, %v3184_v2 }
 0xa06   : > { %v3194_v10 = vadd.f32 %v3188_v13, %v3186_v30  ;;  %v3187_v6 = vmul.f32 %v3179_v51, %v3179_v51  ;;  %v3189_v45 = vmul.f32 %v3181_v23, %v3181_v23  ;;  %v3267_v33 = vpop.permute.xlu1 %3266 }
 0xa07   : > { %v3191_v59 = vmul.f32 %v3183_v14, %v3183_v14  ;;  %v3193_v56 = vmul.f32 %v3185_v36, %v3185_v36 }
 0xa08   : > { %v3195_v43 = vadd.f32 %v3194_v10, %v3190_v26  ;;  %v3203_v0 = vadd.f32 %v3189_v45, %v3187_v6 }
 0xa0a   : > { %v3196_v27 = vadd.f32 %v3195_v43, %v3192_v55  ;;  %v3204_v53 = vadd.f32 %v3203_v0, %v3191_v59 }
 0xa0c   : > { %v3197_v63 = vrot.slane %v3196_v27, 4  ;;  %v3205_v60 = vadd.f32 %v3204_v53, %v3193_v56 }
 0xa0e   : > { %v3198_v61 = vadd.f32 %v3197_v63, %v3196_v27  ;;  %v3206_v50 = vrot.slane %v3205_v60, 4 }
 0xa10   : > { %v3199_v15 = vrot.slane %v3198_v61, 2  ;;  %v3207_v5 = vadd.f32 %v3206_v50, %v3205_v60 }
 0xa12   : > { %v3200_v34 = vadd.f32 %v3199_v15, %v3198_v61  ;;  %v3208_v9 = vrot.slane %v3207_v5, 2 }
 0xa14   : > { %v3201_v22 = vrot.slane %v3200_v34, 1  ;;  %v3209_v38 = vadd.f32 %v3208_v9, %v3207_v5 }
 0xa16   : > { %v3202_v58 = vadd.f32 %v3201_v22, %v3200_v34  ;;  %v3210_v49 = vrot.slane %v3209_v38, 1 }
 0xa18   : > { %v3212_v17 = vmul.f32 0.03125, %v3202_v58  ;;  %v3211_v48 = vadd.f32 %v3210_v49, %v3209_v38 }
 0xa1a   : > { %v3214_v21 = vadd.f32 1e-05, %v3212_v17  ;;  %v3213_v37 = vmul.f32 0.03125, %v3211_v48  ;;  %v6009_v48 = vld [vmem:[%s6822_s2 + $0x18] sm:$0xff] }
 0xa1c   : > { %5032 = vrsqrt.f32 %v3214_v21  ;;  %v3215_v28 = vadd.f32 1e-05, %v3213_v37 }
 0xa1e   : > { %5034 = vrsqrt.f32 %v3215_v28 }
 0xa29   : > { %v5033_v35 = vpop.eup %5032 }
 0xa2a   : > { %v3224_v52 = vmul.f32 %v5033_v35, %v3184_v2  ;;  %v3222_v57 = vmul.f32 %v5033_v35, %v3182_v54  ;;  %v3220_v24 = vmul.f32 %v5033_v35, %v3180_v62  ;;  %v3218_v30 = vmul.f32 %v5033_v35, %v3178_v47  ;;  %v3257_v2 = vpop.permute.xlu0 %3256  ;;  %v3262_v54 = vpop.permute.xlu1 %3261 }
 0xa2b   : > { %v5035_v13 = vpop.eup %5034 }
 0xa2c   : > { %v3252_v26 = vmul.f32 %v3244_v7, %v3224_v52  ;;  %v3250_v10 = vmul.f32 %v3239_v46, %v3222_v57  ;;  %v3225_v6 = vmul.f32 %v5035_v13, %v3185_v36  ;;  %v3223_v45 = vmul.f32 %v5035_v13, %v3183_v14 }
 0xa2d   : > { %v3221_v55 = vmul.f32 %v5035_v13, %v3181_v23  ;;  %v3219_v43 = vmul.f32 %v5035_v13, %v3179_v51  ;;  %v3248_v59 = vmul.f32 %v3234_v19, %v3220_v24  ;;  %v3246_v56 = vmul.f32 %v3229_v32, %v3218_v30 }
 0xa2e   : > { %v3278_v0 = vadd.f32 %v3267_v33, %v3250_v10  ;;  %v3280_v27 = vadd.f32 %v3272_v31, %v3252_v26  ;;  %v3253_v53 = vmul.f32 %v3244_v7, %v3225_v6  ;;  %v3251_v63 = vmul.f32 %v3239_v46, %v3223_v45 }
 0xa2f   : > { %v3249_v60 = vmul.f32 %v3234_v19, %v3221_v55  ;;  %v3247_v61 = vmul.f32 %v3229_v32, %v3219_v43  ;;  %v3276_v5 = vadd.f32 %v3262_v54, %v3248_v59  ;;  %v3274_v34 = vadd.f32 %v3257_v2, %v3246_v56 }
 0xa30   : > { %v3279_v62 = vadd.f32 %v3267_v33, %v3251_v63  ;;  %v3281_v50 = vadd.f32 %v3272_v31, %v3253_v53  ;;  %v3288_v14 = vadd.f32 %v3280_v27, %v5680_v25  ;;  %v3286_v23 = vadd.f32 %v3278_v0, %v5669_v16  ;;  %v3290_v16 = vld [vmem:[%s6822_s2] sm:$0xff] }
 0xa31   : > { %v3277_v47 = vadd.f32 %v3262_v54, %v3249_v60  ;;  %v3275_v15 = vadd.f32 %v3257_v2, %v3247_v61  ;;  %v3284_v49 = vadd.f32 %v3276_v5, %v5663_v8  ;;  %v3282_v17 = vadd.f32 %v3274_v34, %v5665_v11  ;;  %4806 = vmatprep.mubr.msk.f32.mxu1 %vm986_vm0, %v3290_v16  ;;  %v5999_v11 = vld [vmem:[%s6822_s2 + $0x8] sm:$0xff]  ;;  %v3300_v54 = vld [vmem:[%s6824_s3 + $0x10] sm:$0xff]  ;;  %v3301_v5 = vld [vmem:[%s6824_s3 + $0x18] sm:$0xff] }
 0xa32   : > { %v3289_v51 = vadd.f32 %v3281_v50, %v5684_v29  ;;  %v3287_v36 = vadd.f32 %v3279_v62, %v5675_v20  ;;  %v6002_v29 = vld [vmem:[%s6822_s2 + $0x10] sm:$0xff]  ;;  %s6823_s2 = sld [smem:[#allocation18_spill]] }
 0xa33   : > { %v3285_v38 = vadd.f32 %v3277_v47, %v5667_v12  ;;  %v3283_v58 = vadd.f32 %v3275_v15, %v5671_v18  ;;  %v984_v62 = vld [vmem:[%s6825_s4 + $0x10] sm:$0xff] }
 0xa34   : > { %v3311_v9 = vadd.f32 %v3289_v51, %v3288_v14  ;;  %v3308_v22 = vadd.f32 %v3287_v36, %v3286_v23  ;;  %v1076_v15 = vadd.f32 %v5431_v42, %v984_v62 }
 0xa35   : > { %v3305_v25 = vadd.f32 %v3285_v38, %v3284_v49  ;;  %v3302_v7 = vadd.f32 %v3283_v58, %v3282_v17 }
 0xa36   : > { %3312 = vadd.xlane.f32.xlu1 %v3311_v9  ;;  %3309 = vadd.xlane.f32.xlu0 %v3308_v22  ;;  %v3634_v34 = vadd.f32 1.0, %v1076_v15  ;;  %v3299_v22 = vld [vmem:[%s6824_s3 + $0x8] sm:$0xff] }
 0xa38   : > { %v3296_v2 = vld [vmem:[%s6823_s2 + $0x10] sm:$0xff]  ;;  %v3297_v50 = vld [vmem:[%s6823_s2 + $0x18] sm:$0xff]  ;;  %v3294_v47 = vld [vmem:[%s6823_s2] sm:$0xff] }
 0xa3a   : > { %3306 = vadd.xlane.f32.xlu0 %v3305_v25  ;;  %3303 = vadd.xlane.f32.xlu1 %v3302_v7 }
 0xabf   : > { %v3313_v20 = vpop.xlane.xlu1 %3312  ;;  %v3310_v12 = vpop.xlane.xlu0 %3309 }
 0xac0   : > { %4798 = vmatprep.subr.mxu1 %v3313_v20 }
 0xac1   : > { %4799 = vmatpush3.msra.mxu1 %v3313_v20 }
 0xac2   : > { %4800 = vmatprep.subr.mxu1 %v3310_v12 }
 0xac3   : > { %4801 = vmatpush3.msra.mxu1 %v3310_v12  ;;  %v3307_v18 = vpop.xlane.xlu0 %3306  ;;  %v3304_v8 = vpop.xlane.xlu1 %3303 }
 0xac4   : > { %4802 = vmatprep.subr.mxu1 %v3307_v18 }
 0xac5   : > { %4803 = vmatpush3.msra.mxu1 %v3307_v18 }
 0xac6   : > { %4804 = vmatprep.subr.mxu1 %v3304_v8 }
 0xac7   : > { %4805 = vmatpush3.msra.mxu1 %v3304_v8 }
 0xac8   : > { %4807 = vmatmul.mubr.msk.f32.vlgmr.msra.gmra.mxu1 %vm986_vm0, %v5999_v11 }
 0xac9   : > { %4809 = vmatprep.mubr.msk.f32.mxu1 %vm986_vm0, %v6002_v29 }
 0xacc   : > { %4810 = vmatmul.mubr.msk.f32.gmra.mxu1 %vm986_vm0, %v6009_v48 }
 0xacd   : > { %4820 = vmatprep.mubr.msk.f32.mxu1 %vm986_vm0, %v3290_v16 }
 0xb88   : > { %v4808_v21 = vpop.f32.mrf.mxu1 }
 0xb8a   : > { %v3392_v37 = vpop.f32.mrf.mxu1 }
 0xb8c   : > { %v4811_v28 = vpop.f32.mrf.mxu1 }
 0xb8d   : > { %3428 = vperm.xlu0 %4913, %v4811_v28   ;;  %v1091_v28 = vld [vmem:[%s5321_s24 + $0x18] sm:$0xff] }
 0xb8e   : > { %v3402_v46 = vpop.f32.mrf.mxu1 }
 0xb8f   : > { %3423 = vperm.xlu1 %4912, %v3402_v46   ;;  %v1090_v46 = vld [vmem:[%s5321_s24 + $0x10] sm:$0xff] }
 0xb91   : > { %3413 = vperm.xlu0 %4913, %v3392_v37   ;;  %v982_v37 = vld [vmem:[%s6825_s4] sm:$0xff] }
 0xb93   : > { %3418 = vperm.xlu1 %4912, %v4808_v21  }
 0xc08   : > { %v3429_v31 = vpop.permute.xlu0 %3428 }
 0xc09   : > { %v6014_v19 = vsub.f32 %v3288_v14, %v3429_v31  ;;  %v6016_v35 = vsub.f32 %v3289_v51, %v3429_v31  ;;  %v985_v14 = vld [vmem:[%s6825_s4 + $0x18] sm:$0xff]  ;;  %v3295_v51 = vld [vmem:[%s6823_s2 + $0x8] sm:$0xff]  ;;  %s6829_s2 = smov 1  }
 0xc0a   : > { %v3424_v32 = vpop.permute.xlu1 %3423 }
 0xc0b   : > { %v6018_v52 = vsub.f32 %v3286_v23, %v3424_v32  ;;  %v6020_v57 = vsub.f32 %v3287_v36, %v3424_v32  ;;  %v3445_v24 = vmul.f32 %v6014_v19, %v6014_v19  ;;  %v3446_v33 = vmul.f32 %v6016_v35, %v6016_v35  ;;  %v3298_v23 = vld [vmem:[%s6824_s3] sm:$0xff]  ;;  %s6832_s3 = smov 15  }
 0xc0c   : > { %v3414_v30 = vpop.permute.xlu0 %3413  ;;  %v1081_v36 = vadd.f32 %v5429_v41, %v985_v14  ;;  %v1066_v32 = vadd.f32 %v5427_v40, %v982_v37 }
 0xc0d   : > { %v6026_v13 = vsub.f32 %v3282_v17, %v3414_v30  ;;  %v6028_v26 = vsub.f32 %v3283_v58, %v3414_v30  ;;  %v3456_v10 = vadd.f32 %v3446_v33, %v3445_v24  ;;  %v3443_v6 = vmul.f32 %v6018_v52, %v6018_v52 }
 0xc0e   : > { %v3419_v45 = vpop.permute.xlu1 %3418  ;;  %v3444_v55 = vmul.f32 %v6020_v57, %v6020_v57  ;;  %v3635_v9 = vadd.f32 1.0, %v1081_v36  ;;  %v1186_v24 = vadd.f32 %v5454_v3, %v1091_v28  ;;  %v1181_v33 = vadd.f32 %v5456_v4, %v1090_v46 }
 0xc0f   : > { %v6034_v43 = vsub.f32 %v3284_v49, %v3419_v45  ;;  %v6036_v59 = vsub.f32 %v3285_v38, %v3419_v45  ;;  %3457 = vadd.xlane.f32.xlu1 %v3456_v10  ;;  %v3439_v0 = vmul.f32 %v6026_v13, %v6026_v13  ;;  %v3440_v27 = vmul.f32 %v6028_v26, %v6028_v26  ;;  %v1088_v45 = vld [vmem:[%s5321_s24] sm:$0xff] }
 0xc10   : > { %v3453_v56 = vadd.f32 %v3444_v55, %v3443_v6  ;;  %v3632_v10 = vadd.f32 1.0, %v1066_v32  ;;  %v1089_v6 = vld [vmem:[%s5321_s24 + $0x8] sm:$0xff] }
 0xc11   : > { %v3447_v53 = vadd.f32 %v3440_v27, %v3439_v0  ;;  %v3441_v63 = vmul.f32 %v6034_v43, %v6034_v43  ;;  %v3442_v60 = vmul.f32 %v6036_v59, %v6036_v59  ;;  %v1176_v55 = vadd.f32 %v5450_v1, %v1089_v6  ;;  %v6826_v0 = vld [vmem:[#allocation24_spill] sm:$0xff] }
 0xc12   : > { %3454 = vadd.xlane.f32.xlu0 %v3453_v56  ;;  %v1171_v27 = vadd.f32 %v6826_v0, %v1088_v45 }
 0xc13   : > { %3448 = vadd.xlane.f32.xlu1 %v3447_v53  ;;  %v3450_v61 = vadd.f32 %v3442_v60, %v3441_v63 }
 0xc16   : > { %3451 = vadd.xlane.f32.xlu0 %v3450_v61 }
 0xc24   : > { %3588 = vperm.xlu1 %4912, %v3296_v2  }
 0xc28   : > { %3616 = vperm.xlu1 %4912, %v3300_v54  }
 0xc2c   : > { %3593 = vperm.xlu0 %4913, %v3297_v50   ;;  %3578 = vperm.xlu1 %4912, %v3294_v47  }
 0xc30   : > { %3621 = vperm.xlu0 %4913, %v3301_v5   ;;  %3648 = vperm.xlu1 %4912, %v3634_v34  }
 0xc34   : > { %3583 = vperm.xlu0 %4913, %v3295_v51   ;;  %3606 = vperm.xlu1 %4912, %v3298_v23  }
 0xc38   : > { %3653 = vperm.xlu0 %4913, %v3635_v9  }
 0xc3c   : > { %3611 = vperm.xlu0 %4913, %v3299_v22  }
 0xc98   : > { %v3458_v38 = vpop.xlane.xlu1 %3457 }
 0xc99   : > { %4812 = vmatprep.subr.mxu1 %v3458_v38 }
 0xc9a   : > { %4813 = vmatpush3.msra.mxu1 %v3458_v38 }
 0xc9b   : > { %v3455_v42 = vpop.xlane.xlu0 %3454 }
 0xc9c   : > { %4814 = vmatprep.subr.mxu1 %v3455_v42  ;;  %v3449_v49 = vpop.xlane.xlu1 %3448 }
 0xc9d   : > { %4815 = vmatpush3.msra.mxu1 %v3455_v42 }
 0xc9f   : > { %v3452_v58 = vpop.xlane.xlu0 %3451 }
 0xca0   : > { %4816 = vmatprep.subr.mxu1 %v3452_v58 }
 0xca1   : > { %4817 = vmatpush3.msra.mxu1 %v3452_v58 }
 0xca2   : > { %4818 = vmatprep.subr.mxu1 %v3449_v49 }
 0xca3   : > { %4819 = vmatpush3.msra.mxu1 %v3449_v49 }
 0xca4   : > { %4821 = vmatmul.mubr.msk.f32.vlgmr.msra.gmra.mxu1 %vm986_vm0, %v5999_v11 }
 0xca5   : > { %4823 = vmatprep.mubr.msk.f32.mxu1 %vm986_vm0, %v6002_v29 }
 0xca7   : > { %v6077_v40 = vpop.permute.xlu0 %3593 }
 0xca8   : > { %4824 = vmatmul.mubr.msk.f32.gmra.mxu1 %vm986_vm0, %v6009_v48  ;;  %v983_v48 = vld [vmem:[%s6825_s4 + $0x8] sm:$0xff]  ;;  %s6833_s4 = smov 16  }
 0xca9   : > { %4289 = vmatprep.mubr.bf16.mxu1 %v6818_v44  ;;  %v1071_v31 = vadd.f32 %v5425_v39, %v983_v48  ;;  %v3589_v39 = vpop.permute.xlu1 %3588 }
 0xcab   : > { %v3633_v30 = vadd.f32 1.0, %v1071_v31  ;;  %v6079_v56 = vpop.permute.xlu0 %3621 }
 0xcad   : > { %v3617_v3 = vpop.permute.xlu1 %3616 }
 0xcaf   : > { %v3584_v53 = vpop.permute.xlu0 %3583 }
 0xcb1   : > { %v3579_v4 = vpop.permute.xlu1 %3578 }
 0xcb3   : > { %v6081_v60 = vpop.permute.xlu0 %3653 }
 0xcb5   : > { %v3649_v63 = vpop.permute.xlu1 %3648 }
 0xcb7   : > { %v3612_v2 = vpop.permute.xlu0 %3611 }
 0xcb9   : > { %v3607_v61 = vpop.permute.xlu1 %3606 }
 0xd64   : > { %v4822_v41 = vpop.f32.mrf.mxu1 }
 0xd65   : > { %v3531_v17 = vadd.f32 1e-05, %v4822_v41 }
 0xd66   : > { %v3525_v25 = vpop.f32.mrf.mxu1 }
 0xd67   : > { %5036 = vrsqrt.f32 %v3531_v17  ;;  %v3526_v7 = vadd.f32 1e-05, %v3525_v25 }
 0xd68   : > { %v4825_v16 = vpop.f32.mrf.mxu1 }
 0xd69   : > { %5038 = vrsqrt.f32 %v3526_v7  ;;  %v3541_v20 = vadd.f32 1e-05, %v4825_v16 }
 0xd6a   : > { %v3535_v12 = vpop.f32.mrf.mxu1 }
 0xd6b   : > { %v3536_v18 = vadd.f32 1e-05, %v3535_v12  ;;  %5040 = vrsqrt.f32 %v3541_v20 }
 0xd6d   : > { %5042 = vrsqrt.f32 %v3536_v18 }
 0xd74   : > { %v5037_v8 = vpop.eup %5036 }
 0xd75   : > { %3555 = vperm.xlu0 %4913, %v5037_v8  }
 0xd76   : > { %v5039_v11 = vpop.eup %5038 }
 0xd77   : > { %3550 = vperm.xlu1 %4912, %v5039_v11  }
 0xd78   : > { %v5041_v29 = vpop.eup %5040 }
 0xd7a   : > { %v5043_v21 = vpop.eup %5042 }
 0xd7b   : > { %3560 = vperm.xlu0 %4913, %v5043_v21   ;;  %3565 = vperm.xlu1 %4912, %v5041_v29  }
 0xd7f   : > { %3681 = vperm.xlu0 %4913, %v1186_v24   ;;  %3676 = vperm.xlu1 %4912, %v1181_v33  }
 0xd83   : > { %3643 = vperm.xlu0 %4913, %v3633_v30   ;;  %3638 = vperm.xlu1 %4912, %v3632_v10  }
 0xd87   : > { %3671 = vperm.xlu0 %4913, %v1176_v55   ;;  %3666 = vperm.xlu1 %4912, %v1171_v27  }
 0xdf0   : > { %v3556_v54 = vpop.permute.xlu0 %3555 }
 0xdf1   : > { %v3570_v1 = vmul.f32 %v3556_v54, %v6034_v43  ;;  %v3571_v50 = vmul.f32 %v3556_v54, %v6036_v59 }
 0xdf2   : > { %v3551_v62 = vpop.permute.xlu1 %3550 }
 0xdf3   : > { %v3568_v5 = vmul.f32 %v3551_v62, %v6026_v13  ;;  %v3569_v23 = vmul.f32 %v3551_v62, %v6028_v26  ;;  %v3598_v38 = vmul.f32 %v3584_v53, %v3570_v1  ;;  %v3599_v43 = vmul.f32 %v3584_v53, %v3571_v50 }
 0xdf5   : > { %v3596_v58 = vmul.f32 %v3579_v4, %v3568_v5  ;;  %v3597_v41 = vmul.f32 %v3579_v4, %v3569_v23  ;;  %v3626_v26 = vadd.f32 %v3612_v2, %v3598_v38  ;;  %v3627_v25 = vadd.f32 %v3612_v2, %v3599_v43 }
 0xdf6   : > { %v3561_v47 = vpop.permute.xlu0 %3560  ;;  %v3566_v15 = vpop.permute.xlu1 %3565 }
 0xdf7   : > { %v3572_v34 = vmul.f32 %v3561_v47, %v6018_v52  ;;  %v3573_v14 = vmul.f32 %v3561_v47, %v6020_v57  ;;  %v3575_v51 = vmul.f32 %v3566_v15, %v6016_v35  ;;  %v3624_v8 = vadd.f32 %v3607_v61, %v3596_v58 }
 0xdf8   : > { %v3625_v11 = vadd.f32 %v3607_v61, %v3597_v41  ;;  %v3574_v54 = vmul.f32 %v3566_v15, %v6014_v19 }
 0xdf9   : > { %v3600_v36 = vmul.f32 %v3589_v39, %v3572_v34  ;;  %v3601_v9 = vmul.f32 %v3589_v39, %v3573_v14  ;;  %v3603_v22 = vmul.f32 %v6077_v40, %v3575_v51 }
 0xdfa   : > { %v6091_v42 = vpop.permute.xlu0 %3681  ;;  %v3677_v59 = vpop.permute.xlu1 %3676  ;;  %v3602_v5 = vmul.f32 %v6077_v40, %v3574_v54 }
 0xdfb   : > { %v3631_v13 = vadd.f32 %v6079_v56, %v3603_v22  ;;  %v3628_v49 = vadd.f32 %v3617_v3, %v3600_v36  ;;  %v3629_v52 = vadd.f32 %v3617_v3, %v3601_v9 }
 0xdfc   : > { %v3630_v15 = vadd.f32 %v6079_v56, %v3602_v5 }
 0xdfd   : > { %v3663_v57 = vmul.f32 %v6081_v60, %v3631_v13  ;;  %v3660_v35 = vmul.f32 %v3649_v63, %v3628_v49  ;;  %v3661_v17 = vmul.f32 %v3649_v63, %v3629_v52 }
 0xdfe   : > { %v3644_v7 = vpop.permute.xlu0 %3643  ;;  %v3639_v16 = vpop.permute.xlu1 %3638  ;;  %v3662_v40 = vmul.f32 %v6081_v60, %v3630_v15 }
 0xdff   : > { %v6096_v20 = vadd.f32 %v6091_v42, %v3663_v57  ;;  %v6098_v12 = vadd.f32 %v3677_v59, %v3660_v35  ;;  %v6100_v18 = vadd.f32 %v3677_v59, %v3661_v17  ;;  %v3658_v29 = vmul.f32 %v3644_v7, %v3626_v26 }
 0xe00   : > { %v3659_v48 = vmul.f32 %v3644_v7, %v3627_v25  ;;  %v3656_v21 = vmul.f32 %v3639_v16, %v3624_v8  ;;  %v3657_v37 = vmul.f32 %v3639_v16, %v3625_v11  ;;  %v3690_v51 = vadd.f32 %v6091_v42, %v3662_v40  ;;  %v4655_v7 = vld [vmem:[%s5206_s17 + $0x3] ss:$8 sm:$0x3]  ;;  %v6844_v8 = vld [vmem:[#allocation27_spill] sm:$0xff] }
 0xe01   : > { %v4649_v60 = vmul.f32 -1.442695, %v6098_v12  ;;  %v4652_v23 = vmul.f32 -1.442695, %v6096_v20  ;;  %v4650_v36 = vmul.f32 -1.442695, %v6100_v18  ;;  %v6254_v11 = vrot.slane %v4655_v7, %v6844_v8 }
 0xe02   : > { %v3672_v28 = vpop.permute.xlu0 %3671  ;;  %v3667_v46 = vpop.permute.xlu1 %3666  ;;  %v4651_v56 = vmul.f32 -1.442695, %v3690_v51 }
 0xe03   : > { %v3686_v31 = vadd.f32 %v3672_v28, %v3658_v29  ;;  %v3687_v32 = vadd.f32 %v3672_v28, %v3659_v48  ;;  %v3684_v24 = vadd.f32 %v3667_v46, %v3656_v21  ;;  %v3685_v33 = vadd.f32 %v3667_v46, %v3657_v37 }
 0xe05   : > { %v4647_v30 = vmul.f32 -1.442695, %v3686_v31  ;;  %v4648_v10 = vmul.f32 -1.442695, %v3687_v32  ;;  %v4645_v6 = vmul.f32 -1.442695, %v3684_v24 }
 0xe06   : > { %v4646_v45 = vmul.f32 -1.442695, %v3685_v33 }
 0xe07   : > { %5044 = vpow2.f32 %v4647_v30 }
 0xe08   : > { %5046 = vpow2.f32 %v4648_v10 }
 0xe09   : > { %5048 = vpow2.f32 %v4645_v6 }
 0xe0a   : > { %5050 = vpow2.f32 %v4646_v45 }
 0xe14   : > { %v5045_v55 = vpop.eup %5044 }
 0xe15   : > { %v5047_v0 = vpop.eup %5046  ;;  %v3718_v27 = vadd.f32 1.0, %v5045_v55 }
 0xe16   : > { %v5049_v39 = vpop.eup %5048  ;;  %v3719_v3 = vadd.f32 1.0, %v5047_v0 }
 0xe17   : > { %v5051_v4 = vpop.eup %5050  ;;  %5052 = vrcp.f32 %v3718_v27  ;;  %v3716_v53 = vadd.f32 1.0, %v5049_v39 }
 0xe18   : > { %5054 = vrcp.f32 %v3719_v3  ;;  %v3717_v63 = vadd.f32 1.0, %v5051_v4 }
 0xe19   : > { %5056 = vrcp.f32 %v3716_v53 }
 0xe1a   : > { %5058 = vrcp.f32 %v3717_v63 }
 0xe1b   : > { %5060 = vpow2.f32 %v4651_v56 }
 0xe1c   : > { %5062 = vpow2.f32 %v4649_v60 }
 0xe1d   : > { %5064 = vpow2.f32 %v4652_v23 }
 0xe1e   : > { %5066 = vpow2.f32 %v4650_v36 }
 0xe24   : > { %v5053_v61 = vpop.eup %5052 }
 0xe25   : > { %v5055_v2 = vpop.eup %5054  ;;  %v6103_v62 = vmul.f32 %v5053_v61, %v3686_v31 }
 0xe26   : > { %v5057_v1 = vpop.eup %5056  ;;  %v6110_v34 = vmul.f32 %v5055_v2, %v3687_v32 }
 0xe27   : > { %6827 = vst [vmem:[#allocation24_spill] sm:$0xff] %v6103_v62  ;;  %v6105_v50 = vmul.f32 %v5057_v1, %v3684_v24  ;;  %3894 = vrot.lane.b32.xlu0 %v6103_v62, %s6829_s2  ;;  %v5059_v47 = vpop.eup %5058 }
 0xe28   : > { %6830 = vst [vmem:[#allocation29_spill] sm:$0xff] %v6110_v34  ;;  %v6116_v19 = vmul.f32 %v5059_v47, %v3685_v33  ;;  %v5061_v9 = vpop.eup %5060  ;;  %v4654_v33 = vld [vmem:[%s5206_s17 + $0x2] ss:$8 sm:$0x3] }
 0xe29   : > { %6828 = vst [vmem:[#allocation28_spill] sm:$0xff] %v6105_v50  ;;  %3892 = vrot.lane.b32.xlu1 %v6105_v50, %s6829_s2  ;;  %v5063_v22 = vpop.eup %5062  ;;  %v3722_v38 = vadd.f32 1.0, %v5061_v9  ;;  %v6291_v27 = vrot.slane %v4654_v33, %v6844_v8 }
 0xe2a   : > { %6831 = vst [vmem:[#allocation30_spill] sm:$0xff] %v6116_v19  ;;  %v5065_v43 = vpop.eup %5064  ;;  %v3720_v42 = vadd.f32 1.0, %v5063_v22 }
 0xe2b   : > { %3902 = vrot.lane.b32.xlu0 %v6110_v34, %s6829_s2  ;;  %v5067_v59 = vpop.eup %5066  ;;  %v3723_v58 = vadd.f32 1.0, %v5065_v43  ;;  %5068 = vrcp.f32 %v3722_v38 }
 0xe2c   : > { %v3721_v13 = vadd.f32 1.0, %v5067_v59  ;;  %5070 = vrcp.f32 %v3720_v42  ;;  %v4317_v59 = vld [vmem:[%s5331_s27 + $0x8] sm:$0xff] }
 0xe2d   : > { %3900 = vrot.lane.b32.xlu1 %v6116_v19, %s6829_s2  ;;  %5072 = vrcp.f32 %v3723_v58 }
 0xe2e   : > { %5074 = vrcp.f32 %v3721_v13 }
 0xe2f   : > { %3850 = vrot.lane.b32.xlu0 %v6103_v62, %s6832_s3 }
 0xe31   : > { %3848 = vrot.lane.b32.xlu1 %v6105_v50, %s6832_s3 }
 0xe33   : > { %3858 = vrot.lane.b32.xlu0 %v6110_v34, %s6832_s3 }
 0xe35   : > { %3856 = vrot.lane.b32.xlu1 %v6116_v19, %s6832_s3 }
 0xe37   : > { %3806 = vrot.lane.b32.xlu0 %v6103_v62, %s6833_s4 }
 0xe38   : > { %v5069_v49 = vpop.eup %5068 }
 0xe39   : > { %3804 = vrot.lane.b32.xlu1 %v6105_v50, %s6833_s4  ;;  %v5071_v52 = vpop.eup %5070  ;;  %v6178_v41 = vmul.f32 %v5069_v49, %v3690_v51  ;;  %v4653_v51 = vld [vmem:[%s5206_s17 + $0x1] ss:$8 sm:$0x3] }
 0xe3a   : > { %v5073_v57 = vpop.eup %5072  ;;  %v6183_v35 = vmul.f32 %v5071_v52, %v6098_v12  ;;  %v6843_v12 = vld [vmem:[#allocation26_spill] sm:$0xff]  ;;  %v6329_v43 = vrot.slane %v4653_v51, %v6844_v8  ;;  %v4316_v52 = vld [vmem:[%s5331_s27] sm:$0xff] }
 0xe3b   : > { %3814 = vrot.lane.b32.xlu0 %v6110_v34, %s6833_s4  ;;  %6839 = vst [vmem:[#allocation31_spill] sm:$0xff] %v6178_v41  ;;  %v5075_v17 = vpop.eup %5074  ;;  %v6188_v26 = vmul.f32 %v5073_v57, %v6096_v20  ;;  %v6288_v0 = vrot.slane %v4654_v33, %v6843_v12  ;;  %v6326_v38 = vrot.slane %v4653_v51, %v6843_v12  ;;  %v4658_v51 = vld [vmem:[%s5206_s17 + $0x7] ss:$8 sm:$0x3] }
 0xe3c   : > { %6840 = vst [vmem:[#allocation32_spill] sm:$0xff] %v6183_v35  ;;  %v6193_v25 = vmul.f32 %v5075_v17, %v6100_v18  ;;  %v6251_v18 = vrot.slane %v4655_v7, %v6843_v12 }
 0xe3d   : > { %3812 = vrot.lane.b32.xlu1 %v6116_v19, %s6833_s4  ;;  %6841 = vst [vmem:[#allocation33_spill] sm:$0xff] %v6188_v26 }
 0xe3e   : > { %6842 = vst [vmem:[#allocation34_spill] sm:$0xff] %v6193_v25 }
 0xe3f   : > { %3762 = vrot.lane.b32.xlu0 %v6103_v62, %s6834_s5 }
 0xe41   : > { %3760 = vrot.lane.b32.xlu1 %v6105_v50, %s6834_s5 }
 0xe43   : > { %3770 = vrot.lane.b32.xlu0 %v6110_v34, %s6834_s5 }
 0xe45   : > { %3768 = vrot.lane.b32.xlu1 %v6116_v19, %s6834_s5 }
 0xe47   : > { %4026 = vrot.lane.b32.xlu0 %v6103_v62, %s6835_s8 }
 0xe49   : > { %4024 = vrot.lane.b32.xlu1 %v6105_v50, %s6835_s8 }
 0xe4b   : > { %4034 = vrot.lane.b32.xlu0 %v6110_v34, %s6835_s8 }
 0xe4d   : > { %4032 = vrot.lane.b32.xlu1 %v6116_v19, %s6835_s8 }
 0xe4f   : > { %3982 = vrot.lane.b32.xlu0 %v6103_v62, %s6836_s9 }
 0xe51   : > { %3980 = vrot.lane.b32.xlu1 %v6105_v50, %s6836_s9 }
 0xe53   : > { %3990 = vrot.lane.b32.xlu0 %v6110_v34, %s6836_s9 }
 0xe55   : > { %3988 = vrot.lane.b32.xlu1 %v6116_v19, %s6836_s9 }
 0xe57   : > { %4070 = vrot.lane.b32.xlu0 %v6103_v62, %s6837_s13 }
 0xe59   : > { %4068 = vrot.lane.b32.xlu1 %v6105_v50, %s6837_s13 }
 0xe5b   : > { %4078 = vrot.lane.b32.xlu0 %v6110_v34, %s6837_s13 }
 0xe5d   : > { %4076 = vrot.lane.b32.xlu1 %v6116_v19, %s6837_s13 }
 0xe5f   : > { %3938 = vrot.lane.b32.xlu0 %v6103_v62, %s6838_s14 }
 0xe61   : > { %3936 = vrot.lane.b32.xlu1 %v6105_v50, %s6838_s14 }
 0xe63   : > { %3898 = vrot.lane.b32.xlu0 %v6178_v41, %s6829_s2 }
 0xe65   : > { %3896 = vrot.lane.b32.xlu1 %v6183_v35, %s6829_s2 }
 0xe67   : > { %3906 = vrot.lane.b32.xlu0 %v6188_v26, %s6829_s2 }
 0xe69   : > { %3904 = vrot.lane.b32.xlu1 %v6193_v25, %s6829_s2 }
 0xe6b   : > { %3854 = vrot.lane.b32.xlu0 %v6178_v41, %s6832_s3 }
 0xe6d   : > { %3852 = vrot.lane.b32.xlu1 %v6183_v35, %s6832_s3 }
 0xe6f   : > { %3862 = vrot.lane.b32.xlu0 %v6188_v26, %s6832_s3 }
 0xe71   : > { %3860 = vrot.lane.b32.xlu1 %v6193_v25, %s6832_s3 }
 0xe73   : > { %3810 = vrot.lane.b32.xlu0 %v6178_v41, %s6833_s4 }
 0xe75   : > { %3808 = vrot.lane.b32.xlu1 %v6183_v35, %s6833_s4 }
 0xe77   : > { %3818 = vrot.lane.b32.xlu0 %v6188_v26, %s6833_s4 }
 0xe79   : > { %3816 = vrot.lane.b32.xlu1 %v6193_v25, %s6833_s4 }
 0xe7b   : > { %3766 = vrot.lane.b32.xlu0 %v6178_v41, %s6834_s5 }
 0xe7d   : > { %3764 = vrot.lane.b32.xlu1 %v6183_v35, %s6834_s5 }
 0xe7f   : > { %3774 = vrot.lane.b32.xlu0 %v6188_v26, %s6834_s5 }
 0xe81   : > { %3772 = vrot.lane.b32.xlu1 %v6193_v25, %s6834_s5  ;;  %s6846_s5 = sld [smem:[#allocation21_spill]] }
 0xe83   : > { %4030 = vrot.lane.b32.xlu0 %v6178_v41, %s6835_s8 }
 0xe85   : > { %4028 = vrot.lane.b32.xlu1 %v6183_v35, %s6835_s8 }
 0xe87   : > { %4038 = vrot.lane.b32.xlu0 %v6188_v26, %s6835_s8  ;;  %v3757_v3 = vld [vmem:[%s6846_s5 + $0x8] sm:$0xff]  ;;  %v3756_v61 = vld [vmem:[%s6846_s5] sm:$0xff]  ;;  %v3759_v40 = vld [vmem:[%s6846_s5 + $0x18] sm:$0xff] }
 0xe88   : > { %v3758_v36 = vld [vmem:[%s6846_s5 + $0x10] sm:$0xff] }
 0xe89   : > { %4036 = vrot.lane.b32.xlu1 %v6193_v25, %s6835_s8 }
 0xe8b   : > { %3986 = vrot.lane.b32.xlu0 %v6178_v41, %s6836_s9 }
 0xe8d   : > { %3984 = vrot.lane.b32.xlu1 %v6183_v35, %s6836_s9 }
 0xe8f   : > { %3994 = vrot.lane.b32.xlu0 %v6188_v26, %s6836_s9 }
 0xe91   : > { %3992 = vrot.lane.b32.xlu1 %v6193_v25, %s6836_s9  ;;  %s6847_s9 = sld [smem:[#allocation20_spill]] }
 0xe93   : > { %4074 = vrot.lane.b32.xlu0 %v6178_v41, %s6837_s13 }
 0xe95   : > { %4072 = vrot.lane.b32.xlu1 %v6183_v35, %s6837_s13 }
 0xe97   : > { %4082 = vrot.lane.b32.xlu0 %v6188_v26, %s6837_s13  ;;  %v4938_v2 = vld [vmem:[%s6847_s9 + $0x4] ss:$12 sps:$4 sm:$0xff]   ;;  %v4935_v48 = vld [vmem:[%s6847_s9 + $0x20] ss:$12 sps:$4 sm:$0xff]  }
 0xe98   : > { %4236 = vmatprep.mubr.bf16.mxu0 %v4938_v2 }
 0xe99   : > { %4080 = vrot.lane.b32.xlu1 %v6193_v25, %s6837_s13  ;;  %v3895_v16 = vpop.permute.xlu0 %3894  ;;  %s923_s13 = sand.u32 1, %s5132_s10  }
 0xe9a   : > { %s4558_s3 = sshll.u32 %s923_s13, 6 }
 0xe9b   : > { %v3893_v20 = vpop.permute.xlu1 %3892  ;;  %3942 = vrot.lane.b32.xlu0 %v6178_v41, %s6838_s14  ;;  %s6668_s8 = scalar_lea.vmem [#allocation2], %s4558_s3  ;;  %s6687_s3 = scalar_lea.sflag [#allocation3], %s923_s13 }
 0xe9d   : > { %3940 = vrot.lane.b32.xlu1 %v6183_v35, %s6838_s14  ;;  %v3903_v29 = vpop.permute.xlu0 %3902 }
 0xe9e   : > { %v3909_v21 = vsel %vm1561_vm5, %v3895_v16, %v3903_v29  ;;  %v3913_v37 = vsel %vm1561_vm5, %v3903_v29, %v3895_v16  ;;  %v4319_v29 = vld [vmem:[%s5331_s27 + $0x18] sm:$0xff] }
 0xe9f   : > { %v6263_v28 = vmul.f32 %v6251_v18, %v3913_v37  ;;  %v6266_v46 = vmul.f32 %v6254_v11, %v3909_v21  ;;  %v3901_v31 = vpop.permute.xlu1 %3900  ;;  %3950 = vrot.lane.b32.xlu0 %v6188_v26, %s6838_s14  ;;  %v3784_v21 = vld [vmem:[%s5206_s17] ss:$8 sm:$0x3] }
 0xea0   : > { %v3908_v32 = vsel %vm1561_vm5, %v3893_v20, %v3901_v31  ;;  %v3912_v24 = vsel %vm1561_vm5, %v3901_v31, %v3893_v20 }
 0xea1   : > { %v6276_v30 = vmul.f32 %v6251_v18, %v3912_v24  ;;  %v6279_v10 = vmul.f32 %v6254_v11, %v3908_v32  ;;  %3948 = vrot.lane.b32.xlu1 %v6193_v25, %s6838_s14  ;;  %v3851_v6 = vpop.permute.xlu0 %3850  ;;  %v4318_v24 = vld [vmem:[%s5331_s27 + $0x10] sm:$0xff] }
 0xea3   : > { %v3849_v55 = vpop.permute.xlu1 %3848  ;;  %3946 = vrot.lane.b32.xlu0 %v6110_v34, %s6838_s14 }
 0xea5   : > { %3944 = vrot.lane.b32.xlu1 %v6116_v19, %s6838_s14  ;;  %v3859_v4 = vpop.permute.xlu0 %3858  ;;  %s4679_s14 = sshll.u32 %s5359_s0, 10  ;;  %s5181_s0 = smov [#allocation2]  }
 0xea6   : > { %v3865_v53 = vsel %vm1531_vm6, %v3851_v6, %v3859_v4  ;;  %v3869_v63 = vsel %vm1531_vm6, %v3859_v4, %v3851_v6  ;;  %s6679_s2 = scalar_lea.hbm %s5336_s6, %s4679_s14 }
 0xea7   : > { %v6305_v54 = vmul.f32 %v6288_v0, %v3869_v63  ;;  %v6308_v1 = vmul.f32 %v6291_v27, %v3865_v53  ;;  %v3857_v47 = vpop.permute.xlu1 %3856  ;;  %4155 = vperm.xlu0 %4913, %v3757_v3   ;;  %v6364_v3 = vrot.slane %v3784_v21, %v6844_v8 }
 0xea8   : > { %v3864_v5 = vsel %vm1531_vm6, %v3849_v55, %v3857_v47  ;;  %v3868_v15 = vsel %vm1531_vm6, %v3857_v47, %v3849_v55  ;;  %v6361_v55 = vrot.slane %v3784_v21, %v6843_v12 }
 0xea9   : > { %v6317_v56 = vmul.f32 %v6288_v0, %v3868_v15  ;;  %v6320_v60 = vmul.f32 %v6291_v27, %v3864_v5  ;;  %4150 = vperm.xlu1 %4912, %v3756_v61   ;;  %v3807_v23 = vpop.permute.xlu0 %3806 }
 0xeab   : > { %v3805_v22 = vpop.permute.xlu1 %3804  ;;  %4165 = vperm.xlu0 %4913, %v3759_v40  }
 0xead   : > { %4160 = vperm.xlu1 %4912, %v3758_v36   ;;  %v3815_v58 = vpop.permute.xlu0 %3814 }
 0xeae   : > { %v3821_v13 = vsel %vm1501_vm7, %v3807_v23, %v3815_v58  ;;  %v3825_v49 = vsel %vm1501_vm7, %v3815_v58, %v3807_v23 }
 0xeaf   : > { %v6340_v57 = vmul.f32 %v6326_v38, %v3825_v49  ;;  %v6343_v17 = vmul.f32 %v6329_v43, %v3821_v13  ;;  %v3813_v7 = vpop.permute.xlu1 %3812  ;;  %4327 = vperm.xlu0 %4913, %v4317_v59   ;;  %v6392_v13 = vrot.slane %v4658_v51, %v6843_v12  ;;  %v6395_v49 = vrot.slane %v4658_v51, %v6844_v8 }
 0xeb0   : > { %v3820_v16 = vsel %vm1501_vm7, %v3805_v22, %v3813_v7  ;;  %v3824_v20 = vsel %vm1501_vm7, %v3813_v7, %v3805_v22 }
 0xeb1   : > { %v6352_v37 = vmul.f32 %v6326_v38, %v3824_v20  ;;  %v6355_v31 = vmul.f32 %v6329_v43, %v3820_v16  ;;  %4322 = vperm.xlu1 %4912, %v4316_v52   ;;  %v3763_v32 = vpop.permute.xlu0 %3762 }
 0xeb3   : > { %v3761_v6 = vpop.permute.xlu1 %3760  ;;  %4337 = vperm.xlu0 %4913, %v4319_v29  }
 0xeb5   : > { %4332 = vperm.xlu1 %4912, %v4318_v24   ;;  %v3771_v53 = vpop.permute.xlu0 %3770 }
 0xeb6   : > { %v3777_v63 = vsel %vm1472_vm8, %v3763_v32, %v3771_v53  ;;  %v3781_v61 = vsel %vm1472_vm8, %v3771_v53, %v3763_v32  ;;  %v4657_v53 = vld [vmem:[%s5206_s17 + $0x6] ss:$8 sm:$0x3] }
 0xeb7   : > { %v6373_v2 = vmul.f32 %v6361_v55, %v3781_v61  ;;  %v6376_v47 = vmul.f32 %v6364_v3, %v3777_v63  ;;  %v3769_v5 = vpop.permute.xlu1 %3768  ;;  %v6423_v51 = vrot.slane %v4657_v53, %v6843_v12 }
 0xeb8   : > { %v3776_v15 = vsel %vm1472_vm8, %v3761_v6, %v3769_v5  ;;  %v3780_v40 = vsel %vm1472_vm8, %v3769_v5, %v3761_v6 }
 0xeb9   : > { %v6384_v23 = vmul.f32 %v6361_v55, %v3780_v40  ;;  %v6387_v36 = vmul.f32 %v6364_v3, %v3776_v15  ;;  %v4027_v22 = vpop.permute.xlu0 %4026  ;;  %v4659_v15 = vld [vmem:[%s5206_s17 + $0x10] ss:$8 sm:$0x3] }
 0xeba   : > { %v6457_v52 = vrot.slane %v4659_v15, %v6844_v8 }
 0xebb   : > { %v4025_v58 = vpop.permute.xlu1 %4024 }
 0xebd   : > { %v4035_v7 = vpop.permute.xlu0 %4034 }
 0xebe   : > { %v4041_v16 = vsel %vm1651_vm2, %v4027_v22, %v4035_v7  ;;  %v4045_v20 = vsel %vm1651_vm2, %v4035_v7, %v4027_v22  ;;  %v6426_v22 = vrot.slane %v4657_v53, %v6844_v8 }
 0xebf   : > { %v6404_v29 = vmul.f32 %v6392_v13, %v4041_v16  ;;  %v6407_v21 = vmul.f32 %v6395_v49, %v4045_v20  ;;  %v4033_v32 = vpop.permute.xlu1 %4032 }
 0xec0   : > { %v4040_v24 = vsel %vm1651_vm2, %v4025_v58, %v4033_v32  ;;  %v4044_v6 = vsel %vm1651_vm2, %v4033_v32, %v4025_v58 }
 0xec1   : > { %v6415_v63 = vmul.f32 %v6392_v13, %v4040_v24  ;;  %v6418_v61 = vmul.f32 %v6395_v49, %v4044_v6  ;;  %v3983_v5 = vpop.permute.xlu0 %3982 }
 0xec3   : > { %v3981_v40 = vpop.permute.xlu1 %3980 }
 0xec5   : > { %v3991_v7 = vpop.permute.xlu0 %3990 }
 0xec6   : > { %v3997_v16 = vsel %vm1621_vm3, %v3983_v5, %v3991_v7  ;;  %v4001_v20 = vsel %vm1621_vm3, %v3991_v7, %v3983_v5 }
 0xec7   : > { %v6435_v32 = vmul.f32 %v6423_v51, %v3997_v16  ;;  %v6438_v24 = vmul.f32 %v6426_v22, %v4001_v20  ;;  %v3989_v6 = vpop.permute.xlu1 %3988  ;;  %v6454_v20 = vrot.slane %v4659_v15, %v6843_v12 }
 0xec8   : > { %v3996_v53 = vsel %vm1621_vm3, %v3981_v40, %v3989_v6  ;;  %v4000_v14 = vsel %vm1621_vm3, %v3989_v6, %v3981_v40 }
 0xec9   : > { %v6446_v58 = vmul.f32 %v6423_v51, %v3996_v53  ;;  %v6449_v59 = vmul.f32 %v6426_v22, %v4000_v14  ;;  %v4071_v5 = vpop.permute.xlu0 %4070 }
 0xecb   : > { %v4069_v16 = vpop.permute.xlu1 %4068 }
 0xecd   : > { %v4079_v6 = vpop.permute.xlu0 %4078 }
 0xece   : > { %v4085_v53 = vsel %vm1681_vm9, %v4071_v5, %v4079_v6  ;;  %v4089_v14 = vsel %vm1681_vm9, %v4079_v6, %v4071_v5 }
 0xecf   : > { %v6466_v33 = vmul.f32 %v6454_v20, %v4085_v53  ;;  %v6469_v7 = vmul.f32 %v6457_v52, %v4089_v14  ;;  %v4077_v4 = vpop.permute.xlu1 %4076 }
 0xed0   : > { %v4084_v15 = vsel %vm1681_vm9, %v4069_v16, %v4077_v4  ;;  %v4088_v40 = vsel %vm1681_vm9, %v4077_v4, %v4069_v16 }
 0xed1   : > { %v6476_v9 = vmul.f32 %v6454_v20, %v4084_v15  ;;  %v6479_v42 = vmul.f32 %v6457_v52, %v4088_v40  ;;  %v6481_v5 = vpop.permute.xlu0 %3938 }
 0xed3   : > { %v6485_v53 = vpop.permute.xlu1 %3936 }
 0xed5   : > { %v3899_v45 = vpop.permute.xlu0 %3898 }
 0xed7   : > { %v3897_v39 = vpop.permute.xlu1 %3896 }
 0xed9   : > { %v3907_v50 = vpop.permute.xlu0 %3906 }
 0xeda   : > { %v3911_v4 = vsel %vm1561_vm5, %v3899_v45, %v3907_v50  ;;  %v3915_v16 = vsel %vm1561_vm5, %v3907_v50, %v3899_v45 }
 0xedb   : > { %v3934_v40 = vmul.f32 %v6251_v18, %v3915_v16  ;;  %v3935_v15 = vmul.f32 %v6254_v11, %v3911_v4  ;;  %v3905_v62 = vpop.permute.xlu1 %3904 }
 0xedc   : > { %v3910_v6 = vsel %vm1561_vm5, %v3897_v39, %v3905_v62  ;;  %v3914_v14 = vsel %vm1561_vm5, %v3905_v62, %v3897_v39  ;;  %v6849_v39 = vpack.c.bf16 %v6263_v28, %v6276_v30  ;;  %v6850_v28 = vpack.c.bf16 %v6308_v1, %v6320_v60 }
 0xedd   : > { %v3932_v34 = vmul.f32 %v6251_v18, %v3914_v14  ;;  %v3933_v19 = vmul.f32 %v6254_v11, %v3910_v6  ;;  %v3855_v41 = vpop.permute.xlu0 %3854  ;;  %v6848_v18 = vpack.c.bf16 %v6266_v46, %v6279_v10 }
 0xedf   : > { %v4126_v35 = vpack.c.bf16 %v3934_v40, %v3932_v34  ;;  %v3853_v26 = vpop.permute.xlu1 %3852  ;;  %v4127_v25 = vpack.c.bf16 %v3935_v15, %v3933_v19 }
 0xee1   : > { %4204 = vmatprep.subr.bf16.mxu0 %v4127_v25  ;;  %v3863_v50 = vpop.permute.xlu0 %3862 }
 0xee2   : > { %4205 = vmatpush1.bf16.msra.mxu0 %v4126_v35  ;;  %v3867_v45 = vsel %vm1531_vm6, %v3855_v41, %v3863_v50  ;;  %v3871_v4 = vsel %vm1531_vm6, %v3863_v50, %v3855_v41 }
 0xee3   : > { %v3890_v16 = vmul.f32 %v6288_v0, %v3871_v4  ;;  %v3891_v62 = vmul.f32 %v6291_v27, %v3867_v45  ;;  %4206 = vmatprep.subr.bf16.mxu0 %v6848_v18  ;;  %v3861_v34 = vpop.permute.xlu1 %3860 }
 0xee4   : > { %v3866_v19 = vsel %vm1531_vm6, %v3853_v26, %v3861_v34  ;;  %v3870_v35 = vsel %vm1531_vm6, %v3861_v34, %v3853_v26 }
 0xee5   : > { %v3888_v25 = vmul.f32 %v6288_v0, %v3870_v35  ;;  %v3889_v11 = vmul.f32 %v6291_v27, %v3866_v19  ;;  %v3811_v41 = vpop.permute.xlu0 %3810 }
 0xee6   : > { %4207 = vmatpush1.bf16.msra.mxu0 %v6849_v39 }
 0xee7   : > { %v4122_v6 = vpack.c.bf16 %v3890_v16, %v3888_v25  ;;  %v3809_v14 = vpop.permute.xlu1 %3808  ;;  %v4123_v46 = vpack.c.bf16 %v3891_v62, %v3889_v11  ;;  %v6851_v62 = vpack.c.bf16 %v6305_v54, %v6317_v56  ;;  %v6852_v54 = vpack.c.bf16 %v6343_v17, %v6355_v31 }
 0xee9   : > { %4208 = vmatprep.subr.bf16.mxu0 %v4123_v46  ;;  %v3819_v10 = vpop.permute.xlu0 %3818 }
 0xeea   : > { %4209 = vmatpush1.bf16.msra.mxu0 %v4122_v6  ;;  %v3823_v40 = vsel %vm1501_vm7, %v3811_v41, %v3819_v10  ;;  %v3827_v26 = vsel %vm1501_vm7, %v3819_v10, %v3811_v41 }
 0xeeb   : > { %v3846_v0 = vmul.f32 %v6326_v38, %v3827_v26  ;;  %v3847_v27 = vmul.f32 %v6329_v43, %v3823_v40  ;;  %4210 = vmatprep.subr.bf16.mxu0 %v6850_v28  ;;  %v3817_v30 = vpop.permute.xlu1 %3816 }
 0xeec   : > { %v3822_v15 = vsel %vm1501_vm7, %v3809_v14, %v3817_v30  ;;  %v3826_v50 = vsel %vm1501_vm7, %v3817_v30, %v3809_v14  ;;  %v6853_v14 = vpack.c.bf16 %v6340_v57, %v6352_v37  ;;  %v6854_v57 = vpack.c.bf16 %v6376_v47, %v6387_v36 }
 0xeed   : > { %v3844_v45 = vmul.f32 %v6326_v38, %v3826_v50  ;;  %v3845_v4 = vmul.f32 %v6329_v43, %v3822_v15  ;;  %v3767_v16 = vpop.permute.xlu0 %3766  ;;  %v6855_v50 = vpack.c.bf16 %v6373_v2, %v6384_v23  ;;  %v6856_v2 = vpack.c.bf16 %v6407_v21, %v6418_v61 }
 0xeee   : > { %4211 = vmatpush1.bf16.msra.mxu0 %v6851_v62 }
 0xeef   : > { %v4118_v18 = vpack.c.bf16 %v3846_v0, %v3844_v45  ;;  %v3765_v34 = vpop.permute.xlu1 %3764  ;;  %v4119_v1 = vpack.c.bf16 %v3847_v27, %v3845_v4 }
 0xef1   : > { %4212 = vmatprep.subr.bf16.mxu0 %v4119_v1  ;;  %v3775_v60 = vpop.permute.xlu0 %3774 }
 0xef2   : > { %4213 = vmatpush1.bf16.msra.mxu0 %v4118_v18  ;;  %v3779_v19 = vsel %vm1472_vm8, %v3767_v16, %v3775_v60  ;;  %v3783_v35 = vsel %vm1472_vm8, %v3775_v60, %v3767_v16 }
 0xef3   : > { %v3802_v38 = vmul.f32 %v6361_v55, %v3783_v35  ;;  %v3803_v43 = vmul.f32 %v6364_v3, %v3779_v19  ;;  %4214 = vmatprep.subr.bf16.mxu0 %v6852_v54  ;;  %v3773_v56 = vpop.permute.xlu1 %3772  ;;  %v6857_v35 = vpack.c.bf16 %v6404_v29, %v6415_v63  ;;  %v6858_v29 = vpack.c.bf16 %v6438_v24, %v6449_v59 }
 0xef4   : > { %v3778_v25 = vsel %vm1472_vm8, %v3765_v34, %v3773_v56  ;;  %v3782_v11 = vsel %vm1472_vm8, %v3773_v56, %v3765_v34 }
 0xef5   : > { %v3800_v41 = vmul.f32 %v6361_v55, %v3782_v11  ;;  %v3801_v39 = vmul.f32 %v6364_v3, %v3778_v25  ;;  %v4031_v6 = vpop.permute.xlu0 %4030 }
 0xef6   : > { %4215 = vmatpush1.bf16.msra.mxu0 %v6853_v14 }
 0xef7   : > { %v4114_v46 = vpack.c.bf16 %v3802_v38, %v3800_v41  ;;  %v4029_v10 = vpop.permute.xlu1 %4028  ;;  %v4115_v17 = vpack.c.bf16 %v3803_v43, %v3801_v39  ;;  %v4656_v41 = vld [vmem:[%s5206_s17 + $0x5] ss:$8 sm:$0x3] }
 0xef9   : > { %4216 = vmatprep.subr.bf16.mxu0 %v4115_v17  ;;  %v4039_v31 = vpop.permute.xlu0 %4038  ;;  %v3965_v17 = vrot.slane %v4656_v41, %v6843_v12 }
 0xefa   : > { %4217 = vmatpush1.bf16.msra.mxu0 %v4114_v46  ;;  %v4043_v40 = vsel %vm1651_vm2, %v4031_v6, %v4039_v31  ;;  %v4047_v26 = vsel %vm1651_vm2, %v4039_v31, %v4031_v6  ;;  %v6859_v46 = vpack.c.bf16 %v6435_v32, %v6446_v58  ;;  %v3969_v31 = vrot.slane %v4656_v41, %v6844_v8  ;;  %v5076_v8 = vld [vmem:[%s5394_s22 + $0x18] sm:$0xff] }
 0xefb   : > { %v4066_v55 = vmul.f32 %v6392_v13, %v4043_v40  ;;  %v4067_v3 = vmul.f32 %v6395_v49, %v4047_v26  ;;  %4218 = vmatprep.subr.bf16.mxu0 %v6854_v57  ;;  %v4037_v37 = vpop.permute.xlu1 %4036  ;;  %v6860_v26 = vpack.c.bf16 %v6469_v7, %v6479_v42  ;;  %v6861_v42 = vpack.c.bf16 %v6466_v33, %v6476_v9 }
 0xefc   : > { %v4042_v0 = vsel %vm1651_vm2, %v4029_v10, %v4037_v37  ;;  %v4046_v27 = vsel %vm1651_vm2, %v4037_v37, %v4029_v10 }
 0xefd   : > { %v4064_v28 = vmul.f32 %v6392_v13, %v4042_v0  ;;  %v4065_v30 = vmul.f32 %v6395_v49, %v4046_v27  ;;  %v3987_v15 = vpop.permute.xlu0 %3986 }
 0xefe   : > { %4219 = vmatpush1.bf16.msra.mxu0 %v6855_v50  ;;  %v5079_v50 = vld [vmem:[%s5394_s22] sm:$0xff] }
 0xeff   : > { %v4142_v45 = vpack.c.bf16 %v4066_v55, %v4064_v28  ;;  %v3985_v4 = vpop.permute.xlu1 %3984  ;;  %v4143_v47 = vpack.c.bf16 %v4067_v3, %v4065_v30  ;;  %v5077_v55 = vld [vmem:[%s5394_s22 + $0x8] sm:$0xff] }
 0xf00   : > { %v4315_v3 = vpack.c.bf16 %v5076_v8, %v5077_v55  ;;  %v4934_v30 = vld [vmem:[%s6847_s9 + $0x8] ss:$12 sps:$4 sm:$0xff]  }
 0xf01   : > { %4220 = vmatprep.subr.bf16.mxu0 %v4143_v47  ;;  %v3995_v36 = vpop.permute.xlu0 %3994 }
 0xf02   : > { %4221 = vmatpush2.bf16.msra.mxu0 %v4142_v45  ;;  %v3999_v16 = vsel %vm1621_vm3, %v3987_v15, %v3995_v36  ;;  %v4003_v62 = vsel %vm1621_vm3, %v3995_v36, %v3987_v15  ;;  %v5078_v15 = vld [vmem:[%s5394_s22 + $0x10] sm:$0xff]  ;;  %s4439_s22 = sshll.u32 %s6668_s8, 4  ;;  %s6682_s22 = int_to_ptr.vmem [resolvable:$true] %s4439_s22 }
 0xf03   : > { %v4022_v13 = vmul.f32 %v6423_v51, %v3999_v16  ;;  %v4023_v49 = vmul.f32 %v6426_v22, %v4003_v62  ;;  %4222 = vmatprep.subr.bf16.mxu0 %v6856_v2  ;;  %v3993_v23 = vpop.permute.xlu1 %3992  ;;  %v4314_v45 = vpack.c.bf16 %v5078_v15, %v5079_v50  ;;  %s5080_s5 = scalar_lea.vmem %s6682_s22, 1024 }
 0xf04   : > { %v3998_v18 = vsel %vm1621_vm3, %v3985_v4, %v3993_v23  ;;  %v4002_v34 = vsel %vm1621_vm3, %v3993_v23, %v3985_v4  ;;  %p5081_p11 = scmp.ne.s32.totalorder %s6682_s22, %s5080_s5 }
 0xf05   : > { %v4020_v1 = vmul.f32 %v6423_v51, %v3998_v18  ;;  %v4021_v60 = vmul.f32 %v6426_v22, %v4002_v34  ;;  %v4075_v19 = vpop.permute.xlu0 %4074  ;;  %v6862_v18 = vld [vmem:[#allocation34_spill] sm:$0xff]  ;;  %v6863_v34 = vld [vmem:[#allocation33_spill] sm:$0xff] }
 0xf06   : > { %4223 = vmatpush2.bf16.msra.mxu0 %v6857_v35  ;;  %v6866_v35 = vld [vmem:[#allocation30_spill] sm:$0xff]  ;;  %p5082_p12 = pnand %p5081_p11, %p5376_p5 }
 0xf07   : > { %v4138_v38 = vpack.c.bf16 %v4022_v13, %v4020_v1  ;;  %v4073_v21 = vpop.permute.xlu1 %4072  ;;  %v4139_v61 = vpack.c.bf16 %v4023_v49, %v4021_v60  ;;  %v4131_v1 = vpack.c.bf16 %v6863_v34, %v6862_v18  ;;  %v6865_v60 = vld [vmem:[#allocation31_spill] sm:$0xff] }
 0xf08   : > { %p5083_p13 = pneg %p5082_p12 }
 0xf09   : > { %4224 = vmatprep.subr.bf16.mxu0 %v4139_v61  ;;  %v4083_v43 = vpop.permute.xlu0 %4082  ;;  %v4936_v61 = vld [vmem:[%s6847_s9] ss:$12 sps:$4 sm:$0xff]  }
 0xf0a   : > { %4225 = vmatpush2.bf16.msra.mxu0 %v4138_v38  ;;  %v4087_v54 = vsel %vm1681_vm9, %v4075_v19, %v4083_v43  ;;  %v4091_v51 = vsel %vm1681_vm9, %v4083_v43, %v4075_v19  ;;  %v6867_v38 = vld [vmem:[#allocation29_spill] sm:$0xff]  ;;  %v4939_v43 = vld [vmem:[%s5326_s12] sm:$0xff]  }
 0xf0b   : > { %v4110_v22 = vmul.f32 %v6454_v20, %v4087_v54  ;;  %v4111_v56 = vmul.f32 %v6457_v52, %v4091_v51  ;;  %4226 = vmatprep.subr.bf16.mxu0 %v6858_v29  ;;  %v4081_v63 = vpop.permute.xlu1 %4080  ;;  %v6868_v54 = vld [vmem:[#allocation24_spill] sm:$0xff] }
 0xf0c   : > { %v4086_v25 = vsel %vm1681_vm9, %v4073_v21, %v4081_v63  ;;  %v4090_v11 = vsel %vm1681_vm9, %v4081_v63, %v4073_v21  ;;  %v4129_v21 = vpack.c.bf16 %v6867_v38, %v6866_v35  ;;  %v6869_v51 = vld [vmem:[#allocation28_spill] sm:$0xff]  ;;  %v4943_v63 = vld [vmem:[%s5326_s12 + $0x8] sm:$0xff]  }
 0xf0d   : > { %v4108_v39 = vmul.f32 %v6454_v20, %v4086_v25  ;;  %v4109_v6 = vmul.f32 %v6457_v52, %v4090_v11  ;;  %v3943_v14 = vpop.permute.xlu0 %3942  ;;  %v4942_v29 = vld [vmem:[%s6847_s9 + $0x18] ss:$12 sps:$4 sm:$0xff]  }
 0xf0e   : > { %4227 = vmatpush2.bf16.msra.mxu0 %v6859_v46 }
 0xf0f   : > { %v4146_v59 = vpack.c.bf16 %v4110_v22, %v4108_v39  ;;  %v3941_v24 = vpop.permute.xlu1 %3940  ;;  %v4147_v10 = vpack.c.bf16 %v4111_v56, %v4109_v6  ;;  %v6870_v22 = vpack.c.bf16 %v6868_v54, %v6869_v51  ;;  %v4940_v56 = vld [vmem:[%s6847_s9 + $0x1c] ss:$12 sps:$4 sm:$0xff]   ;;  %s5084_s9 = sshll.u32 %s5181_s0, 4  ;;  %s5085_s9 = int_to_ptr.vmem [resolvable:$false] %s5084_s9 }
 0xf10   : > { %s5086_s14 = scalar_lea.vmem %s5085_s9, 2048  ;;  %p5087_p0 = scmp.lt.s32.totalorder %s6682_s22, %s5085_s9 }
 0xf11   : > { %4269 = vmatprep.subr.bf16.mxu1 %v4147_v10  ;;  %v3951_v40 = vpop.permute.xlu0 %3950  ;;  %p5088_p1 = scmp.lt.s32.totalorder %s5086_s14, %s5080_s5 }
 0xf12   : > { %4270 = vmatpush1.bf16.msra.mxu1 %v4146_v59  ;;  %v3955_v52 = vsel %vm1591_vm4, %v3943_v14, %v3951_v40  ;;  %v3959_v58 = vsel %vm1591_vm4, %v3951_v40, %v3943_v14 }
 0xf13   : > { %v3978_v32 = vmul.f32 %v3965_v17, %v3955_v52  ;;  %v3979_v20 = vmul.f32 %v3969_v31, %v3959_v58  ;;  %4271 = vmatprep.subr.bf16.mxu1 %v6860_v26  ;;  %v3949_v12 = vpop.permute.xlu1 %3948  ;;  %p5089_p2 = por %p5088_p1, %p5087_p0 }
 0xf14   : > { %v3954_v57 = vsel %vm1591_vm4, %v3941_v24, %v3949_v12  ;;  %v3958_v37 = vsel %vm1591_vm4, %v3949_v12, %v3941_v24 }
 0xf15   : > { %v3976_v0 = vmul.f32 %v3965_v17, %v3954_v57  ;;  %v3977_v27 = vmul.f32 %v3969_v31, %v3958_v37  ;;  %v3947_v28 = vpop.permute.xlu0 %3946  ;;  %p5090_p3 = pnand %p5089_p2, %p5083_p13 }
 0xf16   : > { %4272 = vmatpush1.bf16.msra.mxu1 %v6861_v42  ;;  %v3953_v7 = vsel %vm1591_vm4, %v6481_v5, %v3947_v28  ;;  %v3957_v4 = vsel %vm1591_vm4, %v3947_v28, %v6481_v5 }
 0xf17   : > { %v4134_v47 = vpack.c.bf16 %v3978_v32, %v3976_v0  ;;  %v3974_v36 = vmul.f32 %v3965_v17, %v3953_v7  ;;  %v3975_v16 = vmul.f32 %v3969_v31, %v3957_v4  ;;  %v3945_v62 = vpop.permute.xlu1 %3944  ;;  %v4135_v13 = vpack.c.bf16 %v3979_v20, %v3977_v27  ;;  %4370 = vmatprep.subr.bf16.mxu1 %v4315_v3 }
 0xf18   : > { %v3952_v9 = vsel %vm1591_vm4, %v6485_v53, %v3945_v62  ;;  %v3956_v33 = vsel %vm1591_vm4, %v3945_v62, %v6485_v53  ;;  %v6864_v53 = vld [vmem:[#allocation32_spill] sm:$0xff] }
 0xf19   : > { %v3972_v49 = vmul.f32 %v3965_v17, %v3952_v9  ;;  %v3973_v2 = vmul.f32 %v3969_v31, %v3956_v33  ;;  %4228 = vmatprep.subr.bf16.mxu0 %v4135_v13  ;;  %4666 = vmatmul.mubr.msk.bf16.vlgmr.msra.gmra.mxu1 %vm986_vm0, %v4934_v30  ;;  %v4130_v19 = vpack.c.bf16 %v6865_v60, %v6864_v53 }
 0xf1a   : > { %4229 = vmatpush2.bf16.msra.mxu0 %v4134_v47  ;;  %4299 = vmatprep.mubr.bf16.mxu1 %v6818_v44 }
 0xf1b   : > { %v4132_v5 = vpack.c.bf16 %v3974_v36, %v3972_v49  ;;  %v4133_v23 = vpack.c.bf16 %v3975_v16, %v3973_v2  ;;  %4371 = vmatpush1.bf16.msra.mxu1 %v4314_v45 }
 0xf1d   : > { %4230 = vmatprep.subr.bf16.mxu0 %v4133_v23 }
 0xf1e   : > { %4231 = vmatpush2.bf16.msra.mxu0 %v4132_v5 }
 0xf1f   : > { %4232 = vmatprep.subr.bf16.mxu0 %v4131_v1 }
 0xf21   : > { %4667 = vmatmul.mubr.msk.bf16.gmra.mxu1 %vm986_vm0, %v4935_v48 }
 0xf22   : > { %4233 = vmatpush2.bf16.msra.mxu0 %v4130_v19  ;;  %4388 = vmatprep.mubr.bf16.mxu1 %v6818_v44  ;;  %v4156_v46 = vpop.permute.xlu0 %4155 }
 0xf23   : > { %4234 = vmatprep.subr.bf16.mxu0 %v4129_v21 }
 0xf24   : > { %v4151_v39 = vpop.permute.xlu1 %4150 }
 0xf26   : > { %4235 = vmatpush2.bf16.msra.mxu0 %v6870_v22 }
 0xf28   : > { %v4161_v24 = vpop.permute.xlu1 %4160 }
 0xf29   : > { %4237 = vmatmul.mubr.bf16.vlgmr.msra.gmra.mxu0 %v4936_v61  ;;  %4670 = vmatmul.mubr.msk.bf16.vlgmr.msra.gmra.mxu1 %vm1201_vm1, %v4939_v43 }
 0xf2a   : > { %4398 = vmatprep.mubr.bf16.mxu1 %v6818_v44  ;;  %4246 = vmatprep.mubr.bf16.mxu0 %v4940_v56  ;;  %v4166_v44 = vpop.permute.xlu0 %4165 }
 0xf2c   : > { %v4323_v52 = vpop.permute.xlu1 %4322 }
 0xf2e   : > { %v4328_v57 = vpop.permute.xlu0 %4327 }
 0xf30   : > { %v4333_v36 = vpop.permute.xlu1 %4332 }
 0xf31   : > { %4247 = vmatmul.mubr.bf16.gmra.mxu0 %v4942_v29  ;;  %4671 = vmatmul.mubr.msk.bf16.gmra.mxu1 %vm1201_vm1, %v4943_v63 }
 0xf32   : > { %v4338_v48 = vpop.permute.xlu0 %4337 }
 0xfd9   : > { %v4291_v25 = vpop.f32.mrf.mxu1 }
 0xfdb   : > { %v4293_v11 = vpop.f32.mrf.mxu1 }
 0xfdd   : > { %v4295_v41 = vpop.f32.mrf.mxu1 }
 0xfdf   : > { %v4297_v6 = vpop.f32.mrf.mxu1 }
 0xfe1   : > { %v4301_v14 = vpop.f32.mrf.mxu1 }
 0xfe3   : > { %v4303_v59 = vpop.f32.mrf.mxu1 }
 0xfe5   : > { %v4305_v10 = vpop.f32.mrf.mxu1 }
 0xfe7   : > { %v4307_v17 = vpop.f32.mrf.mxu1 }
 0xfe9   : > { %v4238_v31 = vpop.f32.mrf.mxu0  ;;  %v4390_v40 = vpop.f32.mrf.mxu1 }
 0xfea   : > { %v4239_v58 = vadd.f32 %v4238_v31, %v4151_v39  ;;  %v4391_v12 = vadd.f32 %v4390_v40, %v4323_v52 }
 0xfeb   : > { %v4240_v32 = vpop.f32.mrf.mxu0  ;;  %v4392_v20 = vpop.f32.mrf.mxu1 }
 0xfec   : > { %v4292_v26 = vadd.f32 %v4291_v25, %v4239_v58  ;;  %v4241_v8 = vadd.f32 %v4240_v32, %v4151_v39  ;;  %v4393_v27 = vadd.f32 %v4392_v20, %v4323_v52 }
 0xfed   : > { %v4242_v55 = vpop.f32.mrf.mxu0  ;;  %v4394_v3 = vpop.f32.mrf.mxu1 }
 0xfee   : > { %v4409_v37 = vadd.f32 %v4391_v12, %v4292_v26  ;;  %v4294_v0 = vadd.f32 %v4293_v11, %v4241_v8  ;;  %v4243_v28 = vadd.f32 %v4242_v55, %v4156_v46  ;;  %v4395_v42 = vadd.f32 %v4394_v3, %v4328_v57 }
 0xfef   : > { %v4244_v30 = vpop.f32.mrf.mxu0  ;;  %v4396_v15 = vpop.f32.mrf.mxu1 }
 0xff0   : > { %4417 = vst [vmem:[%s6668_s8] sm:$0xff] %v4409_v37  ;;  %v4410_v50 = vadd.f32 %v4393_v27, %v4294_v0  ;;  %v4296_v45 = vadd.f32 %v4295_v41, %v4243_v28  ;;  %v4245_v7 = vadd.f32 %v4244_v30, %v4156_v46  ;;  %v4397_v13 = vadd.f32 %v4396_v15, %v4328_v57 }
 0xff1   : > { %v4248_v4 = vpop.f32.mrf.mxu0  ;;  %v4400_v47 = vpop.f32.mrf.mxu1 }
 0xff2   : > { %4418 = vst [vmem:[%s6668_s8 + $0x8] sm:$0xff] %v4410_v50  ;;  %v4411_v16 = vadd.f32 %v4395_v42, %v4296_v45  ;;  %v4298_v62 = vadd.f32 %v4297_v6, %v4245_v7  ;;  %v4249_v9 = vadd.f32 %v4248_v4, %v4161_v24  ;;  %v4401_v23 = vadd.f32 %v4400_v47, %v4333_v36 }
 0xff3   : > { %v4250_v33 = vpop.f32.mrf.mxu0  ;;  %v4402_v49 = vpop.f32.mrf.mxu1 }
 0xff4   : > { %4419 = vst [vmem:[%s6668_s8 + $0x10] sm:$0xff] %v4411_v16  ;;  %v4412_v2 = vadd.f32 %v4397_v13, %v4298_v62  ;;  %v4302_v5 = vadd.f32 %v4301_v14, %v4249_v9  ;;  %v4251_v18 = vadd.f32 %v4250_v33, %v4161_v24  ;;  %v4403_v19 = vadd.f32 %v4402_v49, %v4333_v36 }
 0xff5   : > { %v4252_v34 = vpop.f32.mrf.mxu0  ;;  %v4404_v1 = vpop.f32.mrf.mxu1 }
 0xff6   : > { %4420 = vst [vmem:[%s6668_s8 + $0x18] sm:$0xff] %v4412_v2  ;;  %v4413_v53 = vadd.f32 %v4401_v23, %v4302_v5  ;;  %v4304_v60 = vadd.f32 %v4303_v59, %v4251_v18  ;;  %v4253_v35 = vadd.f32 %v4252_v34, %v4166_v44  ;;  %v4405_v54 = vadd.f32 %v4404_v1, %v4338_v48 }
 0xff7   : > { %v4254_v38 = vpop.f32.mrf.mxu0  ;;  %v4406_v21 = vpop.f32.mrf.mxu1 }
 0xff8   : > { %4421 = vst [vmem:[%s6668_s8 + $0x20] sm:$0xff] %v4413_v53  ;;  %v4414_v61 = vadd.f32 %v4403_v19, %v4304_v60  ;;  %v4306_v43 = vadd.f32 %v4305_v10, %v4253_v35  ;;  %v4255_v51 = vadd.f32 %v4254_v38, %v4166_v44  ;;  %v4407_v29 = vadd.f32 %v4406_v21, %v4338_v48 }
 0xffa   : > { %4422 = vst [vmem:[%s6668_s8 + $0x28] sm:$0xff] %v4414_v61  ;;  %v4415_v22 = vadd.f32 %v4405_v54, %v4306_v43  ;;  %v4308_v56 = vadd.f32 %v4307_v17, %v4255_v51 }
 0xffc   : > { %4423 = vst [vmem:[%s6668_s8 + $0x30] sm:$0xff] %v4415_v22  ;;  %v4416_v63 = vadd.f32 %v4407_v29, %v4308_v56 }
 0xffe   : > { %4424 = vst [vmem:[%s6668_s8 + $0x38] sm:$0xff] %v4416_v63 }
 0xfff   : > { %5093 = shalt.err (!%p5090_p3)
}
0x1000   : > { %s5094_s13 = scalar_lea.hbm %s6679_s2, 1024  ;;  %s5098_s8 = scalar_lea.hbm %s5336_s6, 2048 }
0x1001   : > { %p5095_p4 = scmp.ne.s32.totalorder %s6679_s2, %s5094_s13  ;;  %p5099_p9 = scmp.lt.s32.totalorder %s6679_s2, %s5336_s6 }
0x1002   : > { %p5100_p10 = scmp.lt.s32.totalorder %s5098_s8, %s5094_s13 }
0x1003   : > { %p5096_p7 = pnand %p5095_p4, %p5376_p5 }
0x1004   : > { %p5101_p11 = por %p5100_p10, %p5099_p9 }
0x1005   : > { %p5097_p8 = pneg %p5096_p7 }
0x1007   : > { %p5102_p12 = pnand %p5101_p11, %p5097_p8 }
0x1009   : > { %5105 = shalt.err (!%p5102_p12)
}
0x100a   : > { %s5182_s5 = smov 256  }
0x100b   : > { %4829 = dma.vmem_to_hbm [thread:$0]  (%p5376_p5), %s6682_s22, 1024, %s6679_s2, %s6687_s3, %s5182_s5, %s5182_s5, %s6833_s4  }
0x100c PF: > { %p4835_p13 = scmp.ge.s32.totalorder %s5140_s15, 2  ;;  %s4454_s9 = sand.u32 1, %s5128_s7  }
0x100d   : > { %s4455_s0 = scalar_lea.sflag [#allocation3], %s4454_s9 }
0x100e   : > { %p4832_p0 = pnand %p4835_p13, %p5380_p6 }
0x1010   : > { %p4833_p1 = pneg %p4832_p0 }
0x1012   : > { %5123 = dma.done.wait (%p4833_p1), %s4455_s0, 1024  }
0x1013   : > { %5125 = vsyncadd (%p4833_p1), %s4455_s0, 4294966272  ;;  %p69_p2 = scmp.ge.s32.totalorder %s5363_s18, 4   ;;  %s6871_s7 = smov %s5132_s10 }
0x1014   : > { %s6872_s10 = smov %s5136_s11  ;;  %s6873_s11 = smov %s5374_s26 }
0x1015   : > { %s6874_s15 = smov %s5363_s18  ;;  %71 = sbr.rel (!%p69_p2) target bundleno = 55 (0x37), region = 213 }
0x101a   :  { %4460 = vsyncpa [#allocation3], 1 }
0x101b   :  { %4462 = vsyncpa [#allocation3 + $0x1], 1 }

</bundles_post_ra>
